<compile_context>
chip_gen: v7x
topology: tpu7x:2x2x1
jax: 0.10.0
libtpu: 0.0.40
codegen_flags: <defaults>
</compile_context>

<pallas_src>
import jax
import jax.numpy as jnp
from jax.experimental import pallas as pl
from jax.experimental.pallas import tpu as pltpu

BN_EPS = 1e-5
NPAD = 8  # images per grid step (one sublane tile)

# fslab row layout (f32 [24, 128]):
#   rows 0:9   conv1 weights, lane-dense (lane = n*16 + c)
#   row  9     conv1 shift (folded bias+BN), lane-dense
#   row 10     conv2 shift (cols 0:32)
#   row 11     conv3 shift (cols 0:64)
#   row 12     fc1 bias   (cols 0:64)
#   row 13     fc2 bias   (col 0)
#   rows 16:24 0/1 replication matrix R[n, n*16+c] = 1
FS_S1, FS_S2, FS_S3, FS_B1, FS_B2, FS_REP = 9, 10, 11, 12, 13, 16


# ---------------------------------------------------------------------------
# Fused Pallas kernel (one batch tile of 8 images per grid step)
# ---------------------------------------------------------------------------
def _fused_kernel(x_ref, fs_ref, w2_ref, w3_ref, wfc_ref, o_ref,
                  xp1_ref, xp2_ref, xp3_ref):
    f32 = jnp.float32
    bf16 = jnp.bfloat16

    # ---- replicate the single input channel across lanes (exact 0/1 matmul) ----
    x2d = x_ref[0].reshape(256, 8)                         # rows=(h,w), lanes=n
    rep = fs_ref[FS_REP:FS_REP + 8, :]                     # [8,128] f32 0/1
    xrep = jnp.dot(x2d, rep, preferred_element_type=f32)   # [256,128], lane = n*16+c

    # ---- padded lane-dense conv1 input in VMEM scratch (borders zeroed) --------
    xp1_ref[0:1] = jnp.zeros((1, 18, 128), f32)
    xp1_ref[17:18] = jnp.zeros((1, 18, 128), f32)
    xp1_ref[1:17, 0:1] = jnp.zeros((16, 1, 128), f32)
    xp1_ref[1:17, 17:18] = jnp.zeros((16, 1, 128), f32)
    xp1_ref[1:17, 1:17, :] = xrep.reshape(16, 16, 128)

    # ---- conv1 (1 -> 16): 9 lane-dense VPU FMA taps, folded-BN shift, ReLU -----
    acc1 = xp1_ref[0:16, 0:16, :] * fs_ref[0]
    for t in range(1, 9):
        dy, dx = divmod(t, 3)
        acc1 = acc1 + xp1_ref[dy:dy + 16, dx:dx + 16, :] * fs_ref[t]
    a1 = jnp.maximum(acc1 + fs_ref[FS_S1], 0.0)            # [16,16,128]

    # ---- maxpool 2x2: pool h (leading), relayout lanes->(n,c), pool w (leading) -
    p1h = jnp.max(a1.reshape(8, 2, 16, 128), axis=1)       # [8,16,128]
    p1 = jnp.max(p1h.reshape(8, 8, 2, 8, 16), axis=2)      # [8,8,8,16] = (h,w,n,c)

    # ---- conv2 (16 -> 32): single im2col matmul, K = 9*16 = 144 ----------------
    xp2_ref[0:1] = jnp.zeros((1, 10, 8, 16), f32)
    xp2_ref[9:10] = jnp.zeros((1, 10, 8, 16), f32)
    xp2_ref[1:9, 0:1] = jnp.zeros((8, 1, 8, 16), f32)
    xp2_ref[1:9, 9:10] = jnp.zeros((8, 1, 8, 16), f32)
    xp2_ref[1:9, 1:9, :, :] = p1

    lhs2 = jnp.concatenate(
        [xp2_ref[dy:dy + 8, dx:dx + 8, :, :] for dy in range(3) for dx in range(3)],
        axis=-1).reshape(512, 144).astype(bf16)
    h2 = jnp.dot(lhs2, w2_ref[...], preferred_element_type=f32)       # [512,32]
    a2 = jnp.maximum(h2 + fs_ref[FS_S2][:32], 0.0).reshape(8, 8, 8, 32)
    p2 = jnp.max(a2.reshape(4, 2, 8, 8, 32), axis=1)
    p2 = jnp.max(p2.reshape(4, 4, 2, 8, 32), axis=2)                  # [4,4,8,32]

    # ---- conv3 (32 -> 64): single im2col matmul, K = 9*32 = 288 ----------------
    xp3_ref[0:1] = jnp.zeros((1, 6, 8, 32), f32)
    xp3_ref[5:6] = jnp.zeros((1, 6, 8, 32), f32)
    xp3_ref[1:5, 0:1] = jnp.zeros((4, 1, 8, 32), f32)
    xp3_ref[1:5, 5:6] = jnp.zeros((4, 1, 8, 32), f32)
    xp3_ref[1:5, 1:5, :, :] = p2

    lhs3 = jnp.concatenate(
        [xp3_ref[dy:dy + 4, dx:dx + 4, :, :] for dy in range(3) for dx in range(3)],
        axis=-1).reshape(128, 288).astype(bf16)
    h3 = jnp.dot(lhs3, w3_ref[...], preferred_element_type=f32)       # [128,64]
    a3 = jnp.maximum(h3 + fs_ref[FS_S3][:64], 0.0)                    # rows = (h,w,n)

    # ---- GAP + Linear(64,64)+ReLU + Linear(64,1) ; lane-dense [8,128] output ---
    feat = jnp.mean(a3.reshape(16, 8, 64), axis=0)                    # [8,64]
    h1 = jnp.dot(feat.astype(bf16), wfc_ref[0:64, :],
                 preferred_element_type=f32) + fs_ref[FS_B1]
    h1 = jnp.maximum(h1, 0.0)                                         # cols 64: == 0
    out = jnp.dot(h1[:, 0:64].astype(bf16), wfc_ref[64:128, :],
                  preferred_element_type=f32) + fs_ref[FS_B2]
    o_ref[...] = out                                                  # [8,128]


# ---------------------------------------------------------------------------
# One-time host-side parameter packing (eval-mode BN folded into conv weights)
# ---------------------------------------------------------------------------
def _fold_bn(w_oihw, b, gamma, beta, mean, var):
    cout, cin = w_oihw.shape[0], w_oihw.shape[1]
    s = gamma / jnp.sqrt(var + BN_EPS)                                   # [Cout]
    w = jnp.transpose(w_oihw, (2, 3, 1, 0)).reshape(9, cin, cout) * s    # [9,Cin,Cout]
    shift = ((b - mean) * s + beta).reshape(1, cout)
    return w.astype(jnp.float32), shift.astype(jnp.float32)


def pack_params(params):
    w1, s1 = _fold_bn(*params["block1"])       # [9,1,16],  [1,16]
    w2, s2 = _fold_bn(*params["block2"])       # [9,16,32], [1,32]
    w3, s3 = _fold_bn(*params["block3"])       # [9,32,64], [1,64]

    def row(v):
        v = v.reshape(1, -1).astype(jnp.float32)
        return jnp.pad(v, ((0, 0), (0, 128 - v.shape[1])))

    rep = (jnp.arange(128)[None, :] // 16 == jnp.arange(8)[:, None]).astype(jnp.float32)
    fslab = jnp.concatenate([
        jnp.tile(w1.reshape(9, 16), (1, 8)),   # rows 0:9  conv1 weights, lane-dense
        jnp.tile(s1.reshape(1, 16), (1, 8)),   # row 9     conv1 shift
        row(s2),                               # row 10
        row(s3),                               # row 11
        row(params["fc1_b"]),                  # row 12
        row(params["fc2_b"]),                  # row 13
        jnp.zeros((2, 128), jnp.float32),      # rows 14:16 padding
        rep,                                   # rows 16:24 replication matrix
    ], axis=0).astype(jnp.float32)             # [24,128]

    w2i = w2.reshape(144, 32).astype(jnp.bfloat16)     # im2col RHS, row = t*16 + cin
    w3i = w3.reshape(288, 64).astype(jnp.bfloat16)     # im2col RHS, row = t*32 + cin

    wfc = jnp.zeros((128, 128), jnp.float32)
    wfc = wfc.at[0:64, 0:64].set(params["fc1_w"].T)
    wfc = wfc.at[64:128, 0:1].set(params["fc2_w"].T)
    wfc = wfc.astype(jnp.bfloat16)

    return {"fslab": fslab, "w2i": w2i, "w3i": w3i, "wfc": wfc}


# ---------------------------------------------------------------------------
# Forward wrapper: only a tiny input reshape per call, then one pallas_call
# ---------------------------------------------------------------------------
def height_map_regressor_forward(x_nchw, packed):
    n = x_nchw.shape[0]
    ntiles = (n + NPAD - 1) // NPAD
    npad = ntiles * NPAD

    x = x_nchw.astype(jnp.float32).reshape(n, 16, 16)
    if npad != n:
        x = jnp.pad(x, ((0, npad - n), (0, 0), (0, 0)))
    x = x.reshape(ntiles, NPAD, 16, 16).transpose(0, 2, 3, 1)   # [ntiles,16,16,8]

    out = pl.pallas_call(
        _fused_kernel,
        out_shape=jax.ShapeDtypeStruct((npad, 128), jnp.float32),
        grid=(ntiles,),
        in_specs=[
            pl.BlockSpec((1, 16, 16, NPAD), lambda b: (b, 0, 0, 0)),
            pl.BlockSpec((24, 128), lambda b: (0, 0)),
            pl.BlockSpec((144, 32), lambda b: (0, 0)),
            pl.BlockSpec((288, 64), lambda b: (0, 0)),
            pl.BlockSpec((128, 128), lambda b: (0, 0)),
        ],
        out_specs=pl.BlockSpec((NPAD, 128), lambda b: (b, 0)),
        scratch_shapes=[
            pltpu.VMEM((18, 18, 128), jnp.float32),   # padded conv1 input (lane-dense)
            pltpu.VMEM((10, 10, 8, 16), jnp.float32), # padded conv2 input
            pltpu.VMEM((6, 6, 8, 32), jnp.float32),   # padded conv3 input
        ],
        compiler_params=pltpu.CompilerParams(
            dimension_semantics=("parallel",)),
    )(x, packed["fslab"], packed["w2i"], packed["w3i"], packed["wfc"])

    return out[:n, 0]   # .view(-1)


# ---------------------------------------------------------------------------
# Pure-JAX reference (f32) for a sanity check
# ---------------------------------------------------------------------------
def _reference_forward(x_nchw, params):
    def block(x, w, b, gamma, beta, mean, var):
        y = jax.lax.conv_general_dilated(
            x, w, window_strides=(1, 1), padding="SAME",
            dimension_numbers=("NCHW", "OIHW", "NCHW"))
        y = y + b[None, :, None, None]
        y = (y - mean[None, :, None, None]) / jnp.sqrt(var[None, :, None, None] + BN_EPS)
        y = gamma[None, :, None, None] * y + beta[None, :, None, None]
        return jnp.maximum(y, 0.0)

    def pool(x):
        nb, c, h, w = x.shape
        return x.reshape(nb, c, h // 2, 2, w // 2, 2).max(axis=(3, 5))

    x = x_nchw.astype(jnp.float32)
    x = pool(block(x, *params["block1"]))
    x = pool(block(x, *params["block2"]))
    x = block(x, *params["block3"])
    feat = x.mean(axis=(2, 3))
    h = jnp.maximum(feat @ params["fc1_w"].T + params["fc1_b"], 0.0)
    return (h @ params["fc2_w"].T + params["fc2_b"]).reshape(-1)


# ---------------------------------------------------------------------------
# Deterministic synthetic parameters (shapes match the nn.Module __init__)
# ---------------------------------------------------------------------------
def init_params(key):
    ks = iter(jax.random.split(key, 32))

    def conv_block(cin, cout):
        w = 0.1 * jax.random.normal(next(ks), (cout, cin, 3, 3), jnp.float32)
        b = 0.05 * jax.random.normal(next(ks), (cout,), jnp.float32)
        gamma = 1.0 + 0.1 * jax.random.normal(next(ks), (cout,), jnp.float32)
        beta = 0.05 * jax.random.normal(next(ks), (cout,), jnp.float32)
        mean = 0.05 * jax.random.normal(next(ks), (cout,), jnp.float32)
        var = 1.0 + 0.1 * jnp.abs(jax.random.normal(next(ks), (cout,), jnp.float32))
        return (w, b, gamma, beta, mean, var)

    return {
        "block1": conv_block(1, 16),
        "block2": conv_block(16, 32),
        "block3": conv_block(32, 64),
        "fc1_w": 0.1 * jax.random.normal(next(ks), (64, 64), jnp.float32),
        "fc1_b": 0.05 * jax.random.normal(next(ks), (64,), jnp.float32),
        "fc2_w": 0.1 * jax.random.normal(next(ks), (1, 64), jnp.float32),
        "fc2_b": 0.05 * jax.random.normal(next(ks), (1,), jnp.float32),
    }


if __name__ == "__main__":
    key = jax.random.PRNGKey(0)
    k_param, k_x = jax.random.split(key)
    params = init_params(k_param)

    packed = jax.tree_util.tree_map(jnp.asarray, pack_params(params))  # one-time packing
    fwd = jax.jit(height_map_regressor_forward)

    # batch=2 (single tile) and batch=10 (two grid steps, exercises batch tiling)
    for nb in (2, 10):
        x = jax.random.normal(jax.random.fold_in(k_x, nb), (nb, 1, 16, 16), jnp.float32)
        out = jax.block_until_ready(fwd(x, packed))
        assert out.shape == (nb,), out.shape
        assert bool(jnp.all(jnp.isfinite(out)))
        ref = _reference_forward(x, params)
        assert bool(jnp.allclose(out, ref, atol=5e-2, rtol=1e-1)), (nb, out, ref)

    print("KERNEL_OK")
</pallas_src>

<mosaic_0001>
module attributes {stable_mosaic.version = 11 : i64} {
  func.func @_fused_kernel(%arg0: i32, %arg1: memref<1x16x16x8xf32, #tpu.memory_space<vmem>>, %arg2: memref<24x128xf32, #tpu.memory_space<vmem>>, %arg3: memref<144x32xbf16, #tpu.memory_space<vmem>>, %arg4: memref<288x64xbf16, #tpu.memory_space<vmem>>, %arg5: memref<128x128xbf16, #tpu.memory_space<vmem>>, %arg6: memref<8x128xf32, #tpu.memory_space<vmem>>, %arg7: memref<18x18x128xf32, #tpu.memory_space<vmem>>, %arg8: memref<10x10x8x16xf32, #tpu.memory_space<vmem>>, %arg9: memref<6x6x8x32xf32, #tpu.memory_space<vmem>>) attributes {dimension_semantics = [#tpu.dimension_semantics<parallel>], iteration_bounds = array<i64: 1>, scalar_prefetch = 0 : i64, scratch_operands = 3 : i64, tpu.core_type = #tpu.core_type<tc>, window_params = [{transform_indices = @transform_0, window_bounds = array<i64: 1, 16, 16, 8>}, {pipeline_mode = #tpu.pipeline_mode<synchronous>, transform_indices = @transform_1, window_bounds = array<i64: 24, 128>}, {pipeline_mode = #tpu.pipeline_mode<synchronous>, transform_indices = @transform_2, window_bounds = array<i64: 144, 32>}, {pipeline_mode = #tpu.pipeline_mode<synchronous>, transform_indices = @transform_3, window_bounds = array<i64: 288, 64>}, {pipeline_mode = #tpu.pipeline_mode<synchronous>, transform_indices = @transform_4, window_bounds = array<i64: 128, 128>}, {transform_indices = @transform_5, window_bounds = array<i64: 8, 128>}]} {
    %c0 = arith.constant 0 : index
    %c0_0 = arith.constant 0 : index
    %c0_1 = arith.constant 0 : index
    %c0_2 = arith.constant 0 : index
    %0 = vector.load %arg1[%c0, %c0_0, %c0_1, %c0_2] : memref<1x16x16x8xf32, #tpu.memory_space<vmem>>, vector<1x16x16x8xf32>
    %1 = vector.shape_cast %0 : vector<1x16x16x8xf32> to vector<16x16x8xf32>
    %2 = vector.shape_cast %1 : vector<16x16x8xf32> to vector<256x8xf32>
    %c16 = arith.constant 16 : index
    %c0_3 = arith.constant 0 : index
    %3 = vector.load %arg2[%c16, %c0_3] : memref<24x128xf32, #tpu.memory_space<vmem>>, vector<8x128xf32>
    %cst = arith.constant dense<0.000000e+00> : vector<256x128xf32>
    %4 = tpu.matmul %2, %3, %cst {dimension_numbers = #tpu.dot_dimension_numbers<[1], [0], [0], [1], [0, 0, 1, 1], [], []>} : vector<256x8xf32>, vector<8x128xf32>, vector<256x128xf32> -> vector<256x128xf32>
    %cst_4 = arith.constant 0.000000e+00 : f32
    %5 = vector.broadcast %cst_4 : f32 to vector<1x18x128xf32>
    %c0_5 = arith.constant 0 : index
    %c0_6 = arith.constant 0 : index
    %c0_7 = arith.constant 0 : index
    %6 = vector.load %arg7[%c0_5, %c0_6, %c0_7] : memref<18x18x128xf32, #tpu.memory_space<vmem>>, vector<1x18x128xf32>
    tpu.vector_store %arg7[%c0_5, %c0_6, %c0_7], %5 {strides = array<i32>} : memref<18x18x128xf32, #tpu.memory_space<vmem>>, vector<1x18x128xf32>,
    %cst_8 = arith.constant 0.000000e+00 : f32
    %7 = vector.broadcast %cst_8 : f32 to vector<1x18x128xf32>
    %c17 = arith.constant 17 : index
    %c0_9 = arith.constant 0 : index
    %c0_10 = arith.constant 0 : index
    %8 = vector.load %arg7[%c17, %c0_9, %c0_10] : memref<18x18x128xf32, #tpu.memory_space<vmem>>, vector<1x18x128xf32>
    tpu.vector_store %arg7[%c17, %c0_9, %c0_10], %7 {strides = array<i32>} : memref<18x18x128xf32, #tpu.memory_space<vmem>>, vector<1x18x128xf32>,
    %cst_11 = arith.constant 0.000000e+00 : f32
    %9 = vector.broadcast %cst_11 : f32 to vector<16x1x128xf32>
    %c1 = arith.constant 1 : index
    %c0_12 = arith.constant 0 : index
    %c0_13 = arith.constant 0 : index
    %10 = vector.load %arg7[%c1, %c0_12, %c0_13] : memref<18x18x128xf32, #tpu.memory_space<vmem>>, vector<16x1x128xf32>
    tpu.vector_store %arg7[%c1, %c0_12, %c0_13], %9 {strides = array<i32>} : memref<18x18x128xf32, #tpu.memory_space<vmem>>, vector<16x1x128xf32>,
    %cst_14 = arith.constant 0.000000e+00 : f32
    %11 = vector.broadcast %cst_14 : f32 to vector<16x1x128xf32>
    %c1_15 = arith.constant 1 : index
    %c17_16 = arith.constant 17 : index
    %c0_17 = arith.constant 0 : index
    %12 = vector.load %arg7[%c1_15, %c17_16, %c0_17] : memref<18x18x128xf32, #tpu.memory_space<vmem>>, vector<16x1x128xf32>
    tpu.vector_store %arg7[%c1_15, %c17_16, %c0_17], %11 {strides = array<i32>} : memref<18x18x128xf32, #tpu.memory_space<vmem>>, vector<16x1x128xf32>,
    %13 = vector.shape_cast %4 : vector<256x128xf32> to vector<16x16x128xf32>
    %c1_18 = arith.constant 1 : index
    %c1_19 = arith.constant 1 : index
    %c0_20 = arith.constant 0 : index
    %14 = vector.load %arg7[%c1_18, %c1_19, %c0_20] : memref<18x18x128xf32, #tpu.memory_space<vmem>>, vector<16x16x128xf32>
    tpu.vector_store %arg7[%c1_18, %c1_19, %c0_20], %13 {strides = array<i32>} : memref<18x18x128xf32, #tpu.memory_space<vmem>>, vector<16x16x128xf32>,
    %c0_21 = arith.constant 0 : index
    %c0_22 = arith.constant 0 : index
    %c0_23 = arith.constant 0 : index
    %15 = vector.load %arg7[%c0_21, %c0_22, %c0_23] : memref<18x18x128xf32, #tpu.memory_space<vmem>>, vector<16x16x128xf32>
    %c0_24 = arith.constant 0 : index
    %c0_25 = arith.constant 0 : index
    %16 = vector.load %arg2[%c0_24, %c0_25] : memref<24x128xf32, #tpu.memory_space<vmem>>, vector<1x128xf32>
    %17 = vector.shape_cast %16 : vector<1x128xf32> to vector<128xf32>
    %18 = vector.shape_cast %17 : vector<128xf32> to vector<1x1x128xf32>
    %19 = vector.broadcast %18 : vector<1x1x128xf32> to vector<16x16x128xf32>
    %20 = arith.mulf %15, %19 : vector<16x16x128xf32>
    %c0_26 = arith.constant 0 : index
    %c1_27 = arith.constant 1 : index
    %c0_28 = arith.constant 0 : index
    %21 = vector.load %arg7[%c0_26, %c1_27, %c0_28] : memref<18x18x128xf32, #tpu.memory_space<vmem>>, vector<16x16x128xf32>
    %c1_29 = arith.constant 1 : index
    %c0_30 = arith.constant 0 : index
    %22 = vector.load %arg2[%c1_29, %c0_30] : memref<24x128xf32, #tpu.memory_space<vmem>>, vector<1x128xf32>
    %23 = vector.shape_cast %22 : vector<1x128xf32> to vector<128xf32>
    %24 = vector.shape_cast %23 : vector<128xf32> to vector<1x1x128xf32>
    %25 = vector.broadcast %24 : vector<1x1x128xf32> to vector<16x16x128xf32>
    %26 = arith.mulf %21, %25 : vector<16x16x128xf32>
    %27 = arith.addf %20, %26 : vector<16x16x128xf32>
    %c0_31 = arith.constant 0 : index
    %c2 = arith.constant 2 : index
    %c0_32 = arith.constant 0 : index
    %28 = vector.load %arg7[%c0_31, %c2, %c0_32] : memref<18x18x128xf32, #tpu.memory_space<vmem>>, vector<16x16x128xf32>
    %c2_33 = arith.constant 2 : index
    %c0_34 = arith.constant 0 : index
    %29 = vector.load %arg2[%c2_33, %c0_34] : memref<24x128xf32, #tpu.memory_space<vmem>>, vector<1x128xf32>
    %30 = vector.shape_cast %29 : vector<1x128xf32> to vector<128xf32>
    %31 = vector.shape_cast %30 : vector<128xf32> to vector<1x1x128xf32>
    %32 = vector.broadcast %31 : vector<1x1x128xf32> to vector<16x16x128xf32>
    %33 = arith.mulf %28, %32 : vector<16x16x128xf32>
    %34 = arith.addf %27, %33 : vector<16x16x128xf32>
    %c1_35 = arith.constant 1 : index
    %c0_36 = arith.constant 0 : index
    %c0_37 = arith.constant 0 : index
    %35 = vector.load %arg7[%c1_35, %c0_36, %c0_37] : memref<18x18x128xf32, #tpu.memory_space<vmem>>, vector<16x16x128xf32>
    %c3 = arith.constant 3 : index
    %c0_38 = arith.constant 0 : index
    %36 = vector.load %arg2[%c3, %c0_38] : memref<24x128xf32, #tpu.memory_space<vmem>>, vector<1x128xf32>
    %37 = vector.shape_cast %36 : vector<1x128xf32> to vector<128xf32>
    %38 = vector.shape_cast %37 : vector<128xf32> to vector<1x1x128xf32>
    %39 = vector.broadcast %38 : vector<1x1x128xf32> to vector<16x16x128xf32>
    %40 = arith.mulf %35, %39 : vector<16x16x128xf32>
    %41 = arith.addf %34, %40 : vector<16x16x128xf32>
    %c1_39 = arith.constant 1 : index
    %c1_40 = arith.constant 1 : index
    %c0_41 = arith.constant 0 : index
    %42 = vector.load %arg7[%c1_39, %c1_40, %c0_41] : memref<18x18x128xf32, #tpu.memory_space<vmem>>, vector<16x16x128xf32>
    %c4 = arith.constant 4 : index
    %c0_42 = arith.constant 0 : index
    %43 = vector.load %arg2[%c4, %c0_42] : memref<24x128xf32, #tpu.memory_space<vmem>>, vector<1x128xf32>
    %44 = vector.shape_cast %43 : vector<1x128xf32> to vector<128xf32>
    %45 = vector.shape_cast %44 : vector<128xf32> to vector<1x1x128xf32>
    %46 = vector.broadcast %45 : vector<1x1x128xf32> to vector<16x16x128xf32>
    %47 = arith.mulf %42, %46 : vector<16x16x128xf32>
    %48 = arith.addf %41, %47 : vector<16x16x128xf32>
    %c1_43 = arith.constant 1 : index
    %c2_44 = arith.constant 2 : index
    %c0_45 = arith.constant 0 : index
    %49 = vector.load %arg7[%c1_43, %c2_44, %c0_45] : memref<18x18x128xf32, #tpu.memory_space<vmem>>, vector<16x16x128xf32>
    %c5 = arith.constant 5 : index
    %c0_46 = arith.constant 0 : index
    %50 = vector.load %arg2[%c5, %c0_46] : memref<24x128xf32, #tpu.memory_space<vmem>>, vector<1x128xf32>
    %51 = vector.shape_cast %50 : vector<1x128xf32> to vector<128xf32>
    %52 = vector.shape_cast %51 : vector<128xf32> to vector<1x1x128xf32>
    %53 = vector.broadcast %52 : vector<1x1x128xf32> to vector<16x16x128xf32>
    %54 = arith.mulf %49, %53 : vector<16x16x128xf32>
    %55 = arith.addf %48, %54 : vector<16x16x128xf32>
    %c2_47 = arith.constant 2 : index
    %c0_48 = arith.constant 0 : index
    %c0_49 = arith.constant 0 : index
    %56 = vector.load %arg7[%c2_47, %c0_48, %c0_49] : memref<18x18x128xf32, #tpu.memory_space<vmem>>, vector<16x16x128xf32>
    %c6 = arith.constant 6 : index
    %c0_50 = arith.constant 0 : index
    %57 = vector.load %arg2[%c6, %c0_50] : memref<24x128xf32, #tpu.memory_space<vmem>>, vector<1x128xf32>
    %58 = vector.shape_cast %57 : vector<1x128xf32> to vector<128xf32>
    %59 = vector.shape_cast %58 : vector<128xf32> to vector<1x1x128xf32>
    %60 = vector.broadcast %59 : vector<1x1x128xf32> to vector<16x16x128xf32>
    %61 = arith.mulf %56, %60 : vector<16x16x128xf32>
    %62 = arith.addf %55, %61 : vector<16x16x128xf32>
    %c2_51 = arith.constant 2 : index
    %c1_52 = arith.constant 1 : index
    %c0_53 = arith.constant 0 : index
    %63 = vector.load %arg7[%c2_51, %c1_52, %c0_53] : memref<18x18x128xf32, #tpu.memory_space<vmem>>, vector<16x16x128xf32>
    %c7 = arith.constant 7 : index
    %c0_54 = arith.constant 0 : index
    %64 = vector.load %arg2[%c7, %c0_54] : memref<24x128xf32, #tpu.memory_space<vmem>>, vector<1x128xf32>
    %65 = vector.shape_cast %64 : vector<1x128xf32> to vector<128xf32>
    %66 = vector.shape_cast %65 : vector<128xf32> to vector<1x1x128xf32>
    %67 = vector.broadcast %66 : vector<1x1x128xf32> to vector<16x16x128xf32>
    %68 = arith.mulf %63, %67 : vector<16x16x128xf32>
    %69 = arith.addf %62, %68 : vector<16x16x128xf32>
    %c2_55 = arith.constant 2 : index
    %c2_56 = arith.constant 2 : index
    %c0_57 = arith.constant 0 : index
    %70 = vector.load %arg7[%c2_55, %c2_56, %c0_57] : memref<18x18x128xf32, #tpu.memory_space<vmem>>, vector<16x16x128xf32>
    %c8 = arith.constant 8 : index
    %c0_58 = arith.constant 0 : index
    %71 = vector.load %arg2[%c8, %c0_58] : memref<24x128xf32, #tpu.memory_space<vmem>>, vector<1x128xf32>
    %72 = vector.shape_cast %71 : vector<1x128xf32> to vector<128xf32>
    %73 = vector.shape_cast %72 : vector<128xf32> to vector<1x1x128xf32>
    %74 = vector.broadcast %73 : vector<1x1x128xf32> to vector<16x16x128xf32>
    %75 = arith.mulf %70, %74 : vector<16x16x128xf32>
    %76 = arith.addf %69, %75 : vector<16x16x128xf32>
    %c9 = arith.constant 9 : index
    %c0_59 = arith.constant 0 : index
    %77 = vector.load %arg2[%c9, %c0_59] : memref<24x128xf32, #tpu.memory_space<vmem>>, vector<1x128xf32>
    %78 = vector.shape_cast %77 : vector<1x128xf32> to vector<128xf32>
    %79 = vector.shape_cast %78 : vector<128xf32> to vector<1x1x128xf32>
    %80 = vector.broadcast %79 : vector<1x1x128xf32> to vector<16x16x128xf32>
    %81 = arith.addf %76, %80 : vector<16x16x128xf32>
    %cst_60 = arith.constant 0.000000e+00 : f32
    %82 = vector.broadcast %cst_60 : f32 to vector<16x16x128xf32>
    %83 = arith.maximumf %81, %82 : vector<16x16x128xf32>
    %84 = vector.shape_cast %83 : vector<16x16x128xf32> to vector<8x2x16x128xf32>
    %cst_61 = arith.constant dense<0xFF800000> : vector<8x16x128xf32>
    %85 = vector.multi_reduction <maximumf>, %84, %cst_61 [1] : vector<8x2x16x128xf32> to vector<8x16x128xf32>
    %86 = vector.shape_cast %85 : vector<8x16x128xf32> to vector<8x8x2x8x16xf32>
    %cst_62 = arith.constant dense<0xFF800000> : vector<8x8x8x16xf32>
    %87 = vector.multi_reduction <maximumf>, %86, %cst_62 [2] : vector<8x8x2x8x16xf32> to vector<8x8x8x16xf32>
    %cst_63 = arith.constant 0.000000e+00 : f32
    %88 = vector.broadcast %cst_63 : f32 to vector<1x10x8x16xf32>
    %c0_64 = arith.constant 0 : index
    %c0_65 = arith.constant 0 : index
    %c0_66 = arith.constant 0 : index
    %c0_67 = arith.constant 0 : index
    %89 = vector.load %arg8[%c0_64, %c0_65, %c0_66, %c0_67] : memref<10x10x8x16xf32, #tpu.memory_space<vmem>>, vector<1x10x8x16xf32>
    tpu.vector_store %arg8[%c0_64, %c0_65, %c0_66, %c0_67], %88 {strides = array<i32>} : memref<10x10x8x16xf32, #tpu.memory_space<vmem>>, vector<1x10x8x16xf32>,
    %cst_68 = arith.constant 0.000000e+00 : f32
    %90 = vector.broadcast %cst_68 : f32 to vector<1x10x8x16xf32>
    %c9_69 = arith.constant 9 : index
    %c0_70 = arith.constant 0 : index
    %c0_71 = arith.constant 0 : index
    %c0_72 = arith.constant 0 : index
    %91 = vector.load %arg8[%c9_69, %c0_70, %c0_71, %c0_72] : memref<10x10x8x16xf32, #tpu.memory_space<vmem>>, vector<1x10x8x16xf32>
    tpu.vector_store %arg8[%c9_69, %c0_70, %c0_71, %c0_72], %90 {strides = array<i32>} : memref<10x10x8x16xf32, #tpu.memory_space<vmem>>, vector<1x10x8x16xf32>,
    %cst_73 = arith.constant 0.000000e+00 : f32
    %92 = vector.broadcast %cst_73 : f32 to vector<8x1x8x16xf32>
    %c1_74 = arith.constant 1 : index
    %c0_75 = arith.constant 0 : index
    %c0_76 = arith.constant 0 : index
    %c0_77 = arith.constant 0 : index
    %93 = vector.load %arg8[%c1_74, %c0_75, %c0_76, %c0_77] : memref<10x10x8x16xf32, #tpu.memory_space<vmem>>, vector<8x1x8x16xf32>
    tpu.vector_store %arg8[%c1_74, %c0_75, %c0_76, %c0_77], %92 {strides = array<i32>} : memref<10x10x8x16xf32, #tpu.memory_space<vmem>>, vector<8x1x8x16xf32>,
    %cst_78 = arith.constant 0.000000e+00 : f32
    %94 = vector.broadcast %cst_78 : f32 to vector<8x1x8x16xf32>
    %c1_79 = arith.constant 1 : index
    %c9_80 = arith.constant 9 : index
    %c0_81 = arith.constant 0 : index
    %c0_82 = arith.constant 0 : index
    %95 = vector.load %arg8[%c1_79, %c9_80, %c0_81, %c0_82] : memref<10x10x8x16xf32, #tpu.memory_space<vmem>>, vector<8x1x8x16xf32>
    tpu.vector_store %arg8[%c1_79, %c9_80, %c0_81, %c0_82], %94 {strides = array<i32>} : memref<10x10x8x16xf32, #tpu.memory_space<vmem>>, vector<8x1x8x16xf32>,
    %c1_83 = arith.constant 1 : index
    %c1_84 = arith.constant 1 : index
    %c0_85 = arith.constant 0 : index
    %c0_86 = arith.constant 0 : index
    %96 = vector.load %arg8[%c1_83, %c1_84, %c0_85, %c0_86] : memref<10x10x8x16xf32, #tpu.memory_space<vmem>>, vector<8x8x8x16xf32>
    tpu.vector_store %arg8[%c1_83, %c1_84, %c0_85, %c0_86], %87 {strides = array<i32>} : memref<10x10x8x16xf32, #tpu.memory_space<vmem>>, vector<8x8x8x16xf32>,
    %c0_87 = arith.constant 0 : index
    %c0_88 = arith.constant 0 : index
    %c0_89 = arith.constant 0 : index
    %c0_90 = arith.constant 0 : index
    %97 = vector.load %arg8[%c0_87, %c0_88, %c0_89, %c0_90] : memref<10x10x8x16xf32, #tpu.memory_space<vmem>>, vector<8x8x8x16xf32>
    %c0_91 = arith.constant 0 : index
    %c1_92 = arith.constant 1 : index
    %c0_93 = arith.constant 0 : index
    %c0_94 = arith.constant 0 : index
    %98 = vector.load %arg8[%c0_91, %c1_92, %c0_93, %c0_94] : memref<10x10x8x16xf32, #tpu.memory_space<vmem>>, vector<8x8x8x16xf32>
    %c0_95 = arith.constant 0 : index
    %c2_96 = arith.constant 2 : index
    %c0_97 = arith.constant 0 : index
    %c0_98 = arith.constant 0 : index
    %99 = vector.load %arg8[%c0_95, %c2_96, %c0_97, %c0_98] : memref<10x10x8x16xf32, #tpu.memory_space<vmem>>, vector<8x8x8x16xf32>
    %c1_99 = arith.constant 1 : index
    %c0_100 = arith.constant 0 : index
    %c0_101 = arith.constant 0 : index
    %c0_102 = arith.constant 0 : index
    %100 = vector.load %arg8[%c1_99, %c0_100, %c0_101, %c0_102] : memref<10x10x8x16xf32, #tpu.memory_space<vmem>>, vector<8x8x8x16xf32>
    %c1_103 = arith.constant 1 : index
    %c1_104 = arith.constant 1 : index
    %c0_105 = arith.constant 0 : index
    %c0_106 = arith.constant 0 : index
    %101 = vector.load %arg8[%c1_103, %c1_104, %c0_105, %c0_106] : memref<10x10x8x16xf32, #tpu.memory_space<vmem>>, vector<8x8x8x16xf32>
    %c1_107 = arith.constant 1 : index
    %c2_108 = arith.constant 2 : index
    %c0_109 = arith.constant 0 : index
    %c0_110 = arith.constant 0 : index
    %102 = vector.load %arg8[%c1_107, %c2_108, %c0_109, %c0_110] : memref<10x10x8x16xf32, #tpu.memory_space<vmem>>, vector<8x8x8x16xf32>
    %c2_111 = arith.constant 2 : index
    %c0_112 = arith.constant 0 : index
    %c0_113 = arith.constant 0 : index
    %c0_114 = arith.constant 0 : index
    %103 = vector.load %arg8[%c2_111, %c0_112, %c0_113, %c0_114] : memref<10x10x8x16xf32, #tpu.memory_space<vmem>>, vector<8x8x8x16xf32>
    %c2_115 = arith.constant 2 : index
    %c1_116 = arith.constant 1 : index
    %c0_117 = arith.constant 0 : index
    %c0_118 = arith.constant 0 : index
    %104 = vector.load %arg8[%c2_115, %c1_116, %c0_117, %c0_118] : memref<10x10x8x16xf32, #tpu.memory_space<vmem>>, vector<8x8x8x16xf32>
    %c2_119 = arith.constant 2 : index
    %c2_120 = arith.constant 2 : index
    %c0_121 = arith.constant 0 : index
    %c0_122 = arith.constant 0 : index
    %105 = vector.load %arg8[%c2_119, %c2_120, %c0_121, %c0_122] : memref<10x10x8x16xf32, #tpu.memory_space<vmem>>, vector<8x8x8x16xf32>
    %106 = tpu.concatenate %97, %98, %99, %100, %101, %102, %103, %104, %105 in 3 : vector<8x8x8x16xf32>, vector<8x8x8x16xf32>, vector<8x8x8x16xf32>, vector<8x8x8x16xf32>, vector<8x8x8x16xf32>, vector<8x8x8x16xf32>, vector<8x8x8x16xf32>, vector<8x8x8x16xf32>, vector<8x8x8x16xf32> -> vector<8x8x8x144xf32>
    %107 = vector.shape_cast %106 : vector<8x8x8x144xf32> to vector<512x144xf32>
    %108 = arith.truncf %107 : vector<512x144xf32> to vector<512x144xbf16>
    %c0_123 = arith.constant 0 : index
    %c0_124 = arith.constant 0 : index
    %109 = vector.load %arg3[%c0_123, %c0_124] : memref<144x32xbf16, #tpu.memory_space<vmem>>, vector<144x32xbf16>
    %cst_125 = arith.constant dense<0.000000e+00> : vector<512x32xf32>
    %110 = tpu.matmul %108, %109, %cst_125 {dimension_numbers = #tpu.dot_dimension_numbers<[1], [0], [0], [1], [0, 0, 1, 1], [], []>} : vector<512x144xbf16>, vector<144x32xbf16>, vector<512x32xf32> -> vector<512x32xf32>
    %c10 = arith.constant 10 : index
    %c0_126 = arith.constant 0 : index
    %111 = vector.load %arg2[%c10, %c0_126] : memref<24x128xf32, #tpu.memory_space<vmem>>, vector<1x128xf32>
    %112 = vector.shape_cast %111 : vector<1x128xf32> to vector<128xf32>
    %113 = vector.extract_strided_slice %112 {offsets = [0], sizes = [32], strides = [1]} : vector<128xf32> to vector<32xf32>
    %114 = vector.shape_cast %113 : vector<32xf32> to vector<1x32xf32>
    %115 = vector.broadcast %114 : vector<1x32xf32> to vector<512x32xf32>
    %116 = arith.addf %110, %115 : vector<512x32xf32>
    %cst_127 = arith.constant 0.000000e+00 : f32
    %117 = vector.broadcast %cst_127 : f32 to vector<512x32xf32>
    %118 = arith.maximumf %116, %117 : vector<512x32xf32>
    %119 = vector.shape_cast %118 : vector<512x32xf32> to vector<8x8x8x32xf32>
    %120 = vector.shape_cast %119 : vector<8x8x8x32xf32> to vector<4x2x8x8x32xf32>
    %cst_128 = arith.constant dense<0xFF800000> : vector<4x8x8x32xf32>
    %121 = vector.multi_reduction <maximumf>, %120, %cst_128 [1] : vector<4x2x8x8x32xf32> to vector<4x8x8x32xf32>
    %122 = vector.shape_cast %121 : vector<4x8x8x32xf32> to vector<4x4x2x8x32xf32>
    %cst_129 = arith.constant dense<0xFF800000> : vector<4x4x8x32xf32>
    %123 = vector.multi_reduction <maximumf>, %122, %cst_129 [2] : vector<4x4x2x8x32xf32> to vector<4x4x8x32xf32>
    %cst_130 = arith.constant 0.000000e+00 : f32
    %124 = vector.broadcast %cst_130 : f32 to vector<1x6x8x32xf32>
    %c0_131 = arith.constant 0 : index
    %c0_132 = arith.constant 0 : index
    %c0_133 = arith.constant 0 : index
    %c0_134 = arith.constant 0 : index
    %125 = vector.load %arg9[%c0_131, %c0_132, %c0_133, %c0_134] : memref<6x6x8x32xf32, #tpu.memory_space<vmem>>, vector<1x6x8x32xf32>
    tpu.vector_store %arg9[%c0_131, %c0_132, %c0_133, %c0_134], %124 {strides = array<i32>} : memref<6x6x8x32xf32, #tpu.memory_space<vmem>>, vector<1x6x8x32xf32>,
    %cst_135 = arith.constant 0.000000e+00 : f32
    %126 = vector.broadcast %cst_135 : f32 to vector<1x6x8x32xf32>
    %c5_136 = arith.constant 5 : index
    %c0_137 = arith.constant 0 : index
    %c0_138 = arith.constant 0 : index
    %c0_139 = arith.constant 0 : index
    %127 = vector.load %arg9[%c5_136, %c0_137, %c0_138, %c0_139] : memref<6x6x8x32xf32, #tpu.memory_space<vmem>>, vector<1x6x8x32xf32>
    tpu.vector_store %arg9[%c5_136, %c0_137, %c0_138, %c0_139], %126 {strides = array<i32>} : memref<6x6x8x32xf32, #tpu.memory_space<vmem>>, vector<1x6x8x32xf32>,
    %cst_140 = arith.constant 0.000000e+00 : f32
    %128 = vector.broadcast %cst_140 : f32 to vector<4x1x8x32xf32>
    %c1_141 = arith.constant 1 : index
    %c0_142 = arith.constant 0 : index
    %c0_143 = arith.constant 0 : index
    %c0_144 = arith.constant 0 : index
    %129 = vector.load %arg9[%c1_141, %c0_142, %c0_143, %c0_144] : memref<6x6x8x32xf32, #tpu.memory_space<vmem>>, vector<4x1x8x32xf32>
    tpu.vector_store %arg9[%c1_141, %c0_142, %c0_143, %c0_144], %128 {strides = array<i32>} : memref<6x6x8x32xf32, #tpu.memory_space<vmem>>, vector<4x1x8x32xf32>,
    %cst_145 = arith.constant 0.000000e+00 : f32
    %130 = vector.broadcast %cst_145 : f32 to vector<4x1x8x32xf32>
    %c1_146 = arith.constant 1 : index
    %c5_147 = arith.constant 5 : index
    %c0_148 = arith.constant 0 : index
    %c0_149 = arith.constant 0 : index
    %131 = vector.load %arg9[%c1_146, %c5_147, %c0_148, %c0_149] : memref<6x6x8x32xf32, #tpu.memory_space<vmem>>, vector<4x1x8x32xf32>
    tpu.vector_store %arg9[%c1_146, %c5_147, %c0_148, %c0_149], %130 {strides = array<i32>} : memref<6x6x8x32xf32, #tpu.memory_space<vmem>>, vector<4x1x8x32xf32>,
    %c1_150 = arith.constant 1 : index
    %c1_151 = arith.constant 1 : index
    %c0_152 = arith.constant 0 : index
    %c0_153 = arith.constant 0 : index
    %132 = vector.load %arg9[%c1_150, %c1_151, %c0_152, %c0_153] : memref<6x6x8x32xf32, #tpu.memory_space<vmem>>, vector<4x4x8x32xf32>
    tpu.vector_store %arg9[%c1_150, %c1_151, %c0_152, %c0_153], %123 {strides = array<i32>} : memref<6x6x8x32xf32, #tpu.memory_space<vmem>>, vector<4x4x8x32xf32>,
    %c0_154 = arith.constant 0 : index
    %c0_155 = arith.constant 0 : index
    %c0_156 = arith.constant 0 : index
    %c0_157 = arith.constant 0 : index
    %133 = vector.load %arg9[%c0_154, %c0_155, %c0_156, %c0_157] : memref<6x6x8x32xf32, #tpu.memory_space<vmem>>, vector<4x4x8x32xf32>
    %c0_158 = arith.constant 0 : index
    %c1_159 = arith.constant 1 : index
    %c0_160 = arith.constant 0 : index
    %c0_161 = arith.constant 0 : index
    %134 = vector.load %arg9[%c0_158, %c1_159, %c0_160, %c0_161] : memref<6x6x8x32xf32, #tpu.memory_space<vmem>>, vector<4x4x8x32xf32>
    %c0_162 = arith.constant 0 : index
    %c2_163 = arith.constant 2 : index
    %c0_164 = arith.constant 0 : index
    %c0_165 = arith.constant 0 : index
    %135 = vector.load %arg9[%c0_162, %c2_163, %c0_164, %c0_165] : memref<6x6x8x32xf32, #tpu.memory_space<vmem>>, vector<4x4x8x32xf32>
    %c1_166 = arith.constant 1 : index
    %c0_167 = arith.constant 0 : index
    %c0_168 = arith.constant 0 : index
    %c0_169 = arith.constant 0 : index
    %136 = vector.load %arg9[%c1_166, %c0_167, %c0_168, %c0_169] : memref<6x6x8x32xf32, #tpu.memory_space<vmem>>, vector<4x4x8x32xf32>
    %c1_170 = arith.constant 1 : index
    %c1_171 = arith.constant 1 : index
    %c0_172 = arith.constant 0 : index
    %c0_173 = arith.constant 0 : index
    %137 = vector.load %arg9[%c1_170, %c1_171, %c0_172, %c0_173] : memref<6x6x8x32xf32, #tpu.memory_space<vmem>>, vector<4x4x8x32xf32>
    %c1_174 = arith.constant 1 : index
    %c2_175 = arith.constant 2 : index
    %c0_176 = arith.constant 0 : index
    %c0_177 = arith.constant 0 : index
    %138 = vector.load %arg9[%c1_174, %c2_175, %c0_176, %c0_177] : memref<6x6x8x32xf32, #tpu.memory_space<vmem>>, vector<4x4x8x32xf32>
    %c2_178 = arith.constant 2 : index
    %c0_179 = arith.constant 0 : index
    %c0_180 = arith.constant 0 : index
    %c0_181 = arith.constant 0 : index
    %139 = vector.load %arg9[%c2_178, %c0_179, %c0_180, %c0_181] : memref<6x6x8x32xf32, #tpu.memory_space<vmem>>, vector<4x4x8x32xf32>
    %c2_182 = arith.constant 2 : index
    %c1_183 = arith.constant 1 : index
    %c0_184 = arith.constant 0 : index
    %c0_185 = arith.constant 0 : index
    %140 = vector.load %arg9[%c2_182, %c1_183, %c0_184, %c0_185] : memref<6x6x8x32xf32, #tpu.memory_space<vmem>>, vector<4x4x8x32xf32>
    %c2_186 = arith.constant 2 : index
    %c2_187 = arith.constant 2 : index
    %c0_188 = arith.constant 0 : index
    %c0_189 = arith.constant 0 : index
    %141 = vector.load %arg9[%c2_186, %c2_187, %c0_188, %c0_189] : memref<6x6x8x32xf32, #tpu.memory_space<vmem>>, vector<4x4x8x32xf32>
    %142 = tpu.concatenate %133, %134, %135, %136, %137, %138, %139, %140, %141 in 3 : vector<4x4x8x32xf32>, vector<4x4x8x32xf32>, vector<4x4x8x32xf32>, vector<4x4x8x32xf32>, vector<4x4x8x32xf32>, vector<4x4x8x32xf32>, vector<4x4x8x32xf32>, vector<4x4x8x32xf32>, vector<4x4x8x32xf32> -> vector<4x4x8x288xf32>
    %143 = vector.shape_cast %142 : vector<4x4x8x288xf32> to vector<128x288xf32>
    %144 = arith.truncf %143 : vector<128x288xf32> to vector<128x288xbf16>
    %c0_190 = arith.constant 0 : index
    %c0_191 = arith.constant 0 : index
    %145 = vector.load %arg4[%c0_190, %c0_191] : memref<288x64xbf16, #tpu.memory_space<vmem>>, vector<288x64xbf16>
    %cst_192 = arith.constant dense<0.000000e+00> : vector<128x64xf32>
    %146 = tpu.matmul %144, %145, %cst_192 {dimension_numbers = #tpu.dot_dimension_numbers<[1], [0], [0], [1], [0, 0, 1, 1], [], []>} : vector<128x288xbf16>, vector<288x64xbf16>, vector<128x64xf32> -> vector<128x64xf32>
    %c11 = arith.constant 11 : index
    %c0_193 = arith.constant 0 : index
    %147 = vector.load %arg2[%c11, %c0_193] : memref<24x128xf32, #tpu.memory_space<vmem>>, vector<1x128xf32>
    %148 = vector.shape_cast %147 : vector<1x128xf32> to vector<128xf32>
    %149 = vector.extract_strided_slice %148 {offsets = [0], sizes = [64], strides = [1]} : vector<128xf32> to vector<64xf32>
    %150 = vector.shape_cast %149 : vector<64xf32> to vector<1x64xf32>
    %151 = vector.broadcast %150 : vector<1x64xf32> to vector<128x64xf32>
    %152 = arith.addf %146, %151 : vector<128x64xf32>
    %cst_194 = arith.constant 0.000000e+00 : f32
    %153 = vector.broadcast %cst_194 : f32 to vector<128x64xf32>
    %154 = arith.maximumf %152, %153 : vector<128x64xf32>
    %155 = vector.shape_cast %154 : vector<128x64xf32> to vector<16x8x64xf32>
    %cst_195 = arith.constant dense<0.000000e+00> : vector<8x64xf32>
    %156 = vector.multi_reduction <add>, %155, %cst_195 [0] : vector<16x8x64xf32> to vector<8x64xf32>
    %cst_196 = arith.constant 1.600000e+01 : f32
    %157 = vector.broadcast %cst_196 : f32 to vector<8x64xf32>
    %158 = arith.divf %156, %157 : vector<8x64xf32>
    %159 = arith.truncf %158 : vector<8x64xf32> to vector<8x64xbf16>
    %c0_197 = arith.constant 0 : index
    %c0_198 = arith.constant 0 : index
    %160 = vector.load %arg5[%c0_197, %c0_198] : memref<128x128xbf16, #tpu.memory_space<vmem>>, vector<64x128xbf16>
    %cst_199 = arith.constant dense<0.000000e+00> : vector<8x128xf32>
    %161 = tpu.matmul %159, %160, %cst_199 {dimension_numbers = #tpu.dot_dimension_numbers<[1], [0], [0], [1], [0, 0, 1, 1], [], []>} : vector<8x64xbf16>, vector<64x128xbf16>, vector<8x128xf32> -> vector<8x128xf32>
    %c12 = arith.constant 12 : index
    %c0_200 = arith.constant 0 : index
    %162 = vector.load %arg2[%c12, %c0_200] : memref<24x128xf32, #tpu.memory_space<vmem>>, vector<1x128xf32>
    %163 = vector.shape_cast %162 : vector<1x128xf32> to vector<128xf32>
    %164 = vector.shape_cast %163 : vector<128xf32> to vector<1x128xf32>
    %165 = vector.broadcast %164 : vector<1x128xf32> to vector<8x128xf32>
    %166 = arith.addf %161, %165 : vector<8x128xf32>
    %cst_201 = arith.constant 0.000000e+00 : f32
    %167 = vector.broadcast %cst_201 : f32 to vector<8x128xf32>
    %168 = arith.maximumf %166, %167 : vector<8x128xf32>
    %169 = vector.extract_strided_slice %168 {offsets = [0, 0], sizes = [8, 64], strides = [1, 1]} : vector<8x128xf32> to vector<8x64xf32>
    %170 = arith.truncf %169 : vector<8x64xf32> to vector<8x64xbf16>
    %c64 = arith.constant 64 : index
    %c0_202 = arith.constant 0 : index
    %171 = vector.load %arg5[%c64, %c0_202] : memref<128x128xbf16, #tpu.memory_space<vmem>>, vector<64x128xbf16>
    %cst_203 = arith.constant dense<0.000000e+00> : vector<8x128xf32>
    %172 = tpu.matmul %170, %171, %cst_203 {dimension_numbers = #tpu.dot_dimension_numbers<[1], [0], [0], [1], [0, 0, 1, 1], [], []>} : vector<8x64xbf16>, vector<64x128xbf16>, vector<8x128xf32> -> vector<8x128xf32>
    %c13 = arith.constant 13 : index
    %c0_204 = arith.constant 0 : index
    %173 = vector.load %arg2[%c13, %c0_204] : memref<24x128xf32, #tpu.memory_space<vmem>>, vector<1x128xf32>
    %174 = vector.shape_cast %173 : vector<1x128xf32> to vector<128xf32>
    %175 = vector.shape_cast %174 : vector<128xf32> to vector<1x128xf32>
    %176 = vector.broadcast %175 : vector<1x128xf32> to vector<8x128xf32>
    %177 = arith.addf %172, %176 : vector<8x128xf32>
    %c0_205 = arith.constant 0 : index
    %c0_206 = arith.constant 0 : index
    %178 = vector.load %arg6[%c0_205, %c0_206] : memref<8x128xf32, #tpu.memory_space<vmem>>, vector<8x128xf32>
    tpu.vector_store %arg6[%c0_205, %c0_206], %177 {strides = array<i32>} : memref<8x128xf32, #tpu.memory_space<vmem>>, vector<8x128xf32>,
    return
  }
  func.func @transform_0(%arg0: i32) -> (i32, i32, i32, i32) {
    %c0_i32 = arith.constant 0 : i32
    %c0_i32_0 = arith.constant 0 : i32
    %c0_i32_1 = arith.constant 0 : i32
    %c0_i32_2 = arith.constant 0 : i32
    return %arg0, %c0_i32, %c0_i32_0, %c0_i32_1 : i32, i32, i32, i32
  }
  func.func @transform_1(%arg0: i32) -> (i32, i32) {
    %c0_i32 = arith.constant 0 : i32
    %c0_i32_0 = arith.constant 0 : i32
    %c0_i32_1 = arith.constant 0 : i32
    return %c0_i32, %c0_i32_0 : i32, i32
  }
  func.func @transform_2(%arg0: i32) -> (i32, i32) {
    %c0_i32 = arith.constant 0 : i32
    %c0_i32_0 = arith.constant 0 : i32
    %c0_i32_1 = arith.constant 0 : i32
    return %c0_i32, %c0_i32_0 : i32, i32
  }
  func.func @transform_3(%arg0: i32) -> (i32, i32) {
    %c0_i32 = arith.constant 0 : i32
    %c0_i32_0 = arith.constant 0 : i32
    %c0_i32_1 = arith.constant 0 : i32
    return %c0_i32, %c0_i32_0 : i32, i32
  }
  func.func @transform_4(%arg0: i32) -> (i32, i32) {
    %c0_i32 = arith.constant 0 : i32
    %c0_i32_0 = arith.constant 0 : i32
    %c0_i32_1 = arith.constant 0 : i32
    return %c0_i32, %c0_i32_0 : i32, i32
  }
  func.func @transform_5(%arg0: i32) -> (i32, i32) {
    %c0_i32 = arith.constant 0 : i32
    %c0_i32_0 = arith.constant 0 : i32
    return %arg0, %c0_i32 : i32, i32
  }
}

</mosaic_0001>

<bundles_post_ra>
// kernel: height_map_regressor_forward.1
= control target key start
LH: loop header
LB: loop body
LE: loop exit
PB: predicated region body
PF: predicated region fallthrough
CT: control target
= control target key end

     0   :  { %vm54_vm0 = vcmask 64512   ;;  %v10859_v33 = vmov 0.0   ;;  %s10860_s28 = smov 80   ;;  %s10861_s29 = smov 112   ;;  %vm3939_vm1 = vcmask 130048   ;;  %vm6674_vm2 = vcmask 261120   ;;  %s15738_s1 = inlined_call_operand.vmem [shape: f32[24,128], index: 1, kind: input, shape index: {}]   ;;  %s15739_s0 = inlined_call_operand.vmem [shape: f32[1,16,16,8], index: 0, kind: input, shape index: {}]   ;;  %s15740_s2 = inlined_call_operand.vmem [shape: bf16[144,32], index: 2, kind: input, shape index: {}]   ;;  %s15741_s3 = inlined_call_operand.vmem [shape: bf16[288,64], index: 3, kind: input, shape index: {}]   ;;  %s15742_s4 = inlined_call_operand.vmem [shape: bf16[128,128], index: 4, kind: input, shape index: {}]   ;;  %s15743_s5 = inlined_call_operand.vmem [shape: f32[8,128], index: 5, kind: output, shape index: {}]  }
   0x1   :  { %v53_v0 = vld [vmem:[%s15738_s1 + $0x10] sm:$0xff]  ;;  %v21_v1 = vld [vmem:[%s15739_s0] sm:$0xff]  ;;  %v22_v2 = vld [vmem:[%s15739_s0 + $0x8] sm:$0xff]  ;;  %400 = vst [vmem:[#allocation2 + $0x29] sm:$0x1] %v10859_v33  ;;  %s10862_s30 = smov 64  }
   0x2   :  { %9316 = vmatprep.subr.mxu0 %v53_v0  ;;  %v23_v3 = vld [vmem:[%s15739_s0 + $0x10] sm:$0xff]  ;;  %9318 = vmatprep.mubr.msk.f32.mxu0 %vm54_vm0, %v21_v1  ;;  %v24_v4 = vld [vmem:[%s15739_s0 + $0x18] sm:$0xff]  ;;  %v25_v5 = vld [vmem:[%s15739_s0 + $0x20] sm:$0xff]  ;;  %376 = vst [vmem:[#allocation2] sm:$0xff] %v10859_v33  ;;  %s10863_s6 = smov 96   ;;  %s10864_s7 = smov 32  }
   0x3   :  { %9317 = vmatpush3.msra.mxu0 %v53_v0  ;;  %v26_v6 = vld [vmem:[%s15739_s0 + $0x28] sm:$0xff]  ;;  %v27_v7 = vld [vmem:[%s15739_s0 + $0x30] sm:$0xff]  ;;  %v28_v8 = vld [vmem:[%s15739_s0 + $0x38] sm:$0xff]  ;;  %377 = vst [vmem:[#allocation2 + $0x8] sm:$0xff] %v10859_v33  ;;  %s10865_s8 = smov 48   ;;  %vm6739_vm3 = vcmask 392192  }
   0x4   :  { %9319 = vmatmul.mubr.msk.f32.vlgmr.msra.gmra.mrb[0].mxu0 %vm54_vm0, %v22_v2  ;;  %v29_v9 = vld [vmem:[%s15739_s0 + $0x40] sm:$0xff]  ;;  %v30_v10 = vld [vmem:[%s15739_s0 + $0x48] sm:$0xff]  ;;  %v31_v11 = vld [vmem:[%s15739_s0 + $0x50] sm:$0xff]  ;;  %378 = vst [vmem:[#allocation2 + $0x10] sm:$0x3] %v10859_v33  ;;  %vm6804_vm4 = vcmask 523264  }
   0x5   :  { %9321 = vmatprep.mubr.msk.f32.mxu0 %vm54_vm0, %v23_v3  ;;  %v32_v12 = vld [vmem:[%s15739_s0 + $0x58] sm:$0xff]  ;;  %v33_v13 = vld [vmem:[%s15739_s0 + $0x60] sm:$0xff]  ;;  %v34_v14 = vld [vmem:[%s15739_s0 + $0x68] sm:$0xff]  ;;  %380 = vst [vmem:[#allocation2 + $0x198] sm:$0xff] %v10859_v33  ;;  %vm6869_vm5 = vcmask 654336   ;;  %vm6934_vm6 = vcmask 785408  }
   0x6   :  { %v35_v15 = vld [vmem:[%s15739_s0 + $0x70] sm:$0xff]  ;;  %v36_v16 = vld [vmem:[%s15739_s0 + $0x78] sm:$0xff]  ;;  %v37_v17 = vld [vmem:[%s15739_s0 + $0x80] sm:$0xff]  ;;  %381 = vst [vmem:[#allocation2 + $0x1a0] sm:$0xff] %v10859_v33  ;;  %vm6999_vm7 = vcmask 916480   ;;  %vm10870_vm8 = vmmov 0  }
   0x7   :  { %v38_v18 = vld [vmem:[%s15739_s0 + $0x88] sm:$0xff]  ;;  %v39_v19 = vld [vmem:[%s15739_s0 + $0x90] sm:$0xff]  ;;  %v40_v20 = vld [vmem:[%s15739_s0 + $0x98] sm:$0xff]  ;;  %382 = vst [vmem:[#allocation2 + $0x1a8] sm:$0x3] %v10859_v33 }
   0x8   :  { %9322 = vmatmul.mubr.msk.f32.gmra.mrb[2].mxu0 %vm54_vm0, %v24_v4  ;;  %v41_v21 = vld [vmem:[%s15739_s0 + $0xa0] sm:$0xff]  ;;  %v42_v22 = vld [vmem:[%s15739_s0 + $0xa8] sm:$0xff]  ;;  %v43_v23 = vld [vmem:[%s15739_s0 + $0xb0] sm:$0xff]  ;;  %384 = vst [vmem:[#allocation2 + $0x18] sm:$0x1] %v10859_v33 }
   0x9   :  { %9324 = vmatprep.mubr.msk.f32.mxu0 %vm54_vm0, %v25_v5  ;;  %v44_v24 = vld [vmem:[%s15739_s0 + $0xb8] sm:$0xff]  ;;  %v45_v25 = vld [vmem:[%s15739_s0 + $0xc0] sm:$0xff]  ;;  %v46_v26 = vld [vmem:[%s15739_s0 + $0xc8] sm:$0xff]  ;;  %385 = vst [vmem:[#allocation2 + $0x30] sm:$0x1] %v10859_v33 }
   0xa   :  { %v47_v27 = vld [vmem:[%s15739_s0 + $0xd0] sm:$0xff]  ;;  %v48_v28 = vld [vmem:[%s15739_s0 + $0xd8] sm:$0xff]  ;;  %v49_v29 = vld [vmem:[%s15739_s0 + $0xe0] sm:$0xff]  ;;  %386 = vst [vmem:[#allocation2 + $0x48] sm:$0x1] %v10859_v33 }
   0xb   :  { %v50_v30 = vld [vmem:[%s15739_s0 + $0xe8] sm:$0xff]  ;;  %v51_v31 = vld [vmem:[%s15739_s0 + $0xf0] sm:$0xff]  ;;  %v52_v32 = vld [vmem:[%s15739_s0 + $0xf8] sm:$0xff]  ;;  %387 = vst [vmem:[#allocation2 + $0x60] sm:$0x1] %v10859_v33  ;;  %s10866_s0 = smov 16  }
   0xc   :  { %9325 = vmatmul.mubr.msk.f32.gmra.mrb[4].mxu0 %vm54_vm0, %v26_v6  ;;  %388 = vst [vmem:[#allocation2 + $0x78] sm:$0x1] %v10859_v33  ;;  %389 = vst [vmem:[#allocation2 + $0x90] sm:$0x1] %v10859_v33  ;;  %v11035_v34 = vld [vmem:[%s15738_s1] ss:$0 sm:$0xff] }
   0xd   :  { %9327 = vmatprep.mubr.msk.f32.mxu0 %vm54_vm0, %v27_v7  ;;  %390 = vst [vmem:[#allocation2 + $0xa8] sm:$0x1] %v10859_v33  ;;  %391 = vst [vmem:[#allocation2 + $0xc0] sm:$0x1] %v10859_v33  ;;  %v517_v35 = vld [vmem:[#allocation2 + $0x1] sm:$0xff]  ;;  %v518_v36 = vld [vmem:[#allocation2 + $0x9] sm:$0xff] }
   0xe   :  { %392 = vst [vmem:[#allocation2 + $0xd8] sm:$0x1] %v10859_v33  ;;  %393 = vst [vmem:[#allocation2 + $0xf0] sm:$0x1] %v10859_v33  ;;  %v11040_v37 = vld [vmem:[%s15738_s1 + $0x1] ss:$0 sm:$0xff] }
   0xf   :  { %394 = vst [vmem:[#allocation2 + $0x108] sm:$0x1] %v10859_v33  ;;  %395 = vst [vmem:[#allocation2 + $0x120] sm:$0x1] %v10859_v33  ;;  %v485_v39 = vmul.f32 0.0, %v11035_v34  ;;  %v554_v40 = vmul.f32 %v11040_v37, %v517_v35  ;;  %v555_v41 = vmul.f32 %v11040_v37, %v518_v36  ;;  %v618_v44 = vld [vmem:[#allocation2 + $0x2] sm:$0xff] }
  0x10   :  { %9328 = vmatmul.mubr.msk.f32.gmra.mrb[6].mxu0 %vm54_vm0, %v28_v8  ;;  %396 = vst [vmem:[#allocation2 + $0x138] sm:$0x1] %v10859_v33  ;;  %397 = vst [vmem:[#allocation2 + $0x150] sm:$0x1] %v10859_v33  ;;  %v11048_v42 = vld [vmem:[%s15738_s1 + $0x2] ss:$0 sm:$0xff] }
  0x11   :  { %9330 = vmatprep.mubr.msk.f32.mxu0 %vm54_vm0, %v29_v9  ;;  %398 = vst [vmem:[#allocation2 + $0x168] sm:$0x1] %v10859_v33  ;;  %399 = vst [vmem:[#allocation2 + $0x180] sm:$0x1] %v10859_v33  ;;  %v619_v45 = vld [vmem:[#allocation2 + $0xa] sm:$0xff]  ;;  %v586_v46 = vadd.f32 %v554_v40, %v485_v39  ;;  %v587_v47 = vadd.f32 %v555_v41, %v485_v39  ;;  %v655_v48 = vmul.f32 %v11048_v42, %v618_v44 }
  0x12   :  { %401 = vst [vmem:[#allocation2 + $0x41] sm:$0x1] %v10859_v33  ;;  %402 = vst [vmem:[#allocation2 + $0x59] sm:$0x1] %v10859_v33  ;;  %v656_v49 = vmul.f32 %v11048_v42, %v619_v45  ;;  %v11055_v51 = vld [vmem:[%s15738_s1 + $0x4] ss:$0 sm:$0xff] }
  0x13   :  { %403 = vst [vmem:[#allocation2 + $0x71] sm:$0x1] %v10859_v33  ;;  %404 = vst [vmem:[#allocation2 + $0x89] sm:$0x1] %v10859_v33  ;;  %v11060_v53 = vld [vmem:[%s15738_s1 + $0x3] ss:$0 sm:$0xff]  ;;  %v687_v57 = vadd.f32 %v655_v48, %v586_v46 }
  0x14   :  { %9331 = vmatmul.mubr.msk.f32.gmra.mrb[8].mxu0 %vm54_vm0, %v30_v10  ;;  %405 = vst [vmem:[#allocation2 + $0xa1] sm:$0x1] %v10859_v33  ;;  %406 = vst [vmem:[#allocation2 + $0xb9] sm:$0x1] %v10859_v33  ;;  %v11065_v54 = vld [vmem:[%s15738_s1 + $0x7] ss:$0 sm:$0xff]  ;;  %v688_v58 = vadd.f32 %v656_v49, %v587_v47 }
  0x15   :  { %9333 = vmatprep.mubr.msk.f32.mxu0 %vm54_vm0, %v31_v11  ;;  %407 = vst [vmem:[#allocation2 + $0xd1] sm:$0x1] %v10859_v33  ;;  %408 = vst [vmem:[#allocation2 + $0xe9] sm:$0x1] %v10859_v33  ;;  %v11080_v4 = vld [vmem:[%s15738_s1 + $0x5] ss:$0 sm:$0xff] }
  0x16   :  { %409 = vst [vmem:[#allocation2 + $0x101] sm:$0x1] %v10859_v33  ;;  %410 = vst [vmem:[#allocation2 + $0x119] sm:$0x1] %v10859_v33 }
  0x17   :  { %411 = vst [vmem:[#allocation2 + $0x131] sm:$0x1] %v10859_v33  ;;  %412 = vst [vmem:[#allocation2 + $0x149] sm:$0x1] %v10859_v33 }
  0x18   :  { %9334 = vmatmul.mubr.msk.f32.gmra.mrb[10].mxu0 %vm54_vm0, %v32_v12  ;;  %413 = vst [vmem:[#allocation2 + $0x161] sm:$0x1] %v10859_v33  ;;  %414 = vst [vmem:[#allocation2 + $0x179] sm:$0x1] %v10859_v33 }
  0x19   :  { %9336 = vmatprep.mubr.msk.f32.mxu0 %vm54_vm0, %v33_v13  ;;  %415 = vst [vmem:[#allocation2 + $0x191] sm:$0x1] %v10859_v33 }
  0x1c   :  { %9337 = vmatmul.mubr.msk.f32.gmra.mrb[12].mxu0 %vm54_vm0, %v34_v14 }
  0x1d   :  { %9339 = vmatprep.mubr.msk.f32.mxu0 %vm54_vm0, %v35_v15 }
  0x20   :  { %9340 = vmatmul.mubr.msk.f32.gmra.mrb[14].mxu0 %vm54_vm0, %v36_v16 }
  0x21   :  { %9342 = vmatprep.mubr.msk.f32.mxu0 %vm54_vm0, %v37_v17 }
  0x24   :  { %9343 = vmatmul.mubr.msk.f32.gmra.mrb[16].mxu0 %vm54_vm0, %v38_v18 }
  0x25   :  { %9345 = vmatprep.mubr.msk.f32.mxu0 %vm54_vm0, %v39_v19 }
  0x28   :  { %9346 = vmatmul.mubr.msk.f32.gmra.mrb[18].mxu0 %vm54_vm0, %v40_v20 }
  0x29   :  { %9348 = vmatprep.mubr.msk.f32.mxu0 %vm54_vm0, %v41_v21 }
  0x2c   :  { %9349 = vmatmul.mubr.msk.f32.gmra.mrb[20].mxu0 %vm54_vm0, %v42_v22 }
  0x2d   :  { %9351 = vmatprep.mubr.msk.f32.mxu0 %vm54_vm0, %v43_v23 }
  0x30   :  { %9352 = vmatmul.mubr.msk.f32.gmra.mrb[22].mxu0 %vm54_vm0, %v44_v24 }
  0x31   :  { %9354 = vmatprep.mubr.msk.f32.mxu0 %vm54_vm0, %v45_v25 }
  0x34   :  { %9355 = vmatmul.mubr.msk.f32.gmra.mrb[24].mxu0 %vm54_vm0, %v46_v26  ;;  %v11105_v26 = vld [vmem:[%s15738_s1 + $0x6] ss:$0 sm:$0xff] }
  0x35   :  { %9357 = vmatprep.mubr.msk.f32.mxu0 %vm54_vm0, %v47_v27 }
  0x38   :  { %9358 = vmatmul.mubr.msk.f32.gmra.mrb[26].mxu0 %vm54_vm0, %v48_v28 }
  0x39   :  { %9360 = vmatprep.mubr.msk.f32.mxu0 %vm54_vm0, %v49_v29 }
  0x3c   :  { %9361 = vmatmul.mubr.msk.f32.gmra.mrb[28].mxu0 %vm54_vm0, %v50_v30 }
  0x3d   :  { %9363 = vmatprep.mubr.msk.f32.mxu0 %vm54_vm0, %v51_v31 }
  0x40   :  { %9364 = vmatmul.mubr.msk.f32.gmra.mrb[30].mxu0 %vm54_vm0, %v52_v32 }
  0xd7   :  { %v9320_v38 = vpop.f32.mrb[0].mxu0 }
  0xd8   :  { %417 = vst [vmem:[#allocation2 + $0x21] sm:$0xff] %v9320_v38  ;;  %v217_v43 = vpop.f32.mrb[1].mxu0  ;;  %v557_v55 = vmul.f32 %v9320_v38, %v11040_v37  ;;  %v858_v56 = vmul.f32 %v9320_v38, %v11055_v51 }
  0xd9   :  { %416 = vst [vmem:[#allocation2 + $0x19] sm:$0xff] %v217_v43  ;;  %v556_v62 = vmul.f32 %v11040_v37, %v217_v43  ;;  %v857_v0 = vmul.f32 %v11055_v51, %v217_v43 }
  0xdb   :  { %v9323_v50 = vpop.f32.mrb[2].mxu0 }
  0xdc   :  { %419 = vst [vmem:[#allocation2 + $0x39] sm:$0xff] %v9323_v50  ;;  %v227_v52 = vpop.f32.mrb[3].mxu0  ;;  %v559_v1 = vmul.f32 %v9323_v50, %v11040_v37  ;;  %v11073_v2 = vmul.f32 %v9323_v50, %v11055_v51  ;;  %v11086_v9 = vmul.f32 %v9323_v50, %v11065_v54 }
  0xdd   :  { %418 = vst [vmem:[#allocation2 + $0x31] sm:$0xff] %v227_v52  ;;  %v558_v11 = vmul.f32 %v11040_v37, %v227_v52  ;;  %v859_v12 = vmul.f32 %v11055_v51, %v227_v52  ;;  %v1161_v13 = vmul.f32 %v11065_v54, %v227_v52 }
  0xdf   :  { %v9326_v59 = vpop.f32.mrb[4].mxu0  ;;  %v621_v5 = vld [vmem:[#allocation2 + $0x22] sm:$0xff] }
  0xe0   :  { %v450_v60 = vld [vmem:[#allocation2 + $0x18] sm:$0xff]  ;;  %v451_v61 = vld [vmem:[#allocation2 + $0x20] sm:$0xff]  ;;  %421 = vst [vmem:[#allocation2 + $0x51] sm:$0xff] %v9326_v59  ;;  %v11075_v3 = vpop.f32.mrb[5].mxu0  ;;  %v658_v19 = vmul.f32 %v11048_v42, %v621_v5  ;;  %v959_v20 = vmul.f32 %v11080_v4, %v621_v5  ;;  %v561_v36 = vmul.f32 %v9326_v59, %v11040_v37  ;;  %v862_v41 = vmul.f32 %v9326_v59, %v11055_v51 }
  0xe1   :  { %v620_v63 = vld [vmem:[#allocation2 + $0x1a] sm:$0xff]  ;;  %v487_v6 = vmul.f32 %v11035_v34, %v450_v60  ;;  %v488_v7 = vmul.f32 %v11035_v34, %v451_v61  ;;  %v756_v8 = vmul.f32 %v11060_v53, %v450_v60  ;;  %420 = vst [vmem:[#allocation2 + $0x49] sm:$0xff] %v11075_v3  ;;  %v757_v10 = vmul.f32 %v11060_v53, %v451_v61 }
  0xe2   :  { %v657_v16 = vmul.f32 %v11048_v42, %v620_v63  ;;  %v958_v22 = vmul.f32 %v11080_v4, %v620_v63  ;;  %v11118_v48 = vmul.f32 %v9326_v59, %v11065_v54  ;;  %v560_v59 = vmul.f32 %v11040_v37, %v11075_v3  ;;  %v11133_v63 = vld [vmem:[%s15738_s1 + $0x8] ss:$0 sm:$0xff] }
  0xe3   :  { %v588_v14 = vadd.f32 %v556_v62, %v487_v6  ;;  %v589_v15 = vadd.f32 %v557_v55, %v488_v7  ;;  %v788_v17 = vadd.f32 %v756_v8, %v687_v57  ;;  %v11094_v18 = vpop.f32.mrb[6].mxu0  ;;  %v789_v21 = vadd.f32 %v757_v10, %v688_v58  ;;  %v623_v44 = vld [vmem:[#allocation2 + $0x3a] sm:$0xff] }
  0xe4   :  { %v452_v23 = vld [vmem:[#allocation2 + $0x30] sm:$0xff]  ;;  %v453_v24 = vld [vmem:[#allocation2 + $0x38] sm:$0xff]  ;;  %423 = vst [vmem:[#allocation2 + $0x69] sm:$0xff] %v11094_v18  ;;  %v11100_v25 = vpop.f32.mrb[7].mxu0  ;;  %v861_v62 = vmul.f32 %v11055_v51, %v11075_v3  ;;  %v961_v8 = vmul.f32 %v11080_v4, %v623_v44 }
  0xe5   :  { %v689_v27 = vadd.f32 %v657_v16, %v588_v14  ;;  %v889_v28 = vadd.f32 %v857_v0, %v788_v17  ;;  %v489_v29 = vmul.f32 %v11035_v34, %v452_v23  ;;  %v490_v30 = vmul.f32 %v11035_v34, %v453_v24  ;;  %422 = vst [vmem:[#allocation2 + $0x61] sm:$0xff] %v11100_v25  ;;  %v622_v32 = vld [vmem:[#allocation2 + $0x32] sm:$0xff] }
  0xe6   :  { %v890_v31 = vadd.f32 %v858_v56, %v789_v21  ;;  %v690_v33 = vadd.f32 %v658_v19, %v589_v15  ;;  %v758_v35 = vmul.f32 %v11060_v53, %v452_v23  ;;  %v759_v40 = vmul.f32 %v11060_v53, %v453_v24 }
  0xe7   :  { %v990_v38 = vadd.f32 %v958_v22, %v889_v28  ;;  %v590_v39 = vadd.f32 %v558_v11, %v489_v29  ;;  %v11114_v43 = vpop.f32.mrb[8].mxu0  ;;  %v1060_v47 = vmul.f32 %v11105_v26, %v452_v23  ;;  %v591_v50 = vadd.f32 %v559_v1, %v490_v30 }
  0xe8   :  { %v790_v45 = vadd.f32 %v758_v35, %v689_v27  ;;  %v991_v46 = vadd.f32 %v959_v20, %v890_v31  ;;  %425 = vst [vmem:[#allocation2 + $0x81] sm:$0xff] %v11114_v43  ;;  %v11121_v49 = vpop.f32.mrb[9].mxu0  ;;  %v659_v52 = vmul.f32 %v11048_v42, %v622_v32  ;;  %v791_v55 = vadd.f32 %v759_v40, %v690_v33  ;;  %v454_v57 = vld [vmem:[#allocation2 + $0x48] sm:$0xff]  ;;  %v455_v61 = vld [vmem:[#allocation2 + $0x50] sm:$0xff] }
  0xe9   :  { %v1061_v56 = vmul.f32 %v11105_v26, %v453_v24  ;;  %424 = vst [vmem:[#allocation2 + $0x79] sm:$0xff] %v11121_v49  ;;  %v1092_v60 = vadd.f32 %v1060_v47, %v990_v38  ;;  %v660_v0 = vmul.f32 %v11048_v42, %v623_v44  ;;  %v960_v10 = vmul.f32 %v11080_v4, %v622_v32  ;;  %v624_v15 = vld [vmem:[#allocation2 + $0x4a] sm:$0xff] }
  0xea   :  { %v891_v58 = vadd.f32 %v859_v12, %v790_v45  ;;  %v691_v1 = vadd.f32 %v659_v52, %v590_v39  ;;  %v892_v5 = vadd.f32 %v11073_v2, %v791_v55  ;;  %v625_v12 = vld [vmem:[#allocation2 + $0x52] sm:$0xff]  ;;  %v491_v14 = vmul.f32 %v11035_v34, %v454_v57  ;;  %v11165_v45 = vld [vmem:[%s15738_s1 + $0x9] ss:$0 sm:$0xff] }
  0xeb   :  { %v1093_v6 = vadd.f32 %v1061_v56, %v991_v46  ;;  %v11137_v7 = vpop.f32.mrb[10].mxu0  ;;  %v1193_v11 = vadd.f32 %v1161_v13, %v1092_v60  ;;  %v492_v2 = vmul.f32 %v11035_v34, %v455_v61  ;;  %v692_v19 = vadd.f32 %v660_v0, %v591_v50 }
  0xec   :  { %427 = vst [vmem:[#allocation2 + $0x99] sm:$0xff] %v11137_v7  ;;  %v11143_v16 = vpop.f32.mrb[11].mxu0  ;;  %v760_v20 = vmul.f32 %v11060_v53, %v454_v57  ;;  %v1263_v21 = vmul.f32 %v11133_v63, %v623_v44  ;;  %v992_v13 = vadd.f32 %v960_v10, %v891_v58  ;;  %v1262_v22 = vmul.f32 %v11133_v63, %v622_v32 }
  0xed   :  { %v1194_v17 = vadd.f32 %v11086_v9, %v1093_v6  ;;  %426 = vst [vmem:[#allocation2 + $0x91] sm:$0xff] %v11143_v16  ;;  %v761_v23 = vmul.f32 %v11060_v53, %v455_v61  ;;  %v662_v24 = vmul.f32 %v11048_v42, %v625_v12  ;;  %v661_v27 = vmul.f32 %v11048_v42, %v624_v15 }
  0xee   :  { %v792_v28 = vadd.f32 %v760_v20, %v691_v1  ;;  %v993_v9 = vadd.f32 %v961_v8, %v892_v5  ;;  %v592_v30 = vadd.f32 %v560_v59, %v491_v14  ;;  %v1062_v33 = vmul.f32 %v11105_v26, %v454_v57  ;;  %v456_v59 = vld [vmem:[#allocation2 + $0x60] sm:$0xff] }
  0xef   :  { %v11154_v29 = vpop.f32.mrb[12].mxu0  ;;  %v793_v31 = vadd.f32 %v761_v23, %v692_v19  ;;  %v1063_v35 = vmul.f32 %v11105_v26, %v455_v61  ;;  %v1294_v32 = vadd.f32 %v1262_v22, %v1193_v11  ;;  %v1295_v39 = vadd.f32 %v1263_v21, %v1194_v17  ;;  %v627_v11 = vld [vmem:[#allocation2 + $0x6a] sm:$0xff]  ;;  %v626_v17 = vld [vmem:[#allocation2 + $0x62] sm:$0xff] }
  0xf0   :  { %429 = vst [vmem:[#allocation2 + $0xb1] sm:$0xff] %v11154_v29  ;;  %v11159_v38 = vpop.f32.mrb[13].mxu0  ;;  %v593_v40 = vadd.f32 %v561_v36, %v492_v2  ;;  %v893_v44 = vadd.f32 %v861_v62, %v792_v28  ;;  %v1094_v47 = vadd.f32 %v1062_v33, %v992_v13  ;;  %v1163_v52 = vmul.f32 %v11065_v54, %v11075_v3  ;;  %v457_v62 = vld [vmem:[#allocation2 + $0x68] sm:$0xff] }
  0xf1   :  { %428 = vst [vmem:[#allocation2 + $0xa9] sm:$0xff] %v11159_v38  ;;  %v894_v46 = vadd.f32 %v862_v41, %v793_v31  ;;  %v1095_v50 = vadd.f32 %v1063_v35, %v993_v9  ;;  %v963_v55 = vmul.f32 %v11080_v4, %v625_v12  ;;  %v1265_v56 = vmul.f32 %v11133_v63, %v625_v12 }
  0xf2   :  { %v693_v36 = vadd.f32 %v661_v27, %v592_v30  ;;  %v962_v58 = vmul.f32 %v11080_v4, %v624_v15  ;;  %v1195_v60 = vadd.f32 %v1163_v52, %v1094_v47  ;;  %v11179_v3 = vadd.f32 %v11165_v45, %v1294_v32  ;;  %v629_v47 = vld [vmem:[#allocation2 + $0x82] sm:$0xff] }
  0xf3   :  { %v11171_v57 = vpop.f32.mrb[14].mxu0  ;;  %v1196_v61 = vadd.f32 %v11118_v48, %v1095_v50  ;;  %v11182_v0 = vadd.f32 %v11165_v45, %v1295_v39  ;;  %v493_v1 = vmul.f32 %v11035_v34, %v456_v59  ;;  %v562_v5 = vmul.f32 %v11040_v37, %v11100_v25 }
  0xf4   :  { %431 = vst [vmem:[#allocation2 + $0xc9] sm:$0xff] %v11171_v57  ;;  %v11176_v41 = vpop.f32.mrb[15].mxu0  ;;  %v994_v48 = vadd.f32 %v962_v58, %v893_v44  ;;  %v1264_v6 = vmul.f32 %v11133_v63, %v624_v15  ;;  %v563_v8 = vmul.f32 %v11094_v18, %v11040_v37  ;;  %v694_v10 = vadd.f32 %v662_v24, %v593_v40 }
  0xf5   :  { %430 = vst [vmem:[#allocation2 + $0xc1] sm:$0xff] %v11176_v41  ;;  %v864_v12 = vmul.f32 %v11094_v18, %v11055_v51  ;;  %v494_v14 = vmul.f32 %v11035_v34, %v457_v62  ;;  %v762_v2 = vmul.f32 %v11060_v53, %v456_v59  ;;  %v763_v19 = vmul.f32 %v11060_v53, %v457_v62 }
  0xf6   :  { %v1296_v21 = vadd.f32 %v1264_v6, %v1195_v60  ;;  %v664_v15 = vmul.f32 %v11048_v42, %v627_v11  ;;  %v663_v13 = vmul.f32 %v11048_v42, %v626_v17  ;;  %v863_v22 = vmul.f32 %v11055_v51, %v11100_v25  ;;  %v458_v6 = vld [vmem:[#allocation2 + $0x78] sm:$0xff] }
  0xf7   :  { %v11196_v20 = vpop.f32.mrb[16].mxu0  ;;  %v594_v24 = vadd.f32 %v562_v5, %v493_v1  ;;  %v794_v27 = vadd.f32 %v762_v2, %v693_v36  ;;  %v795_v28 = vadd.f32 %v763_v19, %v694_v10  ;;  %v995_v9 = vadd.f32 %v963_v55, %v894_v46  ;;  %v459_v10 = vld [vmem:[#allocation2 + $0x80] sm:$0xff] }
  0xf8   :  { %433 = vst [vmem:[#allocation2 + $0xe1] sm:$0xff] %v11196_v20  ;;  %v11203_v23 = vpop.f32.mrb[17].mxu0  ;;  %v1166_v30 = vmul.f32 %v11094_v18, %v11065_v54  ;;  %v1064_v31 = vmul.f32 %v11105_v26, %v456_v59  ;;  %v1065_v33 = vmul.f32 %v11105_v26, %v457_v62  ;;  %v1165_v35 = vmul.f32 %v11065_v54, %v11100_v25 }
  0xf9   :  { %432 = vst [vmem:[#allocation2 + $0xd9] sm:$0xff] %v11203_v23  ;;  %v965_v32 = vmul.f32 %v11080_v4, %v627_v11  ;;  %v595_v39 = vadd.f32 %v563_v8, %v494_v14  ;;  %v895_v40 = vadd.f32 %v863_v22, %v794_v27  ;;  %v896_v44 = vadd.f32 %v864_v12, %v795_v28  ;;  %v628_v8 = vld [vmem:[#allocation2 + $0x7a] sm:$0xff] }
  0xfa   :  { %v1267_v46 = vmul.f32 %v11133_v63, %v627_v11  ;;  %v964_v52 = vmul.f32 %v11080_v4, %v626_v17  ;;  %v1096_v18 = vadd.f32 %v1064_v31, %v994_v48  ;;  %v1097_v55 = vadd.f32 %v1065_v33, %v995_v9 }
  0xfb   :  { %v11213_v50 = vpop.f32.mrb[18].mxu0  ;;  %v1297_v58 = vadd.f32 %v1265_v56, %v1196_v61  ;;  %v11221_v25 = vadd.f32 %v11165_v45, %v1296_v21  ;;  %v695_v60 = vadd.f32 %v663_v13, %v594_v24  ;;  %v1266_v59 = vmul.f32 %v11133_v63, %v626_v17 }
  0xfc   :  { %435 = vst [vmem:[#allocation2 + $0xf9] sm:$0xff] %v11213_v50  ;;  %v11218_v36 = vpop.f32.mrb[19].mxu0  ;;  %v1197_v62 = vadd.f32 %v1165_v35, %v1096_v18  ;;  %v1198_v1 = vadd.f32 %v1166_v30, %v1097_v55  ;;  %v565_v5 = vmul.f32 %v11114_v43, %v11040_v37  ;;  %v666_v48 = vmul.f32 %v11048_v42, %v629_v47 }
  0xfd   :  { %434 = vst [vmem:[#allocation2 + $0xf1] sm:$0xff] %v11218_v36  ;;  %v495_v56 = vmul.f32 %v11035_v34, %v458_v6  ;;  %v564_v61 = vmul.f32 %v11040_v37, %v11121_v49  ;;  %v696_v11 = vadd.f32 %v664_v15, %v595_v39  ;;  %v764_v12 = vmul.f32 %v11060_v53, %v458_v6 }
  0xfe   :  { %v996_v17 = vadd.f32 %v964_v52, %v895_v40  ;;  %v866_v2 = vmul.f32 %v11114_v43, %v11055_v51  ;;  %v496_v19 = vmul.f32 %v11035_v34, %v459_v10  ;;  %v765_v21 = vmul.f32 %v11060_v53, %v459_v10 }
  0xff   :  { %v11232_v14 = vpop.f32.mrb[20].mxu0  ;;  %v1168_v22 = vmul.f32 %v11114_v43, %v11065_v54  ;;  %v665_v15 = vmul.f32 %v11048_v42, %v628_v8  ;;  %v796_v24 = vadd.f32 %v764_v12, %v695_v60  ;;  %v865_v27 = vmul.f32 %v11055_v51, %v11121_v49 }
 0x100   :  { %437 = vst [vmem:[#allocation2 + $0x111] sm:$0xff] %v11232_v14  ;;  %v11239_v13 = vpop.f32.mrb[21].mxu0  ;;  %v1298_v28 = vadd.f32 %v1266_v59, %v1197_v62  ;;  %v1299_v9 = vadd.f32 %v1267_v46, %v1198_v1  ;;  %v797_v30 = vadd.f32 %v765_v21, %v696_v11  ;;  %v997_v31 = vadd.f32 %v965_v32, %v896_v44 }
 0x101   :  { %436 = vst [vmem:[#allocation2 + $0x109] sm:$0xff] %v11239_v13  ;;  %v596_v33 = vadd.f32 %v564_v61, %v495_v56  ;;  %v897_v35 = vadd.f32 %v865_v27, %v796_v24  ;;  %v1066_v39 = vmul.f32 %v11105_v26, %v458_v6  ;;  %v1067_v40 = vmul.f32 %v11105_v26, %v459_v10  ;;  %v460_v10 = vld [vmem:[#allocation2 + $0x90] sm:$0xff]  ;;  %v461_v56 = vld [vmem:[#allocation2 + $0x98] sm:$0xff] }
 0x102   :  { %v597_v43 = vadd.f32 %v565_v5, %v496_v19  ;;  %v898_v18 = vadd.f32 %v866_v2, %v797_v30  ;;  %v966_v55 = vmul.f32 %v11080_v4, %v628_v8  ;;  %v1167_v60 = vmul.f32 %v11065_v54, %v11121_v49  ;;  %v631_v27 = vld [vmem:[#allocation2 + $0x9a] sm:$0xff] }
 0x103   :  { %v11249_v52 = vpop.f32.mrb[22].mxu0  ;;  %v11259_v44 = vadd.f32 %v11165_v45, %v1297_v58  ;;  %v1098_v59 = vadd.f32 %v1066_v39, %v996_v17  ;;  %v1099_v62 = vadd.f32 %v1067_v40, %v997_v31  ;;  %v11264_v5 = vadd.f32 %v11165_v45, %v1298_v28  ;;  %v630_v39 = vld [vmem:[#allocation2 + $0x92] sm:$0xff] }
 0x104   :  { %439 = vst [vmem:[#allocation2 + $0x129] sm:$0xff] %v11249_v52  ;;  %v11255_v46 = vpop.f32.mrb[23].mxu0  ;;  %v967_v49 = vmul.f32 %v11080_v4, %v629_v47  ;;  %v1269_v6 = vmul.f32 %v11133_v63, %v629_v47  ;;  %v697_v61 = vadd.f32 %v665_v15, %v596_v33  ;;  %v1268_v58 = vmul.f32 %v11133_v63, %v628_v8 }
 0x105   :  { %438 = vst [vmem:[#allocation2 + $0x121] sm:$0xff] %v11255_v46  ;;  %v1199_v11 = vadd.f32 %v1167_v60, %v1098_v59  ;;  %v1200_v12 = vadd.f32 %v1168_v22, %v1099_v62  ;;  %v11272_v2 = vadd.f32 %v11165_v45, %v1299_v9  ;;  %v998_v19 = vadd.f32 %v966_v55, %v897_v35 }
 0x106   :  { %v868_v21 = vmul.f32 %v11137_v7, %v11055_v51  ;;  %v698_v24 = vadd.f32 %v666_v48, %v597_v43  ;;  %v497_v15 = vmul.f32 %v11035_v34, %v460_v10  ;;  %v566_v8 = vmul.f32 %v11040_v37, %v11143_v16 }
 0x107   :  { %v11269_v17 = vpop.f32.mrb[24].mxu0  ;;  %v766_v22 = vmul.f32 %v11060_v53, %v460_v10  ;;  %v767_v28 = vmul.f32 %v11060_v53, %v461_v56  ;;  %v567_v9 = vmul.f32 %v11137_v7, %v11040_v37  ;;  %v668_v48 = vmul.f32 %v11048_v42, %v631_v27 }
 0x108   :  { %441 = vst [vmem:[#allocation2 + $0x141] sm:$0xff] %v11269_v17  ;;  %v11277_v47 = vpop.f32.mrb[25].mxu0  ;;  %v1170_v30 = vmul.f32 %v11137_v7, %v11065_v54  ;;  %v867_v31 = vmul.f32 %v11055_v51, %v11143_v16  ;;  %v1300_v33 = vadd.f32 %v1268_v58, %v1199_v11  ;;  %v498_v35 = vmul.f32 %v11035_v34, %v461_v56 }
 0x109   :  { %440 = vst [vmem:[#allocation2 + $0x139] sm:$0xff] %v11277_v47  ;;  %v798_v40 = vadd.f32 %v766_v22, %v697_v61  ;;  %v799_v43 = vadd.f32 %v767_v28, %v698_v24  ;;  %v667_v60 = vmul.f32 %v11048_v42, %v630_v39  ;;  %v999_v59 = vadd.f32 %v967_v49, %v898_v18 }
 0x10a   :  { %v1068_v62 = vmul.f32 %v11105_v26, %v460_v10  ;;  %v1069_v32 = vmul.f32 %v11105_v26, %v461_v56  ;;  %v598_v1 = vadd.f32 %v566_v8, %v497_v15  ;;  %v1169_v61 = vmul.f32 %v11065_v54, %v11143_v16 }
 0x10b   :  { %v11293_v55 = vpop.f32.mrb[26].mxu0  ;;  %v899_v11 = vadd.f32 %v867_v31, %v798_v40  ;;  %v900_v58 = vadd.f32 %v868_v21, %v799_v43  ;;  %v1301_v24 = vadd.f32 %v1269_v6, %v1200_v12  ;;  %v968_v22 = vmul.f32 %v11080_v4, %v630_v39 }
 0x10c   :  { %15770 = vst [vmem:[#allocation5_spill] sm:$0xff] %v11293_v55  ;;  %443 = vst [vmem:[#allocation2 + $0x159] sm:$0xff] %v11293_v55  ;;  %v11299_v7 = vpop.f32.mrb[27].mxu0  ;;  %v1100_v18 = vadd.f32 %v1068_v62, %v998_v19  ;;  %v1101_v49 = vadd.f32 %v1069_v32, %v999_v59  ;;  %v1337_v10 = vadd.f32 %v11165_v45, %v1300_v33  ;;  %v1364_v28 = vmax.f32 %v11182_v0, 0.0  ;;  %v462_v0 = vld [vmem:[#allocation2 + $0xa8] sm:$0xff]  ;;  %v463_v59 = vld [vmem:[#allocation2 + $0xb0] sm:$0xff] }
 0x10d   :  { %442 = vst [vmem:[#allocation2 + $0x151] sm:$0xff] %v11299_v7  ;;  %v599_v56 = vadd.f32 %v567_v9, %v498_v35  ;;  %v1366_v55 = vmax.f32 %v11259_v44, 0.0  ;;  %v1271_v21 = vmul.f32 %v11133_v63, %v631_v27  ;;  %v1270_v31 = vmul.f32 %v11133_v63, %v630_v39 }
 0x10e   :  { %v1201_v8 = vadd.f32 %v1169_v61, %v1100_v18  ;;  %v1202_v16 = vadd.f32 %v1170_v30, %v1101_v49  ;;  %v1367_v6 = vmax.f32 %v11264_v5, 0.0  ;;  %v969_v32 = vmul.f32 %v11080_v4, %v631_v27 }
 0x10f   :  { %v11308_v15 = vpop.f32.mrb[28].mxu0  ;;  %v699_v12 = vadd.f32 %v667_v60, %v598_v1  ;;  %v11315_v19 = vmax.f32 %v1364_v28, %v1366_v55  ;;  %v11320_v44 = vadd.f32 %v11165_v45, %v1301_v24  ;;  %v1000_v33 = vadd.f32 %v968_v22, %v899_v11  ;;  %v632_v11 = vld [vmem:[#allocation2 + $0xaa] sm:$0xff] }
 0x110   :  { %445 = vst [vmem:[#allocation2 + $0x171] sm:$0xff] %v11308_v15  ;;  %v11317_v9 = vpop.f32.mrb[29].mxu0  ;;  %v499_v30 = vmul.f32 %v11035_v34, %v462_v0  ;;  %v568_v35 = vmul.f32 %v11040_v37, %v11159_v38  ;;  %v1369_v5 = vmax.f32 %v1337_v10, 0.0  ;;  %v569_v1 = vmul.f32 %v11154_v29, %v11040_v37 }
 0x111   :  { %15771 = vst [vmem:[#allocation6_spill] sm:$0xff] %v11315_v19  ;;  %15772 = vst [vmem:[#allocation7_spill] sm:$0xff] %v11317_v9  ;;  %1525 = vrot.lane.b32.xlu1 %v11315_v19, %s10860_s28  ;;  %1429 = vrot.lane.b32.xlu0 %v11315_v19, %s10861_s29  ;;  %v700_v27 = vadd.f32 %v668_v48, %v599_v56  ;;  %v768_v39 = vmul.f32 %v11060_v53, %v462_v0  ;;  %v633_v56 = vld [vmem:[#allocation2 + $0xb2] sm:$0xff] }
 0x112   :  { %444 = vst [vmem:[#allocation2 + $0x169] sm:$0xff] %v11317_v9  ;;  %v1302_v40 = vadd.f32 %v1270_v31, %v1201_v8  ;;  %v1303_v43 = vadd.f32 %v1271_v21, %v1202_v16  ;;  %v870_v55 = vmul.f32 %v11154_v29, %v11055_v51  ;;  %v1172_v60 = vmul.f32 %v11154_v29, %v11065_v54 }
 0x113   :  { %v500_v62 = vmul.f32 %v11035_v34, %v463_v59  ;;  %v769_v61 = vmul.f32 %v11060_v53, %v463_v59  ;;  %v800_v24 = vadd.f32 %v768_v39, %v699_v12  ;;  %v869_v48 = vmul.f32 %v11055_v51, %v11159_v38 }
 0x114   :  { %v600_v22 = vadd.f32 %v568_v35, %v499_v30  ;;  %v669_v18 = vmul.f32 %v11048_v42, %v632_v11  ;;  %v1001_v49 = vadd.f32 %v969_v32, %v900_v58  ;;  %v1070_v10 = vmul.f32 %v11105_v26, %v462_v0 }
 0x115   :  { %v801_v28 = vadd.f32 %v769_v61, %v700_v27  ;;  %v901_v21 = vadd.f32 %v869_v48, %v800_v24  ;;  %v1071_v29 = vmul.f32 %v11105_v26, %v463_v59  ;;  %v1171_v8 = vmul.f32 %v11065_v54, %v11159_v38  ;;  %1573 = vrot.lane.b32.xlu1 %v11315_v19, %s10862_s30  ;;  %v464_v24 = vld [vmem:[#allocation2 + $0xc0] sm:$0xff] }
 0x116   :  { %v1102_v16 = vadd.f32 %v1070_v10, %v1000_v33  ;;  %v1272_v31 = vmul.f32 %v11133_v63, %v632_v11  ;;  %1477 = vrot.lane.b32.xlu0 %v11315_v19, %s10863_s6  ;;  %v15773_v58 = vmax.f32 %v11221_v25, 0.0  ;;  %v15774_v32 = vmax.f32 %v11179_v3, 0.0  ;;  %v465_v25 = vld [vmem:[#allocation2 + $0xc8] sm:$0xff] }
 0x117   :  { %v11357_v0 = vmax.f32 %v1367_v6, %v1369_v5  ;;  %v670_v38 = vmul.f32 %v11048_v42, %v633_v56  ;;  %v601_v30 = vadd.f32 %v569_v1, %v500_v62  ;;  %v902_v35 = vadd.f32 %v870_v55, %v801_v28 }
 0x118   :  { %v11355_v12 = vmax.f32 %v15774_v32, %v15773_v58  ;;  %v1103_v27 = vadd.f32 %v1071_v29, %v1001_v49  ;;  %v971_v33 = vmul.f32 %v11080_v4, %v633_v56  ;;  %v1273_v39 = vmul.f32 %v11133_v63, %v633_v56  ;;  %v634_v56 = vld [vmem:[#allocation2 + $0xc2] sm:$0xff]  ;;  %v635_v58 = vld [vmem:[#allocation2 + $0xca] sm:$0xff] }
 0x119   :  { %v970_v59 = vmul.f32 %v11080_v4, %v632_v11  ;;  %v1203_v61 = vadd.f32 %v1171_v8, %v1102_v16  ;;  %v11364_v3 = vadd.f32 %v11165_v45, %v1302_v40  ;;  %v701_v48 = vadd.f32 %v669_v18, %v600_v22  ;;  %1669 = vrot.lane.b32.xlu1 %v11315_v19, %s10864_s7 }
 0x11a   :  { %v1204_v6 = vadd.f32 %v1172_v60, %v1103_v27  ;;  %v11370_v1 = vadd.f32 %v11165_v45, %v1303_v43  ;;  %1621 = vrot.lane.b32.xlu0 %v11315_v19, %s10865_s8  ;;  %v501_v62 = vmul.f32 %v11035_v34, %v464_v24  ;;  %v570_v40 = vmul.f32 %v11040_v37, %v11176_v41 }
 0x11b   :  { %v1304_v55 = vadd.f32 %v1272_v31, %v1203_v61  ;;  %v872_v60 = vmul.f32 %v11171_v57, %v11055_v51  ;;  %v702_v11 = vadd.f32 %v670_v38, %v601_v30  ;;  %v770_v22 = vmul.f32 %v11060_v53, %v464_v24 }
 0x11c   :  { %v771_v18 = vmul.f32 %v11060_v53, %v465_v25  ;;  %v1002_v43 = vadd.f32 %v970_v59, %v901_v21  ;;  %v571_v49 = vmul.f32 %v11171_v57, %v11040_v37  ;;  %v502_v10 = vmul.f32 %v11035_v34, %v465_v25 }
 0x11d   :  { %v871_v28 = vmul.f32 %v11055_v51, %v11176_v41  ;;  %1475 = vrot.lane.b32.xlu1 %v11355_v12, %s10863_s6  ;;  %v1174_v29 = vmul.f32 %v11171_v57, %v11065_v54  ;;  %v671_v8 = vmul.f32 %v11048_v42, %v634_v56  ;;  %v802_v16 = vadd.f32 %v770_v22, %v701_v48 }
 0x11e   :  { %v803_v31 = vadd.f32 %v771_v18, %v702_v11  ;;  %v11392_v21 = vadd.f32 %v11165_v45, %v1304_v55  ;;  %1717 = vrot.lane.b32.xlu0 %v11315_v19, %s10866_s0  ;;  %v602_v32 = vadd.f32 %v570_v40, %v501_v62  ;;  %v1003_v38 = vadd.f32 %v971_v33, %v902_v35 }
 0x11f   :  { %v1072_v30 = vmul.f32 %v11105_v26, %v464_v24  ;;  %v903_v27 = vadd.f32 %v871_v28, %v802_v16  ;;  %v1073_v57 = vmul.f32 %v11105_v26, %v465_v25  ;;  %v1173_v61 = vmul.f32 %v11065_v54, %v11176_v41  ;;  %v637_v16 = vld [vmem:[#allocation2 + $0xe2] sm:$0xff] }
 0x120   :  { %v904_v59 = vadd.f32 %v872_v60, %v803_v31  ;;  %v1371_v48 = vmax.f32 %v11364_v3, 0.0  ;;  %v672_v55 = vmul.f32 %v11048_v42, %v635_v58  ;;  %v603_v11 = vadd.f32 %v571_v49, %v502_v10  ;;  %v466_v60 = vld [vmem:[#allocation2 + $0xd8] sm:$0xff]  ;;  %v467_v10 = vld [vmem:[#allocation2 + $0xe0] sm:$0xff] }
 0x121   :  { %v1104_v22 = vadd.f32 %v1072_v30, %v1002_v43  ;;  %1571 = vrot.lane.b32.xlu1 %v11355_v12, %s10862_s30  ;;  %v973_v35 = vmul.f32 %v11080_v4, %v635_v58  ;;  %v1275_v33 = vmul.f32 %v11133_v63, %v635_v58  ;;  %v972_v24 = vmul.f32 %v11080_v4, %v634_v56 }
 0x122   :  { %v1105_v62 = vadd.f32 %v1073_v57, %v1003_v38  ;;  %v1305_v25 = vadd.f32 %v1273_v39, %v1204_v6  ;;  %v1373_v40 = vmax.f32 %v11392_v21, 0.0  ;;  %1427 = vrot.lane.b32.xlu0 %v11355_v12, %s10861_s29  ;;  %v703_v41 = vadd.f32 %v671_v8, %v602_v32  ;;  %v11418_v21 = vpop.f32.mrb[30].mxu0  ;;  %v636_v57 = vld [vmem:[#allocation2 + $0xda] sm:$0xff] }
 0x123   :  { %v1205_v3 = vadd.f32 %v1173_v61, %v1104_v22  ;;  %v1274_v43 = vmul.f32 %v11133_v63, %v634_v56  ;;  %v874_v49 = vmul.f32 %v11196_v20, %v11055_v51  ;;  %v503_v28 = vmul.f32 %v11035_v34, %v466_v60  ;;  %15775 = vst [vmem:[#allocation8_spill] sm:$0xff] %v11418_v21  ;;  %v11428_v38 = vpop.f32.mrb[31].mxu0 }
 0x124   :  { %v1206_v18 = vadd.f32 %v1174_v29, %v1105_v62  ;;  %v572_v39 = vmul.f32 %v11040_v37, %v11203_v23  ;;  %v704_v6 = vadd.f32 %v672_v55, %v603_v11  ;;  %v772_v31 = vmul.f32 %v11060_v53, %v466_v60  ;;  %447 = vst [vmem:[#allocation2 + $0x189] sm:$0xff] %v11418_v21 }
 0x125   :  { %v773_v8 = vmul.f32 %v11060_v53, %v467_v10  ;;  %1667 = vrot.lane.b32.xlu1 %v11355_v12, %s10864_s7  ;;  %v1004_v56 = vadd.f32 %v972_v24, %v903_v27  ;;  %v573_v29 = vmul.f32 %v11196_v20, %v11040_v37  ;;  %v674_v58 = vmul.f32 %v11048_v42, %v637_v16 }
 0x126   :  { %v873_v32 = vmul.f32 %v11055_v51, %v11203_v23  ;;  %1523 = vrot.lane.b32.xlu0 %v11355_v12, %s10860_s28  ;;  %v1176_v30 = vmul.f32 %v11196_v20, %v11065_v54  ;;  %v504_v27 = vmul.f32 %v11035_v34, %v467_v10  ;;  %v804_v61 = vadd.f32 %v772_v31, %v703_v41 }
 0x127   :  { %v805_v55 = vadd.f32 %v773_v8, %v704_v6  ;;  %446 = vst [vmem:[#allocation2 + $0x181] sm:$0xff] %v11428_v38  ;;  %v1306_v11 = vadd.f32 %v1274_v43, %v1205_v3  ;;  %v673_v22 = vmul.f32 %v11048_v42, %v636_v57  ;;  %v1005_v24 = vadd.f32 %v973_v35, %v904_v59 }
 0x128   :  { %v1074_v62 = vmul.f32 %v11105_v26, %v466_v60  ;;  %v604_v5 = vadd.f32 %v572_v39, %v503_v28  ;;  %v905_v19 = vadd.f32 %v873_v32, %v804_v61  ;;  %v1075_v9 = vmul.f32 %v11105_v26, %v467_v10  ;;  %v469_v32 = vld [vmem:[#allocation2 + $0xf8] sm:$0xff] }
 0x129   :  { %v906_v21 = vadd.f32 %v874_v49, %v805_v55  ;;  %1431 = vrot.lane.b32.xlu1 %v11357_v0, %s10861_s29  ;;  %v1175_v41 = vmul.f32 %v11065_v54, %v11203_v23  ;;  %v1276_v6 = vmul.f32 %v11133_v63, %v636_v57  ;;  %v1370_v3 = vmax.f32 %v11320_v44, 0.0  ;;  %v468_v44 = vld [vmem:[#allocation2 + $0xf0] sm:$0xff] }
 0x12a   :  { %v1106_v20 = vadd.f32 %v1074_v62, %v1004_v56  ;;  %1619 = vrot.lane.b32.xlu0 %v11355_v12, %s10865_s8  ;;  %v605_v59 = vadd.f32 %v573_v29, %v504_v27  ;;  %v974_v35 = vmul.f32 %v11080_v4, %v636_v57  ;;  %v1107_v60 = vadd.f32 %v1075_v9, %v1005_v24  ;;  %v638_v57 = vld [vmem:[#allocation2 + $0xf2] sm:$0xff] }
 0x12b   :  { %v11448_v43 = vmax.f32 %v1371_v48, %v1373_v40  ;;  %v11451_v49 = vadd.f32 %v11165_v45, %v1305_v25  ;;  %v975_v10 = vmul.f32 %v11080_v4, %v637_v16  ;;  %v15776_v23 = vmax.f32 %v11272_v2, 0.0 }
 0x12c   :  { %v1207_v28 = vadd.f32 %v1175_v41, %v1106_v20  ;;  %v1307_v31 = vadd.f32 %v1275_v33, %v1206_v18  ;;  %v1277_v8 = vmul.f32 %v11133_v63, %v637_v16  ;;  %v705_v56 = vadd.f32 %v673_v22, %v604_v5  ;;  %v639_v22 = vld [vmem:[#allocation2 + $0xfa] sm:$0xff] }
 0x12d   :  { %v11456_v39 = vmax.f32 %v15776_v23, %v1370_v3  ;;  %v1208_v29 = vadd.f32 %v1176_v30, %v1107_v60  ;;  %v11460_v9 = vadd.f32 %v11165_v45, %v1306_v11  ;;  %1479 = vrot.lane.b32.xlu1 %v11357_v0, %s10863_s6  ;;  %v505_v25 = vmul.f32 %v11035_v34, %v468_v44 }
 0x12e   :  { %v1308_v48 = vadd.f32 %v1276_v6, %v1207_v28  ;;  %v574_v2 = vmul.f32 %v11040_v37, %v11218_v36  ;;  %1715 = vrot.lane.b32.xlu0 %v11355_v12, %s10866_s0  ;;  %v1006_v33 = vadd.f32 %v974_v35, %v905_v19  ;;  %v575_v5 = vmul.f32 %v11213_v50, %v11040_v37 }
 0x12f   :  { %v706_v40 = vadd.f32 %v674_v58, %v605_v59  ;;  %v774_v18 = vmul.f32 %v11060_v53, %v468_v44  ;;  %v876_v16 = vmul.f32 %v11213_v50, %v11055_v51  ;;  %v1178_v30 = vmul.f32 %v11213_v50, %v11065_v54 }
 0x130   :  { %v506_v27 = vmul.f32 %v11035_v34, %v469_v32  ;;  %v775_v61 = vmul.f32 %v11060_v53, %v469_v32  ;;  %v1309_v55 = vadd.f32 %v1277_v8, %v1208_v29  ;;  %v675_v19 = vmul.f32 %v11048_v42, %v638_v57 }
 0x131   :  { %v806_v11 = vadd.f32 %v774_v18, %v705_v56  ;;  %v875_v37 = vmul.f32 %v11055_v51, %v11218_v36  ;;  %v11482_v58 = vadd.f32 %v11165_v45, %v1308_v48  ;;  %1527 = vrot.lane.b32.xlu1 %v11357_v0, %s10860_s28  ;;  %v606_v50 = vadd.f32 %v574_v2, %v505_v25  ;;  %v470_v48 = vld [vmem:[#allocation2 + $0x108] sm:$0xff]  ;;  %v471_v25 = vld [vmem:[#allocation2 + $0x110] sm:$0xff] }
 0x132   :  { %v807_v24 = vadd.f32 %v775_v61, %v706_v40  ;;  %v1007_v34 = vadd.f32 %v975_v10, %v906_v21  ;;  %1433 = vrot.lane.b32.xlu0 %v11456_v39, %s10861_s29  ;;  %v1076_v20 = vmul.f32 %v11105_v26, %v468_v44  ;;  %v1077_v41 = vmul.f32 %v11105_v26, %v469_v32  ;;  %v641_v2 = vld [vmem:[#allocation2 + $0x112] sm:$0xff] }
 0x133   :  { %v907_v62 = vadd.f32 %v875_v37, %v806_v11  ;;  %v1177_v6 = vmul.f32 %v11065_v54, %v11218_v36  ;;  %v11493_v3 = vadd.f32 %v11165_v45, %v1307_v31  ;;  %v676_v59 = vmul.f32 %v11048_v42, %v639_v22 }
 0x134   :  { %v607_v35 = vadd.f32 %v575_v5, %v506_v27  ;;  %v908_v60 = vadd.f32 %v876_v16, %v807_v24  ;;  %v1375_v21 = vmax.f32 %v11460_v9, 0.0  ;;  %v977_v10 = vmul.f32 %v11080_v4, %v639_v22  ;;  %v11516_v16 = vld [vmem:[%s15738_s1 + $0x1] ss:$0 sm:$0xff] }
 0x135   :  { %v1108_v28 = vadd.f32 %v1076_v20, %v1006_v33  ;;  %v1109_v23 = vadd.f32 %v1077_v41, %v1007_v34  ;;  %v11499_v44 = vadd.f32 %v11165_v45, %v1309_v55  ;;  %1575 = vrot.lane.b32.xlu1 %v11357_v0, %s10862_s30  ;;  %v1279_v36 = vmul.f32 %v11133_v63, %v639_v22 }
 0x136   :  { %v707_v31 = vadd.f32 %v675_v19, %v606_v50  ;;  %v976_v8 = vmul.f32 %v11080_v4, %v638_v57  ;;  %v1377_v56 = vmax.f32 %v11482_v58, 0.0  ;;  %1481 = vrot.lane.b32.xlu0 %v11456_v39, %s10863_s6  ;;  %v1278_v9 = vmul.f32 %v11133_v63, %v638_v57  ;;  %v11524_v57 = vld [vmem:[%s15738_s1] ss:$0 sm:$0xff]  ;;  %v640_v19 = vld [vmem:[#allocation2 + $0x10a] sm:$0xff]  ;;  %v11541_v50 = vld [vmem:[%s15738_s1 + $0x2] ss:$0 sm:$0xff] }
 0x137   :  { %v1209_v29 = vadd.f32 %v1177_v6, %v1108_v28  ;;  %v1210_v32 = vadd.f32 %v1178_v30, %v1109_v23  ;;  %v878_v33 = vmul.f32 %v11232_v14, %v11055_v51  ;;  %v708_v5 = vadd.f32 %v676_v59, %v607_v35 }
 0x138   :  { %v776_v40 = vmul.f32 %v11060_v53, %v470_v48  ;;  %v777_v18 = vmul.f32 %v11060_v53, %v471_v25  ;;  %v577_v30 = vmul.f32 %v11516_v16, %v11232_v14  ;;  %v678_v27 = vmul.f32 %v11048_v42, %v641_v2 }
 0x139   :  { %v507_v61 = vmul.f32 %v11524_v57, %v470_v48  ;;  %v576_v53 = vmul.f32 %v11516_v16, %v11239_v13  ;;  %1623 = vrot.lane.b32.xlu1 %v11357_v0, %s10865_s8  ;;  %v1008_v55 = vadd.f32 %v976_v8, %v907_v62  ;;  %v877_v42 = vmul.f32 %v11055_v51, %v11239_v13 }
 0x13a   :  { %v808_v11 = vadd.f32 %v776_v40, %v707_v31  ;;  %v809_v37 = vadd.f32 %v777_v18, %v708_v5  ;;  %1529 = vrot.lane.b32.xlu0 %v11456_v39, %s10860_s28  ;;  %v1180_v58 = vmul.f32 %v11232_v14, %v11065_v54  ;;  %v508_v22 = vmul.f32 %v11524_v57, %v471_v25  ;;  %v11549_v54 = vld [vmem:[%s15738_s1 + $0x7] ss:$0 sm:$0xff] }
 0x13b   :  { %v677_v24 = vmul.f32 %v11541_v50, %v640_v19  ;;  %v1009_v34 = vadd.f32 %v977_v10, %v908_v60  ;;  %v1078_v51 = vmul.f32 %v11105_v26, %v470_v48  ;;  %v1079_v41 = vmul.f32 %v11105_v26, %v471_v25  ;;  %v472_v25 = vld [vmem:[#allocation2 + $0x120] sm:$0xff] }
 0x13c   :  { %v909_v62 = vadd.f32 %v877_v42, %v808_v11  ;;  %v910_v20 = vadd.f32 %v878_v33, %v809_v37  ;;  %v1310_v6 = vadd.f32 %v1278_v9, %v1209_v29  ;;  %v608_v59 = vadd.f32 %v576_v53, %v507_v61  ;;  %v473_v33 = vld [vmem:[#allocation2 + $0x128] sm:$0xff]  ;;  %v11590_v53 = vld [vmem:[%s15738_s1 + $0x3] ss:$0 sm:$0xff] }
 0x13d   :  { %v1179_v14 = vmul.f32 %v11549_v54, %v11239_v13  ;;  %v1372_v35 = vmax.f32 %v11370_v1, 0.0  ;;  %1671 = vrot.lane.b32.xlu1 %v11357_v0, %s10864_s7  ;;  %v979_v60 = vmul.f32 %v11080_v4, %v641_v2  ;;  %v1110_v10 = vadd.f32 %v1078_v51, %v1008_v55 }
 0x13e   :  { %v1111_v28 = vadd.f32 %v1079_v41, %v1009_v34  ;;  %v1374_v26 = vmax.f32 %v11451_v49, 0.0  ;;  %1577 = vrot.lane.b32.xlu0 %v11456_v39, %s10862_s30  ;;  %v1281_v23 = vmul.f32 %v11133_v63, %v641_v2  ;;  %v609_v31 = vadd.f32 %v577_v30, %v508_v22  ;;  %v643_v30 = vld [vmem:[#allocation2 + $0x12a] sm:$0xff] }
 0x13f   :  { %v1280_v8 = vmul.f32 %v11133_v63, %v640_v19  ;;  %v11562_v13 = vmax.f32 %v1375_v21, %v1377_v56  ;;  %v978_v1 = vmul.f32 %v11080_v4, %v640_v19  ;;  %v1211_v29 = vadd.f32 %v1179_v14, %v1110_v10  ;;  %v11577_v4 = vld [vmem:[%s15738_s1 + $0x4] ss:$0 sm:$0xff] }
 0x140   :  { %v1212_v9 = vadd.f32 %v1180_v58, %v1111_v28  ;;  %v11565_v48 = vmax.f32 %v1372_v35, %v1374_v26  ;;  %v1311_v5 = vadd.f32 %v1279_v36, %v1210_v32  ;;  %v11568_v49 = vadd.f32 %v11165_v45, %v1310_v6  ;;  %v642_v58 = vld [vmem:[#allocation2 + $0x122] sm:$0xff] }
 0x141   :  { %v709_v40 = vadd.f32 %v677_v24, %v608_v59  ;;  %v579_v2 = vmul.f32 %v11516_v16, %v11249_v52  ;;  %1719 = vrot.lane.b32.xlu1 %v11357_v0, %s10866_s0  ;;  %v880_v21 = vmul.f32 %v11577_v4, %v11249_v52  ;;  %v509_v36 = vmul.f32 %v11524_v57, %v472_v25 }
 0x142   :  { %v510_v56 = vmul.f32 %v11524_v57, %v473_v33  ;;  %v578_v32 = vmul.f32 %v11516_v16, %v11255_v46  ;;  %1625 = vrot.lane.b32.xlu0 %v11456_v39, %s10865_s8  ;;  %v1312_v18 = vadd.f32 %v1280_v8, %v1211_v29  ;;  %v710_v61 = vadd.f32 %v678_v27, %v609_v31 }
 0x143   :  { %v778_v55 = vmul.f32 %v11590_v53, %v472_v25  ;;  %v779_v19 = vmul.f32 %v11590_v53, %v473_v33  ;;  %v1010_v11 = vadd.f32 %v978_v1, %v909_v62  ;;  %v680_v37 = vmul.f32 %v11541_v50, %v643_v30  ;;  %v11605_v62 = vld [vmem:[%s15738_s1 + $0x6] ss:$0 sm:$0xff]  ;;  %v11621_v1 = vld [vmem:[%s15738_s1 + $0x5] ss:$0 sm:$0xff] }
 0x144   :  { %v1182_v42 = vmul.f32 %v11549_v54, %v11249_v52  ;;  %v879_v22 = vmul.f32 %v11577_v4, %v11255_v46  ;;  %v679_v27 = vmul.f32 %v11541_v50, %v642_v58  ;;  %v1011_v51 = vadd.f32 %v979_v60, %v910_v20 }
 0x145   :  { %v810_v24 = vadd.f32 %v778_v55, %v709_v40  ;;  %v811_v34 = vadd.f32 %v779_v19, %v710_v61  ;;  %1435 = vrot.lane.b32.xlu1 %v11448_v43, %s10861_s29  ;;  %v610_v41 = vadd.f32 %v578_v32, %v509_v36  ;;  %v611_v6 = vadd.f32 %v579_v2, %v510_v56  ;;  %v475_v2 = vld [vmem:[#allocation2 + $0x140] sm:$0xff] }
 0x146   :  { %v1080_v52 = vmul.f32 %v11605_v62, %v472_v25  ;;  %v1081_v59 = vmul.f32 %v11605_v62, %v473_v33  ;;  %1673 = vrot.lane.b32.xlu0 %v11456_v39, %s10864_s7  ;;  %v1349_v14 = vadd.f32 %v11165_v45, %v1312_v18  ;;  %v1181_v60 = vmul.f32 %v11549_v54, %v11255_v46 }
 0x147   :  { %v911_v20 = vadd.f32 %v879_v22, %v810_v24  ;;  %v912_v35 = vadd.f32 %v880_v21, %v811_v34  ;;  %v11615_v10 = vadd.f32 %v11165_v45, %v1311_v5  ;;  %v1379_v28 = vmax.f32 %v11568_v49, 0.0 }
 0x148   :  { %v1112_v26 = vadd.f32 %v1080_v52, %v1010_v11  ;;  %v1113_v31 = vadd.f32 %v1081_v59, %v1011_v51  ;;  %v1313_v8 = vadd.f32 %v1281_v23, %v1212_v9  ;;  %v981_v29 = vmul.f32 %v11621_v1, %v643_v30  ;;  %v474_v23 = vld [vmem:[#allocation2 + $0x138] sm:$0xff] }
 0x149   :  { %v1283_v25 = vmul.f32 %v11133_v63, %v643_v30  ;;  %v980_v33 = vmul.f32 %v11621_v1, %v642_v58  ;;  %1483 = vrot.lane.b32.xlu1 %v11448_v43, %s10863_s6  ;;  %v711_v46 = vadd.f32 %v679_v27, %v610_v41  ;;  %v1282_v40 = vmul.f32 %v11133_v63, %v642_v58  ;;  %v644_v11 = vld [vmem:[#allocation2 + $0x13a] sm:$0xff]  ;;  %v645_v41 = vld [vmem:[#allocation2 + $0x142] sm:$0xff] }
 0x14a   :  { %v1213_v5 = vadd.f32 %v1181_v60, %v1112_v26  ;;  %v1214_v49 = vadd.f32 %v1182_v42, %v1113_v31  ;;  %1721 = vrot.lane.b32.xlu0 %v11456_v39, %s10866_s0  ;;  %v1381_v9 = vmax.f32 %v1349_v14, 0.0  ;;  %v511_v21 = vmul.f32 %v11524_v57, %v474_v23  ;;  %v11658_v26 = vld [vmem:[%s15738_s1 + $0x8] ss:$0 sm:$0xff] }
 0x14b   :  { %v580_v36 = vmul.f32 %v11516_v16, %v11277_v47  ;;  %v712_v56 = vadd.f32 %v680_v37, %v611_v6  ;;  %v581_v32 = vmul.f32 %v11516_v16, %v11269_v17  ;;  %v882_v18 = vmul.f32 %v11577_v4, %v11269_v17 }
 0x14c   :  { %v780_v63 = vmul.f32 %v11590_v53, %v474_v23  ;;  %v781_v30 = vmul.f32 %v11590_v53, %v475_v2  ;;  %v1012_v61 = vadd.f32 %v980_v33, %v911_v20  ;;  %v1184_v55 = vmul.f32 %v11549_v54, %v11269_v17 }
 0x14d   :  { %v512_v19 = vmul.f32 %v11524_v57, %v475_v2  ;;  %v881_v37 = vmul.f32 %v11577_v4, %v11277_v47  ;;  %1531 = vrot.lane.b32.xlu1 %v11448_v43, %s10860_s28  ;;  %v1314_v42 = vadd.f32 %v1282_v40, %v1213_v5  ;;  %v681_v58 = vmul.f32 %v11541_v50, %v644_v11 }
 0x14e   :  { %v812_v22 = vadd.f32 %v780_v63, %v711_v46  ;;  %v813_v27 = vadd.f32 %v781_v30, %v712_v56  ;;  %1437 = vrot.lane.b32.xlu0 %v11565_v48, %s10861_s29  ;;  %v612_v24 = vadd.f32 %v580_v36, %v511_v21  ;;  %v1013_v34 = vadd.f32 %v981_v29, %v912_v35 }
 0x14f   :  { %v1082_v17 = vmul.f32 %v11605_v62, %v474_v23  ;;  %v1083_v51 = vmul.f32 %v11605_v62, %v475_v2  ;;  %v982_v59 = vmul.f32 %v11621_v1, %v644_v11  ;;  %v1183_v14 = vmul.f32 %v11549_v54, %v11277_v47  ;;  %v476_v2 = vld [vmem:[#allocation2 + $0x150] sm:$0xff] }
 0x150   :  { %v913_v6 = vadd.f32 %v881_v37, %v812_v22  ;;  %v914_v52 = vadd.f32 %v882_v18, %v813_v27  ;;  %v1284_v35 = vmul.f32 %v11658_v26, %v644_v11  ;;  %v1376_v31 = vmax.f32 %v11493_v3, 0.0  ;;  %v15777_v18 = vld [vmem:[#allocation5_spill] sm:$0xff] }
 0x151   :  { %v1114_v20 = vadd.f32 %v1082_v17, %v1012_v61  ;;  %v1115_v60 = vadd.f32 %v1083_v51, %v1013_v34  ;;  %1579 = vrot.lane.b32.xlu1 %v11448_v43, %s10862_s30  ;;  %v682_v29 = vmul.f32 %v11541_v50, %v645_v41  ;;  %v613_v33 = vadd.f32 %v581_v32, %v512_v19  ;;  %v646_v37 = vld [vmem:[#allocation2 + $0x152] sm:$0xff] }
 0x152   :  { %v1378_v46 = vmax.f32 %v11499_v44, 0.0  ;;  %v11666_v47 = vmax.f32 %v1379_v28, %v1381_v9  ;;  %v11669_v5 = vadd.f32 %v11165_v45, %v1313_v8  ;;  %1485 = vrot.lane.b32.xlu0 %v11565_v48, %s10863_s6  ;;  %v1285_v40 = vmul.f32 %v11658_v26, %v645_v41  ;;  %v477_v44 = vld [vmem:[#allocation2 + $0x158] sm:$0xff]  ;;  %v11680_v45 = vld [vmem:[%s15738_s1 + $0x9] ss:$0 sm:$0xff] }
 0x153   :  { %v1215_v23 = vadd.f32 %v1183_v14, %v1114_v20  ;;  %v1216_v3 = vadd.f32 %v1184_v55, %v1115_v60  ;;  %v1315_v21 = vadd.f32 %v1283_v25, %v1214_v49  ;;  %v983_v36 = vmul.f32 %v11621_v1, %v645_v41 }
 0x154   :  { %v713_v56 = vadd.f32 %v681_v58, %v612_v24  ;;  %v11675_v32 = vmax.f32 %v1376_v31, %v1378_v46  ;;  %v11683_v28 = vadd.f32 %v11680_v45, %v1314_v42  ;;  %v1014_v8 = vadd.f32 %v982_v59, %v913_v6  ;;  %v647_v6 = vld [vmem:[#allocation2 + $0x15a] sm:$0xff] }
 0x155   :  { %v1316_v9 = vadd.f32 %v1284_v35, %v1215_v23  ;;  %v583_v63 = vmul.f32 %v11516_v16, %v15777_v18  ;;  %1627 = vrot.lane.b32.xlu1 %v11448_v43, %s10865_s8  ;;  %v513_v25 = vmul.f32 %v11524_v57, %v476_v2  ;;  %v582_v49 = vmul.f32 %v11516_v16, %v11299_v7 }
 0x156   :  { %v714_v30 = vadd.f32 %v682_v29, %v613_v33  ;;  %v782_v61 = vmul.f32 %v11590_v53, %v476_v2  ;;  %1533 = vrot.lane.b32.xlu0 %v11565_v48, %s10860_s28  ;;  %v1317_v55 = vadd.f32 %v1285_v40, %v1216_v3  ;;  %v884_v19 = vmul.f32 %v11577_v4, %v15777_v18 }
 0x157   :  { %v1186_v11 = vmul.f32 %v11549_v54, %v15777_v18  ;;  %v783_v42 = vmul.f32 %v11590_v53, %v477_v44  ;;  %v514_v58 = vmul.f32 %v11524_v57, %v477_v44  ;;  %v683_v22 = vmul.f32 %v11541_v50, %v646_v37 }
 0x158   :  { %v814_v27 = vadd.f32 %v782_v61, %v713_v56  ;;  %v883_v24 = vmul.f32 %v11577_v4, %v11299_v7  ;;  %v11705_v34 = vadd.f32 %v11680_v45, %v1316_v9  ;;  %v1015_v51 = vadd.f32 %v983_v36, %v914_v52  ;;  %v649_v9 = vld [vmem:[#allocation2 + $0x172] sm:$0xff]  ;;  %v478_v61 = vld [vmem:[#allocation2 + $0x168] sm:$0xff] }
 0x159   :  { %v815_v17 = vadd.f32 %v783_v42, %v714_v30  ;;  %v1084_v41 = vmul.f32 %v11605_v62, %v476_v2  ;;  %1675 = vrot.lane.b32.xlu1 %v11448_v43, %s10864_s7  ;;  %v614_v59 = vadd.f32 %v582_v49, %v513_v25  ;;  %v1085_v20 = vmul.f32 %v11605_v62, %v477_v44  ;;  %v648_v42 = vld [vmem:[#allocation2 + $0x16a] sm:$0xff] }
 0x15a   :  { %v915_v14 = vadd.f32 %v883_v24, %v814_v27  ;;  %v1185_v60 = vmul.f32 %v11549_v54, %v11299_v7  ;;  %1581 = vrot.lane.b32.xlu0 %v11565_v48, %s10862_s30  ;;  %v984_v31 = vmul.f32 %v11621_v1, %v646_v37  ;;  %v1286_v29 = vmul.f32 %v11658_v26, %v646_v37  ;;  %v15778_v27 = vld [vmem:[#allocation7_spill] sm:$0xff] }
 0x15b   :  { %v916_v35 = vadd.f32 %v884_v19, %v815_v17  ;;  %v1116_v52 = vadd.f32 %v1084_v41, %v1014_v8  ;;  %v11718_v33 = vadd.f32 %v11680_v45, %v1315_v21  ;;  %v1383_v46 = vmax.f32 %v11683_v28, 0.0 }
 0x15c   :  { %v1287_v40 = vmul.f32 %v11658_v26, %v647_v6  ;;  %v1117_v23 = vadd.f32 %v1085_v20, %v1015_v51  ;;  %v11723_v3 = vadd.f32 %v11680_v45, %v1317_v55  ;;  %v684_v7 = vmul.f32 %v11541_v50, %v647_v6 }
 0x15d   :  { %v985_v2 = vmul.f32 %v11621_v1, %v647_v6  ;;  %v1217_v36 = vadd.f32 %v1185_v60, %v1116_v52  ;;  %1723 = vrot.lane.b32.xlu1 %v11448_v43, %s10866_s0  ;;  %v1385_v56 = vmax.f32 %v11705_v34, 0.0  ;;  %v615_v21 = vadd.f32 %v583_v63, %v514_v58 }
 0x15e   :  { %v715_v44 = vadd.f32 %v683_v22, %v614_v59  ;;  %v1218_v8 = vadd.f32 %v1186_v11, %v1117_v23  ;;  %1629 = vrot.lane.b32.xlu0 %v11565_v48, %s10865_s8  ;;  %v1016_v18 = vadd.f32 %v984_v31, %v915_v14  ;;  %v585_v49 = vmul.f32 %v11516_v16, %v11308_v15  ;;  %v479_v11 = vld [vmem:[#allocation2 + $0x170] sm:$0xff] }
 0x15f   :  { %v1318_v25 = vadd.f32 %v1286_v29, %v1217_v36  ;;  %v11735_v30 = vmul.f32 %v11541_v50, %v649_v9  ;;  %v886_v19 = vmul.f32 %v11577_v4, %v11308_v15  ;;  %v11740_v63 = vmul.f32 %v11621_v1, %v649_v9 }
 0x160   :  { %v1319_v55 = vadd.f32 %v1287_v40, %v1218_v8  ;;  %v515_v37 = vmul.f32 %v11524_v57, %v478_v61  ;;  %v516_v22 = vmul.f32 %v11524_v57, %v479_v11  ;;  %v584_v24 = vmul.f32 %v11516_v16, %v15778_v27  ;;  %v952_v8 = vld [vmem:[#allocation2 + $0x18a] sm:$0xff] }
 0x161   :  { %v11744_v58 = vadd.f32 %v11680_v45, %v1318_v25  ;;  %v685_v17 = vmul.f32 %v11541_v50, %v648_v42  ;;  %1439 = vrot.lane.b32.xlu1 %v11562_v13, %s10861_s29  ;;  %v11754_v51 = vmul.f32 %v11549_v54, %v11308_v15  ;;  %v11757_v41 = vmul.f32 %v11658_v26, %v649_v9 }
 0x162   :  { %v716_v6 = vadd.f32 %v684_v7, %v615_v21  ;;  %v784_v59 = vmul.f32 %v11590_v53, %v478_v61  ;;  %1677 = vrot.lane.b32.xlu0 %v11565_v48, %s10864_s7  ;;  %v11763_v16 = vadd.f32 %v11680_v45, %v1319_v55  ;;  %v616_v50 = vadd.f32 %v584_v24, %v515_v37  ;;  %v15779_v55 = vld [vmem:[#allocation8_spill] sm:$0xff]  ;;  %v749_v37 = vld [vmem:[#allocation2 + $0x180] sm:$0xff] }
 0x163   :  { %v1387_v57 = vmax.f32 %v11744_v58, 0.0  ;;  %v785_v14 = vmul.f32 %v11590_v53, %v479_v11  ;;  %v11767_v20 = vadd.f32 %v585_v49, %v516_v22  ;;  %v885_v60 = vmul.f32 %v11577_v4, %v15778_v27 }
 0x164   :  { %v816_v15 = vadd.f32 %v784_v59, %v715_v44  ;;  %v986_v31 = vmul.f32 %v11621_v1, %v648_v42  ;;  %v11772_v52 = vadd.f32 %v685_v17, %v616_v50  ;;  %v1017_v40 = vadd.f32 %v985_v2, %v916_v35 }
 0x165   :  { %v817_v29 = vadd.f32 %v785_v14, %v716_v6  ;;  %v1086_v23 = vmul.f32 %v11605_v62, %v478_v61  ;;  %1535 = vrot.lane.b32.xlu1 %v11562_v13, %s10860_s28  ;;  %v1087_v36 = vmul.f32 %v11605_v62, %v479_v11  ;;  %v1187_v21 = vmul.f32 %v11549_v54, %v15778_v27 }
 0x166   :  { %v917_v7 = vadd.f32 %v885_v60, %v816_v15  ;;  %v1288_v44 = vmul.f32 %v11658_v26, %v648_v42  ;;  %1725 = vrot.lane.b32.xlu0 %v11565_v48, %s10866_s0  ;;  %v1380_v2 = vmax.f32 %v11615_v10, 0.0  ;;  %v1382_v25 = vmax.f32 %v11669_v5, 0.0  ;;  %v750_v42 = vld [vmem:[#allocation2 + $0x188] sm:$0xff] }
 0x167   :  { %v11783_v9 = vadd.f32 %v886_v19, %v817_v29  ;;  %v1118_v35 = vadd.f32 %v1086_v23, %v1016_v18  ;;  %v1119_v61 = vadd.f32 %v1087_v36, %v1017_v40  ;;  %v11791_v11 = vmul.f32 %v11577_v4, %v15779_v55  ;;  %v10845_v19 = vld [vmem:[#allocation2] sm:$0xff] }
 0x168   :  { %v11787_v49 = vadd.f32 %v986_v31, %v917_v7  ;;  %v11793_v27 = vmax.f32 %v1380_v2, %v1382_v25  ;;  %4132 = vst.msk [vmem:[#allocation3] sm:$0xff] %vm3939_vm1, %v10845_v19  ;;  %4133 = vst.msk [vmem:[#allocation3 + $0x8] sm:$0xff] %vm3939_vm1, %v10845_v19  ;;  %v989_v10 = vmul.f32 %v11621_v1, %v952_v8  ;;  %v951_v18 = vld [vmem:[#allocation2 + $0x182] sm:$0xff]  ;;  %v1255_v40 = vld [vmem:[#allocation2 + $0x19a] sm:$0xff] }
 0x169   :  { %v1219_v22 = vadd.f32 %v1187_v21, %v1118_v35  ;;  %4134 = vst.msk [vmem:[#allocation3 + $0x10] sm:$0xff] %vm3939_vm1, %v10845_v19  ;;  %4135 = vst.msk [vmem:[#allocation3 + $0x18] sm:$0xff] %vm3939_vm1, %v10845_v19  ;;  %v1190_v5 = vmul.f32 %v11549_v54, %v15779_v55  ;;  %1631 = vrot.lane.b32.xlu1 %v11562_v13, %s10865_s8  ;;  %v1220_v24 = vadd.f32 %v11754_v51, %v1119_v61  ;;  %v1155_v29 = vld [vmem:[#allocation2 + $0x1a1] sm:$0xff] }
 0x16a   :  { %4136 = vst.msk [vmem:[#allocation3 + $0x20] sm:$0xff] %vm3939_vm1, %v10845_v19  ;;  %4137 = vst.msk [vmem:[#allocation3 + $0x28] sm:$0xff] %vm3939_vm1, %v10845_v19  ;;  %v1291_v17 = vmul.f32 %v11658_v26, %v952_v8  ;;  %v11842_v6 = vmax.f32 %v1383_v46, %v1385_v56  ;;  %v718_v59 = vadd.f32 %v11735_v30, %v11767_v20  ;;  %1487 = vrot.lane.b32.xlu0 %v11562_v13, %s10863_s6  ;;  %v1256_v25 = vld [vmem:[#allocation2 + $0x1a2] sm:$0xff] }
 0x16b   :  { %4138 = vst.msk [vmem:[#allocation3 + $0x30] sm:$0xff] %vm3939_vm1, %v10845_v19  ;;  %4139 = vst.msk [vmem:[#allocation3 + $0x38] sm:$0xff] %vm3939_vm1, %v10845_v19  ;;  %v1320_v50 = vadd.f32 %v1288_v44, %v1219_v22  ;;  %v786_v14 = vmul.f32 %v11590_v53, %v749_v37  ;;  %v787_v15 = vmul.f32 %v11590_v53, %v750_v42  ;;  %v1154_v53 = vld [vmem:[#allocation2 + $0x199] sm:$0xff]  ;;  %v1384_v61 = vmax.f32 %v11718_v33, 0.0 }
 0x16c   :  { %4140 = vst.msk [vmem:[#allocation3 + $0x40] sm:$0xff] %vm3939_vm1, %v10845_v19  ;;  %4141 = vst.msk [vmem:[#allocation3 + $0x48] sm:$0xff] %vm3939_vm1, %v10845_v19  ;;  %v887_v51 = vmul.f32 %v11577_v4, %v11428_v38  ;;  %v1321_v34 = vadd.f32 %v11757_v41, %v1220_v24  ;;  %v988_v28 = vmul.f32 %v11621_v1, %v951_v18  ;;  %v1386_v55 = vmax.f32 %v11723_v3, 0.0 }
 0x16d   :  { %4143 = vst.msk [vmem:[#allocation3 + $0x2d0] sm:$0xff] %vm3939_vm1, %v10845_v19  ;;  %4144 = vst.msk [vmem:[#allocation3 + $0x2d8] sm:$0xff] %vm3939_vm1, %v10845_v19  ;;  %v1019_v46 = vadd.f32 %v11740_v63, %v11783_v9  ;;  %v1088_v56 = vmul.f32 %v11605_v62, %v749_v37  ;;  %v1357_v30 = vadd.f32 %v11680_v45, %v1320_v50  ;;  %1727 = vrot.lane.b32.xlu1 %v11562_v13, %s10866_s0 }
 0x16e   :  { %4145 = vst.msk [vmem:[#allocation3 + $0x2e0] sm:$0xff] %vm3939_vm1, %v10845_v19  ;;  %4146 = vst.msk [vmem:[#allocation3 + $0x2e8] sm:$0xff] %vm3939_vm1, %v10845_v19  ;;  %v818_v20 = vadd.f32 %v786_v14, %v11772_v52  ;;  %v819_v60 = vadd.f32 %v787_v15, %v718_v59  ;;  %v1089_v31 = vmul.f32 %v11605_v62, %v750_v42  ;;  %1583 = vrot.lane.b32.xlu0 %v11562_v13, %s10862_s30 }
 0x16f   :  { %4147 = vst.msk [vmem:[#allocation3 + $0x2f0] sm:$0xff] %vm3939_vm1, %v10845_v19  ;;  %4148 = vst.msk [vmem:[#allocation3 + $0x2f8] sm:$0xff] %vm3939_vm1, %v10845_v19  ;;  %v1358_v4 = vadd.f32 %v11680_v45, %v1321_v34  ;;  %v1090_v1 = vmul.f32 %v10845_v19, %v11605_v62  ;;  %v1120_v63 = vadd.f32 %v1088_v56, %v11787_v49  ;;  %v1389_v52 = vmax.f32 %v1357_v30, 0.0 }
 0x170   :  { %4149 = vst.msk [vmem:[#allocation3 + $0x300] sm:$0xff] %vm3939_vm1, %v10845_v19  ;;  %4150 = vst.msk [vmem:[#allocation3 + $0x308] sm:$0xff] %vm3939_vm1, %v10845_v19  ;;  %v1189_v41 = vmul.f32 %v11549_v54, %v11428_v38  ;;  %v919_v23 = vadd.f32 %v887_v51, %v818_v20  ;;  %v920_v7 = vadd.f32 %v11791_v11, %v819_v60  ;;  %v1388_v22 = vmax.f32 %v11763_v16, 0.0 }
 0x171   :  { %4151 = vst.msk [vmem:[#allocation3 + $0x310] sm:$0xff] %vm3939_vm1, %v10845_v19  ;;  %4152 = vst.msk [vmem:[#allocation3 + $0x318] sm:$0xff] %vm3939_vm1, %v10845_v19  ;;  %v1121_v36 = vadd.f32 %v1089_v31, %v1019_v46  ;;  %v1191_v21 = vmul.f32 %v11549_v54, %v1154_v53  ;;  %v1192_v44 = vmul.f32 %v11549_v54, %v1155_v29  ;;  %1489 = vrot.lane.b32.xlu1 %v11675_v32, %s10863_s6  ;;  %v10867_v46 = vmov 1983009808  }
 0x172   :  { %4154 = vst.msk [vmem:[#allocation3 + $0x50] sm:$0xff] %vm3939_vm1, %v10845_v19  ;;  %4155 = vst.msk [vmem:[#allocation3 + $0xa0] sm:$0xff] %vm3939_vm1, %v10845_v19  ;;  %v1221_v8 = vadd.f32 %v1189_v41, %v1120_v63  ;;  %v1290_v62 = vmul.f32 %v11658_v26, %v951_v18  ;;  %v1020_v9 = vadd.f32 %v988_v28, %v919_v23  ;;  %1679 = vrot.lane.b32.xlu0 %v11562_v13, %s10864_s7  ;;  %v1768_v30 = vlaneseq }
 0x173   :  { %4156 = vst.msk [vmem:[#allocation3 + $0xf0] sm:$0xff] %vm3939_vm1, %v10845_v19  ;;  %4157 = vst.msk [vmem:[#allocation3 + $0x140] sm:$0xff] %vm3939_vm1, %v10845_v19  ;;  %v1021_v35 = vadd.f32 %v989_v10, %v920_v7  ;;  %v1222_v2 = vadd.f32 %v1190_v5, %v1121_v36  ;;  %v1292_v38 = vmul.f32 %v11658_v26, %v1255_v40  ;;  %v1390_v10 = vmax.f32 %v1358_v4, 0.0 }
 0x174   :  { %4158 = vst.msk [vmem:[#allocation3 + $0x190] sm:$0xff] %vm3939_vm1, %v10845_v19  ;;  %4159 = vst.msk [vmem:[#allocation3 + $0x1e0] sm:$0xff] %vm3939_vm1, %v10845_v19  ;;  %v1322_v49 = vadd.f32 %v1290_v62, %v1221_v8  ;;  %v11880_v54 = vmax.f32 %v1387_v57, %v1389_v52  ;;  %v1122_v11 = vadd.f32 %v1090_v1, %v1020_v9  ;;  %v1766_v56 = vunpack.c.l.s4 %v10867_v46 }
 0x175   :  { %4160 = vst.msk [vmem:[#allocation3 + $0x230] sm:$0xff] %vm3939_vm1, %v10845_v19  ;;  %4161 = vst.msk [vmem:[#allocation3 + $0x280] sm:$0xff] %vm3939_vm1, %v10845_v19  ;;  %v1123_v37 = vadd.f32 %v1090_v1, %v1021_v35  ;;  %v1323_v42 = vadd.f32 %v1291_v17, %v1222_v2  ;;  %v1293_v5 = vmul.f32 %v11658_v26, %v1256_v25  ;;  %1585 = vrot.lane.b32.xlu1 %v11675_v32, %s10862_s30  ;;  %v10868_v29 = vmov 1934713408   ;;  %v15780_v1 = vld [vmem:[#allocation6_spill] sm:$0xff] }
 0x176   :  { %4163 = vst.msk [vmem:[#allocation3 + $0x98] sm:$0xff] %vm3939_vm1, %v10845_v19  ;;  %4164 = vst.msk [vmem:[#allocation3 + $0xe8] sm:$0xff] %vm3939_vm1, %v10845_v19  ;;  %v1223_v33 = vadd.f32 %v1191_v21, %v1122_v11  ;;  %v1359_v3 = vadd.f32 %v11680_v45, %v1322_v49  ;;  %v11892_v57 = vmax.f32 %v1388_v22, %v1390_v10  ;;  %1441 = vrot.lane.b32.xlu0 %v11675_v32, %s10861_s29 }
 0x177   :  { %4165 = vst.msk [vmem:[#allocation3 + $0x138] sm:$0xff] %vm3939_vm1, %v10845_v19  ;;  %4166 = vst.msk [vmem:[#allocation3 + $0x188] sm:$0xff] %vm3939_vm1, %v10845_v19  ;;  %v1224_v18 = vadd.f32 %v1192_v44, %v1123_v37  ;;  %v1360_v58 = vadd.f32 %v11680_v45, %v1323_v42  ;;  %v1767_v60 = vunpack.c.0.s8 %v1766_v56  ;;  %v1769_v31 = vshrl.u32 %v1768_v30, 7 }
 0x178   :  { %4167 = vst.msk [vmem:[#allocation3 + $0x1d8] sm:$0xff] %vm3939_vm1, %v10845_v19  ;;  %4168 = vst.msk [vmem:[#allocation3 + $0x228] sm:$0xff] %vm3939_vm1, %v10845_v19  ;;  %v1324_v16 = vadd.f32 %v1292_v38, %v1223_v33  ;;  %v1391_v17 = vmax.f32 %v1359_v3, 0.0  ;;  %v1830_v4 = vunpack.c.l.s4 %v10868_v29 }
 0x179   :  { %4169 = vst.msk [vmem:[#allocation3 + $0x278] sm:$0xff] %vm3939_vm1, %v10845_v19  ;;  %4170 = vst.msk [vmem:[#allocation3 + $0x2c8] sm:$0xff] %vm3939_vm1, %v10845_v19  ;;  %v11885_v19 = vmax.f32 %v1384_v61, %v1386_v55  ;;  %v1325_v24 = vadd.f32 %v1293_v5, %v1224_v18  ;;  %v1392_v50 = vmax.f32 %v1360_v58, 0.0  ;;  %1681 = vrot.lane.b32.xlu1 %v11675_v32, %s10864_s7 }
 0x17a   :  { %v1361_v59 = vadd.f32 %v11680_v45, %v1324_v16  ;;  %1537 = vrot.lane.b32.xlu0 %v11675_v32, %s10860_s28  ;;  %v11923_v40 = vsub.s32 %v1767_v60, %v1769_v31  ;;  %v1831_v21 = vunpack.c.0.s8 %v1830_v4 }
 0x17b   :  { %v1362_v26 = vadd.f32 %v11680_v45, %v1325_v24 }
 0x17c   :  { %v1393_v14 = vmax.f32 %v1361_v59, 0.0  ;;  %v11938_v55 = vsub.s32 %v1831_v21, %v1769_v31 }
 0x17d   :  { %v1394_v15 = vmax.f32 %v1362_v26, 0.0  ;;  %1443 = vrot.lane.b32.xlu1 %v11666_v47, %s10861_s29 }
 0x17e   :  { %v11902_v51 = vmax.f32 %v1391_v17, %v1393_v14  ;;  %1633 = vrot.lane.b32.xlu0 %v11675_v32, %s10865_s8 }
 0x17f   :  { %v11904_v34 = vmax.f32 %v1392_v50, %v1394_v15 }
 0x181   :  { %1539 = vrot.lane.b32.xlu1 %v11666_v47, %s10860_s28 }
 0x182   :  { %1729 = vrot.lane.b32.xlu0 %v11675_v32, %s10866_s0 }
 0x183   :  { %v1526_v45 = vpop.permute.xlu1 %1525  ;;  %v1430_v28 = vpop.permute.xlu0 %1429 }
 0x184   :  { %v1915_v52 = vcombine.low %v1430_v28, %v1526_v45  ;;  %v1916_v36 = vcombine.high %v1430_v28, %v1526_v45 }
 0x185   :  { %1635 = vrot.lane.b32.xlu1 %v11666_v47, %s10865_s8 }
 0x186   :  { %1491 = vrot.lane.b32.xlu0 %v11666_v47, %s10863_s6  ;;  %v1923_v35 = vrot.slane %v1915_v52, %v11923_v40  ;;  %v1930_v61 = vrot.slane %v1916_v36, %v11923_v40 }
 0x187   :  { %v1574_v20 = vpop.permute.xlu1 %1573 }
 0x188   :  { %v1478_v53 = vpop.permute.xlu0 %1477 }
 0x189   :  { %1731 = vrot.lane.b32.xlu1 %v11666_v47, %s10866_s0  ;;  %v1899_v63 = vcombine.low %v15780_v1, %v1478_v53  ;;  %v1900_v23 = vcombine.high %v15780_v1, %v1478_v53 }
 0x18a   :  { %1587 = vrot.lane.b32.xlu0 %v11666_v47, %s10862_s30 }
 0x18b   :  { %v1670_v41 = vpop.permute.xlu1 %1669  ;;  %v1907_v44 = vrot.slane %v1899_v63, %v11923_v40  ;;  %v1914_v2 = vrot.slane %v1900_v23, %v11923_v40 }
 0x18c   :  { %v1622_v7 = vpop.permute.xlu0 %1621  ;;  %v1931_v8 = vcombine.low %v1574_v20, %v1670_v41  ;;  %v1932_v62 = vcombine.high %v1574_v20, %v1670_v41 }
 0x18d   :  { %1445 = vrot.lane.b32.xlu1 %v11793_v27, %s10861_s29  ;;  %v1963_v11 = vcombine.low %v1907_v44, %v1923_v35  ;;  %v1964_v37 = vcombine.high %v1907_v44, %v1923_v35  ;;  %v1979_v18 = vcombine.low %v1914_v2, %v1930_v61  ;;  %v1980_v3 = vcombine.high %v1914_v2, %v1930_v61 }
 0x18e   :  { %1683 = vrot.lane.b32.xlu0 %v11666_v47, %s10864_s7  ;;  %v1939_v42 = vrot.slane %v1931_v8, %v11923_v40  ;;  %v1946_v22 = vrot.slane %v1932_v62, %v11923_v40 }
 0x18f   :  { %v11931_v9 = vpop.permute.xlu1 %1475  ;;  %v1971_v26 = vrot.slane %v1963_v11, %v11938_v55  ;;  %v1978_v50 = vrot.slane %v1964_v37, %v11938_v55  ;;  %v1987_v56 = vrot.slane %v1979_v18, %v11938_v55  ;;  %v1994_v30 = vrot.slane %v1980_v3, %v11938_v55 }
 0x190   :  { %v1718_v38 = vpop.permute.xlu0 %1717  ;;  %v1763_v20 = vcombine.low %v11355_v12, %v11931_v9  ;;  %v1764_v37 = vcombine.high %v11355_v12, %v11931_v9 }
 0x191   :  { %v1947_v25 = vcombine.low %v1622_v7, %v1718_v38  ;;  %v1948_v49 = vcombine.high %v1622_v7, %v1718_v38  ;;  %1541 = vrot.lane.b32.xlu1 %v11793_v27, %s10860_s28 }
 0x192   :  { %1493 = vrot.lane.b32.xlu0 %v11793_v27, %s10863_s6  ;;  %v1771_v3 = vrot.slane %v1763_v20, %v11923_v40 }
 0x193   :  { %v1955_v10 = vrot.slane %v1947_v25, %v11923_v40  ;;  %v1962_v5 = vrot.slane %v1948_v49, %v11923_v40  ;;  %v11946_v33 = vpop.permute.xlu1 %1571 }
 0x194   :  { %v1428_v58 = vpop.permute.xlu0 %1427 }
 0x195   :  { %v1995_v16 = vcombine.low %v1939_v42, %v1955_v10  ;;  %v1996_v24 = vcombine.high %v1939_v42, %v1955_v10  ;;  %v2011_v17 = vcombine.low %v1946_v22, %v1962_v5  ;;  %v2012_v59 = vcombine.high %v1946_v22, %v1962_v5  ;;  %1637 = vrot.lane.b32.xlu1 %v11793_v27, %s10865_s8 }
 0x196   :  { %1589 = vrot.lane.b32.xlu0 %v11793_v27, %s10862_s30 }
 0x197   :  { %v2003_v14 = vrot.slane %v1995_v16, %v11938_v55  ;;  %v2010_v15 = vrot.slane %v1996_v24, %v11938_v55  ;;  %v2019_v45 = vrot.slane %v2011_v17, %v11938_v55  ;;  %v2026_v28 = vrot.slane %v2012_v59, %v11938_v55  ;;  %v1668_v46 = vpop.permute.xlu1 %1667 }
 0x198   :  { %v1524_v60 = vpop.permute.xlu0 %1523  ;;  %v1795_v10 = vcombine.low %v11946_v33, %v1668_v46  ;;  %v1796_v5 = vcombine.high %v11946_v33, %v1668_v46  ;;  %v1778_v17 = vrot.slane %v1764_v37, %v11923_v40 }
 0x199   :  { %v2027_v31 = vcombine.low %v1971_v26, %v2003_v14  ;;  %v2028_v53 = vcombine.high %v1971_v26, %v2003_v14  ;;  %v2029_v29 = vcombine.low %v1978_v50, %v2010_v15  ;;  %v2030_v4 = vcombine.high %v1978_v50, %v2010_v15  ;;  %1733 = vrot.lane.b32.xlu1 %v11793_v27, %s10866_s0 }
 0x19a   :  { %v2031_v1 = vcombine.low %v1987_v56, %v2019_v45  ;;  %v2032_v63 = vcombine.high %v1987_v56, %v2019_v45  ;;  %v2033_v41 = vcombine.low %v1994_v30, %v2026_v28  ;;  %v2034_v52 = vcombine.high %v1994_v30, %v2026_v28  ;;  %1685 = vrot.lane.b32.xlu0 %v11793_v27, %s10864_s7 }
 0x19b   :  { %v3952_v23 = vsel %vm3939_vm1, %v2027_v31, -inf  ;;  %v3953_v7 = vsel %vm3939_vm1, %v2028_v53, -inf  ;;  %v3955_v36 = vsel %vm3939_vm1, %v2029_v29, -inf  ;;  %v3956_v21 = vsel %vm3939_vm1, %v2030_v4, -inf  ;;  %v11970_v44 = vpop.permute.xlu1 %1431 }
 0x19c   :  { %v3954_v8 = vmax.f32 %v3952_v23, %v3953_v7  ;;  %v3957_v62 = vmax.f32 %v3955_v36, %v3956_v21  ;;  %v3958_v35 = vsel %vm3939_vm1, %v2031_v1, -inf  ;;  %v3959_v2 = vsel %vm3939_vm1, %v2032_v63, -inf  ;;  %v1620_v38 = vpop.permute.xlu0 %1619 }
 0x19d   :  { %v3960_v25 = vmax.f32 %v3958_v35, %v3959_v2  ;;  %v3961_v49 = vsel %vm3939_vm1, %v2033_v41, -inf  ;;  %v3962_v61 = vsel %vm3939_vm1, %v2034_v52, -inf  ;;  %1495 = vrot.lane.b32.xlu1 %v11842_v6, %s10863_s6  ;;  %v1779_v42 = vcombine.low %v1428_v58, %v1524_v60 }
 0x19e   :  { %v3963_v11 = vmax.f32 %v3961_v49, %v3962_v61  ;;  %4176 = vst.msk [vmem:[#allocation3 + $0x78] sm:$0xff] %vm3939_vm1, %v3954_v8  ;;  %4177 = vst.msk [vmem:[#allocation3 + $0x80] sm:$0xff] %vm3939_vm1, %v3957_v62  ;;  %v1780_v22 = vcombine.high %v1428_v58, %v1524_v60  ;;  %1447 = vrot.lane.b32.xlu0 %v11842_v6, %s10861_s29  ;;  %v1803_v26 = vrot.slane %v1795_v10, %v11923_v40 }
 0x19f   :  { %4178 = vst.msk [vmem:[#allocation3 + $0x88] sm:$0xff] %vm3939_vm1, %v3960_v25  ;;  %v11987_v18 = vpop.permute.xlu1 %1479  ;;  %v1787_v16 = vrot.slane %v1779_v42, %v11923_v40  ;;  %v1810_v50 = vrot.slane %v1796_v5, %v11923_v40 }
 0x1a0   :  { %4179 = vst.msk [vmem:[#allocation3 + $0x90] sm:$0xff] %vm3939_vm1, %v3963_v11  ;;  %v1794_v12 = vrot.slane %v1780_v22, %v11923_v40  ;;  %v1716_v9 = vpop.permute.xlu0 %1715  ;;  %v2035_v4 = vcombine.low %v11357_v0, %v11987_v18 }
 0x1a1   :  { %v1811_v58 = vcombine.low %v1620_v38, %v1716_v9  ;;  %v1812_v24 = vcombine.high %v1620_v38, %v1716_v9  ;;  %1591 = vrot.lane.b32.xlu1 %v11842_v6, %s10862_s30  ;;  %v1827_v59 = vcombine.low %v1771_v3, %v1787_v16  ;;  %v1828_v33 = vcombine.high %v1771_v3, %v1787_v16 }
 0x1a2   :  { %1543 = vrot.lane.b32.xlu0 %v11842_v6, %s10860_s28  ;;  %v1843_v28 = vcombine.low %v1778_v17, %v1794_v12  ;;  %v1844_v46 = vcombine.high %v1778_v17, %v1794_v12 }
 0x1a3   :  { %v1819_v14 = vrot.slane %v1811_v58, %v11923_v40  ;;  %v1826_v15 = vrot.slane %v1812_v24, %v11923_v40  ;;  %v1528_v45 = vpop.permute.xlu1 %1527  ;;  %v1835_v53 = vrot.slane %v1827_v59, %v11938_v55  ;;  %v1842_v29 = vrot.slane %v1828_v33, %v11938_v55 }
 0x1a4   :  { %v12002_v56 = vpop.permute.xlu0 %1433  ;;  %v1851_v7 = vrot.slane %v1843_v28, %v11938_v55  ;;  %v1858_v36 = vrot.slane %v1844_v46, %v11938_v55  ;;  %v2051_v21 = vcombine.low %v11970_v44, %v1528_v45  ;;  %v2052_v8 = vcombine.high %v11970_v44, %v1528_v45 }
 0x1a5   :  { %v1859_v30 = vcombine.low %v1803_v26, %v1819_v14  ;;  %v1860_v20 = vcombine.high %v1803_v26, %v1819_v14  ;;  %v1875_v60 = vcombine.low %v1810_v50, %v1826_v15  ;;  %v1876_v31 = vcombine.high %v1810_v50, %v1826_v15  ;;  %1687 = vrot.lane.b32.xlu1 %v11842_v6, %s10864_s7  ;;  %v12054_v28 = vld [vmem:[#allocation3 + $0x80] sm:$0xff]  ;;  %v12056_v46 = vld [vmem:[#allocation3 + $0x78] sm:$0xff] }
 0x1a6   :  { %1639 = vrot.lane.b32.xlu0 %v11842_v6, %s10865_s8  ;;  %v2036_v33 = vcombine.high %v11357_v0, %v11987_v18  ;;  %v2059_v50 = vrot.slane %v2051_v21, %v11923_v40  ;;  %v2066_v14 = vrot.slane %v2052_v8, %v11923_v40  ;;  %v2043_v0 = vrot.slane %v2035_v4, %v11923_v40 }
 0x1a7   :  { %v1867_v1 = vrot.slane %v1859_v30, %v11938_v55  ;;  %v1874_v63 = vrot.slane %v1860_v20, %v11938_v55  ;;  %v1883_v41 = vrot.slane %v1875_v60, %v11938_v55  ;;  %v1890_v52 = vrot.slane %v1876_v31, %v11938_v55  ;;  %v12016_v23 = vpop.permute.xlu1 %1575  ;;  %v12062_v31 = vld [vmem:[#allocation3 + $0x88] sm:$0xff] }
 0x1a8   :  { %v12022_v62 = vpop.permute.xlu0 %1481  ;;  %v2050_v45 = vrot.slane %v2036_v33, %v11923_v40  ;;  %v2099_v30 = vcombine.low %v2043_v0, %v2059_v50 }
 0x1a9   :  { %v1891_v35 = vcombine.low %v1835_v53, %v1867_v1  ;;  %v1892_v2 = vcombine.high %v1835_v53, %v1867_v1  ;;  %v1893_v38 = vcombine.low %v1842_v29, %v1874_v63  ;;  %v1894_v25 = vcombine.high %v1842_v29, %v1874_v63  ;;  %1449 = vrot.lane.b32.xlu1 %v11885_v19, %s10861_s29 }
 0x1aa   :  { %v1895_v49 = vcombine.low %v1851_v7, %v1883_v41  ;;  %v1896_v61 = vcombine.high %v1851_v7, %v1883_v41  ;;  %v1897_v11 = vcombine.low %v1858_v36, %v1890_v52  ;;  %v1898_v37 = vcombine.high %v1858_v36, %v1890_v52  ;;  %1735 = vrot.lane.b32.xlu0 %v11842_v6, %s10866_s0 }
 0x1ab   :  { %v3940_v42 = vsel %vm3939_vm1, %v1891_v35, -inf  ;;  %v3941_v44 = vsel %vm3939_vm1, %v1892_v2, -inf  ;;  %v3943_v22 = vsel %vm3939_vm1, %v1893_v38, -inf  ;;  %v3944_v10 = vsel %vm3939_vm1, %v1894_v25, -inf  ;;  %v1624_v5 = vpop.permute.xlu1 %1623 }
 0x1ac   :  { %v3942_v3 = vmax.f32 %v3940_v42, %v3941_v44  ;;  %v3945_v16 = vmax.f32 %v3943_v22, %v3944_v10  ;;  %v3946_v12 = vsel %vm3939_vm1, %v1895_v49, -inf  ;;  %v3947_v9 = vsel %vm3939_vm1, %v1896_v61, -inf  ;;  %v1530_v58 = vpop.permute.xlu0 %1529 }
 0x1ad   :  { %v3948_v24 = vmax.f32 %v3946_v12, %v3947_v9  ;;  %v3949_v17 = vsel %vm3939_vm1, %v1897_v11, -inf  ;;  %v3950_v59 = vsel %vm3939_vm1, %v1898_v37, -inf  ;;  %1545 = vrot.lane.b32.xlu1 %v11885_v19, %s10860_s28  ;;  %v2187_v20 = vcombine.low %v12002_v56, %v1530_v58 }
 0x1ae   :  { %v3951_v26 = vmax.f32 %v3949_v17, %v3950_v59  ;;  %4172 = vst.msk [vmem:[#allocation3 + $0x58] sm:$0xff] %vm3939_vm1, %v3942_v3  ;;  %4173 = vst.msk [vmem:[#allocation3 + $0x60] sm:$0xff] %vm3939_vm1, %v3945_v16  ;;  %1497 = vrot.lane.b32.xlu0 %v11885_v19, %s10863_s6  ;;  %v2100_v53 = vcombine.high %v2043_v0, %v2059_v50  ;;  %v2115_v29 = vcombine.low %v2050_v45, %v2066_v14 }
 0x1af   :  { %4174 = vst.msk [vmem:[#allocation3 + $0x68] sm:$0xff] %vm3939_vm1, %v3948_v24  ;;  %v1672_v15 = vpop.permute.xlu1 %1671  ;;  %v2116_v63 = vcombine.high %v2050_v45, %v2066_v14  ;;  %v2171_v41 = vcombine.low %v11456_v39, %v12022_v62  ;;  %v9440_v36 = vpack.i.bf16 %v12054_v28, %v12056_v46  ;;  %v2172_v21 = vcombine.high %v11456_v39, %v12022_v62 }
 0x1b0   :  { %4175 = vst.msk [vmem:[#allocation3 + $0x70] sm:$0xff] %vm3939_vm1, %v3951_v26  ;;  %v12049_v18 = vpop.permute.xlu0 %1577  ;;  %v2067_v60 = vcombine.low %v12016_v23, %v1672_v15  ;;  %v2068_v4 = vcombine.high %v12016_v23, %v1672_v15  ;;  %v2188_v8 = vcombine.high %v12002_v56, %v1530_v58  ;;  %v9445_v23 = vpack.i.bf16 %v12062_v31, %v12054_v28 }
 0x1b1   :  { %1641 = vrot.lane.b32.xlu1 %v11885_v19, %s10865_s8  ;;  %v2107_v2 = vrot.slane %v2099_v30, %v11938_v55  ;;  %v12080_v38 = vrot.slane %v2187_v20, %v11923_v40  ;;  %v2114_v39 = vrot.slane %v2100_v53, %v11938_v55  ;;  %v2123_v56 = vrot.slane %v2115_v29, %v11938_v55 }
 0x1b2   :  { %1593 = vrot.lane.b32.xlu0 %v11885_v19, %s10862_s30  ;;  %v2075_v25 = vrot.slane %v2067_v60, %v11923_v40  ;;  %v2082_v62 = vrot.slane %v2068_v4, %v11923_v40  ;;  %v2130_v37 = vrot.slane %v2116_v63, %v11938_v55  ;;  %v12094_v42 = vrot.slane %v2171_v41, %v11923_v40 }
 0x1b3   :  { %v1720_v1 = vpop.permute.xlu1 %1719  ;;  %v12100_v3 = vrot.slane %v2188_v8, %v11923_v40 }
 0x1b4   :  { %v12067_v52 = vpop.permute.xlu0 %1625  ;;  %v2083_v7 = vcombine.low %v1624_v5, %v1720_v1  ;;  %v2084_v35 = vcombine.high %v1624_v5, %v1720_v1  ;;  %v12097_v5 = vrot.slane %v2172_v21, %v11923_v40  ;;  %v2235_v9 = vcombine.low %v12094_v42, %v12080_v38 }
 0x1b5   :  { %1737 = vrot.lane.b32.xlu1 %v11885_v19, %s10866_s0  ;;  %v2236_v58 = vcombine.high %v12094_v42, %v12080_v38 }
 0x1b6   :  { %v2091_v49 = vrot.slane %v2083_v7, %v11923_v40  ;;  %1689 = vrot.lane.b32.xlu0 %v11885_v19, %s10864_s7  ;;  %v2098_v61 = vrot.slane %v2084_v35, %v11923_v40 }
 0x1b7   :  { %v12090_v11 = vpop.permute.xlu1 %1435 }
 0x1b8   :  { %v2131_v44 = vcombine.low %v2075_v25, %v2091_v49  ;;  %v2132_v22 = vcombine.high %v2075_v25, %v2091_v49  ;;  %v1674_v10 = vpop.permute.xlu0 %1673  ;;  %v2147_v16 = vcombine.low %v2082_v62, %v2098_v61  ;;  %v2148_v12 = vcombine.high %v2082_v62, %v2098_v61 }
 0x1b9   :  { %1499 = vrot.lane.b32.xlu1 %v11880_v54, %s10863_s6  ;;  %v2203_v26 = vcombine.low %v12049_v18, %v1674_v10  ;;  %v2204_v50 = vcombine.high %v12049_v18, %v1674_v10  ;;  %v2251_v62 = vcombine.low %v12097_v5, %v12100_v3  ;;  %v2252_v61 = vcombine.high %v12097_v5, %v12100_v3 }
 0x1ba   :  { %v2139_v24 = vrot.slane %v2131_v44, %v11938_v55  ;;  %v2146_v17 = vrot.slane %v2132_v22, %v11938_v55  ;;  %1451 = vrot.lane.b32.xlu0 %v11880_v54, %s10861_s29  ;;  %v2155_v59 = vrot.slane %v2147_v16, %v11938_v55  ;;  %v2162_v33 = vrot.slane %v2148_v12, %v11938_v55 }
 0x1bb   :  { %v1484_v14 = vpop.permute.xlu1 %1483  ;;  %v2211_v44 = vrot.slane %v2203_v26, %v11923_v40 }
 0x1bc   :  { %v2163_v15 = vcombine.low %v2107_v2, %v2139_v24  ;;  %v2164_v0 = vcombine.high %v2107_v2, %v2139_v24  ;;  %v2165_v45 = vcombine.low %v2114_v39, %v2146_v17  ;;  %v2166_v30 = vcombine.high %v2114_v39, %v2146_v17  ;;  %v1722_v20 = vpop.permute.xlu0 %1721 }
 0x1bd   :  { %v2167_v60 = vcombine.low %v2123_v56, %v2155_v59  ;;  %v2168_v53 = vcombine.high %v2123_v56, %v2155_v59  ;;  %v2169_v29 = vcombine.low %v2130_v37, %v2162_v33  ;;  %v2170_v4 = vcombine.high %v2130_v37, %v2162_v33  ;;  %1595 = vrot.lane.b32.xlu1 %v11880_v54, %s10862_s30 }
 0x1be   :  { %v3964_v1 = vsel %vm3939_vm1, %v2163_v15, -inf  ;;  %v3965_v63 = vsel %vm3939_vm1, %v2164_v0, -inf  ;;  %v3967_v41 = vsel %vm3939_vm1, %v2165_v45, -inf  ;;  %v3968_v18 = vsel %vm3939_vm1, %v2166_v30, -inf  ;;  %1547 = vrot.lane.b32.xlu0 %v11880_v54, %s10860_s28 }
 0x1bf   :  { %v3966_v7 = vmax.f32 %v3964_v1, %v3965_v63  ;;  %v3969_v21 = vmax.f32 %v3967_v41, %v3968_v18  ;;  %v3970_v8 = vsel %vm3939_vm1, %v2167_v60, -inf  ;;  %v3971_v35 = vsel %vm3939_vm1, %v2168_v53, -inf  ;;  %v1532_v2 = vpop.permute.xlu1 %1531 }
 0x1c0   :  { %v3972_v38 = vmax.f32 %v3970_v8, %v3971_v35  ;;  %v3973_v25 = vsel %vm3939_vm1, %v2169_v29, -inf  ;;  %v3974_v49 = vsel %vm3939_vm1, %v2170_v4, -inf  ;;  %v2219_v39 = vcombine.low %v12067_v52, %v1722_v20  ;;  %v12129_v56 = vpop.permute.xlu0 %1437 }
 0x1c1   :  { %v3975_v37 = vmax.f32 %v3973_v25, %v3974_v49  ;;  %4180 = vst.msk [vmem:[#allocation3 + $0xa8] sm:$0xff] %vm3939_vm1, %v3966_v7  ;;  %4181 = vst.msk [vmem:[#allocation3 + $0xb0] sm:$0xff] %vm3939_vm1, %v3969_v21  ;;  %v2220_v42 = vcombine.high %v12067_v52, %v1722_v20  ;;  %1691 = vrot.lane.b32.xlu1 %v11880_v54, %s10864_s7  ;;  %v2307_v10 = vcombine.low %v11448_v43, %v1484_v14 }
 0x1c2   :  { %4182 = vst.msk [vmem:[#allocation3 + $0xb8] sm:$0xff] %vm3939_vm1, %v3972_v38  ;;  %v2227_v22 = vrot.slane %v2219_v39, %v11923_v40  ;;  %v2308_v5 = vcombine.high %v11448_v43, %v1484_v14  ;;  %1643 = vrot.lane.b32.xlu0 %v11880_v54, %s10865_s8  ;;  %v2218_v52 = vrot.slane %v2204_v50, %v11923_v40  ;;  %v12188_v39 = vld [vmem:[#allocation3 + $0x90] sm:$0xff] }
 0x1c3   :  { %4183 = vst.msk [vmem:[#allocation3 + $0xc0] sm:$0xff] %vm3939_vm1, %v3975_v37  ;;  %v2234_v3 = vrot.slane %v2220_v42, %v11923_v40  ;;  %v2323_v16 = vcombine.low %v12090_v11, %v1532_v2  ;;  %v2324_v12 = vcombine.high %v12090_v11, %v1532_v2  ;;  %v12152_v24 = vpop.permute.xlu1 %1579  ;;  %v2243_v17 = vrot.slane %v2235_v9, %v11938_v55 }
 0x1c4   :  { %v2250_v59 = vrot.slane %v2236_v58, %v11938_v55  ;;  %v2267_v43 = vcombine.low %v2211_v44, %v2227_v22  ;;  %v2268_v33 = vcombine.high %v2211_v44, %v2227_v22  ;;  %v12156_v26 = vpop.permute.xlu0 %1485  ;;  %v2259_v14 = vrot.slane %v2251_v62, %v11938_v55  ;;  %v12190_v62 = vld [vmem:[#allocation3 + $0x98] sm:$0xff] }
 0x1c5   :  { %v2266_v50 = vrot.slane %v2252_v61, %v11938_v55  ;;  %v2283_v15 = vcombine.low %v2218_v52, %v2234_v3  ;;  %v2284_v0 = vcombine.high %v2218_v52, %v2234_v3  ;;  %1453 = vrot.lane.b32.xlu1 %v11892_v57, %s10861_s29  ;;  %v12165_v9 = vrot.slane %v2307_v10, %v11923_v40 }
 0x1c6   :  { %v2275_v11 = vrot.slane %v2267_v43, %v11938_v55  ;;  %v2282_v45 = vrot.slane %v2268_v33, %v11938_v55  ;;  %v12168_v58 = vrot.slane %v2308_v5, %v11923_v40  ;;  %1739 = vrot.lane.b32.xlu0 %v11880_v54, %s10866_s0  ;;  %v2331_v60 = vrot.slane %v2323_v16, %v11923_v40 }
 0x1c7   :  { %v2291_v30 = vrot.slane %v2283_v15, %v11938_v55  ;;  %v2298_v20 = vrot.slane %v2284_v0, %v11938_v55  ;;  %v12176_v53 = vrot.slane %v2324_v12, %v11923_v40  ;;  %v12178_v29 = vpop.permute.xlu1 %1627  ;;  %v2443_v3 = vcombine.low %v11565_v48, %v12156_v26 }
 0x1c8   :  { %v2299_v4 = vcombine.low %v2243_v17, %v2275_v11  ;;  %v2300_v1 = vcombine.high %v2243_v17, %v2275_v11  ;;  %v2301_v63 = vcombine.low %v2250_v59, %v2282_v45  ;;  %v2302_v41 = vcombine.high %v2250_v59, %v2282_v45  ;;  %v1534_v18 = vpop.permute.xlu0 %1533  ;;  %v12198_v16 = vld [vmem:[#allocation3 + $0xb0] sm:$0xff] }
 0x1c9   :  { %v2303_v7 = vcombine.low %v2259_v14, %v2291_v30  ;;  %v2304_v21 = vcombine.high %v2259_v14, %v2291_v30  ;;  %v2305_v8 = vcombine.low %v2266_v50, %v2298_v20  ;;  %v2306_v35 = vcombine.high %v2266_v50, %v2298_v20  ;;  %1549 = vrot.lane.b32.xlu1 %v11892_v57, %s10860_s28  ;;  %v12200_v12 = vld [vmem:[#allocation3 + $0xb8] sm:$0xff] }
 0x1ca   :  { %v3976_v2 = vsel %vm3939_vm1, %v2299_v4, -inf  ;;  %v3977_v38 = vsel %vm3939_vm1, %v2300_v1, -inf  ;;  %v3979_v25 = vsel %vm3939_vm1, %v2301_v63, -inf  ;;  %v3980_v49 = vsel %vm3939_vm1, %v2302_v41, -inf  ;;  %1501 = vrot.lane.b32.xlu0 %v11892_v57, %s10863_s6  ;;  %v12241_v63 = vld [vmem:[#allocation3 + $0xc0] sm:$0xff]  ;;  %v12243_v41 = vld [vmem:[#allocation3 + $0xa8] sm:$0xff] }
 0x1cb   :  { %v3978_v61 = vmax.f32 %v3976_v2, %v3977_v38  ;;  %v3981_v37 = vmax.f32 %v3979_v25, %v3980_v49  ;;  %v3982_v42 = vsel %vm3939_vm1, %v2303_v7, -inf  ;;  %v3983_v44 = vsel %vm3939_vm1, %v2304_v21, -inf  ;;  %v1676_v22 = vpop.permute.xlu1 %1675 }
 0x1cc   :  { %v3984_v10 = vmax.f32 %v3982_v42, %v3983_v44  ;;  %v3985_v5 = vsel %vm3939_vm1, %v2305_v8, -inf  ;;  %v3986_v52 = vsel %vm3939_vm1, %v2306_v35, -inf  ;;  %v12202_v17 = vpop.permute.xlu0 %1581  ;;  %v2371_v43 = vcombine.low %v12165_v9, %v2331_v60 }
 0x1cd   :  { %v3987_v59 = vmax.f32 %v3985_v5, %v3986_v52  ;;  %4184 = vst.msk [vmem:[#allocation3 + $0xc8] sm:$0xff] %vm3939_vm1, %v3978_v61  ;;  %4185 = vst.msk [vmem:[#allocation3 + $0xd0] sm:$0xff] %vm3939_vm1, %v3981_v37  ;;  %v2372_v33 = vcombine.high %v12165_v9, %v2331_v60  ;;  %1645 = vrot.lane.b32.xlu1 %v11892_v57, %s10865_s8  ;;  %v9455_v14 = vpack.i.bf16 %v12190_v62, %v12188_v39 }
 0x1ce   :  { %4186 = vst.msk [vmem:[#allocation3 + $0xd8] sm:$0xff] %vm3939_vm1, %v3984_v10  ;;  %v2387_v50 = vcombine.low %v12168_v58, %v12176_v53  ;;  %v2388_v15 = vcombine.high %v12168_v58, %v12176_v53  ;;  %v2459_v0 = vcombine.low %v12129_v56, %v1534_v18  ;;  %v2460_v11 = vcombine.high %v12129_v56, %v1534_v18 }
 0x1cf   :  { %1597 = vrot.lane.b32.xlu0 %v11892_v57, %s10862_s30  ;;  %4187 = vst.msk [vmem:[#allocation3 + $0xe0] sm:$0xff] %vm3939_vm1, %v3987_v59  ;;  %v2444_v45 = vcombine.high %v11565_v48, %v12156_v26  ;;  %v7065_v9 = vpack.c.bf16 %v12200_v12, %v12198_v16  ;;  %v2339_v30 = vcombine.low %v12152_v24, %v1676_v22  ;;  %v1724_v58 = vpop.permute.xlu1 %1723 }
 0x1d0   :  { %v2340_v20 = vcombine.high %v12152_v24, %v1676_v22  ;;  %v2451_v60 = vrot.slane %v2443_v3, %v11923_v40  ;;  %v2467_v56 = vrot.slane %v2459_v0, %v11923_v40  ;;  %v12230_v53 = vpop.permute.xlu0 %1629  ;;  %v2355_v4 = vcombine.low %v12178_v29, %v1724_v58 }
 0x1d1   :  { %v2356_v1 = vcombine.high %v12178_v29, %v1724_v58  ;;  %v2379_v48 = vrot.slane %v2371_v43, %v11938_v55  ;;  %v2386_v26 = vrot.slane %v2372_v33, %v11938_v55  ;;  %9128 = vmatprep.mubr.msk.bf16.mxu0 %vm3939_vm1, %v7065_v9  ;;  %1741 = vrot.lane.b32.xlu1 %v11892_v57, %s10866_s0 }
 0x1d2   :  { %v9450_v24 = vpack.i.bf16 %v12188_v39, %v12062_v31  ;;  %v2395_v18 = vrot.slane %v2387_v50, %v11938_v55  ;;  %v2402_v29 = vrot.slane %v2388_v15, %v11938_v55  ;;  %v12248_v7 = vrot.slane %v2460_v11, %v11923_v40 }
 0x1d3   :  { %v2507_v21 = vcombine.low %v2451_v60, %v2467_v56  ;;  %1693 = vrot.lane.b32.xlu0 %v11892_v57, %s10864_s7  ;;  %v2347_v8 = vrot.slane %v2339_v30, %v11923_v40  ;;  %v2354_v35 = vrot.slane %v2340_v20, %v11923_v40  ;;  %v2363_v2 = vrot.slane %v2355_v4, %v11923_v40  ;;  %v12256_v25 = vpop.permute.xlu1 %1439 }
 0x1d4   :  { %v2370_v38 = vrot.slane %v2356_v1, %v11923_v40  ;;  %v12259_v49 = vrot.slane %v2444_v45, %v11923_v40  ;;  %v2508_v61 = vcombine.high %v2451_v60, %v2467_v56  ;;  %v12261_v37 = vpop.permute.xlu0 %1677  ;;  %v9490_v42 = vpack.i.bf16 %v12198_v16, %v12243_v41 }
 0x1d5   :  { %v9500_v44 = vpack.i.bf16 %v12241_v63, %v12200_v12  ;;  %v2403_v22 = vcombine.low %v2347_v8, %v2363_v2  ;;  %v2404_v10 = vcombine.high %v2347_v8, %v2363_v2  ;;  %1503 = vrot.lane.b32.xlu1 %v11902_v51, %s10863_s6  ;;  %v12270_v3 = vrot.slane %v2507_v21, %v11938_v55 }
 0x1d6   :  { %v2419_v5 = vcombine.low %v2354_v35, %v2370_v38  ;;  %v2420_v52 = vcombine.high %v2354_v35, %v2370_v38  ;;  %v2523_v59 = vcombine.low %v12259_v49, %v12248_v7  ;;  %v2524_v43 = vcombine.high %v12259_v49, %v12248_v7 }
 0x1d7   :  { %1455 = vrot.lane.b32.xlu0 %v11902_v51, %s10861_s29  ;;  %v9495_v33 = vpack.i.bf16 %v12200_v12, %v12198_v16  ;;  %v2411_v50 = vrot.slane %v2403_v22, %v11938_v55  ;;  %v2418_v15 = vrot.slane %v2404_v10, %v11938_v55  ;;  %v1536_v45 = vpop.permute.xlu1 %1535  ;;  %v12285_v9 = vrot.slane %v2508_v61, %v11938_v55 }
 0x1d8   :  { %v2427_v0 = vrot.slane %v2419_v5, %v11938_v55  ;;  %v2434_v11 = vrot.slane %v2420_v52, %v11938_v55  ;;  %v2475_v30 = vcombine.low %v12202_v17, %v12261_v37  ;;  %v2476_v20 = vcombine.high %v12202_v17, %v12261_v37  ;;  %v1726_v58 = vpop.permute.xlu0 %1725 }
 0x1d9   :  { %v2595_v60 = vcombine.low %v12256_v25, %v1536_v45  ;;  %v2435_v56 = vcombine.low %v2379_v48, %v2411_v50  ;;  %v2436_v4 = vcombine.high %v2379_v48, %v2411_v50  ;;  %v2437_v1 = vcombine.low %v2386_v26, %v2418_v15  ;;  %1599 = vrot.lane.b32.xlu1 %v11902_v51, %s10862_s30 }
 0x1da   :  { %v2438_v7 = vcombine.high %v2386_v26, %v2418_v15  ;;  %v2439_v21 = vcombine.low %v2395_v18, %v2427_v0  ;;  %v2440_v8 = vcombine.high %v2395_v18, %v2427_v0  ;;  %v2441_v35 = vcombine.low %v2402_v29, %v2434_v11 }
 0x1db   :  { %v2442_v2 = vcombine.high %v2402_v29, %v2434_v11  ;;  %1551 = vrot.lane.b32.xlu0 %v11902_v51, %s10860_s28  ;;  %v3988_v38 = vsel %vm3939_vm1, %v2435_v56, -inf  ;;  %v3989_v17 = vsel %vm3939_vm1, %v2436_v4, -inf  ;;  %v3991_v49 = vsel %vm3939_vm1, %v2437_v1, -inf  ;;  %v12300_v61 = vpop.permute.xlu1 %1631 }
 0x1dc   :  { %v3992_v48 = vsel %vm3939_vm1, %v2438_v7, -inf  ;;  %v3990_v26 = vmax.f32 %v3988_v38, %v3989_v17  ;;  %v3994_v22 = vsel %vm3939_vm1, %v2439_v21, -inf  ;;  %v3995_v18 = vsel %vm3939_vm1, %v2440_v8, -inf  ;;  %v1488_v29 = vpop.permute.xlu0 %1487 }
 0x1dd   :  { %v3993_v37 = vmax.f32 %v3991_v49, %v3992_v48  ;;  %v3996_v10 = vmax.f32 %v3994_v22, %v3995_v18  ;;  %v3997_v5 = vsel %vm3939_vm1, %v2441_v35, -inf  ;;  %v3998_v52 = vsel %vm3939_vm1, %v2442_v2, -inf  ;;  %1695 = vrot.lane.b32.xlu1 %v11902_v51, %s10864_s7 }
 0x1de   :  { %v2491_v50 = vcombine.low %v12230_v53, %v1726_v58  ;;  %v2531_v15 = vrot.slane %v2523_v59, %v11938_v55  ;;  %v3999_v0 = vmax.f32 %v3997_v5, %v3998_v52  ;;  %4188 = vst.msk [vmem:[#allocation3 + $0xf8] sm:$0xff] %vm3939_vm1, %v3990_v26  ;;  %v2492_v11 = vcombine.high %v12230_v53, %v1726_v58 }
 0x1df   :  { %4189 = vst.msk [vmem:[#allocation3 + $0x100] sm:$0xff] %vm3939_vm1, %v3993_v37  ;;  %v2596_v56 = vcombine.high %v12256_v25, %v1536_v45  ;;  %1647 = vrot.lane.b32.xlu0 %v11902_v51, %s10865_s8  ;;  %4190 = vst.msk [vmem:[#allocation3 + $0x108] sm:$0xff] %vm3939_vm1, %v3996_v10  ;;  %v2483_v4 = vrot.slane %v2475_v30, %v11923_v40  ;;  %v2579_v59 = vcombine.low %v11562_v13, %v1488_v29  ;;  %v12321_v21 = vpop.permute.xlu1 %1727 }
 0x1e0   :  { %v2499_v1 = vrot.slane %v2491_v50, %v11923_v40  ;;  %v2580_v7 = vcombine.high %v11562_v13, %v1488_v29  ;;  %v2538_v8 = vrot.slane %v2524_v43, %v11938_v55  ;;  %4191 = vst.msk [vmem:[#allocation3 + $0x110] sm:$0xff] %vm3939_vm1, %v3999_v0  ;;  %v2490_v53 = vrot.slane %v2476_v20, %v11923_v40  ;;  %v12330_v30 = vpop.permute.xlu0 %1583 }
 0x1e1   :  { %v2506_v25 = vrot.slane %v2492_v11, %v11923_v40  ;;  %v12328_v45 = vrot.slane %v2595_v60, %v11923_v40  ;;  %v12333_v2 = vrot.slane %v2579_v59, %v11923_v40  ;;  %1457 = vrot.lane.b32.xlu1 %v11904_v34, %s10861_s29  ;;  %v12341_v38 = vrot.slane %v2596_v56, %v11923_v40  ;;  %v4506_v59 = vld [vmem:[#allocation3 + $0xc8] sm:$0xff] }
 0x1e2   :  { %v2539_v58 = vcombine.low %v2483_v4, %v2499_v1  ;;  %v2540_v35 = vcombine.high %v2483_v4, %v2499_v1  ;;  %v12336_v13 = vrot.slane %v2580_v7, %v11923_v40  ;;  %v2627_v60 = vcombine.low %v12300_v61, %v12321_v21  ;;  %v4507_v7 = vld [vmem:[#allocation3 + $0xd0] sm:$0xff] }
 0x1e3   :  { %v2555_v43 = vcombine.low %v2490_v53, %v2506_v25  ;;  %v2556_v20 = vcombine.high %v2490_v53, %v2506_v25  ;;  %1743 = vrot.lane.b32.xlu0 %v11902_v51, %s10866_s0  ;;  %v2643_v48 = vcombine.low %v12333_v2, %v12328_v45  ;;  %v2628_v26 = vcombine.high %v12300_v61, %v12321_v21  ;;  %v12353_v37 = vpop.permute.xlu1 %1489 }
 0x1e4   :  { %v2547_v17 = vrot.slane %v2539_v58, %v11938_v55  ;;  %v2554_v49 = vrot.slane %v2540_v35, %v11938_v55  ;;  %v2644_v29 = vcombine.high %v12333_v2, %v12328_v45  ;;  %v2659_v10 = vcombine.low %v12336_v13, %v12341_v38  ;;  %v1680_v5 = vpop.permute.xlu0 %1679  ;;  %v4508_v45 = vld [vmem:[#allocation3 + $0xd8] sm:$0xff]  ;;  %v4509_v58 = vld [vmem:[#allocation3 + $0xe0] sm:$0xff] }
 0x1e5   :  { %v2563_v22 = vrot.slane %v2555_v43, %v11938_v55  ;;  %v2570_v18 = vrot.slane %v2556_v20, %v11938_v55  ;;  %1553 = vrot.lane.b32.xlu1 %v11904_v34, %s10860_s28 }
 0x1e6   :  { %v2571_v52 = vcombine.low %v12270_v3, %v2547_v17  ;;  %v2572_v50 = vcombine.high %v12270_v3, %v2547_v17  ;;  %v2573_v0 = vcombine.low %v12285_v9, %v2554_v49  ;;  %v2574_v61 = vcombine.high %v12285_v9, %v2554_v49 }
 0x1e7   :  { %v2575_v11 = vcombine.low %v2531_v15, %v2563_v22  ;;  %v2576_v56 = vcombine.high %v2531_v15, %v2563_v22  ;;  %v2577_v4 = vcombine.low %v2538_v8, %v2570_v18  ;;  %v2578_v1 = vcombine.high %v2538_v8, %v2570_v18  ;;  %1505 = vrot.lane.b32.xlu0 %v11904_v34, %s10863_s6  ;;  %v12373_v25 = vpop.permute.xlu1 %1585 }
 0x1e8   :  { %v4000_v21 = vsel %vm3939_vm1, %v2571_v52, -inf  ;;  %v4001_v3 = vsel %vm3939_vm1, %v2572_v50, -inf  ;;  %v4003_v53 = vsel %vm3939_vm1, %v2573_v0, -inf  ;;  %v4004_v9 = vsel %vm3939_vm1, %v2574_v61, -inf  ;;  %v1442_v43 = vpop.permute.xlu0 %1441 }
 0x1e9   :  { %v4002_v15 = vmax.f32 %v4000_v21, %v4001_v3  ;;  %v4005_v35 = vmax.f32 %v4003_v53, %v4004_v9  ;;  %v4006_v8 = vsel %vm3939_vm1, %v2575_v11, -inf  ;;  %v4007_v2 = vsel %vm3939_vm1, %v2576_v56, -inf  ;;  %1649 = vrot.lane.b32.xlu1 %v11904_v34, %s10865_s8 }
 0x1ea   :  { %v4008_v20 = vmax.f32 %v4006_v8, %v4007_v2  ;;  %v4009_v17 = vsel %vm3939_vm1, %v2577_v4, -inf  ;;  %v4010_v49 = vsel %vm3939_vm1, %v2578_v1, -inf  ;;  %v2660_v22 = vcombine.high %v12336_v13, %v12341_v38  ;;  %v12422_v2 = vld [vmem:[#allocation3 + $0xf0] sm:$0xff] }
 0x1eb   :  { %v4011_v18 = vmax.f32 %v4009_v17, %v4010_v49  ;;  %4192 = vst.msk [vmem:[#allocation3 + $0x118] sm:$0xff] %vm3939_vm1, %v4002_v15  ;;  %4193 = vst.msk [vmem:[#allocation3 + $0x120] sm:$0xff] %vm3939_vm1, %v4005_v35  ;;  %1601 = vrot.lane.b32.xlu0 %v11904_v34, %s10862_s30  ;;  %v12387_v52 = vpack.i.bf16 %v4507_v7, %v4506_v59  ;;  %v12390_v50 = vpack.i.bf16 %v4506_v59, %v12241_v63  ;;  %v12398_v11 = vpop.permute.xlu1 %1681 }
 0x1ec   :  { %v12392_v0 = vpack.i.bf16 %v4509_v58, %v4508_v45  ;;  %4194 = vst.msk [vmem:[#allocation3 + $0x128] sm:$0xff] %vm3939_vm1, %v4008_v20  ;;  %v2635_v13 = vrot.slane %v2627_v60, %v11923_v40  ;;  %v2611_v38 = vcombine.low %v12330_v30, %v1680_v5  ;;  %v2612_v61 = vcombine.high %v12330_v30, %v1680_v5  ;;  %v1538_v60 = vpop.permute.xlu0 %1537  ;;  %v12424_v20 = vld [vmem:[#allocation3 + $0xf8] sm:$0xff] }
 0x1ed   :  { %v12400_v56 = vpack.i.bf16 %v4508_v45, %v4507_v7  ;;  %4195 = vst.msk [vmem:[#allocation3 + $0x130] sm:$0xff] %vm3939_vm1, %v4011_v18  ;;  %v2651_v4 = vrot.slane %v2643_v48, %v11938_v55  ;;  %v2658_v1 = vrot.slane %v2644_v29, %v11938_v55  ;;  %v2642_v59 = vrot.slane %v2628_v26, %v11923_v40  ;;  %v4574_v48 = vld [vmem:[#allocation3 + $0xe8] sm:$0xff] }
 0x1ee   :  { %v2715_v21 = vcombine.low %v11675_v32, %v12353_v37  ;;  %v2667_v3 = vrot.slane %v2659_v10, %v11938_v55  ;;  %v2674_v30 = vrot.slane %v2660_v22, %v11938_v55  ;;  %v2619_v5 = vrot.slane %v2611_v38, %v11923_v40  ;;  %1745 = vrot.lane.b32.xlu1 %v11904_v34, %s10866_s0 }
 0x1ef   :  { %v2626_v7 = vrot.slane %v2612_v61, %v11923_v40  ;;  %v2716_v29 = vcombine.high %v11675_v32, %v12353_v37  ;;  %v2731_v26 = vcombine.low %v1442_v43, %v1538_v60  ;;  %v2732_v53 = vcombine.high %v1442_v43, %v1538_v60  ;;  %1697 = vrot.lane.b32.xlu0 %v11904_v34, %s10864_s7  ;;  %v12420_v8 = vpop.permute.xlu1 %1443 }
 0x1f0   :  { %v2747_v9 = vcombine.low %v12373_v25, %v12398_v11  ;;  %v2675_v10 = vcombine.low %v2619_v5, %v2635_v13  ;;  %v2676_v45 = vcombine.high %v2619_v5, %v2635_v13  ;;  %v12427_v32 = vrot.slane %v2715_v21, %v11923_v40  ;;  %v12434_v17 = vpop.permute.xlu0 %1633 }
 0x1f1   :  { %v2691_v15 = vcombine.low %v2626_v7, %v2642_v59  ;;  %v2692_v35 = vcombine.high %v2626_v7, %v2642_v59  ;;  %v12430_v37 = vrot.slane %v2731_v26, %v11923_v40  ;;  %v2748_v43 = vcombine.high %v12373_v25, %v12398_v11 }
 0x1f2   :  { %v12436_v49 = vpack.i.bf16 %v4574_v48, %v4509_v58  ;;  %v2683_v22 = vrot.slane %v2675_v10, %v11938_v55  ;;  %v2690_v18 = vrot.slane %v2676_v45, %v11938_v55  ;;  %9446 = vrot.lane.b32.xlu1 %v9445_v23, %s10864_s7  ;;  %v12447_v61 = vrot.slane %v2716_v29, %v11923_v40  ;;  %v4511_v10 = vld [vmem:[#allocation3 + $0x100] sm:$0xff] }
 0x1f3   :  { %v2699_v13 = vrot.slane %v2691_v15, %v11938_v55  ;;  %v2706_v38 = vrot.slane %v2692_v35, %v11938_v55  ;;  %v12450_v25 = vrot.slane %v2732_v53, %v11923_v40  ;;  %v2779_v58 = vcombine.low %v12427_v32, %v12430_v37  ;;  %9441 = vrot.lane.b32.xlu0 %v9440_v36, %s10866_s0  ;;  %v12460_v5 = vpop.permute.xlu1 %1539  ;;  %v12474_v35 = vld [vmem:[#allocation3 + $0x120] sm:$0xff] }
 0x1f4   :  { %v9550_v11 = vpack.i.bf16 %v12424_v20, %v12422_v2  ;;  %v2707_v59 = vcombine.low %v2651_v4, %v2683_v22  ;;  %v2708_v21 = vcombine.high %v2651_v4, %v2683_v22  ;;  %v2709_v23 = vcombine.low %v2658_v1, %v2690_v18  ;;  %v1730_v53 = vpop.permute.xlu0 %1729  ;;  %v12470_v4 = vld [vmem:[#allocation3 + $0x108] sm:$0xff] }
 0x1f5   :  { %v2710_v60 = vcombine.high %v2658_v1, %v2690_v18  ;;  %v2711_v7 = vcombine.low %v2667_v3, %v2699_v13  ;;  %v2712_v48 = vcombine.high %v2667_v3, %v2699_v13  ;;  %v2713_v29 = vcombine.low %v2674_v30, %v2706_v38  ;;  %v12476_v22 = vld [vmem:[#allocation3 + $0x128] sm:$0xff] }
 0x1f6   :  { %v2714_v26 = vcombine.high %v2674_v30, %v2706_v38  ;;  %v4012_v45 = vsel %vm3939_vm1, %v2707_v59, -inf  ;;  %v4013_v28 = vsel %vm3939_vm1, %v2708_v21, -inf  ;;  %v4015_v46 = vsel %vm3939_vm1, %v2709_v23, -inf  ;;  %9456 = vrot.lane.b32.xlu1 %v9455_v14, %s10864_s7 }
 0x1f7   :  { %v4016_v36 = vsel %vm3939_vm1, %v2710_v60, -inf  ;;  %v4014_v1 = vmax.f32 %v4012_v45, %v4013_v28  ;;  %v4018_v30 = vsel %vm3939_vm1, %v2711_v7, -inf  ;;  %v4019_v15 = vsel %vm3939_vm1, %v2712_v48, -inf  ;;  %9451 = vrot.lane.b32.xlu0 %v9450_v24, %s10866_s0  ;;  %v12486_v38 = vpop.permute.xlu1 %1635  ;;  %v12524_v45 = vld [vmem:[#allocation3 + $0x118] sm:$0xff] }
 0x1f8   :  { %v4017_v3 = vmax.f32 %v4015_v46, %v4016_v36  ;;  %v4020_v18 = vmax.f32 %v4018_v30, %v4019_v15  ;;  %v4021_v62 = vsel %vm3939_vm1, %v2713_v29, -inf  ;;  %v4022_v14 = vsel %vm3939_vm1, %v2714_v26, -inf  ;;  %v1492_v24 = vpop.permute.xlu0 %1491 }
 0x1f9   :  { %v2780_v13 = vcombine.high %v12427_v32, %v12430_v37  ;;  %v4023_v59 = vmax.f32 %v4021_v62, %v4022_v14  ;;  %4196 = vst.msk [vmem:[#allocation3 + $0x148] sm:$0xff] %vm3939_vm1, %v4014_v1  ;;  %v2795_v21 = vcombine.low %v12447_v61, %v12450_v25  ;;  %v2755_v31 = vrot.slane %v2747_v9, %v11923_v40 }
 0x1fa   :  { %4197 = vst.msk [vmem:[#allocation3 + $0x150] sm:$0xff] %vm3939_vm1, %v4017_v3  ;;  %v2762_v39 = vrot.slane %v2748_v43, %v11923_v40  ;;  %4198 = vst.msk [vmem:[#allocation3 + $0x158] sm:$0xff] %vm3939_vm1, %v4020_v18  ;;  %v7077_v32 = vpack.c.bf16 %v12476_v22, %v12474_v35  ;;  %v2763_v37 = vcombine.low %v12434_v17, %v1730_v53  ;;  %9466 = vrot.lane.b32.xlu1 %v12387_v52, %s10862_s30 }
 0x1fb   :  { %v2764_v23 = vcombine.high %v12434_v17, %v1730_v53  ;;  %v12502_v60 = vpack.i.bf16 %v4511_v10, %v12424_v20  ;;  %4199 = vst.msk [vmem:[#allocation3 + $0x160] sm:$0xff] %vm3939_vm1, %v4023_v59  ;;  %v2796_v9 = vcombine.high %v12447_v61, %v12450_v25  ;;  %v2867_v43 = vcombine.low %v12420_v8, %v12460_v5  ;;  %v12520_v25 = vpop.permute.xlu1 %1731  ;;  %v12522_v53 = vld [vmem:[#allocation3 + $0x110] sm:$0xff] }
 0x1fc   :  { %v2851_v7 = vcombine.low %v11666_v47, %v1492_v24  ;;  %9461 = vrot.lane.b32.xlu0 %v12390_v50, %s10865_s8  ;;  %v12513_v17 = vpack.i.bf16 %v12470_v4, %v4511_v10  ;;  %v2787_v48 = vrot.slane %v2779_v58, %v11938_v55  ;;  %v2794_v29 = vrot.slane %v2780_v13, %v11938_v55  ;;  %v12533_v36 = vpop.permute.xlu0 %1587 }
 0x1fd   :  { %9134 = vmatprep.mubr.msk.bf16.mxu1 %vm3939_vm1, %v7077_v32  ;;  %v2771_v26 = vrot.slane %v2763_v37, %v11923_v40  ;;  %v2778_v61 = vrot.slane %v2764_v23, %v11923_v40  ;;  %v2803_v28 = vrot.slane %v2795_v21, %v11938_v55  ;;  %v2868_v10 = vcombine.high %v12420_v8, %v12460_v5 }
 0x1fe   :  { %v2852_v58 = vcombine.high %v11666_v47, %v1492_v24  ;;  %v12531_v46 = vrot.slane %v2851_v7, %v11923_v40  ;;  %9481 = vrot.lane.b32.xlu1 %v12392_v0, %s10862_s30  ;;  %v2810_v18 = vrot.slane %v2796_v9, %v11938_v55  ;;  %v12539_v62 = vrot.slane %v2867_v43, %v11923_v40 }
 0x1ff   :  { %v2811_v1 = vcombine.low %v2755_v31, %v2771_v26  ;;  %v2812_v3 = vcombine.high %v2755_v31, %v2771_v26  ;;  %v2827_v30 = vcombine.low %v2762_v39, %v2778_v61  ;;  %v2828_v15 = vcombine.high %v2762_v39, %v2778_v61  ;;  %v12555_v21 = vpop.permute.xlu1 %1445 }
 0x200   :  { %9471 = vrot.lane.b32.xlu0 %v12400_v56, %s10860_s28  ;;  %v12545_v47 = vpack.i.bf16 %v12524_v45, %v12522_v53  ;;  %v12549_v8 = vpack.i.bf16 %v12474_v35, %v12524_v45  ;;  %v12558_v31 = vrot.slane %v2868_v10, %v11923_v40  ;;  %v2866_v39 = vrot.slane %v2852_v58, %v11923_v40  ;;  %v1684_v37 = vpop.permute.xlu0 %1683 }
 0x201   :  { %v2819_v5 = vrot.slane %v2811_v1, %v11938_v55  ;;  %v2826_v14 = vrot.slane %v2812_v3, %v11938_v55  ;;  %v2835_v13 = vrot.slane %v2827_v30, %v11938_v55  ;;  %v2842_v59 = vrot.slane %v2828_v15, %v11938_v55 }
 0x202   :  { %v2915_v24 = vcombine.low %v12531_v46, %v12539_v62  ;;  %v2899_v32 = vcombine.low %v12486_v38, %v12520_v25  ;;  %9491 = vrot.lane.b32.xlu1 %v9490_v42, %s10866_s0  ;;  %v2931_v63 = vcombine.low %v2866_v39, %v12558_v31 }
 0x203   :  { %v2843_v23 = vcombine.low %v2787_v48, %v2819_v5  ;;  %v2844_v9 = vcombine.high %v2787_v48, %v2819_v5  ;;  %v2845_v43 = vcombine.low %v2794_v29, %v2826_v14  ;;  %v2846_v7 = vcombine.high %v2794_v29, %v2826_v14  ;;  %v1542_v30 = vpop.permute.xlu1 %1541 }
 0x204   :  { %v2847_v26 = vcombine.low %v2803_v28, %v2835_v13  ;;  %v2848_v61 = vcombine.high %v2803_v28, %v2835_v13  ;;  %v2849_v10 = vcombine.low %v2810_v18, %v2842_v59  ;;  %v2850_v58 = vcombine.high %v2810_v18, %v2842_v59  ;;  %9476 = vrot.lane.b32.xlu0 %v12400_v56, %s10865_s8  ;;  %v1494_v28 = vpop.permute.xlu0 %1493 }
 0x205   :  { %v4024_v1 = vsel %vm3939_vm1, %v2843_v23, -inf  ;;  %v4025_v3 = vsel %vm3939_vm1, %v2844_v9, -inf  ;;  %v4027_v48 = vsel %vm3939_vm1, %v2845_v43, -inf  ;;  %v4028_v29 = vsel %vm3939_vm1, %v2846_v7, -inf }
 0x206   :  { %v4026_v15 = vmax.f32 %v4024_v1, %v4025_v3  ;;  %v4029_v5 = vmax.f32 %v4027_v48, %v4028_v29  ;;  %v4030_v41 = vsel %vm3939_vm1, %v2847_v26, -inf  ;;  %v4031_v42 = vsel %vm3939_vm1, %v2848_v61, -inf  ;;  %9501 = vrot.lane.b32.xlu1 %v9500_v44, %s10866_s0 }
 0x207   :  { %v4032_v18 = vmax.f32 %v4030_v41, %v4031_v42  ;;  %v4033_v14 = vsel %vm3939_vm1, %v2849_v10, -inf  ;;  %v4034_v13 = vsel %vm3939_vm1, %v2850_v58, -inf  ;;  %v2900_v59 = vcombine.high %v12486_v38, %v12520_v25  ;;  %v12598_v26 = vpop.permute.xlu1 %1637 }
 0x208   :  { %v4035_v23 = vmax.f32 %v4033_v14, %v4034_v13  ;;  %4200 = vst.msk [vmem:[#allocation3 + $0x168] sm:$0xff] %vm3939_vm1, %v4026_v15  ;;  %4201 = vst.msk [vmem:[#allocation3 + $0x170] sm:$0xff] %vm3939_vm1, %v4029_v5  ;;  %v2916_v9 = vcombine.high %v12531_v46, %v12539_v62  ;;  %v2883_v43 = vcombine.low %v12533_v36, %v1684_v37  ;;  %9486 = vrot.lane.b32.xlu0 %v12436_v49, %s10860_s28  ;;  %v12605_v61 = vpop.permute.xlu0 %1589 }
 0x209   :  { %v2884_v7 = vcombine.high %v12533_v36, %v1684_v37  ;;  %4202 = vst.msk [vmem:[#allocation3 + $0x178] sm:$0xff] %vm3939_vm1, %v4032_v18  ;;  %v2932_v44 = vcombine.high %v2866_v39, %v12558_v31  ;;  %v2987_v38 = vcombine.low %v11793_v27, %v1494_v28  ;;  %v3003_v25 = vcombine.low %v12555_v21, %v1542_v30 }
 0x20a   :  { %4203 = vst.msk [vmem:[#allocation3 + $0x180] sm:$0xff] %vm3939_vm1, %v4035_v23  ;;  %v2907_v46 = vrot.slane %v2899_v32, %v11923_v40  ;;  %v2914_v36 = vrot.slane %v2900_v59, %v11923_v40  ;;  %v2891_v62 = vrot.slane %v2883_v43, %v11923_v40  ;;  %v2988_v31 = vcombine.high %v11793_v27, %v1494_v28 }
 0x20b   :  { %v2898_v37 = vrot.slane %v2884_v7, %v11923_v40  ;;  %v12609_v39 = vrot.slane %v2987_v38, %v11923_v40  ;;  %v3004_v10 = vcombine.high %v12555_v21, %v1542_v30  ;;  %v12613_v58 = vrot.slane %v3003_v25, %v11923_v40  ;;  %9516 = vrot.lane.b32.xlu1 %v12400_v56, %s10864_s7  ;;  %v1734_v15 = vpop.permute.xlu1 %1733 }
 0x20c   :  { %v2947_v32 = vcombine.low %v2891_v62, %v2907_v46  ;;  %v2948_v1 = vcombine.high %v2891_v62, %v2907_v46  ;;  %9496 = vrot.lane.b32.xlu0 %v9495_v33, %s10864_s7  ;;  %v2923_v27 = vrot.slane %v2915_v24, %v11938_v55  ;;  %v2930_v29 = vrot.slane %v2916_v9, %v11938_v55  ;;  %v1686_v28 = vpop.permute.xlu0 %1685 }
 0x20d   :  { %v2963_v3 = vcombine.low %v2898_v37, %v2914_v36  ;;  %v2964_v48 = vcombine.high %v2898_v37, %v2914_v36  ;;  %v2939_v21 = vrot.slane %v2931_v63, %v11938_v55  ;;  %v2946_v30 = vrot.slane %v2932_v44, %v11938_v55 }
 0x20e   :  { %v2955_v56 = vrot.slane %v2947_v32, %v11938_v55  ;;  %v2962_v5 = vrot.slane %v2948_v1, %v11938_v55  ;;  %v12630_v16 = vrot.slane %v2988_v31, %v11923_v40  ;;  %v12633_v12 = vrot.slane %v3004_v10, %v11923_v40 }
 0x20f   :  { %v2971_v41 = vrot.slane %v2963_v3, %v11938_v55  ;;  %v2978_v42 = vrot.slane %v2964_v48, %v11938_v55  ;;  %v3051_v33 = vcombine.low %v12609_v39, %v12613_v58  ;;  %9526 = vrot.lane.b32.xlu1 %v12436_v49, %s10864_s7  ;;  %v12641_v24 = vpack.i.bf16 %v12476_v22, %v12474_v35  ;;  %v1496_v63 = vpop.permute.xlu1 %1495 }
 0x210   :  { %v2979_v18 = vcombine.low %v2923_v27, %v2955_v56  ;;  %v2980_v14 = vcombine.high %v2923_v27, %v2955_v56  ;;  %v2981_v13 = vcombine.low %v2930_v29, %v2962_v5  ;;  %v2982_v59 = vcombine.high %v2930_v29, %v2962_v5  ;;  %9506 = vrot.lane.b32.xlu0 %v12390_v50, %s10864_s7  ;;  %v1448_v25 = vpop.permute.xlu0 %1447 }
 0x211   :  { %v2983_v23 = vcombine.low %v2939_v21, %v2971_v41  ;;  %v2984_v9 = vcombine.high %v2939_v21, %v2971_v41  ;;  %v2985_v43 = vcombine.low %v2946_v30, %v2978_v42  ;;  %v2986_v7 = vcombine.high %v2946_v30, %v2978_v42  ;;  %v12667_v21 = vld [vmem:[#allocation3 + $0x130] sm:$0xff] }
 0x212   :  { %v4036_v44 = vsel %vm3939_vm1, %v2979_v18, -inf  ;;  %v4037_v49 = vsel %vm3939_vm1, %v2980_v14, -inf  ;;  %v4039_v38 = vsel %vm3939_vm1, %v2981_v13, -inf  ;;  %v4040_v35 = vsel %vm3939_vm1, %v2982_v59, -inf }
 0x213   :  { %v4038_v46 = vmax.f32 %v4036_v44, %v4037_v49  ;;  %v4041_v36 = vmax.f32 %v4039_v38, %v4040_v35  ;;  %v4042_v62 = vsel %vm3939_vm1, %v2983_v23, -inf  ;;  %v4043_v50 = vsel %vm3939_vm1, %v2984_v9, -inf  ;;  %9531 = vrot.lane.b32.xlu1 %v12545_v47, %s10863_s6  ;;  %v12665_v29 = vpop.permute.xlu1 %1591 }
 0x214   :  { %v4044_v37 = vmax.f32 %v4042_v62, %v4043_v50  ;;  %v4045_v31 = vsel %vm3939_vm1, %v2985_v43, -inf  ;;  %v4046_v10 = vsel %vm3939_vm1, %v2986_v7, -inf  ;;  %v3052_v32 = vcombine.high %v12609_v39, %v12613_v58  ;;  %9511 = vrot.lane.b32.xlu0 %v12387_v52, %s10866_s0  ;;  %v1544_v56 = vpop.permute.xlu0 %1543  ;;  %v4582_v43 = vld [vmem:[#allocation3 + $0x138] sm:$0xff] }
 0x215   :  { %v4047_v1 = vmax.f32 %v4045_v31, %v4046_v10  ;;  %4204 = vst.msk [vmem:[#allocation3 + $0x198] sm:$0xff] %vm3939_vm1, %v4038_v46  ;;  %4205 = vst.msk [vmem:[#allocation3 + $0x1a0] sm:$0xff] %vm3939_vm1, %v4041_v36  ;;  %v3067_v3 = vcombine.low %v12630_v16, %v12633_v12  ;;  %v3019_v48 = vcombine.low %v12605_v61, %v1686_v28 }
 0x216   :  { %v3020_v27 = vcombine.high %v12605_v61, %v1686_v28  ;;  %4206 = vst.msk [vmem:[#allocation3 + $0x1a8] sm:$0xff] %vm3939_vm1, %v4044_v37  ;;  %v3068_v52 = vcombine.high %v12630_v16, %v12633_v12  ;;  %v3035_v39 = vcombine.low %v12598_v26, %v1734_v15  ;;  %v3036_v58 = vcombine.high %v12598_v26, %v1734_v15 }
 0x217   :  { %v3123_v30 = vcombine.low %v11842_v6, %v1496_v63  ;;  %4207 = vst.msk [vmem:[#allocation3 + $0x1b0] sm:$0xff] %vm3939_vm1, %v4047_v1  ;;  %v3027_v61 = vrot.slane %v3019_v48, %v11923_v40  ;;  %v3124_v41 = vcombine.high %v11842_v6, %v1496_v63  ;;  %v3139_v42 = vcombine.low %v1448_v25, %v1544_v56  ;;  %v12698_v13 = vpop.permute.xlu1 %1687 }
 0x218   :  { %v3034_v5 = vrot.slane %v3020_v27, %v11923_v40  ;;  %9536 = vrot.lane.b32.xlu1 %v12549_v8, %s10861_s29  ;;  %v3043_v28 = vrot.slane %v3035_v39, %v11923_v40  ;;  %v3050_v16 = vrot.slane %v3036_v58, %v11923_v40  ;;  %9521 = vrot.lane.b32.xlu0 %v12392_v0, %s10866_s0 }
 0x219   :  { %v12687_v26 = vpack.i.bf16 %v12667_v21, %v12476_v22  ;;  %v12691_v15 = vpack.i.bf16 %v12522_v53, %v12470_v4  ;;  %v3059_v6 = vrot.slane %v3051_v33, %v11938_v55  ;;  %v3066_v12 = vrot.slane %v3052_v32, %v11938_v55  ;;  %v1640_v22 = vpop.permute.xlu0 %1639 }
 0x21a   :  { %v3140_v18 = vcombine.high %v1448_v25, %v1544_v56  ;;  %v12696_v14 = vrot.slane %v3139_v42, %v11923_v40  ;;  %v3083_v59 = vcombine.low %v3027_v61, %v3043_v28  ;;  %v3084_v0 = vcombine.high %v3027_v61, %v3043_v28 }
 0x21b   :  { %v3099_v23 = vcombine.low %v3034_v5, %v3050_v16  ;;  %v3100_v9 = vcombine.high %v3034_v5, %v3050_v16  ;;  %v3075_v7 = vrot.slane %v3067_v3, %v11938_v55  ;;  %v3082_v4 = vrot.slane %v3068_v52, %v11938_v55  ;;  %v12723_v36 = vpop.permute.xlu1 %1449 }
 0x21c   :  { %v12703_v53 = vrot.slane %v3123_v30, %v11923_v40  ;;  %v12706_v33 = vrot.slane %v3124_v41, %v11923_v40  ;;  %9541 = vrot.lane.b32.xlu1 %v12641_v24, %s10863_s6  ;;  %v3091_v63 = vrot.slane %v3083_v59, %v11938_v55  ;;  %v3098_v44 = vrot.slane %v3084_v0, %v11938_v55 }
 0x21d   :  { %v3107_v49 = vrot.slane %v3099_v23, %v11938_v55  ;;  %v3114_v38 = vrot.slane %v3100_v9, %v11938_v55  ;;  %9546 = vrot.lane.b32.xlu0 %v12687_v26, %s10861_s29  ;;  %v12717_v35 = vrot.slane %v3140_v18, %v11923_v40  ;;  %v12726_v62 = vpack.i.bf16 %v4582_v43, %v12667_v21  ;;  %v1736_v32 = vpop.permute.xlu0 %1735 }
 0x21e   :  { %v3187_v25 = vcombine.low %v12703_v53, %v12696_v14  ;;  %v3188_v46 = vcombine.high %v12703_v53, %v12696_v14  ;;  %v3115_v50 = vcombine.low %v3059_v6, %v3091_v63  ;;  %v3116_v37 = vcombine.high %v3059_v6, %v3091_v63  ;;  %v12768_v53 = vld [vmem:[#allocation3 + $0x128] sm:$0xff] }
 0x21f   :  { %v3117_v31 = vcombine.low %v3066_v12, %v3098_v44  ;;  %v3118_v10 = vcombine.high %v3066_v12, %v3098_v44  ;;  %v3119_v1 = vcombine.low %v3075_v7, %v3107_v49  ;;  %v3120_v3 = vcombine.high %v3075_v7, %v3107_v49  ;;  %v1546_v42 = vpop.permute.xlu1 %1545 }
 0x220   :  { %v3121_v48 = vcombine.low %v3082_v4, %v3114_v38  ;;  %v3122_v27 = vcombine.high %v3082_v4, %v3114_v38  ;;  %9551 = vrot.lane.b32.xlu1 %v9550_v11, %s10865_s8  ;;  %v4048_v52 = vsel %vm3939_vm1, %v3115_v50, -inf  ;;  %v4049_v39 = vsel %vm3939_vm1, %v3116_v37, -inf  ;;  %v12766_v4 = vld [vmem:[#allocation3 + $0x120] sm:$0xff] }
 0x221   :  { %v4051_v58 = vsel %vm3939_vm1, %v3117_v31, -inf  ;;  %v4052_v30 = vsel %vm3939_vm1, %v3118_v10, -inf  ;;  %9556 = vrot.lane.b32.xlu0 %v12502_v60, %s10862_s30  ;;  %v4050_v56 = vmax.f32 %v4048_v52, %v4049_v39  ;;  %v4054_v5 = vsel %vm3939_vm1, %v3119_v1, -inf  ;;  %v1498_v16 = vpop.permute.xlu0 %1497 }
 0x222   :  { %v4053_v61 = vmax.f32 %v4051_v58, %v4052_v30  ;;  %v4055_v41 = vsel %vm3939_vm1, %v3120_v3, -inf  ;;  %v4057_v20 = vsel %vm3939_vm1, %v3121_v48, -inf  ;;  %v4058_v11 = vsel %vm3939_vm1, %v3122_v27, -inf }
 0x223   :  { %v4056_v2 = vmax.f32 %v4054_v5, %v4055_v41  ;;  %v3155_v28 = vcombine.low %v12665_v29, %v12698_v13  ;;  %v4059_v6 = vmax.f32 %v4057_v20, %v4058_v11  ;;  %4208 = vst.msk [vmem:[#allocation3 + $0x1b8] sm:$0xff] %vm3939_vm1, %v4050_v56  ;;  %v3156_v12 = vcombine.high %v12665_v29, %v12698_v13  ;;  %v12764_v7 = vpop.permute.xlu1 %1641 }
 0x224   :  { %4209 = vst.msk [vmem:[#allocation3 + $0x1c0] sm:$0xff] %vm3939_vm1, %v4053_v61  ;;  %v3171_v18 = vcombine.low %v1640_v22, %v1736_v32  ;;  %v3172_v14 = vcombine.high %v1640_v22, %v1736_v32  ;;  %9561 = vrot.lane.b32.xlu1 %v12513_v17, %s10860_s28  ;;  %v3203_v59 = vcombine.low %v12706_v33, %v12717_v35 }
 0x225   :  { %4210 = vst.msk [vmem:[#allocation3 + $0x1c8] sm:$0xff] %vm3939_vm1, %v4056_v2  ;;  %v3204_v0 = vcombine.high %v12706_v33, %v12717_v35  ;;  %v3275_v23 = vcombine.low %v12723_v36, %v1546_v42  ;;  %v3259_v9 = vcombine.low %v11885_v19, %v1498_v16  ;;  %9571 = vrot.lane.b32.xlu0 %v12691_v15, %s10862_s30  ;;  %4211 = vst.msk [vmem:[#allocation3 + $0x1d0] sm:$0xff] %vm3939_vm1, %v4059_v6  ;;  %v12778_v38 = vpop.permute.xlu0 %1593 }
 0x226   :  { %v3163_v29 = vrot.slane %v3155_v28, %v11923_v40  ;;  %v3170_v13 = vrot.slane %v3156_v12, %v11923_v40  ;;  %v3179_v22 = vrot.slane %v3171_v18, %v11923_v40  ;;  %v3186_v43 = vrot.slane %v3172_v14, %v11923_v40 }
 0x227   :  { %v3276_v33 = vcombine.high %v12723_v36, %v1546_v42  ;;  %v12772_v63 = vrot.slane %v3275_v23, %v11923_v40  ;;  %v3260_v44 = vcombine.high %v11885_v19, %v1498_v16  ;;  %v12776_v49 = vrot.slane %v3259_v9, %v11923_v40  ;;  %v1738_v52 = vpop.permute.xlu1 %1737 }
 0x228   :  { %v3219_v35 = vcombine.low %v3163_v29, %v3179_v22  ;;  %v3220_v50 = vcombine.high %v3163_v29, %v3179_v22  ;;  %v3235_v37 = vcombine.low %v3170_v13, %v3186_v43  ;;  %v3236_v31 = vcombine.high %v3170_v13, %v3186_v43  ;;  %9566 = vrot.lane.b32.xlu1 %v12513_v17, %s10865_s8 }
 0x229   :  { %v3195_v10 = vrot.slane %v3187_v25, %v11938_v55  ;;  %v3202_v36 = vrot.slane %v3188_v46, %v11938_v55  ;;  %v3211_v32 = vrot.slane %v3203_v59, %v11938_v55  ;;  %9581 = vrot.lane.b32.xlu0 %v12545_v47, %s10865_s8  ;;  %v9635_v19 = vpack.i.bf16 %v12768_v53, %v12766_v4  ;;  %v1690_v30 = vpop.permute.xlu0 %1689 }
 0x22a   :  { %v3227_v1 = vrot.slane %v3219_v35, %v11938_v55  ;;  %v3234_v3 = vrot.slane %v3220_v50, %v11938_v55  ;;  %v3243_v48 = vrot.slane %v3235_v37, %v11938_v55  ;;  %v3250_v27 = vrot.slane %v3236_v31, %v11938_v55 }
 0x22b   :  { %v3218_v25 = vrot.slane %v3204_v0, %v11938_v55  ;;  %v12795_v46 = vrot.slane %v3276_v33, %v11923_v40  ;;  %v12798_v39 = vrot.slane %v3260_v44, %v11923_v40  ;;  %v3323_v58 = vcombine.low %v12776_v49, %v12772_v63  ;;  %v1500_v18 = vpop.permute.xlu1 %1499 }
 0x22c   :  { %v3251_v56 = vcombine.low %v3195_v10, %v3227_v1  ;;  %v3252_v61 = vcombine.high %v3195_v10, %v3227_v1  ;;  %v3253_v5 = vcombine.low %v3202_v36, %v3234_v3  ;;  %v3254_v41 = vcombine.high %v3202_v36, %v3234_v3  ;;  %9576 = vrot.lane.b32.xlu1 %v12545_v47, %s10860_s28 }
 0x22d   :  { %v3255_v42 = vcombine.low %v3211_v32, %v3243_v48  ;;  %v3256_v2 = vcombine.high %v3211_v32, %v3243_v48  ;;  %v3257_v20 = vcombine.low %v3218_v25, %v3250_v27  ;;  %v3258_v11 = vcombine.high %v3218_v25, %v3250_v27  ;;  %9591 = vrot.lane.b32.xlu0 %v12641_v24, %s10860_s28  ;;  %v1452_v9 = vpop.permute.xlu0 %1451  ;;  %v4640_v32 = vld [vmem:[#allocation3 + $0x140] sm:$0xff] }
 0x22e   :  { %v4060_v28 = vsel %vm3939_vm1, %v3251_v56, -inf  ;;  %v4061_v16 = vsel %vm3939_vm1, %v3252_v61, -inf  ;;  %v4063_v6 = vsel %vm3939_vm1, %v3253_v5, -inf  ;;  %v4064_v12 = vsel %vm3939_vm1, %v3254_v41, -inf  ;;  %v4708_v25 = vld [vmem:[#allocation3 + $0x160] sm:$0xff] }
 0x22f   :  { %v4062_v14 = vmax.f32 %v4060_v28, %v4061_v16  ;;  %v4065_v59 = vmax.f32 %v4063_v6, %v4064_v12  ;;  %v4066_v0 = vsel %vm3939_vm1, %v3255_v42, -inf  ;;  %v4067_v23 = vsel %vm3939_vm1, %v3256_v2, -inf }
 0x230   :  { %v4068_v29 = vmax.f32 %v4066_v0, %v4067_v23  ;;  %v4069_v13 = vsel %vm3939_vm1, %v3257_v20, -inf  ;;  %v4070_v22 = vsel %vm3939_vm1, %v3258_v11, -inf  ;;  %v3324_v43 = vcombine.high %v12776_v49, %v12772_v63  ;;  %9586 = vrot.lane.b32.xlu1 %v12549_v8, %s10862_s30  ;;  %v12829_v49 = vpop.permute.xlu1 %1595 }
 0x231   :  { %v4071_v33 = vmax.f32 %v4069_v13, %v4070_v22  ;;  %4212 = vst.msk [vmem:[#allocation3 + $0x1e8] sm:$0xff] %vm3939_vm1, %v4062_v14  ;;  %4213 = vst.msk [vmem:[#allocation3 + $0x1f0] sm:$0xff] %vm3939_vm1, %v4065_v59  ;;  %v3339_v44 = vcombine.low %v12798_v39, %v12795_v46  ;;  %v3307_v35 = vcombine.low %v12764_v7, %v1738_v52  ;;  %9596 = vrot.lane.b32.xlu0 %v12641_v24, %s10865_s8 }
 0x232   :  { %v3308_v50 = vcombine.high %v12764_v7, %v1738_v52  ;;  %4214 = vst.msk [vmem:[#allocation3 + $0x1f8] sm:$0xff] %vm3939_vm1, %v4068_v29  ;;  %v3291_v63 = vcombine.low %v12778_v38, %v1690_v30  ;;  %v3292_v8 = vcombine.high %v12778_v38, %v1690_v30  ;;  %v9630_v37 = vpack.i.bf16 %v12766_v4, %v12524_v45  ;;  %v1548_v38 = vpop.permute.xlu0 %1547  ;;  %v12847_v52 = vld [vmem:[#allocation3 + $0x158] sm:$0xff] }
 0x233   :  { %v9640_v31 = vpack.i.bf16 %v12667_v21, %v12768_v53  ;;  %4215 = vst.msk [vmem:[#allocation3 + $0x200] sm:$0xff] %vm3939_vm1, %v4071_v33  ;;  %v3340_v7 = vcombine.high %v12798_v39, %v12795_v46  ;;  %v3315_v24 = vrot.slane %v3307_v35, %v11923_v40  ;;  %v3395_v36 = vcombine.low %v11880_v54, %v1500_v18  ;;  %v12849_v46 = vld [vmem:[#allocation3 + $0x148] sm:$0xff] }
 0x234   :  { %v3322_v10 = vrot.slane %v3308_v50, %v11923_v40  ;;  %v3331_v1 = vrot.slane %v3323_v58, %v11938_v55  ;;  %v3338_v3 = vrot.slane %v3324_v43, %v11938_v55  ;;  %v3299_v48 = vrot.slane %v3291_v63, %v11923_v40  ;;  %9601 = vrot.lane.b32.xlu1 %v12687_v26, %s10862_s30  ;;  %v12855_v2 = vpop.permute.xlu1 %1691 }
 0x235   :  { %v3306_v27 = vrot.slane %v3292_v8, %v11923_v40  ;;  %v3347_v39 = vrot.slane %v3339_v44, %v11938_v55  ;;  %v3396_v30 = vcombine.high %v11880_v54, %v1500_v18  ;;  %v3411_v56 = vcombine.low %v1452_v9, %v1548_v38  ;;  %9606 = vrot.lane.b32.xlu0 %v12726_v62, %s10860_s28 }
 0x236   :  { %v3412_v58 = vcombine.high %v1452_v9, %v1548_v38  ;;  %v3355_v61 = vcombine.low %v3299_v48, %v3315_v24  ;;  %v3356_v5 = vcombine.high %v3299_v48, %v3315_v24  ;;  %v3354_v26 = vrot.slane %v3340_v7, %v11938_v55  ;;  %v1644_v11 = vpop.permute.xlu0 %1643 }
 0x237   :  { %v3371_v41 = vcombine.low %v3306_v27, %v3322_v10  ;;  %v3372_v42 = vcombine.high %v3306_v27, %v3322_v10  ;;  %v12859_v20 = vrot.slane %v3395_v36, %v11923_v40  ;;  %v12862_v28 = vpack.i.bf16 %v4708_v25, %v12847_v52 }
 0x238   :  { %v12865_v54 = vpack.i.bf16 %v12849_v46, %v4640_v32  ;;  %v3363_v16 = vrot.slane %v3355_v61, %v11938_v55  ;;  %v3370_v6 = vrot.slane %v3356_v5, %v11938_v55  ;;  %9611 = vrot.lane.b32.xlu1 %v12502_v60, %s10866_s0  ;;  %v12874_v14 = vrot.slane %v3396_v30, %v11923_v40  ;;  %v1454_v60 = vpop.permute.xlu1 %1453 }
 0x239   :  { %v3379_v12 = vrot.slane %v3371_v41, %v11938_v55  ;;  %v3386_v18 = vrot.slane %v3372_v42, %v11938_v55  ;;  %v12877_v59 = vrot.slane %v3411_v56, %v11923_v40  ;;  %v12880_v0 = vrot.slane %v3412_v58, %v11923_v40  ;;  %9616 = vrot.lane.b32.xlu0 %v12513_v17, %s10864_s7  ;;  %v12892_v17 = vld [vmem:[#allocation3 + $0x168] sm:$0xff] }
 0x23a   :  { %v3427_v23 = vcombine.low %v12829_v49, %v12855_v2  ;;  %v3387_v9 = vcombine.low %v3331_v1, %v3363_v16  ;;  %v3388_v29 = vcombine.high %v3331_v1, %v3363_v16  ;;  %v3389_v13 = vcombine.low %v3338_v3, %v3370_v6  ;;  %v1740_v50 = vpop.permute.xlu0 %1739 }
 0x23b   :  { %v3390_v22 = vcombine.high %v3338_v3, %v3370_v6  ;;  %v3391_v43 = vcombine.low %v3347_v39, %v3379_v12  ;;  %v3392_v33 = vcombine.high %v3347_v39, %v3379_v12  ;;  %v3393_v44 = vcombine.low %v3354_v26, %v3386_v18  ;;  %v12933_v12 = vld [vmem:[#allocation3 + $0x150] sm:$0xff] }
 0x23c   :  { %v3394_v35 = vcombine.high %v3354_v26, %v3386_v18  ;;  %v4072_v63 = vsel %vm3939_vm1, %v3387_v9, -inf  ;;  %v4073_v8 = vsel %vm3939_vm1, %v3388_v29, -inf  ;;  %v4075_v7 = vsel %vm3939_vm1, %v3389_v13, -inf  ;;  %9621 = vrot.lane.b32.xlu1 %v12691_v15, %s10866_s0  ;;  %v1550_v15 = vpop.permute.xlu1 %1549 }
 0x23d   :  { %v4076_v24 = vsel %vm3939_vm1, %v3390_v22, -inf  ;;  %v4074_v10 = vmax.f32 %v4072_v63, %v4073_v8  ;;  %v4078_v38 = vsel %vm3939_vm1, %v3391_v43, -inf  ;;  %v4079_v32 = vsel %vm3939_vm1, %v3392_v33, -inf  ;;  %9626 = vrot.lane.b32.xlu0 %v12545_v47, %s10864_s7 }
 0x23e   :  { %v4077_v36 = vmax.f32 %v4075_v7, %v4076_v24  ;;  %v4080_v1 = vmax.f32 %v4078_v38, %v4079_v32  ;;  %v4081_v3 = vsel %vm3939_vm1, %v3393_v44, -inf  ;;  %v4082_v48 = vsel %vm3939_vm1, %v3394_v35, -inf  ;;  %v1502_v56 = vpop.permute.xlu0 %1501 }
 0x23f   :  { %v3428_v27 = vcombine.high %v12829_v49, %v12855_v2  ;;  %v4083_v39 = vmax.f32 %v4081_v3, %v4082_v48  ;;  %4216 = vst.msk [vmem:[#allocation3 + $0x208] sm:$0xff] %vm3939_vm1, %v4074_v10  ;;  %v3459_v30 = vcombine.low %v12859_v20, %v12877_v59  ;;  %v3460_v47 = vcombine.high %v12859_v20, %v12877_v59 }
 0x240   :  { %4217 = vst.msk [vmem:[#allocation3 + $0x210] sm:$0xff] %vm3939_vm1, %v4077_v36  ;;  %v12909_v58 = vpack.i.bf16 %v12892_v17, %v4708_v25  ;;  %4218 = vst.msk [vmem:[#allocation3 + $0x218] sm:$0xff] %vm3939_vm1, %v4080_v1  ;;  %v3475_v49 = vcombine.low %v12874_v14, %v12880_v0  ;;  %v3476_v61 = vcombine.high %v12874_v14, %v12880_v0  ;;  %9636 = vrot.lane.b32.xlu1 %v9635_v19, %s10864_s7  ;;  %v12931_v6 = vpop.permute.xlu1 %1645 }
 0x241   :  { %v3443_v5 = vcombine.low %v1644_v11, %v1740_v50  ;;  %v3444_v41 = vcombine.high %v1644_v11, %v1740_v50  ;;  %4219 = vst.msk [vmem:[#allocation3 + $0x220] sm:$0xff] %vm3939_vm1, %v4083_v39  ;;  %v3547_v42 = vcombine.low %v1454_v60, %v1550_v15  ;;  %v3548_v25 = vcombine.high %v1454_v60, %v1550_v15 }
 0x242   :  { %v3531_v2 = vcombine.low %v11892_v57, %v1502_v56  ;;  %v3532_v26 = vcombine.high %v11892_v57, %v1502_v56  ;;  %9631 = vrot.lane.b32.xlu0 %v9630_v37, %s10866_s0  ;;  %v3435_v20 = vrot.slane %v3427_v23, %v11923_v40  ;;  %v3442_v11 = vrot.slane %v3428_v27, %v11923_v40  ;;  %v12947_v37 = vpop.permute.xlu0 %1597 }
 0x243   :  { %v3451_v16 = vrot.slane %v3443_v5, %v11923_v40  ;;  %v3458_v19 = vrot.slane %v3444_v41, %v11923_v40  ;;  %v12936_v18 = vrot.slane %v3547_v42, %v11923_v40  ;;  %v12939_v57 = vrot.slane %v3548_v25, %v11923_v40 }
 0x244   :  { %v12942_v45 = vrot.slane %v3531_v2, %v11923_v40  ;;  %v12945_v4 = vrot.slane %v3532_v26, %v11923_v40  ;;  %9646 = vrot.lane.b32.xlu1 %v12726_v62, %s10864_s7  ;;  %v3467_v9 = vrot.slane %v3459_v30, %v11938_v55  ;;  %v3474_v29 = vrot.slane %v3460_v47, %v11938_v55  ;;  %v1742_v44 = vpop.permute.xlu1 %1741 }
 0x245   :  { %v3491_v14 = vcombine.low %v3435_v20, %v3451_v16  ;;  %v3492_v59 = vcombine.high %v3435_v20, %v3451_v16  ;;  %v3507_v0 = vcombine.low %v3442_v11, %v3458_v19  ;;  %v3508_v23 = vcombine.high %v3442_v11, %v3458_v19 }
 0x246   :  { %v3483_v13 = vrot.slane %v3475_v49, %v11938_v55  ;;  %9641 = vrot.lane.b32.xlu0 %v9640_v31, %s10866_s0  ;;  %v12960_v22 = vpack.i.bf16 %v12933_v12, %v12849_v46  ;;  %v3490_v35 = vrot.slane %v3476_v61, %v11938_v55  ;;  %v3595_v50 = vcombine.low %v12942_v45, %v12936_v18  ;;  %v1694_v31 = vpop.permute.xlu0 %1693  ;;  %v4710_v49 = vld [vmem:[#allocation3 + $0x170] sm:$0xff] }
 0x247   :  { %v3499_v60 = vrot.slane %v3491_v14, %v11938_v55  ;;  %v3506_v43 = vrot.slane %v3492_v59, %v11938_v55  ;;  %v3515_v62 = vrot.slane %v3507_v0, %v11938_v55  ;;  %v3522_v33 = vrot.slane %v3508_v23, %v11938_v55  ;;  %v4647_v59 = vld [vmem:[#allocation3 + $0x178] sm:$0xff]  ;;  %v13015_v0 = vld [vmem:[#allocation3 + $0x180] sm:$0xff] }
 0x248   :  { %v3596_v21 = vcombine.high %v12942_v45, %v12936_v18  ;;  %v3611_v53 = vcombine.low %v12945_v4, %v12939_v57  ;;  %9666 = vrot.lane.b32.xlu1 %v12862_v28, %s10861_s29  ;;  %v12981_v27 = vpop.permute.xlu1 %1503  ;;  %v3579_v42 = vcombine.low %v12931_v6, %v1742_v44  ;;  %v3580_v2 = vcombine.high %v12931_v6, %v1742_v44 }
 0x249   :  { %v3523_v46 = vcombine.low %v3467_v9, %v3499_v60  ;;  %v3524_v63 = vcombine.high %v3467_v9, %v3499_v60  ;;  %v3525_v8 = vcombine.low %v3474_v29, %v3506_v43  ;;  %v3526_v7 = vcombine.high %v3474_v29, %v3506_v43 }
 0x24a   :  { %v3527_v24 = vcombine.low %v3483_v13, %v3515_v62  ;;  %v3528_v10 = vcombine.high %v3483_v13, %v3515_v62  ;;  %v3529_v36 = vcombine.low %v3490_v35, %v3522_v33  ;;  %v3530_v38 = vcombine.high %v3490_v35, %v3522_v33  ;;  %9651 = vrot.lane.b32.xlu0 %v12865_v54, %s10863_s6  ;;  %v1456_v56 = vpop.permute.xlu0 %1455 }
 0x24b   :  { %v4084_v32 = vsel %vm3939_vm1, %v3523_v46, -inf  ;;  %v4085_v1 = vsel %vm3939_vm1, %v3524_v63, -inf  ;;  %v4087_v3 = vsel %vm3939_vm1, %v3525_v8, -inf  ;;  %v4088_v48 = vsel %vm3939_vm1, %v3526_v7, -inf }
 0x24c   :  { %v4086_v15 = vmax.f32 %v4084_v32, %v4085_v1  ;;  %v4089_v39 = vmax.f32 %v4087_v3, %v4088_v48  ;;  %v4090_v30 = vsel %vm3939_vm1, %v3527_v24, -inf  ;;  %v4091_v47 = vsel %vm3939_vm1, %v3528_v10, -inf  ;;  %9671 = vrot.lane.b32.xlu1 %v12909_v58, %s10863_s6  ;;  %v13001_v19 = vpop.permute.xlu1 %1599 }
 0x24d   :  { %v4092_v61 = vmax.f32 %v4090_v30, %v4091_v47  ;;  %v4093_v5 = vsel %vm3939_vm1, %v3529_v36, -inf  ;;  %v4094_v41 = vsel %vm3939_vm1, %v3530_v38, -inf  ;;  %v3563_v26 = vcombine.low %v12947_v37, %v1694_v31  ;;  %v13060_v30 = vld [vmem:[%s15740_s2 + $0x8] sm:$0xff]  }
 0x24e   :  { %v4095_v25 = vmax.f32 %v4093_v5, %v4094_v41  ;;  %4220 = vst.msk [vmem:[#allocation3 + $0x238] sm:$0xff] %vm3939_vm1, %v4086_v15  ;;  %4221 = vst.msk [vmem:[#allocation3 + $0x240] sm:$0xff] %vm3939_vm1, %v4089_v39  ;;  %v3564_v20 = vcombine.high %v12947_v37, %v1694_v31  ;;  %9656 = vrot.lane.b32.xlu0 %v12960_v22, %s10861_s29  ;;  %v3612_v11 = vcombine.high %v12945_v4, %v12939_v57  ;;  %v1552_v4 = vpop.permute.xlu0 %1551  ;;  %v10869_v8 = vmov 0  }
 0x24f   :  { %4222 = vst.msk [vmem:[#allocation3 + $0x248] sm:$0xff] %vm3939_vm1, %v4092_v61  ;;  %v3587_v16 = vrot.slane %v3579_v42, %v11923_v40  ;;  %v13004_v18 = vpack.i.bf16 %v4710_v49, %v12892_v17  ;;  %v13008_v6 = vpack.i.bf16 %v12847_v52, %v12933_v12  ;;  %v3603_v45 = vrot.slane %v3595_v50, %v11938_v55  ;;  %v10800_v50 = vld [vmem:[%s15740_s2] sm:$0xff]  }
 0x250   :  { %4223 = vst.msk [vmem:[#allocation3 + $0x250] sm:$0xff] %vm3939_vm1, %v4095_v25  ;;  %v3594_v37 = vrot.slane %v3580_v2, %v11923_v40  ;;  %v3571_v14 = vrot.slane %v3563_v26, %v11923_v40  ;;  %v3578_v57 = vrot.slane %v3564_v20, %v11923_v40  ;;  %v3610_v17 = vrot.slane %v3596_v21, %v11938_v55  ;;  %v13024_v33 = vpop.permute.xlu1 %1695 }
 0x251   :  { %v3619_v23 = vrot.slane %v3611_v53, %v11938_v55  ;;  %v3683_v52 = vcombine.low %v1456_v56, %v1552_v4  ;;  %v3684_v9 = vcombine.high %v1456_v56, %v1552_v4  ;;  %9676 = vrot.lane.b32.xlu1 %v13004_v18, %s10861_s29  ;;  %v3626_v62 = vrot.slane %v3612_v11, %v11938_v55 }
 0x252   :  { %v3627_v29 = vcombine.low %v3571_v14, %v3587_v16  ;;  %v3628_v13 = vcombine.high %v3571_v14, %v3587_v16  ;;  %v3643_v60 = vcombine.low %v3578_v57, %v3594_v37  ;;  %v3644_v43 = vcombine.high %v3578_v57, %v3594_v37  ;;  %9661 = vrot.lane.b32.xlu0 %v13008_v6, %s10863_s6  ;;  %v13038_v63 = vpop.permute.xlu0 %1647  ;;  %v13085_v14 = vld [vmem:[%s15740_s2 + $0x10] sm:$0xff]  }
 0x253   :  { %v13026_v44 = vpack.i.bf16 %v4647_v59, %v4710_v49  ;;  %v13029_v35 = vpack.i.bf16 %v13015_v0, %v4647_v59  ;;  %9410 = vmatprep.subr.bf16.mxu1 %v10869_v8  ;;  %v3667_v7 = vcombine.low %v11902_v51, %v12981_v27  ;;  %v3668_v24 = vcombine.high %v11902_v51, %v12981_v27 }
 0x254   :  { %v3635_v21 = vrot.slane %v3627_v29, %v11938_v55  ;;  %v3642_v53 = vrot.slane %v3628_v13, %v11938_v55  ;;  %v3651_v31 = vrot.slane %v3643_v60, %v11938_v55  ;;  %v3658_v46 = vrot.slane %v3644_v43, %v11938_v55  ;;  %v13055_v27 = vpop.permute.xlu1 %1457  ;;  %9419 = vmatpush1.bf16.msra.mxu1 %v10800_v50 }
 0x255   :  { %v13046_v10 = vrot.slane %v3683_v52, %v11923_v40  ;;  %v13049_v36 = vrot.slane %v3684_v9, %v11923_v40  ;;  %9681 = vrot.lane.b32.xlu1 %v13026_v44, %s10863_s6  ;;  %9411 = vmatprep.subr.bf16.mxu1 %v10869_v8  ;;  %v3699_v57 = vcombine.low %v13001_v19, %v13024_v33 }
 0x256   :  { %v3659_v38 = vcombine.low %v3603_v45, %v3635_v21  ;;  %v3660_v32 = vcombine.high %v3603_v45, %v3635_v21  ;;  %v3661_v1 = vcombine.low %v3610_v17, %v3642_v53  ;;  %v3662_v3 = vcombine.high %v3610_v17, %v3642_v53  ;;  %9686 = vrot.lane.b32.xlu0 %v13029_v35, %s10861_s29  ;;  %v1744_v5 = vpop.permute.xlu0 %1743 }
 0x257   :  { %v3663_v48 = vcombine.low %v3619_v23, %v3651_v31  ;;  %v3664_v15 = vcombine.high %v3619_v23, %v3651_v31  ;;  %v3665_v39 = vcombine.low %v3626_v62, %v3658_v46  ;;  %v3666_v51 = vcombine.high %v3626_v62, %v3658_v46  ;;  %7301 = vmatprep.subr.bf16.mxu0 %v10869_v8  ;;  %v13118_v46 = vld [vmem:[%s15740_s2 + $0x18] sm:$0xff]  }
 0x258   :  { %v4096_v47 = vsel %vm3939_vm1, %v3659_v38, -inf  ;;  %v4097_v56 = vsel %vm3939_vm1, %v3660_v32, -inf  ;;  %v4099_v49 = vsel %vm3939_vm1, %v3661_v1, -inf  ;;  %v4100_v61 = vsel %vm3939_vm1, %v3662_v3, -inf  ;;  %7302 = vmatpush1.bf16.msra.mxu0 %v10800_v50  ;;  %v1554_v37 = vpop.permute.xlu1 %1553  ;;  %9420 = vmatpush1.bf16.msra.mxu1 %v13060_v30 }
 0x259   :  { %v4098_v41 = vmax.f32 %v4096_v47, %v4097_v56  ;;  %v4101_v42 = vmax.f32 %v4099_v49, %v4100_v61  ;;  %v4102_v25 = vsel %vm3939_vm1, %v3663_v48, -inf  ;;  %v4103_v2 = vsel %vm3939_vm1, %v3664_v15, -inf  ;;  %9691 = vrot.lane.b32.xlu1 %v12865_v54, %s10865_s8  ;;  %7303 = vmatprep.subr.bf16.mxu0 %v10869_v8  ;;  %v13151_v61 = vld [vmem:[%s15740_s2 + $0x20] sm:$0xff]  }
 0x25a   :  { %v4104_v26 = vmax.f32 %v4102_v25, %v4103_v2  ;;  %v4105_v20 = vsel %vm3939_vm1, %v3665_v39, -inf  ;;  %v4106_v11 = vsel %vm3939_vm1, %v3666_v51, -inf  ;;  %9696 = vrot.lane.b32.xlu0 %v12960_v22, %s10862_s30  ;;  %v3675_v45 = vrot.slane %v3667_v7, %v11923_v40  ;;  %v1506_v23 = vpop.permute.xlu0 %1505  ;;  %9412 = vmatprep.subr.bf16.mxu1 %v10869_v8 }
 0x25b   :  { %v4107_v16 = vmax.f32 %v4105_v20, %v4106_v11  ;;  %4224 = vst.msk [vmem:[#allocation3 + $0x258] sm:$0xff] %vm3939_vm1, %v4098_v41  ;;  %4225 = vst.msk [vmem:[#allocation3 + $0x260] sm:$0xff] %vm3939_vm1, %v4101_v42  ;;  %v3682_v54 = vrot.slane %v3668_v24, %v11923_v40  ;;  %v3700_v4 = vcombine.high %v13001_v19, %v13024_v33 }
 0x25c   :  { %4226 = vst.msk [vmem:[#allocation3 + $0x268] sm:$0xff] %vm3939_vm1, %v4104_v26  ;;  %v3715_v59 = vcombine.low %v13038_v63, %v1744_v5  ;;  %v3716_v17 = vcombine.high %v13038_v63, %v1744_v5  ;;  %v3731_v52 = vcombine.low %v3675_v45, %v13046_v10  ;;  %v3732_v9 = vcombine.high %v3675_v45, %v13046_v10  ;;  %v13112_v31 = vpop.permute.xlu1 %1649 }
 0x25d   :  { %4227 = vst.msk [vmem:[#allocation3 + $0x270] sm:$0xff] %vm3939_vm1, %v4107_v16  ;;  %v3747_v29 = vcombine.low %v3682_v54, %v13049_v36  ;;  %v3748_v13 = vcombine.high %v3682_v54, %v13049_v36  ;;  %9701 = vrot.lane.b32.xlu1 %v13008_v6, %s10860_s28  ;;  %v3707_v19 = vrot.slane %v3699_v57, %v11923_v40 }
 0x25e   :  { %v3714_v60 = vrot.slane %v3700_v4, %v11923_v40  ;;  %v3723_v43 = vrot.slane %v3715_v59, %v11923_v40  ;;  %v3730_v62 = vrot.slane %v3716_v17, %v11923_v40  ;;  %9711 = vrot.lane.b32.xlu0 %v12862_v28, %s10862_s30  ;;  %v3819_v33 = vcombine.low %v13055_v27, %v1554_v37  ;;  %v13120_v36 = vpop.permute.xlu0 %1601 }
 0x25f   :  { %v3820_v50 = vcombine.high %v13055_v27, %v1554_v37  ;;  %v3803_v21 = vcombine.low %v11904_v34, %v1506_v23  ;;  %v3804_v53 = vcombine.high %v11904_v34, %v1506_v23  ;;  %9421 = vmatpush1.bf16.msra.mxu1 %v13085_v14  ;;  %v3739_v38 = vrot.slane %v3731_v52, %v11938_v55 }
 0x260   :  { %v3763_v63 = vcombine.low %v3707_v19, %v3723_v43  ;;  %v3764_v7 = vcombine.high %v3707_v19, %v3723_v43  ;;  %v3779_v24 = vcombine.low %v3714_v60, %v3730_v62  ;;  %v3780_v10 = vcombine.high %v3714_v60, %v3730_v62  ;;  %9413 = vmatprep.subr.bf16.mxu1 %v10869_v8  ;;  %v1746_v49 = vpop.permute.xlu1 %1745 }
 0x261   :  { %v3746_v34 = vrot.slane %v3732_v9, %v11938_v55  ;;  %v3755_v32 = vrot.slane %v3747_v29, %v11938_v55  ;;  %v3762_v1 = vrot.slane %v3748_v13, %v11938_v55  ;;  %9706 = vrot.lane.b32.xlu1 %v13008_v6, %s10865_s8  ;;  %v13136_v51 = vrot.slane %v3819_v33, %v11923_v40  ;;  %v13171_v9 = vld [vmem:[%s15740_s2 + $0x28] sm:$0xff]  }
 0x262   :  { %v3771_v3 = vrot.slane %v3763_v63, %v11938_v55  ;;  %v3778_v48 = vrot.slane %v3764_v7, %v11938_v55  ;;  %v3787_v15 = vrot.slane %v3779_v24, %v11938_v55  ;;  %v3794_v39 = vrot.slane %v3780_v10, %v11938_v55  ;;  %9721 = vrot.lane.b32.xlu0 %v12909_v58, %s10865_s8  ;;  %v1698_v2 = vpop.permute.xlu0 %1697 }
 0x263   :  { %v13139_v27 = vrot.slane %v3820_v50, %v11923_v40  ;;  %v13142_v47 = vrot.slane %v3803_v21, %v11923_v40  ;;  %v13145_v56 = vrot.slane %v3804_v53, %v11923_v40  ;;  %9422 = vmatpush1.bf16.msra.mxu1 %v13118_v46  ;;  %7304 = vmatpush1.bf16.msra.mxu0 %v13060_v30  ;;  %v4590_v21 = vld [vmem:[#allocation3 + $0x188] sm:$0xff] }
 0x264   :  { %v3795_v5 = vcombine.low %v3739_v38, %v3771_v3  ;;  %v3796_v41 = vcombine.high %v3739_v38, %v3771_v3  ;;  %v3797_v42 = vcombine.low %v3746_v34, %v3778_v48  ;;  %v3798_v25 = vcombine.high %v3746_v34, %v3778_v48  ;;  %9414 = vmatprep.subr.bf16.mxu1 %v10869_v8  ;;  %v13165_v52 = vpop.permute.xlu1 %9446  ;;  %v13206_v38 = vld [vmem:[%s15740_s2 + $0x30] sm:$0xff]  }
 0x265   :  { %v3799_v26 = vcombine.low %v3755_v32, %v3787_v15  ;;  %v3800_v20 = vcombine.high %v3755_v32, %v3787_v15  ;;  %v3801_v11 = vcombine.low %v3762_v1, %v3794_v39  ;;  %v3802_v16 = vcombine.high %v3762_v1, %v3794_v39  ;;  %9716 = vrot.lane.b32.xlu1 %v12909_v58, %s10860_s28  ;;  %v10846_v39 = vld [vmem:[#allocation2] sm:$0xff] }
 0x266   :  { %v4108_v45 = vsel %vm3939_vm1, %v3795_v5, -inf  ;;  %v4109_v54 = vsel %vm3939_vm1, %v3796_v41, -inf  ;;  %v4111_v37 = vsel %vm3939_vm1, %v3797_v42, -inf  ;;  %v4112_v57 = vsel %vm3939_vm1, %v3798_v25, -inf  ;;  %9731 = vrot.lane.b32.xlu0 %v13026_v44, %s10860_s28  ;;  %7305 = vmatprep.subr.bf16.mxu0 %v10869_v8  ;;  %v13177_v60 = vpop.permute.xlu0 %9441  ;;  %7798 = vst.msk [vmem:[#allocation4] sm:$0xff] %vm6674_vm2, %v10846_v39  ;;  %7799 = vst.msk [vmem:[#allocation4 + $0x8] sm:$0xff] %vm6674_vm2, %v10846_v39 }
 0x267   :  { %v4110_v4 = vmax.f32 %v4108_v45, %v4109_v54  ;;  %v4113_v59 = vmax.f32 %v4111_v37, %v4112_v57  ;;  %v4114_v17 = vsel %vm3939_vm1, %v3799_v26, -inf  ;;  %v4115_v23 = vsel %vm3939_vm1, %v3800_v20, -inf  ;;  %9423 = vmatpush1.bf16.msra.mxu1 %v13151_v61  ;;  %7306 = vmatpush1.bf16.msra.mxu0 %v13085_v14  ;;  %7800 = vst.msk [vmem:[#allocation4 + $0x10] sm:$0xff] %vm6674_vm2, %v10846_v39  ;;  %v10807_v41 = vld [vmem:[%s15740_s2 + $0x38] sm:$0xff]  }
 0x268   :  { %v4116_v29 = vmax.f32 %v4114_v17, %v4115_v23  ;;  %v4117_v30 = vsel %vm3939_vm1, %v3801_v11, -inf  ;;  %v4118_v13 = vsel %vm3939_vm1, %v3802_v16, -inf  ;;  %v3851_v19 = vcombine.low %v13112_v31, %v1746_v49  ;;  %9415 = vmatprep.subr.bf16.mxu1 %v10869_v8  ;;  %7307 = vmatprep.subr.bf16.mxu0 %v10869_v8  ;;  %7801 = vst.msk [vmem:[#allocation4 + $0x18] sm:$0xff] %vm6674_vm2, %v10846_v39 }
 0x269   :  { %v4119_v43 = vmax.f32 %v4117_v30, %v4118_v13  ;;  %4228 = vst.msk [vmem:[#allocation3 + $0x288] sm:$0xff] %vm3939_vm1, %v4110_v4  ;;  %4229 = vst.msk [vmem:[#allocation3 + $0x290] sm:$0xff] %vm3939_vm1, %v4113_v59  ;;  %v3852_v62 = vcombine.high %v13112_v31, %v1746_v49  ;;  %v3835_v33 = vcombine.low %v13120_v36, %v1698_v2  ;;  %9726 = vrot.lane.b32.xlu1 %v13004_v18, %s10862_s30 }
 0x26a   :  { %v3836_v50 = vcombine.high %v13120_v36, %v1698_v2  ;;  %4230 = vst.msk [vmem:[#allocation3 + $0x298] sm:$0xff] %vm3939_vm1, %v4116_v29  ;;  %v3867_v53 = vcombine.low %v13142_v47, %v13136_v51  ;;  %v3868_v63 = vcombine.high %v13142_v47, %v13136_v51  ;;  %v3859_v7 = vrot.slane %v3851_v19, %v11923_v40  ;;  %v13200_v36 = vpop.permute.xlu1 %9456  ;;  %v13213_v32 = vpop.permute.xlu0 %9451 }
 0x26b   :  { %9736 = vrot.lane.b32.xlu0 %v13026_v44, %s10865_s8  ;;  %4231 = vst.msk [vmem:[#allocation3 + $0x2a0] sm:$0xff] %vm3939_vm1, %v4119_v43  ;;  %v3866_v31 = vrot.slane %v3852_v62, %v11923_v40  ;;  %v3843_v24 = vrot.slane %v3835_v33, %v11923_v40  ;;  %9424 = vmatpush1.bf16.msra.mxu1 %v13171_v9 }
 0x26c   :  { %v3850_v10 = vrot.slane %v3836_v50, %v11923_v40  ;;  %v3883_v14 = vcombine.low %v13145_v56, %v13139_v27  ;;  %v3884_v34 = vcombine.high %v13145_v56, %v13139_v27  ;;  %v13216_v40 = vpack.i.bf16 %v4590_v21, %v13015_v0  ;;  %9416 = vmatprep.subr.bf16.mxu1 %v10869_v8  ;;  %v13310_v21 = vld [vmem:[#allocation3 + $0x1a8] sm:$0xff] }
 0x26d   :  { %v3899_v1 = vcombine.low %v3843_v24, %v3859_v7  ;;  %v3900_v3 = vcombine.high %v3843_v24, %v3859_v7  ;;  %9741 = vrot.lane.b32.xlu1 %v13029_v35, %s10862_s30  ;;  %7802 = vst.msk [vmem:[#allocation4 + $0x20] sm:$0xff] %vm6674_vm2, %v10846_v39  ;;  %7803 = vst.msk [vmem:[#allocation4 + $0x28] sm:$0xff] %vm6674_vm2, %v10846_v39  ;;  %v3875_v0 = vrot.slane %v3867_v53, %v11938_v55 }
 0x26e   :  { %v3915_v48 = vcombine.low %v3850_v10, %v3866_v31  ;;  %v3916_v15 = vcombine.high %v3850_v10, %v3866_v31  ;;  %7805 = vst.msk [vmem:[#allocation4 + $0xf0] sm:$0xff] %vm6674_vm2, %v10846_v39  ;;  %7806 = vst.msk [vmem:[#allocation4 + $0xf8] sm:$0xff] %vm6674_vm2, %v10846_v39  ;;  %v3882_v51 = vrot.slane %v3868_v63, %v11938_v55  ;;  %7308 = vmatpush1.bf16.msra.mxu0 %v13118_v46  ;;  %v13250_v5 = vpop.permute.xlu1 %9466  ;;  %v13258_v25 = vpop.permute.xlu0 %9461  ;;  %v4649_v63 = vld [vmem:[#allocation3 + $0x198] sm:$0xff]  ;;  %v4248_v10 = vld [vmem:[#allocation3 + $0x70] sm:$0xff] }
 0x26f   :  { %7807 = vst.msk [vmem:[#allocation4 + $0x100] sm:$0xff] %vm6674_vm2, %v10846_v39  ;;  %7808 = vst.msk [vmem:[#allocation4 + $0x108] sm:$0xff] %vm6674_vm2, %v10846_v39  ;;  %9746 = vrot.lane.b32.xlu0 %v13216_v40, %s10860_s28  ;;  %v3907_v27 = vrot.slane %v3899_v1, %v11938_v55  ;;  %v3914_v47 = vrot.slane %v3900_v3, %v11938_v55  ;;  %9425 = vmatpush1.bf16.msra.mxu1 %v13206_v38  ;;  %v9443_v53 = vunpack.i.l.bf16 %v13177_v60  ;;  %v13335_v3 = vld [vmem:[#allocation3 + $0x1a0] sm:$0xff] }
 0x270   :  { %7809 = vst.msk [vmem:[#allocation4 + $0x110] sm:$0xff] %vm6674_vm2, %v10846_v39  ;;  %7810 = vst.msk [vmem:[#allocation4 + $0x118] sm:$0xff] %vm6674_vm2, %v10846_v39  ;;  %v3923_v56 = vrot.slane %v3915_v48, %v11938_v55  ;;  %v3930_v49 = vrot.slane %v3916_v15, %v11938_v55  ;;  %v3891_v42 = vrot.slane %v3883_v14, %v11938_v55  ;;  %9417 = vmatprep.subr.bf16.mxu1 %v10869_v8 }
 0x271   :  { %7812 = vst.msk [vmem:[#allocation4 + $0x30] sm:$0xff] %vm6674_vm2, %v10846_v39  ;;  %7813 = vst.msk [vmem:[#allocation4 + $0x60] sm:$0xff] %vm6674_vm2, %v10846_v39  ;;  %v3898_v46 = vrot.slane %v3884_v34, %v11938_v55  ;;  %7309 = vmatprep.subr.bf16.mxu0 %v10869_v8  ;;  %v3931_v2 = vcombine.low %v3875_v0, %v3907_v27  ;;  %v3932_v26 = vcombine.high %v3875_v0, %v3907_v27  ;;  %v4249_v34 = vld [vmem:[#allocation3 + $0x78] sm:$0xff] }
 0x272   :  { %7814 = vst.msk [vmem:[#allocation4 + $0x90] sm:$0xff] %vm6674_vm2, %v10846_v39  ;;  %7815 = vst.msk [vmem:[#allocation4 + $0xc0] sm:$0xff] %vm6674_vm2, %v10846_v39  ;;  %v3933_v20 = vcombine.low %v3882_v51, %v3914_v47  ;;  %v3934_v11 = vcombine.high %v3882_v51, %v3914_v47  ;;  %9751 = vrot.lane.b32.xlu1 %v12960_v22, %s10866_s0  ;;  %v3935_v16 = vcombine.low %v3891_v42, %v3923_v56  ;;  %v13270_v17 = vpop.permute.xlu1 %9481  ;;  %v13275_v22 = vld [vmem:[%s15740_s2 + $0x40] sm:$0xff]   ;;  %v13280_v13 = vpop.permute.xlu0 %9471 }
 0x273   :  { %7817 = vst.msk [vmem:[#allocation4 + $0x58] sm:$0xff] %vm6674_vm2, %v10846_v39  ;;  %7818 = vst.msk [vmem:[#allocation4 + $0x88] sm:$0xff] %vm6674_vm2, %v10846_v39  ;;  %v3936_v45 = vcombine.high %v3891_v42, %v3923_v56  ;;  %v3937_v54 = vcombine.low %v3898_v46, %v3930_v49  ;;  %v3938_v37 = vcombine.high %v3898_v46, %v3930_v49  ;;  %9756 = vrot.lane.b32.xlu0 %v13008_v6, %s10864_s7  ;;  %v4251_v46 = vld [vmem:[#allocation3 + $0x88] sm:$0xff] }
 0x274   :  { %7819 = vst.msk [vmem:[#allocation4 + $0xb8] sm:$0xff] %vm6674_vm2, %v10846_v39  ;;  %7820 = vst.msk [vmem:[#allocation4 + $0xe8] sm:$0xff] %vm6674_vm2, %v10846_v39  ;;  %v4120_v55 = vsel %vm3939_vm1, %v3931_v2, -inf  ;;  %v4121_v57 = vsel %vm3939_vm1, %v3932_v26, -inf  ;;  %v4123_v4 = vsel %vm3939_vm1, %v3933_v20, -inf  ;;  %v4124_v59 = vsel %vm3939_vm1, %v3934_v11, -inf  ;;  %9426 = vmatpush1.bf16.msra.mxu1 %v10807_v41  ;;  %7310 = vmatpush1.bf16.msra.mxu0 %v13151_v61 }
 0x275   :  { %v4122_v23 = vmax.f32 %v4120_v55, %v4121_v57  ;;  %v4125_v6 = vmax.f32 %v4123_v4, %v4124_v59  ;;  %v4126_v29 = vsel %vm3939_vm1, %v3935_v16, -inf  ;;  %v4127_v30 = vsel %vm3939_vm1, %v3936_v45, -inf  ;;  %9418 = vmatprep.subr.bf16.mxu1 %v10869_v8  ;;  %7311 = vmatprep.subr.bf16.mxu0 %v10869_v8 }
 0x276   :  { %v4128_v19 = vmax.f32 %v4126_v29, %v4127_v30  ;;  %v4129_v43 = vsel %vm3939_vm1, %v3937_v54, -inf  ;;  %v4130_v62 = vsel %vm3939_vm1, %v3938_v37, -inf  ;;  %9761 = vrot.lane.b32.xlu1 %v12862_v28, %s10866_s0  ;;  %v13293_v33 = vpop.permute.xlu1 %9491  ;;  %v13298_v50 = vpop.permute.xlu0 %9476  ;;  %v9448_v24 = vunpack.i.l.bf16 %v13165_v52 }
 0x277   :  { %v4131_v61 = vmax.f32 %v4129_v43, %v4130_v62  ;;  %4232 = vst.msk [vmem:[#allocation3 + $0x2a8] sm:$0xff] %vm3939_vm1, %v4122_v23  ;;  %4233 = vst.msk [vmem:[#allocation3 + $0x2b0] sm:$0xff] %vm3939_vm1, %v4125_v6  ;;  %9766 = vrot.lane.b32.xlu0 %v12909_v58, %s10864_s7  ;;  %v9463_v1 = vunpack.i.l.bf16 %v13258_v25  ;;  %v9454_v15 = vunpack.i.h.bf16 %v13213_v32  ;;  %v9464_v39 = vunpack.i.h.bf16 %v13258_v25  ;;  %v4655_v23 = vld [vmem:[#allocation3 + $0x1c8] sm:$0xff] }
 0x278   :  { %4234 = vst.msk [vmem:[#allocation3 + $0x2b8] sm:$0xff] %vm3939_vm1, %v4128_v19  ;;  %9427 = vmatpush1.bf16.msra.mxu1 %v13275_v22  ;;  %7312 = vmatpush1.bf16.msra.mxu0 %v13171_v9  ;;  %v4716_v9 = vld [vmem:[#allocation3 + $0x1b0] sm:$0xff]  ;;  %v9453_v0 = vunpack.i.l.bf16 %v13213_v32  ;;  %v9469_v47 = vunpack.i.h.bf16 %v13250_v5  ;;  %v9468_v56 = vunpack.i.l.bf16 %v13250_v5  ;;  %v13356_v42 = vpack.i.bf16 %v13335_v3, %v4649_v63  ;;  %v4250_v5 = vld [vmem:[#allocation3 + $0x80] sm:$0xff] }
 0x279   :  { %4235 = vst.msk [vmem:[#allocation3 + $0x2c0] sm:$0xff] %vm3939_vm1, %v4131_v61  ;;  %7313 = vmatprep.subr.bf16.mxu0 %v10869_v8  ;;  %v13322_v31 = vpack.i.bf16 %v4716_v9, %v13310_v21  ;;  %v9473_v2 = vunpack.i.l.bf16 %v13280_v13  ;;  %v6625_v26 = vsel %vm3939_vm1, %v4251_v46, %v9454_v15  ;;  %v9474_v11 = vunpack.i.h.bf16 %v13280_v13  ;;  %v13385_v19 = vld [vmem:[#allocation3 + $0x1d0] sm:$0xff] }
 0x27a   :  { %9776 = vrot.lane.b32.xlu1 %v13026_v44, %s10864_s7  ;;  %v13305_v28 = vpop.permute.xlu1 %9501  ;;  %v13308_v58 = vpop.permute.xlu0 %9486  ;;  %v4648_v44 = vld [vmem:[#allocation3 + $0x190] sm:$0xff]  ;;  %v6624_v16 = vsel %vm3939_vm1, %v4250_v5, %v9453_v0  ;;  %v9479_v45 = vunpack.i.h.bf16 %v13298_v50  ;;  %v9478_v54 = vunpack.i.l.bf16 %v13298_v50  ;;  %v9483_v57 = vunpack.i.l.bf16 %v13270_v17 }
 0x27b   :  { %9771 = vrot.lane.b32.xlu0 %v13004_v18, %s10866_s0  ;;  %v9444_v18 = vunpack.i.h.bf16 %v13177_v60  ;;  %v13327_v14 = vpack.i.bf16 %v4649_v63, %v4648_v44  ;;  %v9449_v60 = vunpack.i.h.bf16 %v13165_v52  ;;  %v9458_v52 = vunpack.i.l.bf16 %v13200_v36 }
 0x27c   :  { %7314 = vmatpush1.bf16.msra.mxu0 %v13206_v38  ;;  %v9489_v63 = vunpack.i.h.bf16 %v13308_v58 }
 0x27d   :  { %7315 = vmatprep.subr.bf16.mxu0 %v10869_v8  ;;  %v6623_v48 = vsel %vm3939_vm1, %v4249_v34, %v9444_v18  ;;  %v6689_v62 = vsel %vm6674_vm2, %v6624_v16, %v9458_v52 }
 0x27e   :  { %9781 = vrot.lane.b32.xlu1 %v13029_v35, %s10866_s0  ;;  %v13319_v7 = vpop.permute.xlu1 %9516  ;;  %v13325_v38 = vpop.permute.xlu0 %9496  ;;  %v4653_v35 = vld [vmem:[#allocation3 + $0x1b8] sm:$0xff]  ;;  %v6688_v32 = vsel %vm6674_vm2, %v6623_v48, %v9449_v60  ;;  %v6754_v50 = vsel %vm6739_vm3, %v6689_v62, %v9478_v54  ;;  %v9488_v60 = vunpack.i.l.bf16 %v13308_v58  ;;  %v13461_v62 = vld [vmem:[#allocation3 + $0xc0] sm:$0xff] }
 0x27f   :  { %9786 = vrot.lane.b32.xlu0 %v13216_v40, %s10864_s7  ;;  %v6622_v40 = vsel %vm3939_vm1, %v4248_v10, %v9443_v53  ;;  %v13347_v27 = vpack.i.bf16 %v4653_v35, %v4716_v9  ;;  %v6753_v20 = vsel %vm6739_vm3, %v6688_v32, %v9464_v39  ;;  %v4769_v48 = vld [vmem:[#allocation3 + $0x138] sm:$0xff]  ;;  %v9484_v39 = vunpack.i.h.bf16 %v13270_v17 }
 0x280   :  { %7316 = vmatpush1.bf16.msra.mxu0 %v10807_v41  ;;  %v6687_v49 = vsel %vm6674_vm2, %v6622_v40, %v9448_v24  ;;  %v6818_v6 = vsel %vm6804_vm4, %v6753_v20, %v9469_v47  ;;  %v6819_v52 = vsel %vm6804_vm4, %v6754_v50, %v9483_v57  ;;  %v13465_v50 = vld [vmem:[#allocation3 + $0x1d8] sm:$0xff] }
 0x281   :  { %7317 = vmatprep.subr.bf16.mxu0 %v10869_v8  ;;  %v9459_v8 = vunpack.i.h.bf16 %v13200_v36  ;;  %v4718_v36 = vld [vmem:[#allocation3 + $0x1c0] sm:$0xff]  ;;  %v6752_v25 = vsel %vm6739_vm3, %v6687_v49, %v9463_v1  ;;  %v6883_v43 = vsel %vm6869_vm5, %v6818_v6, %v9474_v11  ;;  %v4768_v1 = vld [vmem:[#allocation3 + $0x130] sm:$0xff]  ;;  %15782 = vst [vmem:[#allocation7_spill] sm:$0xff] %v13465_v50 }
 0x282   :  { %9806 = vrot.lane.b32.xlu1 %v13322_v31, %s10861_s29  ;;  %v13345_v51 = vpop.permute.xlu1 %9526  ;;  %v13353_v41 = vpop.permute.xlu0 %9506  ;;  %v13371_v55 = vpack.i.bf16 %v4718_v36, %v4653_v35  ;;  %v6817_v4 = vsel %vm6804_vm4, %v6752_v25, %v9468_v56  ;;  %v13394_v44 = vpack.i.bf16 %v4655_v23, %v4718_v36  ;;  %v9825_v35 = vpack.i.bf16 %v13385_v19, %v4655_v23 }
 0x283   :  { %9791 = vrot.lane.b32.xlu0 %v13327_v14, %s10863_s6  ;;  %v6882_v29 = vsel %vm6869_vm5, %v6817_v4, %v9473_v2  ;;  %v6690_v61 = vsel %vm6674_vm2, %v6625_v26, %v9459_v8  ;;  %v7079_v32 = vpack.c.bf16 %v4769_v48, %v4768_v1  ;;  %v6884_v25 = vsel %vm6869_vm5, %v6819_v52, %v9488_v60  ;;  %v10847_v4 = vld [vmem:[#allocation3 + $0x158] sm:$0xff] }
 0x284   :  { %7318 = vmatpush1.bf16.msra.mxu0 %v13275_v22  ;;  %v13379_v22 = vpack.i.bf16 %v13310_v21, %v13335_v3  ;;  %v6755_v9 = vsel %vm6739_vm3, %v6690_v61, %v9479_v45  ;;  %v7081_v23 = vpack.c.bf16 %v10847_v4, %v12933_v12  ;;  %v4723_v48 = vld [vmem:[#allocation3 + $0x1f8] sm:$0xff] }
 0x285   :  { %v6820_v56 = vsel %vm6804_vm4, %v6755_v9, %v9484_v39  ;;  %v4724_v39 = vld [vmem:[#allocation3 + $0x200] sm:$0xff] }
 0x286   :  { %9811 = vrot.lane.b32.xlu1 %v13347_v27, %s10863_s6  ;;  %v9532_v37 = vpop.permute.xlu1 %9531  ;;  %v13375_v59 = vpop.permute.xlu0 %9511  ;;  %v6885_v17 = vsel %vm6869_vm5, %v6820_v56, %v9489_v63  ;;  %v4657_v63 = vld [vmem:[#allocation3 + $0x1e8] sm:$0xff] }
 0x287   :  { %9796 = vrot.lane.b32.xlu0 %v13356_v42, %s10861_s29  ;;  %v9534_v30 = vunpack.i.h.bf16 %v9532_v37  ;;  %v9533_v13 = vunpack.i.l.bf16 %v9532_v37 }
 0x289   :  { %v6947_v34 = vsel %vm6934_vm6, %v6882_v29, %v9533_v13  ;;  %v6948_v40 = vsel %vm6934_vm6, %v6883_v43, %v9534_v30  ;;  %v13456_v13 = vld [vmem:[#allocation3 + $0xc8] sm:$0xff] }
 0x28a   :  { %9816 = vrot.lane.b32.xlu1 %v13371_v55, %s10861_s29  ;;  %v9537_v53 = vpop.permute.xlu1 %9536  ;;  %v13397_v10 = vpop.permute.xlu0 %9521  ;;  %15781 = vst [vmem:[#allocation5_spill] sm:$0xff] %v13456_v13  ;;  %v9509_v13 = vunpack.i.h.bf16 %v13353_v41 }
 0x28b   :  { %9801 = vrot.lane.b32.xlu0 %v13379_v22, %s10863_s6  ;;  %v9539_v18 = vunpack.i.h.bf16 %v9537_v53  ;;  %v9538_v24 = vunpack.i.l.bf16 %v9537_v53  ;;  %v4656_v53 = vld [vmem:[#allocation3 + $0x1e0] sm:$0xff] }
 0x28c   :  { %v13479_v60 = vpack.i.bf16 %v4657_v63, %v4656_v53 }
 0x28d   :  { %v7012_v8 = vsel %vm6999_vm7, %v6947_v34, %v9538_v24  ;;  %v7013_v58 = vsel %vm6999_vm7, %v6948_v40, %v9539_v18  ;;  %v9885_v24 = vpack.i.bf16 %v13465_v50, %v13385_v19  ;;  %v4722_v34 = vld [vmem:[#allocation3 + $0x1f0] sm:$0xff] }
 0x28e   :  { %9821 = vrot.lane.b32.xlu1 %v13394_v44, %s10863_s6  ;;  %v9542_v0 = vpop.permute.xlu1 %9541  ;;  %v7076_v47 = vpack.c.bf16 %v7013_v58, %v7012_v8  ;;  %v13496_v8 = vpack.i.bf16 %v4724_v39, %v4723_v48  ;;  %v13500_v52 = vpack.i.bf16 %v4723_v48, %v4722_v34  ;;  %v4254_v48 = vld [vmem:[#allocation3 + $0xb0] sm:$0xff] }
 0x28f   :  { %9826 = vrot.lane.b32.xlu0 %v9825_v35, %s10861_s29  ;;  %v9544_v49 = vunpack.i.h.bf16 %v9542_v0  ;;  %v9543_v36 = vunpack.i.l.bf16 %v9542_v0  ;;  %v9547_v46 = vpop.permute.xlu0 %9546  ;;  %v4661_v0 = vld [vmem:[#allocation3 + $0x208] sm:$0xff] }
 0x290   :  { %v9549_v2 = vunpack.i.h.bf16 %v9547_v46  ;;  %v9548_v5 = vunpack.i.l.bf16 %v9547_v46  ;;  %7382 = vmatmul.mubr.bf16.vlgmr.msra.gmra.mrb[0].mxu1 %v7076_v47  ;;  %v4726_v47 = vld [vmem:[#allocation3 + $0x210] sm:$0xff]  ;;  %v9493_v46 = vunpack.i.l.bf16 %v13293_v33 }
 0x291   :  { %9135 = vmatprep.mubr.msk.bf16.mxu1 %vm3939_vm1, %v7079_v32  ;;  %v6949_v26 = vsel %vm6934_vm6, %v6884_v25, %v9543_v36  ;;  %v6950_v20 = vsel %vm6934_vm6, %v6885_v17, %v9544_v49  ;;  %v13509_v49 = vpack.i.bf16 %v4661_v0, %v4724_v39  ;;  %v13511_v36 = vld [vmem:[#allocation3 + $0x50] sm:$0xff]  ;;  %v13516_v25 = vpack.i.bf16 %v4726_v47, %v4661_v0  ;;  %v4727_v17 = vld [vmem:[#allocation3 + $0x218] sm:$0xff] }
 0x292   :  { %9831 = vrot.lane.b32.xlu1 %v13327_v14, %s10865_s8  ;;  %v13422_v11 = vpop.permute.xlu1 %9551  ;;  %v7014_v45 = vsel %vm6999_vm7, %v6949_v26, %v9548_v5  ;;  %v7015_v54 = vsel %vm6999_vm7, %v6950_v20, %v9549_v2  ;;  %v13518_v2 = vld [vmem:[#allocation3 + $0x220] sm:$0xff]  ;;  %v13520_v5 = vld [vmem:[#allocation3 + $0x58] sm:$0xff]  ;;  %v9504_v20 = vunpack.i.h.bf16 %v13305_v28 }
 0x293   :  { %9836 = vrot.lane.b32.xlu0 %v13356_v42, %s10862_s30  ;;  %v13424_v16 = vpop.permute.xlu0 %9556  ;;  %v7078_v37 = vpack.c.bf16 %v7015_v54, %v7014_v45  ;;  %15784 = vst [vmem:[#allocation6_spill] sm:$0xff] %v13518_v2  ;;  %v4252_v26 = vld [vmem:[#allocation3 + $0xa0] sm:$0xff]  ;;  %v9503_v45 = vunpack.i.l.bf16 %v13305_v28  ;;  %v4253_v54 = vld [vmem:[#allocation3 + $0xa8] sm:$0xff]  ;;  %v13534_v53 = vpack.i.bf16 %v13518_v2, %v4727_v17  ;;  %v13536_v28 = vld [vmem:[#allocation3 + $0x238] sm:$0xff]  ;;  %v9554_v39 = vunpack.i.h.bf16 %v13422_v11 }
 0x294   :  { %v9553_v0 = vunpack.i.l.bf16 %v13422_v11  ;;  %v13575_v2 = vld [vmem:[#allocation3 + $0x168] sm:$0xff] }
 0x295   :  { %15786 = vst [vmem:[#allocation10_spill] sm:$0xff] %v13534_v53  ;;  %v6628_v15 = vsel %vm3939_vm1, %v4254_v48, %v9503_v45  ;;  %v9558_v45 = vunpack.i.l.bf16 %v13424_v16 }
 0x296   :  { %9841 = vrot.lane.b32.xlu1 %v13379_v22, %s10860_s28  ;;  %v13432_v14 = vpop.permute.xlu1 %9561 }
 0x297   :  { %9851 = vrot.lane.b32.xlu0 %v13322_v31, %s10862_s30  ;;  %v13434_v57 = vpop.permute.xlu0 %9571 }
 0x298   :  { %7390 = vmatmul.mubr.bf16.gmra.mrb[4].mxu1 %v7078_v37  ;;  %v9498_v37 = vunpack.i.l.bf16 %v13325_v38 }
 0x299   :  { %9136 = vmatprep.mubr.msk.bf16.mxu1 %vm3939_vm1, %v7081_v23 }
 0x29a   :  { %9846 = vrot.lane.b32.xlu1 %v13379_v22, %s10865_s8  ;;  %v13442_v6 = vpop.permute.xlu1 %9566 }
 0x29b   :  { %9861 = vrot.lane.b32.xlu0 %v13347_v27, %s10865_s8  ;;  %v13444_v29 = vpop.permute.xlu0 %9581 }
 0x29e   :  { %9856 = vrot.lane.b32.xlu1 %v13347_v27, %s10860_s28  ;;  %v13450_v12 = vpop.permute.xlu1 %9576 }
 0x29f   :  { %9871 = vrot.lane.b32.xlu0 %v13394_v44, %s10860_s28  ;;  %v13452_v30 = vpop.permute.xlu0 %9591 }
 0x2a2   :  { %9866 = vrot.lane.b32.xlu1 %v13371_v55, %s10862_s30  ;;  %v13459_v43 = vpop.permute.xlu1 %9586 }
 0x2a3   :  { %9881 = vrot.lane.b32.xlu0 %v9825_v35, %s10862_s30  ;;  %v13463_v61 = vpop.permute.xlu0 %9596 }
 0x2a6   :  { %9876 = vrot.lane.b32.xlu1 %v13394_v44, %s10865_s8  ;;  %v13473_v18 = vpop.permute.xlu1 %9601 }
 0x2a7   :  { %9891 = vrot.lane.b32.xlu0 %v13356_v42, %s10866_s0  ;;  %v13477_v35 = vpop.permute.xlu0 %9606  ;;  %v13488_v42 = vpack.i.bf16 %v4722_v34, %v4657_v63  ;;  %v4664_v63 = vld [vmem:[#allocation3 + $0x230] sm:$0xff]  ;;  %v6626_v34 = vsel %vm3939_vm1, %v4252_v26, %v9493_v46  ;;  %v9563_v46 = vunpack.i.l.bf16 %v13432_v14 }
 0x2a8   :  { %v6691_v11 = vsel %vm6674_vm2, %v6626_v34, %v9498_v37  ;;  %v13569_v37 = vld [vmem:[#allocation3 + $0x10] sm:$0xff]  ;;  %v9564_v34 = vunpack.i.h.bf16 %v13432_v14 }
 0x2aa   :  { %9886 = vrot.lane.b32.xlu1 %v9885_v24, %s10860_s28  ;;  %v13484_v40 = vpop.permute.xlu1 %9611  ;;  %v9508_v24 = vunpack.i.l.bf16 %v13353_v41  ;;  %v9559_v41 = vunpack.i.h.bf16 %v13424_v16 }
 0x2ab   :  { %9901 = vrot.lane.b32.xlu0 %v13479_v60, %s10863_s6  ;;  %v13486_v1 = vpop.permute.xlu0 %9616 }
 0x2ac   :  { %v6693_v50 = vsel %vm6674_vm2, %v6628_v15, %v9508_v24  ;;  %v4256_v15 = vld [vmem:[#allocation3 + $0xc0] sm:$0xff] }
 0x2ae   :  { %9896 = vrot.lane.b32.xlu1 %v13379_v22, %s10864_s7  ;;  %v13494_v19 = vpop.permute.xlu1 %9621  ;;  %v9494_v22 = vunpack.i.h.bf16 %v13293_v33  ;;  %v9499_v33 = vunpack.i.h.bf16 %v13325_v38  ;;  %v4255_v38 = vld [vmem:[#allocation3 + $0xb8] sm:$0xff] }
 0x2af   :  { %9906 = vrot.lane.b32.xlu0 %v13488_v42, %s10861_s29  ;;  %v13498_v58 = vpop.permute.xlu0 %9626  ;;  %v6629_v9 = vsel %vm3939_vm1, %v4255_v38, %v9504_v20  ;;  %v9513_v20 = vunpack.i.l.bf16 %v13375_v59  ;;  %v13567_v38 = vld [vmem:[#allocation3 + $0x240] sm:$0xff] }
 0x2b0   :  { %v6627_v4 = vsel %vm3939_vm1, %v4253_v54, %v9494_v22  ;;  %v13545_v54 = vpack.i.bf16 %v4727_v17, %v4726_v47  ;;  %v13559_v47 = vpack.i.bf16 %v13536_v28, %v4664_v63  ;;  %v9514_v17 = vunpack.i.h.bf16 %v13375_v59 }
 0x2b1   :  { %v6692_v26 = vsel %vm6674_vm2, %v6627_v4, %v9499_v33  ;;  %v4301_v33 = vld [vmem:[#allocation3 + $0x8] sm:$0xff]  ;;  %v6756_v4 = vsel %vm6739_vm3, %v6691_v11, %v9553_v0  ;;  %v6694_v16 = vsel %vm6674_vm2, %v6629_v9, %v9509_v13  ;;  %v9970_v14 = vpack.i.bf16 %v13567_v38, %v13536_v28  ;;  %v13590_v13 = vld [vmem:[#allocation3 + $0x160] sm:$0xff] }
 0x2b2   :  { %9916 = vrot.lane.b32.xlu1 %v13496_v8, %s10861_s29  ;;  %v13507_v56 = vpop.permute.xlu1 %9636  ;;  %15788 = vst [vmem:[#allocation12_spill] sm:$0xff] %v13545_v54  ;;  %v6757_v63 = vsel %vm6739_vm3, %v6692_v26, %v9554_v39  ;;  %v9955_v26 = vpack.i.bf16 %v13569_v37, %v4301_v33  ;;  %v4257_v9 = vld [vmem:[#allocation3 + $0xc8] sm:$0xff]  ;;  %v6821_v24 = vsel %vm6804_vm4, %v6756_v4, %v9558_v45 }
 0x2b3   :  { %9911 = vrot.lane.b32.xlu0 %v13500_v52, %s10863_s6  ;;  %15783 = vst [vmem:[#allocation8_spill] sm:$0xff] %v13507_v56  ;;  %v6631_v28 = vsel %vm3939_vm1, %v4257_v9, %v9514_v17  ;;  %v6630_v33 = vsel %vm3939_vm1, %v4256_v15, %v9513_v20  ;;  %v9578_v17 = vunpack.i.l.bf16 %v13450_v12  ;;  %v9584_v15 = vunpack.i.h.bf16 %v13444_v29 }
 0x2b4   :  { %v13514_v32 = vpop.permute.xlu0 %9631 }
 0x2b6   :  { %9921 = vrot.lane.b32.xlu1 %v13509_v49, %s10863_s6  ;;  %v13531_v23 = vpop.permute.xlu1 %9646 }
 0x2b7   :  { %9926 = vrot.lane.b32.xlu0 %v13516_v25, %s10861_s29  ;;  %15785 = vst [vmem:[#allocation9_spill] sm:$0xff] %v13531_v23  ;;  %v9569_v23 = vunpack.i.h.bf16 %v13442_v6 }
 0x2b8   :  { %v13543_v22 = vpop.permute.xlu0 %9641 }
 0x2b9   :  { %15787 = vst [vmem:[#allocation11_spill] sm:$0xff] %v13543_v22  ;;  %v9568_v22 = vunpack.i.l.bf16 %v13442_v6  ;;  %v6822_v6 = vsel %vm6804_vm4, %v6757_v63, %v9559_v41  ;;  %v6759_v41 = vsel %vm6739_vm3, %v6694_v16, %v9569_v23  ;;  %v9573_v23 = vunpack.i.l.bf16 %v13434_v57 }
 0x2ba   :  { %9936 = vrot.lane.b32.xlu1 %v13534_v53, %s10861_s29  ;;  %v13565_v48 = vpop.permute.xlu1 %9666  ;;  %v13577_v53 = vld [vmem:[#allocation3 + $0x18] sm:$0xff]  ;;  %v6887_v56 = vsel %vm6869_vm5, %v6822_v6, %v9564_v34  ;;  %v9524_v16 = vunpack.i.h.bf16 %v13397_v10  ;;  %v9583_v6 = vunpack.i.l.bf16 %v13444_v29 }
 0x2bb   :  { %9931 = vrot.lane.b32.xlu0 %v13545_v54, %s10863_s6  ;;  %v6758_v45 = vsel %vm6739_vm3, %v6693_v50, %v9568_v22  ;;  %v9574_v50 = vunpack.i.h.bf16 %v13434_v57 }
 0x2bc   :  { %v9652_v59 = vpop.permute.xlu0 %9651 }
 0x2bd   :  { %v9654_v39 = vunpack.i.h.bf16 %v9652_v59  ;;  %v9653_v0 = vunpack.i.l.bf16 %v9652_v59  ;;  %v6886_v59 = vsel %vm6869_vm5, %v6821_v24, %v9563_v46 }
 0x2be   :  { %9946 = vrot.lane.b32.xlu1 %v13488_v42, %s10862_s30  ;;  %v13594_v11 = vpop.permute.xlu1 %9671  ;;  %v7083_v42 = vpack.c.bf16 %v13575_v2, %v13590_v13 }
 0x2bf   :  { %9941 = vrot.lane.b32.xlu0 %v13479_v60, %s10865_s8  ;;  %v9960_v60 = vpack.i.bf16 %v13577_v53, %v13569_v37  ;;  %v9579_v37 = vunpack.i.h.bf16 %v13450_v12  ;;  %v6951_v46 = vsel %vm6934_vm6, %v6886_v59, %v9653_v0  ;;  %v6952_v20 = vsel %vm6934_vm6, %v6887_v56, %v9654_v39 }
 0x2c0   :  { %v9657_v54 = vpop.permute.xlu0 %9656  ;;  %v9523_v12 = vunpack.i.l.bf16 %v13397_v10  ;;  %v6823_v56 = vsel %vm6804_vm4, %v6758_v45, %v9573_v23  ;;  %v6824_v39 = vsel %vm6804_vm4, %v6759_v41, %v9574_v50  ;;  %v9588_v10 = vunpack.i.l.bf16 %v13459_v43  ;;  %v13633_v45 = vld [vmem:[#allocation3 + $0x178] sm:$0xff] }
 0x2c1   :  { %v9659_v4 = vunpack.i.h.bf16 %v9657_v54  ;;  %v9658_v63 = vunpack.i.l.bf16 %v9657_v54  ;;  %v6888_v59 = vsel %vm6869_vm5, %v6823_v56, %v9578_v17  ;;  %15790 = vst [vmem:[#allocation14_spill] sm:$0xff] %v13633_v45  ;;  %v9669_v41 = vunpack.i.h.bf16 %v13565_v48 }
 0x2c2   :  { %9966 = vrot.lane.b32.xlu1 %v13559_v47, %s10863_s6  ;;  %v9519_v17 = vunpack.i.h.bf16 %v13319_v7  ;;  %v9589_v50 = vunpack.i.h.bf16 %v13459_v43 }
 0x2c3   :  { %9951 = vrot.lane.b32.xlu0 %v13500_v52, %s10860_s28  ;;  %v13616_v22 = vpop.permute.xlu1 %9676  ;;  %v7016_v54 = vsel %vm6999_vm7, %v6951_v46, %v9658_v63  ;;  %v7017_v34 = vsel %vm6999_vm7, %v6952_v20, %v9659_v4  ;;  %v6889_v4 = vsel %vm6869_vm5, %v6824_v39, %v9579_v37  ;;  %v13631_v63 = vld [vmem:[#allocation3 + $0x170] sm:$0xff]  ;;  %v9668_v46 = vunpack.i.l.bf16 %v13565_v48  ;;  %v4259_v48 = vld [vmem:[#allocation3 + $0xd8] sm:$0xff] }
 0x2c4   :  { %v9662_v9 = vpop.permute.xlu0 %9661  ;;  %v7080_v0 = vpack.c.bf16 %v7017_v34, %v7016_v54  ;;  %15789 = vst [vmem:[#allocation13_spill] sm:$0xff] %v13631_v63  ;;  %v9528_v20 = vunpack.i.l.bf16 %v13345_v51  ;;  %v4258_v54 = vld [vmem:[#allocation3 + $0xd0] sm:$0xff]  ;;  %v6633_v43 = vsel %vm3939_vm1, %v4259_v48, %v9524_v16  ;;  %v6696_v39 = vsel %vm6674_vm2, %v6631_v28, %v9519_v17 }
 0x2c5   :  { %v9664_v24 = vunpack.i.h.bf16 %v9662_v9  ;;  %v9663_v57 = vunpack.i.l.bf16 %v9662_v9  ;;  %v6632_v56 = vsel %vm3939_vm1, %v4258_v54, %v9523_v12  ;;  %v9674_v12 = vunpack.i.h.bf16 %v13594_v11 }
 0x2c6   :  { %9971 = vrot.lane.b32.xlu1 %v9970_v14, %s10861_s29  ;;  %7398 = vmatmul.mubr.bf16.gmra.mrb[8].mxu1 %v7080_v0  ;;  %v9673_v28 = vunpack.i.l.bf16 %v13594_v11  ;;  %v15792_v11 = vpack.i.bf16 %v13520_v5, %v13511_v36  ;;  %v9608_v48 = vunpack.i.l.bf16 %v13477_v35 }
 0x2c7   :  { %9956 = vrot.lane.b32.xlu0 %v9955_v26, %s10866_s0  ;;  %9137 = vmatprep.mubr.msk.bf16.mxu1 %vm3939_vm1, %v7083_v42  ;;  %v13638_v29 = vpop.permute.xlu1 %9681  ;;  %v6953_v14 = vsel %vm6934_vm6, %v6888_v59, %v9663_v57  ;;  %v6954_v37 = vsel %vm6934_vm6, %v6889_v4, %v9664_v24  ;;  %v9529_v26 = vunpack.i.h.bf16 %v13345_v51  ;;  %v15791_v42 = vunpack.i.l.bf16 %v13319_v7  ;;  %v4495_v4 = vld [vmem:[#allocation3 + $0x60] sm:$0xff] }
 0x2c8   :  { %v13646_v23 = vpop.permute.xlu0 %9686  ;;  %v7018_v9 = vsel %vm6999_vm7, %v6953_v14, %v9668_v46  ;;  %v7019_v0 = vsel %vm6999_vm7, %v6954_v37, %v9669_v41  ;;  %v7085_v51 = vpack.c.bf16 %v13633_v45, %v13631_v63  ;;  %v9599_v24 = vunpack.i.h.bf16 %v13463_v61  ;;  %v4265_v45 = vld [vmem:[#allocation3 + $0x118] sm:$0xff] }
 0x2c9   :  { %v6695_v34 = vsel %vm6674_vm2, %v6630_v33, %v15791_v42  ;;  %v6761_v33 = vsel %vm6739_vm3, %v6696_v39, %v9584_v15  ;;  %v9598_v57 = vunpack.i.l.bf16 %v13463_v61  ;;  %v9594_v15 = vunpack.i.h.bf16 %v13452_v30  ;;  %v13703_v42 = vld [vmem:[#allocation3 + $0x68] sm:$0xff] }
 0x2ca   :  { %9976 = vrot.lane.b32.xlu1 %v13322_v31, %s10866_s0  ;;  %v6760_v7 = vsel %vm6739_vm3, %v6695_v34, %v9583_v6  ;;  %v6826_v16 = vsel %vm6804_vm4, %v6761_v33, %v9589_v50  ;;  %v9679_v41 = vunpack.i.h.bf16 %v13616_v22  ;;  %v9678_v61 = vunpack.i.l.bf16 %v13616_v22 }
 0x2cb   :  { %9961 = vrot.lane.b32.xlu0 %v9960_v60, %s10864_s7  ;;  %v6825_v31 = vsel %vm6804_vm4, %v6760_v7, %v9588_v10  ;;  %v13666_v59 = vpop.permute.xlu1 %9691  ;;  %v7082_v60 = vpack.c.bf16 %v7019_v0, %v7018_v9  ;;  %v9593_v10 = vunpack.i.l.bf16 %v13452_v30  ;;  %v9604_v46 = vunpack.i.h.bf16 %v13473_v18  ;;  %v4776_v0 = vld [vmem:[#allocation3 + $0x180] sm:$0xff] }
 0x2cc   :  { %v13671_v6 = vpop.permute.xlu0 %9696  ;;  %v9603_v14 = vunpack.i.l.bf16 %v13473_v18  ;;  %v9990_v37 = vpack.i.bf16 %v4495_v4, %v13520_v5  ;;  %v6697_v30 = vsel %vm6674_vm2, %v6632_v56, %v9528_v20  ;;  %v6698_v17 = vsel %vm6674_vm2, %v6633_v43, %v9529_v26 }
 0x2cd   :  { %v6891_v18 = vsel %vm6869_vm5, %v6826_v16, %v9594_v15  ;;  %v6762_v50 = vsel %vm6739_vm3, %v6697_v30, %v9598_v57  ;;  %v6763_v36 = vsel %vm6739_vm3, %v6698_v17, %v9599_v24  ;;  %v9609_v26 = vunpack.i.h.bf16 %v13477_v35  ;;  %v4304_v30 = vld [vmem:[#allocation3 + $0x20] sm:$0xff] }
 0x2ce   :  { %9986 = vrot.lane.b32.xlu1 %v13347_v27, %s10864_s7  ;;  %7406 = vmatmul.mubr.bf16.gmra.mrb[12].mxu1 %v7082_v60  ;;  %v6890_v27 = vsel %vm6869_vm5, %v6825_v31, %v9593_v10  ;;  %v6956_v20 = vsel %vm6934_vm6, %v6891_v18, %v9674_v12  ;;  %v6827_v43 = vsel %vm6804_vm4, %v6762_v50, %v9603_v14  ;;  %v9684_v39 = vunpack.i.h.bf16 %v13638_v29  ;;  %v4625_v60 = vld [vmem:[#allocation3 + $0xa8] sm:$0xff]  ;;  %v13747_v50 = vld [vmem:[#allocation3 + $0x250] sm:$0xff] }
 0x2cf   :  { %9981 = vrot.lane.b32.xlu0 %v15792_v11, %s10865_s8  ;;  %9138 = vmatprep.mubr.msk.bf16.mxu1 %vm3939_vm1, %v7085_v51  ;;  %v13689_v22 = vpop.permute.xlu1 %9701  ;;  %v6955_v5 = vsel %vm6934_vm6, %v6890_v27, %v9673_v28  ;;  %v7021_v9 = vsel %vm6999_vm7, %v6956_v20, %v9679_v41  ;;  %v4777_v51 = vld [vmem:[#allocation3 + $0x188] sm:$0xff]  ;;  %v6828_v56 = vsel %vm6804_vm4, %v6763_v36, %v9604_v46  ;;  %v9683_v7 = vunpack.i.l.bf16 %v13638_v29  ;;  %v4624_v29 = vld [vmem:[#allocation3 + $0xa0] sm:$0xff] }
 0x2d0   :  { %v13695_v54 = vpop.permute.xlu0 %9711  ;;  %v7020_v34 = vsel %vm6999_vm7, %v6955_v5, %v9678_v61  ;;  %v10000_v33 = vpack.i.bf16 %v13703_v42, %v4495_v4  ;;  %v7087_v24 = vpack.c.bf16 %v4777_v51, %v4776_v0  ;;  %v6892_v57 = vsel %vm6869_vm5, %v6827_v43, %v9608_v48  ;;  %v4497_v51 = vld [vmem:[#allocation3 + $0x70] sm:$0xff] }
 0x2d1   :  { %v7084_v31 = vpack.c.bf16 %v7021_v9, %v7020_v34  ;;  %v6893_v16 = vsel %vm6869_vm5, %v6828_v56, %v9609_v26  ;;  %v9689_v12 = vunpack.i.h.bf16 %v13646_v23  ;;  %v9688_v28 = vunpack.i.l.bf16 %v13646_v23  ;;  %v13731_v23 = vld [vmem:[#allocation3 + $0x248] sm:$0xff]  ;;  %v4260_v56 = vld [vmem:[#allocation3 + $0xf0] sm:$0xff] }
 0x2d2   :  { %9996 = vrot.lane.b32.xlu1 %v13500_v52, %s10865_s8  ;;  %v6957_v4 = vsel %vm6934_vm6, %v6892_v57, %v9683_v7  ;;  %v6958_v15 = vsel %vm6934_vm6, %v6893_v16, %v9684_v39  ;;  %v10010_v61 = vpack.i.bf16 %v4625_v60, %v4624_v29  ;;  %v10030_v36 = vpack.i.bf16 %v4304_v30, %v13577_v53  ;;  %v13760_v26 = vld [vmem:[#allocation3 + $0x28] sm:$0xff]  ;;  %v4261_v39 = vld [vmem:[#allocation3 + $0xf8] sm:$0xff]  ;;  %v13792_v16 = vld [vmem:[#allocation3 + $0x2b0] sm:$0xff] }
 0x2d3   :  { %9991 = vrot.lane.b32.xlu0 %v9990_v37, %s10862_s30  ;;  %v13712_v35 = vpop.permute.xlu1 %9706  ;;  %v7022_v46 = vsel %vm6999_vm7, %v6957_v4, %v9688_v28  ;;  %v7023_v14 = vsel %vm6999_vm7, %v6958_v15, %v9689_v12  ;;  %v10025_v37 = vpack.i.bf16 %v13731_v23, %v13567_v38  ;;  %v15793_v5 = vpack.c.bf16 %v13310_v21, %v13335_v3  ;;  %v13790_v57 = vld [vmem:[#allocation3 + $0x258] sm:$0xff]  ;;  %v13801_v28 = vld [vmem:[#allocation3 + $0x260] sm:$0xff]  ;;  %v13809_v15 = vld [vmem:[#allocation3 + $0x30] sm:$0xff] }
 0x2d4   :  { %v13714_v52 = vpop.permute.xlu0 %9721  ;;  %v7086_v18 = vpack.c.bf16 %v7023_v14, %v7022_v46  ;;  %v10035_v20 = vpack.i.bf16 %v13747_v50, %v13731_v23  ;;  %v10040_v53 = vpack.i.bf16 %v13760_v26, %v4304_v30  ;;  %v9614_v0 = vunpack.i.h.bf16 %v13484_v40  ;;  %15795 = vst [vmem:[#allocation16_spill] sm:$0xff] %v13792_v16  ;;  %v13807_v4 = vld [vmem:[#allocation3 + $0x78] sm:$0xff] }
 0x2d5   :  { %v9613_v43 = vunpack.i.l.bf16 %v13484_v40  ;;  %v9618_v12 = vunpack.i.l.bf16 %v13486_v1  ;;  %v13818_v46 = vpack.i.bf16 %v13807_v4, %v4497_v51  ;;  %v9693_v30 = vunpack.i.l.bf16 %v13666_v59  ;;  %v15800_v16 = vld [vmem:[#allocation8_spill] sm:$0xff] }
 0x2d6   :  { %10006 = vrot.lane.b32.xlu1 %v13496_v8, %s10862_s30  ;;  %7414 = vmatmul.mubr.bf16.gmra.mrb[16].mxu1 %v7084_v31  ;;  %v13735_v8 = vld [vmem:[#allocation3 + $0xb0] sm:$0xff]  ;;  %v6635_v40 = vsel %vm3939_vm1, %v4261_v39, %v9614_v0  ;;  %v9628_v39 = vunpack.i.l.bf16 %v13498_v58 }
 0x2d7   :  { %10001 = vrot.lane.b32.xlu0 %v10000_v33, %s10860_s28  ;;  %9139 = vmatprep.mubr.msk.bf16.mxu1 %vm3939_vm1, %v7087_v24  ;;  %v13727_v10 = vpop.permute.xlu1 %9716  ;;  %v10020_v27 = vpack.i.bf16 %v13735_v8, %v4625_v60  ;;  %v10060_v24 = vpack.i.bf16 %v4497_v51, %v13703_v42  ;;  %v6634_v29 = vsel %vm3939_vm1, %v4260_v56, %v9613_v43  ;;  %v9624_v42 = vunpack.i.h.bf16 %v13494_v19 }
 0x2d8   :  { %v13729_v41 = vpop.permute.xlu0 %9731  ;;  %v9623_v60 = vunpack.i.l.bf16 %v13494_v19  ;;  %v10095_v19 = vpack.i.bf16 %v13790_v57, %v13747_v50  ;;  %v4263_v50 = vld [vmem:[#allocation3 + $0x108] sm:$0xff]  ;;  %v9629_v56 = vunpack.i.h.bf16 %v13498_v58 }
 0x2d9   :  { %v6637_v51 = vsel %vm3939_vm1, %v4263_v50, %v9624_v42  ;;  %v9698_v42 = vunpack.i.l.bf16 %v13671_v6  ;;  %v9704_v50 = vunpack.i.h.bf16 %v13689_v22 }
 0x2da   :  { %10016 = vrot.lane.b32.xlu1 %v13509_v49, %s10860_s28 }
 0x2db   :  { %10011 = vrot.lane.b32.xlu0 %v10010_v61, %s10863_s6  ;;  %v13740_v11 = vpop.permute.xlu1 %9726  ;;  %v13811_v61 = vld [vmem:[#allocation3 + $0x1b8] sm:$0xff] }
 0x2dd   :  { %v13744_v17 = vpop.permute.xlu0 %9736 }
 0x2de   :  { %10026 = vrot.lane.b32.xlu1 %v10025_v37, %s10863_s6  ;;  %7422 = vmatmul.mubr.bf16.gmra.mrb[20].mxu1 %v7086_v18  ;;  %v9694_v37 = vunpack.i.h.bf16 %v13666_v59  ;;  %v9709_v59 = vunpack.i.h.bf16 %v13712_v35 }
 0x2df   :  { %10021 = vrot.lane.b32.xlu0 %v10020_v27, %s10861_s29  ;;  %9140 = vmatprep.mubr.msk.bf16.mxu1 %vm3939_vm1, %v15793_v5  ;;  %v13756_v38 = vpop.permute.xlu1 %9741  ;;  %v13832_v5 = vld [vmem:[#allocation3 + $0x1b0] sm:$0xff] }
 0x2e1   :  { %v13762_v48 = vpop.permute.xlu0 %9746 }
 0x2e2   :  { %10036 = vrot.lane.b32.xlu1 %v10035_v20, %s10861_s29 }
 0x2e3   :  { %10031 = vrot.lane.b32.xlu0 %v10030_v36, %s10866_s0  ;;  %v9708_v36 = vunpack.i.l.bf16 %v13712_v35  ;;  %v9638_v35 = vunpack.i.l.bf16 %v15800_v16 }
 0x2e4   :  { %v13767_v34 = vpop.permute.xlu1 %9751 }
 0x2e5   :  { %v13769_v21 = vpop.permute.xlu0 %9756 }
 0x2e6   :  { %10046 = vrot.lane.b32.xlu1 %v13371_v55, %s10866_s0  ;;  %v13785_v55 = vld [vmem:[#allocation3 + $0xb8] sm:$0xff] }
 0x2e7   :  { %10041 = vrot.lane.b32.xlu0 %v10040_v53, %s10864_s7  ;;  %15794 = vst [vmem:[#allocation15_spill] sm:$0xff] %v13785_v55  ;;  %v10080_v14 = vpack.i.bf16 %v13785_v55, %v13735_v8  ;;  %v10090_v18 = vpack.i.bf16 %v13461_v62, %v13785_v55  ;;  %v6699_v8 = vsel %vm6674_vm2, %v6634_v29, %v9618_v12  ;;  %v4262_v53 = vld [vmem:[#allocation3 + $0x100] sm:$0xff]  ;;  %v9633_v12 = vunpack.i.l.bf16 %v13514_v32  ;;  %v4264_v55 = vld [vmem:[#allocation3 + $0x110] sm:$0xff] }
 0x2e8   :  { %v13774_v3 = vpop.permute.xlu1 %9761  ;;  %v6636_v43 = vsel %vm3939_vm1, %v4262_v53, %v9623_v60  ;;  %v9699_v29 = vunpack.i.h.bf16 %v13671_v6  ;;  %v6764_v58 = vsel %vm6739_vm3, %v6699_v8, %v9693_v30 }
 0x2e9   :  { %v13776_v9 = vpop.permute.xlu0 %9766  ;;  %v6829_v63 = vsel %vm6804_vm4, %v6764_v58, %v9698_v42  ;;  %v9718_v42 = vunpack.i.l.bf16 %v13727_v10 }
 0x2ea   :  { %10056 = vrot.lane.b32.xlu1 %v13394_v44, %s10864_s7  ;;  %v13794_v44 = vld [vmem:[#allocation3 + $0x2b8] sm:$0xff] }
 0x2eb   :  { %10051 = vrot.lane.b32.xlu0 %v10000_v33, %s10865_s8  ;;  %15796 = vst [vmem:[#allocation17_spill] sm:$0xff] %v13794_v44  ;;  %v9619_v33 = vunpack.i.h.bf16 %v13486_v1  ;;  %v9703_v1 = vunpack.i.l.bf16 %v13689_v22 }
 0x2ec   :  { %v13783_v7 = vpop.permute.xlu1 %9776 }
 0x2ed   :  { %v13787_v31 = vpop.permute.xlu0 %9771  ;;  %v6700_v20 = vsel %vm6674_vm2, %v6635_v40, %v9619_v33  ;;  %v13852_v40 = vld [vmem:[#allocation3 + $0x38] sm:$0xff]  ;;  %v9634_v33 = vunpack.i.h.bf16 %v13514_v32 }
 0x2ee   :  { %10066 = vrot.lane.b32.xlu1 %v13509_v49, %s10865_s8  ;;  %v6765_v53 = vsel %vm6739_vm3, %v6700_v20, %v9694_v37  ;;  %v15799_v32 = vld [vmem:[#allocation12_spill] sm:$0xff]  ;;  %v6702_v37 = vsel %vm6674_vm2, %v6637_v51, %v9629_v56  ;;  %v6701_v20 = vsel %vm6674_vm2, %v6636_v43, %v9628_v39  ;;  %v6638_v43 = vsel %vm3939_vm1, %v4264_v55, %v9633_v12 }
 0x2ef   :  { %10061 = vrot.lane.b32.xlu0 %v10060_v24, %s10862_s30  ;;  %v13848_v24 = vld [vmem:[#allocation3 + $0x1c8] sm:$0xff]  ;;  %v6830_v6 = vsel %vm6804_vm4, %v6765_v53, %v9699_v29  ;;  %v6639_v51 = vsel %vm3939_vm1, %v4265_v45, %v9634_v33  ;;  %v6766_v39 = vsel %vm6739_vm3, %v6701_v20, %v9708_v36  ;;  %v6767_v30 = vsel %vm6739_vm3, %v6702_v37, %v9709_v59  ;;  %v15801_v33 = vld [vmem:[#allocation11_spill] sm:$0xff] }
 0x2f0   :  { %v13815_v49 = vpop.permute.xlu1 %9781  ;;  %v9719_v29 = vunpack.i.h.bf16 %v13727_v10  ;;  %v9714_v55 = vunpack.i.h.bf16 %v13695_v54  ;;  %v9644_v12 = vunpack.i.h.bf16 %v15801_v33  ;;  %v9643_v10 = vunpack.i.l.bf16 %v15801_v33 }
 0x2f1   :  { %15797 = vst [vmem:[#allocation18_spill] sm:$0xff] %v13815_v49  ;;  %v13826_v27 = vpop.permute.xlu0 %9786  ;;  %v9723_v20 = vunpack.i.l.bf16 %v13714_v52  ;;  %v6703_v33 = vsel %vm6674_vm2, %v6638_v43, %v9638_v35  ;;  %v15809_v35 = vpack.i.bf16 %v13852_v40, %v13809_v15 }
 0x2f2   :  { %15798 = vst [vmem:[#allocation19_spill] sm:$0xff] %v13826_v27  ;;  %10076 = vrot.lane.b32.xlu1 %v13516_v25, %s10862_s30  ;;  %v13850_v25 = vld [vmem:[#allocation3 + $0x1d0] sm:$0xff] }
 0x2f3   :  { %10071 = vrot.lane.b32.xlu0 %v13818_v46, %s10860_s28 }
 0x2f4   :  { %v13858_v60 = vpop.permute.xlu1 %9806 }
 0x2f5   :  { %v9792_v0 = vpop.permute.xlu0 %9791 }
 0x2f6   :  { %10086 = vrot.lane.b32.xlu1 %v15799_v32, %s10860_s28  ;;  %v9794_v8 = vunpack.i.h.bf16 %v9792_v0  ;;  %v9793_v22 = vunpack.i.l.bf16 %v9792_v0  ;;  %v6894_v0 = vsel %vm6869_vm5, %v6829_v63, %v9703_v1  ;;  %v9713_v1 = vunpack.i.l.bf16 %v13695_v54 }
 0x2f7   :  { %10081 = vrot.lane.b32.xlu0 %v10080_v14, %s10863_s6  ;;  %v6895_v14 = vsel %vm6869_vm5, %v6830_v6, %v9704_v50  ;;  %v6832_v6 = vsel %vm6804_vm4, %v6767_v30, %v9714_v55  ;;  %v15803_v30 = vpack.i.bf16 %v13809_v15, %v13760_v26  ;;  %v9729_v26 = vunpack.i.h.bf16 %v13740_v11 }
 0x2f8   :  { %v13879_v27 = vpop.permute.xlu1 %9811  ;;  %v6959_v45 = vsel %vm6934_vm6, %v6894_v0, %v9793_v22  ;;  %v6960_v63 = vsel %vm6934_vm6, %v6895_v14, %v9794_v8  ;;  %v6831_v50 = vsel %vm6804_vm4, %v6766_v39, %v9713_v1  ;;  %v6897_v22 = vsel %vm6869_vm5, %v6832_v6, %v9719_v29  ;;  %v15806_v1 = vld [vmem:[#allocation7_spill] sm:$0xff] }
 0x2f9   :  { %v9797_v56 = vpop.permute.xlu0 %9796  ;;  %v6896_v8 = vsel %vm6869_vm5, %v6831_v50, %v9718_v42  ;;  %v9728_v0 = vunpack.i.l.bf16 %v13740_v11  ;;  %v9809_v14 = vunpack.i.h.bf16 %v13858_v60  ;;  %v15804_v39 = vpack.c.bf16 %v13811_v61, %v13832_v5  ;;  %v4266_v5 = vld [vmem:[#allocation3 + $0x120] sm:$0xff] }
 0x2fa   :  { %v9799_v44 = vunpack.i.h.bf16 %v9797_v56  ;;  %v9798_v49 = vunpack.i.l.bf16 %v9797_v56  ;;  %10096 = vrot.lane.b32.xlu1 %v10095_v19, %s10863_s6  ;;  %v9808_v56 = vunpack.i.l.bf16 %v13858_v60  ;;  %v10125_v60 = vpack.i.bf16 %v15806_v1, %v13850_v25 }
 0x2fb   :  { %10091 = vrot.lane.b32.xlu0 %v10090_v18, %s10861_s29  ;;  %v9724_v18 = vunpack.i.h.bf16 %v13714_v52  ;;  %v6640_v6 = vsel %vm3939_vm1, %v4266_v5, %v9643_v10 }
 0x2fc   :  { %v13895_v36 = vpop.permute.xlu1 %9816  ;;  %v7024_v59 = vsel %vm6999_vm7, %v6959_v45, %v9798_v49  ;;  %v7025_v19 = vsel %vm6999_vm7, %v6960_v63, %v9799_v44  ;;  %v15802_v49 = vpack.i.bf16 %v13801_v28, %v13790_v57  ;;  %v4782_v44 = vld [vmem:[#allocation3 + $0x1c0] sm:$0xff] }
 0x2fd   :  { %v9802_v58 = vpop.permute.xlu0 %9801  ;;  %v7088_v53 = vpack.c.bf16 %v7025_v19, %v7024_v59  ;;  %v15805_v45 = vld [vmem:[#allocation9_spill] sm:$0xff]  ;;  %v7093_v59 = vpack.c.bf16 %v13848_v24, %v4782_v44  ;;  %v4267_v19 = vld [vmem:[#allocation3 + $0x128] sm:$0xff]  ;;  %v9739_v44 = vunpack.i.h.bf16 %v13744_v17 }
 0x2fe   :  { %v9804_v37 = vunpack.i.h.bf16 %v9802_v58  ;;  %v9803_v54 = vunpack.i.l.bf16 %v9802_v58  ;;  %10106 = vrot.lane.b32.xlu1 %v15802_v49, %s10861_s29  ;;  %v9649_v63 = vunpack.i.h.bf16 %v15805_v45  ;;  %v9648_v61 = vunpack.i.l.bf16 %v15805_v45 }
 0x2ff   :  { %10101 = vrot.lane.b32.xlu0 %v15803_v30, %s10866_s0  ;;  %7430 = vmatmul.mubr.bf16.gmra.mrb[24].mxu1 %v7088_v53  ;;  %v15807_v58 = vpack.i.bf16 %v13850_v25, %v13848_v24  ;;  %v6641_v50 = vsel %vm3939_vm1, %v4267_v19, %v9644_v12  ;;  %v6768_v49 = vsel %vm6739_vm3, %v6703_v33, %v9723_v20  ;;  %v9738_v12 = vunpack.i.l.bf16 %v13744_v17 }
 0x300   :  { %9141 = vmatprep.mubr.msk.bf16.mxu1 %vm3939_vm1, %v15804_v39  ;;  %v13922_v52 = vpop.permute.xlu1 %9821  ;;  %v6961_v29 = vsel %vm6934_vm6, %v6896_v8, %v9803_v54  ;;  %v6962_v42 = vsel %vm6934_vm6, %v6897_v22, %v9804_v37  ;;  %v15808_v37 = vunpack.i.h.bf16 %v15800_v16  ;;  %v6833_v43 = vsel %vm6804_vm4, %v6768_v49, %v9728_v0  ;;  %v4499_v16 = vld [vmem:[#allocation3 + $0x80] sm:$0xff] }
 0x301   :  { %v13928_v55 = vpop.permute.xlu0 %9826  ;;  %v7026_v11 = vsel %vm6999_vm7, %v6961_v29, %v9808_v56  ;;  %v7027_v53 = vsel %vm6999_vm7, %v6962_v42, %v9809_v14  ;;  %v9814_v20 = vunpack.i.h.bf16 %v13879_v27  ;;  %v9813_v8 = vunpack.i.l.bf16 %v13879_v27 }
 0x302   :  { %10116 = vrot.lane.b32.xlu1 %v15807_v58, %s10866_s0  ;;  %v6704_v54 = vsel %vm6674_vm2, %v6639_v51, %v15808_v37  ;;  %v7090_v15 = vpack.c.bf16 %v7027_v53, %v7026_v11  ;;  %v9733_v0 = vunpack.i.l.bf16 %v13729_v41  ;;  %v9819_v30 = vunpack.i.h.bf16 %v13895_v36  ;;  %v14007_v37 = vld [vmem:[#allocation3 + $0x228] sm:$0xff] }
 0x303   :  { %10111 = vrot.lane.b32.xlu0 %v15809_v35, %s10864_s7  ;;  %v6769_v24 = vsel %vm6739_vm3, %v6704_v54, %v9724_v18  ;;  %v9734_v18 = vunpack.i.h.bf16 %v13729_v41  ;;  %v9818_v17 = vunpack.i.l.bf16 %v13895_v36  ;;  %v9744_v14 = vunpack.i.h.bf16 %v13756_v38 }
 0x304   :  { %v13955_v10 = vpop.permute.xlu1 %9831  ;;  %v6834_v51 = vsel %vm6804_vm4, %v6769_v24, %v9729_v26  ;;  %v9743_v56 = vunpack.i.l.bf16 %v13756_v38  ;;  %v10130_v27 = vpack.i.bf16 %v4499_v16, %v13807_v4  ;;  %v6705_v39 = vsel %vm6674_vm2, %v6640_v6, %v9648_v61  ;;  %v15810_v24 = vld [vmem:[#allocation10_spill] sm:$0xff] }
 0x305   :  { %v13960_v22 = vpop.permute.xlu0 %9836  ;;  %v6706_v41 = vsel %vm6674_vm2, %v6641_v50, %v9649_v63  ;;  %v6898_v36 = vsel %vm6869_vm5, %v6833_v43, %v9733_v0  ;;  %v6899_v42 = vsel %vm6869_vm5, %v6834_v51, %v9734_v18  ;;  %v6770_v38 = vsel %vm6739_vm3, %v6705_v39, %v9738_v12  ;;  %v14034_v18 = vld [vmem:[#allocation3 + $0x1f0] sm:$0xff]  ;;  %v14036_v0 = vld [vmem:[#allocation3 + $0x1f8] sm:$0xff] }
 0x306   :  { %10126 = vrot.lane.b32.xlu1 %v10125_v60, %s10864_s7  ;;  %v6771_v45 = vsel %vm6739_vm3, %v6706_v41, %v9739_v44  ;;  %v6963_v4 = vsel %vm6934_vm6, %v6898_v36, %v9813_v8  ;;  %v6964_v26 = vsel %vm6934_vm6, %v6899_v42, %v9814_v20  ;;  %v9749_v63 = vunpack.i.h.bf16 %v13762_v48  ;;  %v15811_v44 = vld [vmem:[#allocation6_spill] sm:$0xff]  ;;  %v15812_v20 = vld [vmem:[#allocation5_spill] sm:$0xff]  ;;  %v14047_v39 = vld [vmem:[#allocation3 + $0x58] sm:$0xff] }
 0x307   :  { %10121 = vrot.lane.b32.xlu0 %v13818_v46, %s10865_s8  ;;  %7438 = vmatmul.mubr.bf16.gmra.mrb[28].mxu1 %v7090_v15  ;;  %v9748_v60 = vunpack.i.l.bf16 %v13762_v48  ;;  %v7028_v61 = vsel %vm6999_vm7, %v6963_v4, %v9818_v17  ;;  %v7029_v5 = vsel %vm6999_vm7, %v6964_v26, %v9819_v30  ;;  %v6835_v19 = vsel %vm6804_vm4, %v6770_v38, %v9743_v56  ;;  %v14032_v15 = vld [vmem:[#allocation3 + $0xd0] sm:$0xff]  ;;  %v14038_v30 = vld [vmem:[#allocation3 + $0x98] sm:$0xff]  ;;  %v14054_v42 = vld [vmem:[#allocation3 + $0xe0] sm:$0xff] }
 0x308   :  { %9142 = vmatprep.mubr.msk.bf16.mxu1 %vm3939_vm1, %v7093_v59  ;;  %v13975_v29 = vpop.permute.xlu1 %9841  ;;  %v13989_v59 = vld [vmem:[#allocation3 + $0x88] sm:$0xff]  ;;  %v6836_v33 = vsel %vm6804_vm4, %v6771_v45, %v9744_v14  ;;  %v9824_v58 = vunpack.i.h.bf16 %v13922_v52  ;;  %v9823_v11 = vunpack.i.l.bf16 %v13922_v52  ;;  %v7092_v50 = vpack.c.bf16 %v7029_v5, %v7028_v61  ;;  %v14043_v56 = vld [vmem:[#allocation3 + $0x270] sm:$0xff]  ;;  %v14052_v36 = vld [vmem:[#allocation3 + $0xd8] sm:$0xff] }
 0x309   :  { %v13981_v46 = vpop.permute.xlu0 %9851  ;;  %v7095_v6 = vpack.c.bf16 %v15806_v1, %v13850_v25  ;;  %v6900_v54 = vsel %vm6869_vm5, %v6835_v19, %v9748_v60  ;;  %v6901_v49 = vsel %vm6869_vm5, %v6836_v33, %v9749_v63  ;;  %v9829_v52 = vunpack.i.h.bf16 %v13928_v55  ;;  %v14056_v38 = vld [vmem:[#allocation3 + $0x60] sm:$0xff]  ;;  %v14065_v60 = vld [vmem:[#allocation3 + $0x1e8] sm:$0xff] }
 0x30a   :  { %10136 = vrot.lane.b32.xlu1 %v15799_v32, %s10865_s8  ;;  %v14003_v32 = vpack.i.bf16 %v13989_v59, %v4499_v16  ;;  %v9828_v35 = vunpack.i.l.bf16 %v13928_v55  ;;  %v6965_v43 = vsel %vm6934_vm6, %v6900_v54, %v9823_v11  ;;  %v6966_v25 = vsel %vm6934_vm6, %v6901_v49, %v9824_v58  ;;  %v14024_v16 = vld [vmem:[#allocation3 + $0x268] sm:$0xff]  ;;  %v14026_v55 = vld [vmem:[#allocation3 + $0x90] sm:$0xff] }
 0x30b   :  { %10131 = vrot.lane.b32.xlu0 %v10130_v27, %s10862_s30  ;;  %v10155_v12 = vpack.i.bf16 %v14007_v37, %v15811_v44  ;;  %v10150_v8 = vpack.i.bf16 %v15812_v20, %v13461_v62  ;;  %v7031_v14 = vsel %vm6999_vm7, %v6966_v25, %v9829_v52  ;;  %v14045_v27 = vld [vmem:[#allocation3 + $0x40] sm:$0xff]  ;;  %v10165_v41 = vpack.i.bf16 %v14024_v16, %v13801_v28  ;;  %v4373_v11 = vld [vmem:[#allocation3 + $0x48] sm:$0xff]  ;;  %v4542_v44 = vld [vmem:[#allocation3 + $0x238] sm:$0xff] }
 0x30c   :  { %v13998_v48 = vpop.permute.xlu1 %9846  ;;  %v7030_v17 = vsel %vm6999_vm7, %v6965_v43, %v9828_v35  ;;  %v9754_v45 = vunpack.i.h.bf16 %v13767_v34  ;;  %v10160_v26 = vpack.i.bf16 %v14032_v15, %v15812_v20  ;;  %v7097_v63 = vpack.c.bf16 %v14036_v0, %v14034_v18  ;;  %v4269_v35 = vld [vmem:[#allocation3 + $0x148] sm:$0xff] }
 0x30d   :  { %v14000_v53 = vpop.permute.xlu0 %9861  ;;  %v9753_v61 = vunpack.i.l.bf16 %v13767_v34  ;;  %v7094_v19 = vpack.c.bf16 %v7031_v14, %v7030_v17  ;;  %v10175_v33 = vpack.i.bf16 %v14043_v56, %v14024_v16  ;;  %v10170_v58 = vpack.i.bf16 %v14045_v27, %v13852_v40 }
 0x30e   :  { %10146 = vrot.lane.b32.xlu1 %v15810_v24, %s10862_s30  ;;  %v9759_v40 = vunpack.i.h.bf16 %v13769_v21  ;;  %v9764_v24 = vunpack.i.h.bf16 %v13774_v3  ;;  %v9763_v43 = vunpack.i.l.bf16 %v13774_v3  ;;  %v10185_v25 = vpack.i.bf16 %v14034_v18, %v14065_v60  ;;  %v14107_v60 = vld [vmem:[#allocation3 + $0x218] sm:$0xff] }
 0x30f   :  { %10141 = vrot.lane.b32.xlu0 %v14003_v32, %s10860_s28  ;;  %7446 = vmatmul.mubr.bf16.gmra.mrb[32].mxu1 %v7092_v50  ;;  %v4268_v50 = vld [vmem:[#allocation3 + $0x140] sm:$0xff]  ;;  %v9758_v17 = vunpack.i.l.bf16 %v13769_v21  ;;  %v10195_v3 = vpack.i.bf16 %v14036_v0, %v14034_v18  ;;  %v9833_v21 = vunpack.i.l.bf16 %v13955_v10  ;;  %v9769_v18 = vunpack.i.h.bf16 %v13776_v9 }
 0x310   :  { %9143 = vmatprep.mubr.msk.bf16.mxu1 %vm3939_vm1, %v7095_v6  ;;  %v14020_v1 = vpop.permute.xlu1 %9856  ;;  %v14077_v6 = vld [vmem:[#allocation3 + $0x208] sm:$0xff]  ;;  %v6642_v52 = vsel %vm3939_vm1, %v4268_v50, %v9753_v61  ;;  %v9768_v49 = vunpack.i.l.bf16 %v13776_v9  ;;  %v9838_v28 = vunpack.i.l.bf16 %v13960_v22 }
 0x311   :  { %v14028_v51 = vpop.permute.xlu0 %9871  ;;  %v6707_v9 = vsel %vm6674_vm2, %v6642_v52, %v9758_v17  ;;  %v9849_v17 = vunpack.i.h.bf16 %v13998_v48 }
 0x312   :  { %10156 = vrot.lane.b32.xlu1 %v10155_v12, %s10860_s28  ;;  %v14093_v12 = vld [vmem:[#allocation3 + $0x240] sm:$0xff] }
 0x313   :  { %10151 = vrot.lane.b32.xlu0 %v10150_v8, %s10863_s6  ;;  %v6643_v8 = vsel %vm3939_vm1, %v4269_v35, %v9754_v45  ;;  %v9834_v45 = vunpack.i.h.bf16 %v13955_v10  ;;  %v4271_v35 = vld [vmem:[#allocation3 + $0x158] sm:$0xff]  ;;  %v14120_v34 = vpack.i.bf16 %v14093_v12, %v4542_v44  ;;  %v9839_v44 = vunpack.i.h.bf16 %v13960_v22 }
 0x314   :  { %v14059_v4 = vpop.permute.xlu1 %9866  ;;  %v6708_v10 = vsel %vm6674_vm2, %v6643_v8, %v9759_v40  ;;  %v6645_v50 = vsel %vm3939_vm1, %v4271_v35, %v9764_v24  ;;  %v6772_v40 = vsel %vm6739_vm3, %v6707_v9, %v9833_v21  ;;  %v9848_v35 = vunpack.i.l.bf16 %v13998_v48 }
 0x315   :  { %v14070_v5 = vpop.permute.xlu0 %9881  ;;  %v6773_v24 = vsel %vm6739_vm3, %v6708_v10, %v9834_v45  ;;  %v9779_v22 = vunpack.i.h.bf16 %v13783_v7  ;;  %v9778_v21 = vunpack.i.l.bf16 %v13783_v7  ;;  %v9854_v7 = vunpack.i.h.bf16 %v13981_v46 }
 0x316   :  { %10166 = vrot.lane.b32.xlu1 %v10165_v41, %s10863_s6  ;;  %v10180_v41 = vpack.i.bf16 %v4373_v11, %v14045_v27  ;;  %v4270_v11 = vld [vmem:[#allocation3 + $0x150] sm:$0xff]  ;;  %v9853_v9 = vunpack.i.l.bf16 %v13981_v46 }
 0x317   :  { %10161 = vrot.lane.b32.xlu0 %v10160_v26, %s10861_s29  ;;  %7454 = vmatmul.mubr.bf16.gmra.mrb[36].mxu1 %v7094_v19  ;;  %v14103_v26 = vld [vmem:[#allocation3 + $0x200] sm:$0xff]  ;;  %v14105_v19 = vld [vmem:[#allocation3 + $0x210] sm:$0xff]  ;;  %v6644_v54 = vsel %vm3939_vm1, %v4270_v11, %v9763_v43  ;;  %v9844_v43 = vunpack.i.h.bf16 %v13975_v29  ;;  %v6710_v11 = vsel %vm6674_vm2, %v6645_v50, %v9769_v18  ;;  %v9773_v18 = vunpack.i.l.bf16 %v13787_v31 }
 0x318   :  { %9144 = vmatprep.mubr.msk.bf16.mxu1 %vm3939_vm1, %v7097_v63  ;;  %v14098_v14 = vpop.permute.xlu1 %9876  ;;  %v7101_v27 = vpack.c.bf16 %v14107_v60, %v14105_v19  ;;  %v6709_v52 = vsel %vm6674_vm2, %v6644_v54, %v9768_v49  ;;  %v6837_v54 = vsel %vm6804_vm4, %v6772_v40, %v9838_v28  ;;  %v6838_v49 = vsel %vm6804_vm4, %v6773_v24, %v9839_v44 }
 0x319   :  { %v14112_v63 = vpop.permute.xlu0 %9891  ;;  %v6903_v50 = vsel %vm6869_vm5, %v6838_v49, %v9844_v43  ;;  %v9859_v28 = vunpack.i.h.bf16 %v14020_v1  ;;  %v9858_v44 = vunpack.i.l.bf16 %v14020_v1  ;;  %v6646_v24 = vsel %vm3939_vm1, %v13590_v13, %v9773_v18 }
 0x31a   :  { %10176 = vrot.lane.b32.xlu1 %v10175_v33, %s10861_s29  ;;  %v9774_v33 = vunpack.i.h.bf16 %v13787_v31  ;;  %v9864_v43 = vunpack.i.h.bf16 %v14000_v53 }
 0x31b   :  { %10171 = vrot.lane.b32.xlu0 %v10170_v58, %s10866_s0  ;;  %v9843_v58 = vunpack.i.l.bf16 %v13975_v29 }
 0x31c   :  { %v14134_v61 = vpop.permute.xlu1 %9886  ;;  %v6647_v29 = vsel %vm3939_vm1, %v13575_v2, %v9774_v33  ;;  %v6775_v2 = vsel %vm6739_vm3, %v6710_v11, %v9849_v17 }
 0x31d   :  { %v9902_v8 = vpop.permute.xlu0 %9901 }
 0x31e   :  { %10186 = vrot.lane.b32.xlu1 %v10185_v25, %s10866_s0  ;;  %v9904_v45 = vunpack.i.h.bf16 %v9902_v8  ;;  %v9903_v10 = vunpack.i.l.bf16 %v9902_v8  ;;  %v6902_v25 = vsel %vm6869_vm5, %v6837_v54, %v9843_v58  ;;  %v6774_v8 = vsel %vm6739_vm3, %v6709_v52, %v9848_v35 }
 0x31f   :  { %10181 = vrot.lane.b32.xlu0 %v10180_v41, %s10864_s7  ;;  %v9863_v52 = vunpack.i.l.bf16 %v14000_v53  ;;  %v6839_v1 = vsel %vm6804_vm4, %v6774_v8, %v9853_v9  ;;  %v9868_v53 = vunpack.i.l.bf16 %v14059_v4 }
 0x320   :  { %v14153_v48 = vpop.permute.xlu1 %9896  ;;  %v6967_v40 = vsel %vm6934_vm6, %v6902_v25, %v9903_v10  ;;  %v6968_v46 = vsel %vm6934_vm6, %v6903_v50, %v9904_v45  ;;  %v6904_v13 = vsel %vm6869_vm5, %v6839_v1, %v9858_v44  ;;  %v9869_v25 = vunpack.i.h.bf16 %v14059_v4  ;;  %v4672_v1 = vld [vmem:[#allocation3 + $0x280] sm:$0xff] }
 0x321   :  { %v9907_v41 = vpop.permute.xlu0 %9906  ;;  %v15813_v50 = vpack.i.bf16 %v14026_v55, %v13989_v59  ;;  %v6712_v44 = vsel %vm6674_vm2, %v6647_v29, %v9779_v22  ;;  %v15817_v29 = vpack.i.bf16 %v14038_v30, %v14026_v55  ;;  %v14222_v30 = vld [vmem:[#allocation3 + $0x220] sm:$0xff] }
 0x322   :  { %v9909_v31 = vunpack.i.h.bf16 %v9907_v41  ;;  %v9908_v33 = vunpack.i.l.bf16 %v9907_v41  ;;  %10196 = vrot.lane.b32.xlu1 %v10195_v3, %s10864_s7 }
 0x323   :  { %10191 = vrot.lane.b32.xlu0 %v14003_v32, %s10865_s8  ;;  %v6840_v32 = vsel %vm6804_vm4, %v6775_v2, %v9854_v7  ;;  %v15814_v7 = vld [vmem:[#allocation18_spill] sm:$0xff] }
 0x324   :  { %v9917_v58 = vpop.permute.xlu1 %9916  ;;  %v7032_v11 = vsel %vm6999_vm7, %v6967_v40, %v9908_v33  ;;  %v7033_v3 = vsel %vm6999_vm7, %v6968_v46, %v9909_v31  ;;  %v6905_v18 = vsel %vm6869_vm5, %v6840_v32, %v9859_v28  ;;  %v9784_v9 = vunpack.i.h.bf16 %v15814_v7  ;;  %v15816_v31 = vld [vmem:[#allocation19_spill] sm:$0xff]  ;;  %v4673_v32 = vld [vmem:[#allocation3 + $0x288] sm:$0xff] }
 0x325   :  { %v9912_v17 = vpop.permute.xlu0 %9911  ;;  %v7096_v35 = vpack.c.bf16 %v7033_v3, %v7032_v11  ;;  %v9919_v10 = vunpack.i.h.bf16 %v9917_v58  ;;  %v9918_v45 = vunpack.i.l.bf16 %v9917_v58  ;;  %v9783_v41 = vunpack.i.l.bf16 %v15814_v7 }
 0x326   :  { %v9914_v54 = vunpack.i.h.bf16 %v9912_v17  ;;  %v9913_v49 = vunpack.i.l.bf16 %v9912_v17  ;;  %10206 = vrot.lane.b32.xlu1 %v13559_v47, %s10865_s8  ;;  %v15815_v47 = vpack.c.bf16 %v14077_v6, %v14103_v26  ;;  %v9789_v33 = vunpack.i.h.bf16 %v15816_v31 }
 0x327   :  { %10201 = vrot.lane.b32.xlu0 %v15813_v50, %s10862_s30  ;;  %7462 = vmatmul.mubr.bf16.gmra.mrb[40].mxu1 %v7096_v35  ;;  %v9788_v59 = vunpack.i.l.bf16 %v15816_v31  ;;  %v6711_v28 = vsel %vm6674_vm2, %v6646_v24, %v9778_v21  ;;  %v6777_v58 = vsel %vm6739_vm3, %v6712_v44, %v9864_v43  ;;  %v15818_v43 = vld [vmem:[#allocation13_spill] sm:$0xff]  ;;  %v9874_v35 = vunpack.i.h.bf16 %v14028_v51 }
 0x328   :  { %9145 = vmatprep.mubr.msk.bf16.mxu1 %vm3939_vm1, %v15815_v47  ;;  %v9922_v8 = vpop.permute.xlu1 %9921  ;;  %v6969_v2 = vsel %vm6934_vm6, %v6904_v13, %v9913_v49  ;;  %v6970_v4 = vsel %vm6934_vm6, %v6905_v18, %v9914_v54  ;;  %v6776_v46 = vsel %vm6739_vm3, %v6711_v28, %v9863_v52  ;;  %v6842_v21 = vsel %vm6804_vm4, %v6777_v58, %v9869_v25  ;;  %v15819_v49 = vld [vmem:[#allocation14_spill] sm:$0xff] }
 0x329   :  { %v9927_v40 = vpop.permute.xlu0 %9926  ;;  %v7034_v11 = vsel %vm6999_vm7, %v6969_v2, %v9918_v45  ;;  %v7035_v3 = vsel %vm6999_vm7, %v6970_v4, %v9919_v10  ;;  %v6841_v17 = vsel %vm6804_vm4, %v6776_v46, %v9868_v53  ;;  %v9924_v24 = vunpack.i.h.bf16 %v9922_v8 }
 0x32a   :  { %10216 = vrot.lane.b32.xlu1 %v14120_v34, %s10862_s30  ;;  %v9923_v22 = vunpack.i.l.bf16 %v9922_v8  ;;  %v6648_v52 = vsel %vm3939_vm1, %v15818_v43, %v9783_v41  ;;  %v9873_v10 = vunpack.i.l.bf16 %v14028_v51  ;;  %v9878_v45 = vunpack.i.l.bf16 %v14098_v14 }
 0x32b   :  { %10211 = vrot.lane.b32.xlu0 %v15817_v29, %s10860_s28  ;;  %v6649_v13 = vsel %vm3939_vm1, %v15819_v49, %v9784_v9  ;;  %v9879_v18 = vunpack.i.h.bf16 %v14098_v14  ;;  %v7098_v53 = vpack.c.bf16 %v7035_v3, %v7034_v11  ;;  %v14220_v55 = vpack.i.bf16 %v4673_v32, %v4672_v1  ;;  %v14277_v49 = vld [vmem:[#allocation3 + $0x68] sm:$0xff] }
 0x32c   :  { %v14215_v54 = vpop.permute.xlu1 %9936  ;;  %v9929_v50 = vunpack.i.h.bf16 %v9927_v40  ;;  %v9928_v7 = vunpack.i.l.bf16 %v9927_v40  ;;  %v15820_v51 = vpack.i.bf16 %v13731_v23, %v14093_v12  ;;  %v6906_v41 = vsel %vm6869_vm5, %v6841_v17, %v9873_v10 }
 0x32d   :  { %v9932_v25 = vpop.permute.xlu0 %9931  ;;  %v6907_v47 = vsel %vm6869_vm5, %v6842_v21, %v9874_v35  ;;  %v6713_v9 = vsel %vm6674_vm2, %v6648_v52, %v9788_v59  ;;  %v15821_v14 = vpack.i.bf16 %v14052_v36, %v14032_v15  ;;  %v6971_v8 = vsel %vm6934_vm6, %v6906_v41, %v9923_v22  ;;  %v14246_v15 = vld [vmem:[#allocation3 + $0x290] sm:$0xff] }
 0x32e   :  { %10226 = vrot.lane.b32.xlu1 %v15820_v51, %s10860_s28  ;;  %v6972_v2 = vsel %vm6934_vm6, %v6907_v47, %v9924_v24  ;;  %v6714_v4 = vsel %vm6674_vm2, %v6649_v13, %v9789_v33  ;;  %v6778_v23 = vsel %vm6739_vm3, %v6713_v9, %v9878_v45  ;;  %v9888_v31 = vunpack.i.l.bf16 %v14134_v61  ;;  %v4276_v24 = vld [vmem:[#allocation3 + $0x190] sm:$0xff]  ;;  %v4277_v13 = vld [vmem:[#allocation3 + $0x198] sm:$0xff] }
 0x32f   :  { %10221 = vrot.lane.b32.xlu0 %v15821_v14, %s10863_s6  ;;  %7470 = vmatmul.mubr.bf16.gmra.mrb[44].mxu1 %v7098_v53  ;;  %v7103_v28 = vpack.c.bf16 %v14007_v37, %v14222_v30  ;;  %v9884_v44 = vunpack.i.h.bf16 %v14070_v5  ;;  %v9883_v33 = vunpack.i.l.bf16 %v14070_v5  ;;  %v6779_v40 = vsel %vm6739_vm3, %v6714_v4, %v9879_v18  ;;  %v4438_v4 = vld [vmem:[#allocation3 + $0xa0] sm:$0xff] }
 0x330   :  { %9146 = vmatprep.mubr.msk.bf16.mxu1 %vm3939_vm1, %v7101_v27  ;;  %v14244_v59 = vpop.permute.xlu1 %9946  ;;  %v9889_v46 = vunpack.i.h.bf16 %v14134_v61  ;;  %v9934_v11 = vunpack.i.h.bf16 %v9932_v25  ;;  %v9933_v3 = vunpack.i.l.bf16 %v9932_v25  ;;  %v7036_v27 = vsel %vm6999_vm7, %v6971_v8, %v9928_v7 }
 0x331   :  { %v9942_v58 = vpop.permute.xlu0 %9941  ;;  %v7037_v1 = vsel %vm6999_vm7, %v6972_v2, %v9929_v50  ;;  %v9894_v37 = vunpack.i.h.bf16 %v14112_v63  ;;  %v9893_v17 = vunpack.i.l.bf16 %v14112_v63  ;;  %v6843_v5 = vsel %vm6804_vm4, %v6778_v23, %v9883_v33  ;;  %v4439_v23 = vld [vmem:[#allocation3 + $0xa8] sm:$0xff] }
 0x332   :  { %10236 = vrot.lane.b32.xlu1 %v14220_v55, %s10863_s6  ;;  %v15822_v61 = vpack.i.bf16 %v14054_v42, %v14052_v36  ;;  %v14266_v21 = vpack.i.bf16 %v14246_v15, %v4673_v32  ;;  %v6844_v22 = vsel %vm6804_vm4, %v6779_v40, %v9884_v44  ;;  %v6908_v29 = vsel %vm6869_vm5, %v6843_v5, %v9888_v31 }
 0x333   :  { %v9899_v43 = vunpack.i.h.bf16 %v14153_v48  ;;  %v9898_v52 = vunpack.i.l.bf16 %v14153_v48  ;;  %v6909_v35 = vsel %vm6869_vm5, %v6844_v22, %v9889_v46  ;;  %v9939_v10 = vunpack.i.h.bf16 %v14215_v54 }
 0x334   :  { %10231 = vrot.lane.b32.xlu0 %v15822_v61, %s10861_s29  ;;  %v14272_v63 = vpop.permute.xlu1 %9966  ;;  %v9938_v42 = vunpack.i.l.bf16 %v14215_v54  ;;  %v7100_v32 = vpack.c.bf16 %v7037_v1, %v7036_v27  ;;  %v9944_v18 = vunpack.i.h.bf16 %v9942_v58  ;;  %v9943_v25 = vunpack.i.l.bf16 %v9942_v58 }
 0x335   :  { %v9952_v45 = vpop.permute.xlu0 %9951  ;;  %v6973_v48 = vsel %vm6934_vm6, %v6908_v29, %v9933_v3  ;;  %v6974_v53 = vsel %vm6934_vm6, %v6909_v35, %v9934_v11  ;;  %v6651_v50 = vsel %vm3939_vm1, %v4277_v13, %v9894_v37  ;;  %v6650_v7 = vsel %vm3939_vm1, %v4276_v24, %v9893_v17  ;;  %v14320_v29 = vld [vmem:[#allocation3 + $0xb0] sm:$0xff] }
 0x336   :  { %10246 = vrot.lane.b32.xlu1 %v14266_v21, %s10861_s29  ;;  %v15823_v54 = vpack.i.bf16 %v14056_v38, %v14047_v39  ;;  %v6715_v51 = vsel %vm6674_vm2, %v6650_v7, %v9898_v52  ;;  %v6716_v41 = vsel %vm6674_vm2, %v6651_v50, %v9899_v43  ;;  %v10255_v9 = vpack.i.bf16 %v14103_v26, %v14036_v0  ;;  %v15824_v7 = vld [vmem:[#allocation15_spill] sm:$0xff] }
 0x337   :  { %7478 = vmatmul.mubr.bf16.gmra.mrb[48].mxu1 %v7100_v32  ;;  %v10250_v14 = vpack.i.bf16 %v14277_v49, %v14056_v38  ;;  %v9949_v8 = vunpack.i.h.bf16 %v14244_v59  ;;  %v9948_v2 = vunpack.i.l.bf16 %v14244_v59  ;;  %v7038_v31 = vsel %vm6999_vm7, %v6973_v48, %v9938_v42 }
 0x338   :  { %10241 = vrot.lane.b32.xlu0 %v15823_v54, %s10866_s0  ;;  %9147 = vmatprep.mubr.msk.bf16.mxu1 %vm3939_vm1, %v7103_v28  ;;  %v9972_v47 = vpop.permute.xlu1 %9971  ;;  %v7039_v44 = vsel %vm6999_vm7, %v6974_v53, %v9939_v10  ;;  %v4795_v28 = vld [vmem:[#allocation3 + $0x248] sm:$0xff]  ;;  %v6780_v33 = vsel %vm6739_vm3, %v6715_v51, %v9943_v25  ;;  %v6781_v0 = vsel %vm6739_vm3, %v6716_v41, %v9944_v18  ;;  %v9954_v40 = vunpack.i.h.bf16 %v9952_v45  ;;  %v14332_v10 = vld [vmem:[#allocation3 + $0x250] sm:$0xff]  ;;  %v14341_v18 = vld [vmem:[#allocation3 + $0xf8] sm:$0xff] }
 0x339   :  { %v14298_v39 = vpop.permute.xlu0 %9956  ;;  %v9953_v46 = vunpack.i.l.bf16 %v9952_v45  ;;  %v10265_v59 = vpack.i.bf16 %v14077_v6, %v14103_v26  ;;  %v10260_v58 = vpack.i.bf16 %v4439_v23, %v4438_v4  ;;  %v7102_v11 = vpack.c.bf16 %v7039_v44, %v7038_v31  ;;  %v14348_v53 = vld [vmem:[#allocation3 + $0x100] sm:$0xff]  ;;  %v14354_v41 = vld [vmem:[#allocation3 + $0x70] sm:$0xff]  ;;  %v14369_v31 = vld [vmem:[#allocation3 + $0x78] sm:$0xff] }
 0x33a   :  { %10256 = vrot.lane.b32.xlu1 %v10255_v9, %s10866_s0  ;;  %v7105_v3 = vpack.c.bf16 %v4795_v28, %v14093_v12  ;;  %v9969_v27 = vunpack.i.h.bf16 %v14272_v63  ;;  %v9968_v1 = vunpack.i.l.bf16 %v14272_v63  ;;  %v6845_v37 = vsel %vm6804_vm4, %v6780_v33, %v9948_v2  ;;  %v4236_v44 = vld [vmem:[#allocation3] sm:$0xff] }
 0x33b   :  { %v6846_v17 = vsel %vm6804_vm4, %v6781_v0, %v9949_v8  ;;  %v6910_v61 = vsel %vm6869_vm5, %v6845_v37, %v9953_v46  ;;  %v9974_v22 = vunpack.i.h.bf16 %v9972_v47  ;;  %v9973_v26 = vunpack.i.l.bf16 %v9972_v47  ;;  %v14378_v46 = vld [vmem:[#allocation3 + $0x2a0] sm:$0xff] }
 0x33c   :  { %10251 = vrot.lane.b32.xlu0 %v10250_v14, %s10864_s7  ;;  %v14306_v38 = vpop.permute.xlu1 %9976  ;;  %v6911_v24 = vsel %vm6869_vm5, %v6846_v17, %v9954_v40  ;;  %v14327_v52 = vpack.i.bf16 %v4795_v28, %v14093_v12  ;;  %v10270_v35 = vpack.i.bf16 %v14320_v29, %v4439_v23  ;;  %v6975_v42 = vsel %vm6934_vm6, %v6910_v61, %v9968_v1  ;;  %v4632_v12 = vld [vmem:[#allocation3 + $0xf0] sm:$0xff]  ;;  %v14361_v14 = vld [vmem:[#allocation3 + $0x298] sm:$0xff]  ;;  %v4279_v1 = vld [vmem:[#allocation3 + $0x1a8] sm:$0xff] }
 0x33d   :  { %v14315_v5 = vpop.permute.xlu0 %9961  ;;  %v6976_v45 = vsel %vm6934_vm6, %v6911_v24, %v9969_v27  ;;  %v7040_v32 = vsel %vm6999_vm7, %v6975_v42, %v9973_v26  ;;  %v14346_v48 = vpack.i.bf16 %v14332_v10, %v4795_v28  ;;  %v10280_v54 = vpack.i.bf16 %v15824_v7, %v14320_v29  ;;  %v4237_v28 = vld [vmem:[#allocation3 + $0x8] sm:$0xff]  ;;  %v4278_v61 = vld [vmem:[#allocation3 + $0x1a0] sm:$0xff] }
 0x33e   :  { %10266 = vrot.lane.b32.xlu1 %v10265_v59, %s10864_s7  ;;  %v7041_v13 = vsel %vm6999_vm7, %v6976_v45, %v9974_v22  ;;  %v7107_v47 = vpack.c.bf16 %v13790_v57, %v14332_v10  ;;  %v10290_v9 = vpack.i.bf16 %v14341_v18, %v4632_v12  ;;  %v9959_v8 = vunpack.i.h.bf16 %v14298_v39 }
 0x33f   :  { %7486 = vmatmul.mubr.bf16.gmra.mrb[52].mxu1 %v7102_v11  ;;  %v7104_v51 = vpack.c.bf16 %v7041_v13, %v7040_v32  ;;  %v9958_v2 = vunpack.i.l.bf16 %v14298_v39  ;;  %v9979_v4 = vunpack.i.h.bf16 %v14306_v38  ;;  %v10300_v23 = vpack.i.bf16 %v14348_v53, %v14341_v18 }
 0x340   :  { %10261 = vrot.lane.b32.xlu0 %v10260_v58, %s10865_s8  ;;  %9148 = vmatprep.mubr.msk.bf16.mxu1 %vm3939_vm1, %v7105_v3  ;;  %v14324_v43 = vpop.permute.xlu1 %9986  ;;  %v9978_v33 = vunpack.i.l.bf16 %v14306_v38  ;;  %v9963_v0 = vunpack.i.l.bf16 %v14315_v5  ;;  %v10295_v39 = vpack.i.bf16 %v13790_v57, %v14332_v10  ;;  %v10310_v59 = vpack.i.bf16 %v14354_v41, %v14277_v49 }
 0x341   :  { %v14329_v63 = vpop.permute.xlu0 %9981  ;;  %v9964_v58 = vunpack.i.h.bf16 %v14315_v5  ;;  %v14385_v38 = vpack.i.bf16 %v14361_v14, %v14246_v15  ;;  %v10325_v3 = vpack.i.bf16 %v14105_v19, %v14077_v6  ;;  %v10320_v27 = vpack.i.bf16 %v14369_v31, %v14354_v41 }
 0x342   :  { %10276 = vrot.lane.b32.xlu1 %v14327_v52, %s10865_s8  ;;  %v9989_v57 = vunpack.i.h.bf16 %v14324_v43  ;;  %v9988_v37 = vunpack.i.l.bf16 %v14324_v43  ;;  %v9984_v49 = vunpack.i.h.bf16 %v14329_v63  ;;  %v9983_v17 = vunpack.i.l.bf16 %v14329_v63 }
 0x343   :  { %v6611_v15 = vsel %vm3939_vm1, %v4237_v28, %v9959_v8  ;;  %v6610_v5 = vsel %vm3939_vm1, %v4236_v44, %v9958_v2  ;;  %v6653_v24 = vsel %vm3939_vm1, %v4279_v1, %v9979_v4  ;;  %v14402_v22 = vpack.i.bf16 %v14378_v46, %v14361_v14 }
 0x344   :  { %10271 = vrot.lane.b32.xlu0 %v10270_v35, %s10862_s30  ;;  %v14343_v25 = vpop.permute.xlu1 %9996  ;;  %v6652_v26 = vsel %vm3939_vm1, %v4278_v61, %v9978_v33  ;;  %v6675_v43 = vsel %vm6674_vm2, %v6610_v5, %v9963_v0  ;;  %v6676_v45 = vsel %vm6674_vm2, %v6611_v15, %v9964_v58  ;;  %v15825_v6 = vpack.c.bf16 %v15812_v20, %v13461_v62  ;;  %v4505_v62 = vld [vmem:[#allocation3 + $0xc0] sm:$0xff] }
 0x345   :  { %v14350_v50 = vpop.permute.xlu0 %9991  ;;  %v9998_v32 = vunpack.i.l.bf16 %v14343_v25  ;;  %v6717_v7 = vsel %vm6674_vm2, %v6652_v26, %v9988_v37 }
 0x346   :  { %10286 = vrot.lane.b32.xlu1 %v14346_v48, %s10862_s30  ;;  %v9994_v63 = vunpack.i.h.bf16 %v14350_v50  ;;  %v9993_v35 = vunpack.i.l.bf16 %v14350_v50  ;;  %v9999_v50 = vunpack.i.h.bf16 %v14343_v25 }
 0x347   :  { %7494 = vmatmul.mubr.bf16.gmra.mrb[56].mxu1 %v7104_v51  ;;  %v6740_v51 = vsel %vm6739_vm3, %v6675_v43, %v9983_v17 }
 0x348   :  { %10281 = vrot.lane.b32.xlu0 %v10280_v54, %s10860_s28  ;;  %9149 = vmatprep.mubr.msk.bf16.mxu1 %vm3939_vm1, %v7107_v47  ;;  %v14374_v40 = vpop.permute.xlu1 %10006  ;;  %v6718_v54 = vsel %vm6674_vm2, %v6653_v24, %v9989_v57  ;;  %v6741_v47 = vsel %vm6739_vm3, %v6676_v45, %v9984_v49  ;;  %v6805_v4 = vsel %vm6804_vm4, %v6740_v51, %v9993_v35 }
 0x349   :  { %v10002_v11 = vpop.permute.xlu0 %10001  ;;  %v6806_v44 = vsel %vm6804_vm4, %v6741_v47, %v9994_v63  ;;  %v10009_v28 = vunpack.i.h.bf16 %v14374_v40  ;;  %v6783_v17 = vsel %vm6739_vm3, %v6718_v54, %v9999_v50  ;;  %v10335_v47 = vpack.i.bf16 %v14107_v60, %v14105_v19 }
 0x34a   :  { %10296 = vrot.lane.b32.xlu1 %v10295_v39, %s10860_s28  ;;  %v10004_v13 = vunpack.i.h.bf16 %v10002_v11  ;;  %v10003_v12 = vunpack.i.l.bf16 %v10002_v11  ;;  %v6782_v39 = vsel %vm6739_vm3, %v6717_v7, %v9998_v32  ;;  %v14445_v7 = vld [vmem:[#allocation3 + $0x260] sm:$0xff] }
 0x34b   :  { %v6848_v61 = vsel %vm6804_vm4, %v6783_v17, %v10009_v28  ;;  %v7109_v31 = vpack.c.bf16 %v14024_v16, %v14445_v7 }
 0x34c   :  { %10291 = vrot.lane.b32.xlu0 %v10290_v9, %s10863_s6  ;;  %v10017_v42 = vpop.permute.xlu1 %10016  ;;  %v10008_v9 = vunpack.i.l.bf16 %v14374_v40  ;;  %v6870_v58 = vsel %vm6869_vm5, %v6805_v4, %v10003_v12  ;;  %v6871_v25 = vsel %vm6869_vm5, %v6806_v44, %v10004_v13  ;;  %v14484_v44 = vld [vmem:[#allocation3 + $0x108] sm:$0xff] }
 0x34d   :  { %v10012_v18 = vpop.permute.xlu0 %10011  ;;  %v10018_v33 = vunpack.i.l.bf16 %v10017_v42  ;;  %v10019_v11 = vunpack.i.h.bf16 %v10017_v42 }
 0x34e   :  { %10306 = vrot.lane.b32.xlu1 %v14385_v38, %s10863_s6  ;;  %v10014_v8 = vunpack.i.h.bf16 %v10012_v18  ;;  %v10013_v2 = vunpack.i.l.bf16 %v10012_v18  ;;  %v6847_v40 = vsel %vm6804_vm4, %v6782_v39, %v10008_v9  ;;  %v14492_v39 = vld [vmem:[#allocation3 + $0x2a8] sm:$0xff] }
 0x34f   :  { %v6912_v24 = vsel %vm6869_vm5, %v6847_v40, %v10018_v33  ;;  %v6913_v35 = vsel %vm6869_vm5, %v6848_v61, %v10019_v11  ;;  %v10848_v33 = vld [vmem:[#allocation3 + $0xc8] sm:$0xff] }
 0x350   :  { %10301 = vrot.lane.b32.xlu0 %v10300_v23, %s10861_s29  ;;  %v10027_v0 = vpop.permute.xlu1 %10026  ;;  %v6935_v15 = vsel %vm6934_vm6, %v6870_v58, %v10013_v2  ;;  %v6936_v5 = vsel %vm6934_vm6, %v6871_v25, %v10014_v8  ;;  %v14494_v58 = vld [vmem:[#allocation3 + $0x228] sm:$0xff] }
 0x351   :  { %v10022_v1 = vpop.permute.xlu0 %10021  ;;  %v10029_v57 = vunpack.i.h.bf16 %v10027_v0  ;;  %v10028_v37 = vunpack.i.l.bf16 %v10027_v0  ;;  %v14488_v0 = vld [vmem:[#allocation3 + $0x110] sm:$0xff] }
 0x352   :  { %v10024_v49 = vunpack.i.h.bf16 %v10022_v1  ;;  %v10023_v23 = vunpack.i.l.bf16 %v10022_v1  ;;  %10316 = vrot.lane.b32.xlu1 %v14402_v22, %s10861_s29 }
 0x353   :  { %v6977_v12 = vsel %vm6934_vm6, %v6912_v24, %v10028_v37  ;;  %v6978_v18 = vsel %vm6934_vm6, %v6913_v35, %v10029_v57  ;;  %v10360_v57 = vpack.i.bf16 %v14484_v44, %v14348_v53  ;;  %v4238_v37 = vld [vmem:[#allocation3 + $0x10] sm:$0xff]  ;;  %v14517_v53 = vpack.i.bf16 %v14492_v39, %v14378_v46 }
 0x354   :  { %10311 = vrot.lane.b32.xlu0 %v10310_v59, %s10866_s0  ;;  %v7000_v26 = vsel %vm6999_vm7, %v6935_v15, %v10023_v23  ;;  %v7001_v43 = vsel %vm6999_vm7, %v6936_v5, %v10024_v49  ;;  %v10037_v63 = vpop.permute.xlu1 %10036  ;;  %v4441_v59 = vld [vmem:[#allocation3 + $0xb8] sm:$0xff]  ;;  %v14508_v15 = vpack.i.bf16 %v14024_v16, %v14445_v7  ;;  %v10370_v5 = vpack.i.bf16 %v14488_v0, %v14484_v44 }
 0x355   :  { %v7064_v42 = vpack.c.bf16 %v7001_v43, %v7000_v26  ;;  %v10039_v45 = vunpack.i.h.bf16 %v10037_v63  ;;  %v10038_v32 = vunpack.i.l.bf16 %v10037_v63  ;;  %v14437_v13 = vpop.permute.xlu0 %10031  ;;  %v10330_v41 = vpack.i.bf16 %v4441_v59, %v14320_v29  ;;  %v4239_v49 = vld [vmem:[#allocation3 + $0x18] sm:$0xff] }
 0x356   :  { %10326 = vrot.lane.b32.xlu1 %v10325_v3, %s10866_s0  ;;  %v10340_v29 = vpack.i.bf16 %v4505_v62, %v4441_v59  ;;  %v10034_v25 = vunpack.i.h.bf16 %v14437_v13  ;;  %v10033_v11 = vunpack.i.l.bf16 %v14437_v13  ;;  %v10385_v43 = vpack.i.bf16 %v14222_v30, %v14107_v60  ;;  %v10849_v60 = vld [vmem:[#allocation3 + $0x1b8] sm:$0xff] }
 0x357   :  { %7334 = vmatmul.mubr.bf16.vlgmr.msra.gmra.mrb[32].mxu0 %v7064_v42  ;;  %v7042_v54 = vsel %vm6999_vm7, %v6977_v12, %v10038_v32  ;;  %v7043_v51 = vsel %vm6999_vm7, %v6978_v18, %v10039_v45  ;;  %v10390_v63 = vpack.i.bf16 %v14494_v58, %v14222_v30  ;;  %v14535_v18 = vld [vmem:[#allocation3 + $0x2b0] sm:$0xff]  ;;  %v14604_v58 = vld [vmem:[#allocation3 + $0x2c0] sm:$0xff] }
 0x358   :  { %10321 = vrot.lane.b32.xlu0 %v10320_v27, %s10864_s7  ;;  %9129 = vmatprep.mubr.msk.bf16.mxu0 %vm3939_vm1, %v15825_v6  ;;  %v14457_v3 = vpop.permute.xlu1 %10046  ;;  %v7106_v50 = vpack.c.bf16 %v7043_v51, %v7042_v54  ;;  %v4483_v27 = vld [vmem:[#allocation3 + $0x258] sm:$0xff]  ;;  %v6613_v46 = vsel %vm3939_vm1, %v4239_v49, %v10034_v25  ;;  %v6612_v13 = vsel %vm3939_vm1, %v4238_v37, %v10033_v11  ;;  %v10851_v51 = vld [vmem:[#allocation3 + $0x1b0] sm:$0xff] }
 0x359   :  { %v14461_v9 = vpop.permute.xlu0 %10041  ;;  %v14472_v19 = vpack.i.bf16 %v4483_v27, %v14332_v10  ;;  %v14482_v4 = vpack.i.bf16 %v14445_v7, %v4483_v27  ;;  %v10350_v10 = vpack.i.bf16 %v10848_v33, %v4505_v62  ;;  %v10049_v1 = vunpack.i.h.bf16 %v14457_v3 }
 0x35a   :  { %10336 = vrot.lane.b32.xlu1 %v10335_v47, %s10864_s7  ;;  %7502 = vmatmul.mubr.bf16.gmra.mrb[60].mxu1 %v7106_v50  ;;  %v10048_v23 = vunpack.i.l.bf16 %v14457_v3  ;;  %v10043_v17 = vunpack.i.l.bf16 %v14461_v9  ;;  %v10044_v61 = vunpack.i.h.bf16 %v14461_v9  ;;  %v14539_v54 = vpack.i.bf16 %v14535_v18, %v14492_v39 }
 0x35b   :  { %9150 = vmatprep.mubr.msk.bf16.mxu1 %vm3939_vm1, %v7109_v31  ;;  %v6655_v59 = vsel %vm3939_vm1, %v10849_v60, %v10049_v1 }
 0x35c   :  { %10331 = vrot.lane.b32.xlu0 %v10330_v41, %s10865_s8  ;;  %v14469_v20 = vpop.permute.xlu1 %10056  ;;  %v6654_v6 = vsel %vm3939_vm1, %v10851_v51, %v10048_v23  ;;  %v6677_v3 = vsel %vm6674_vm2, %v6612_v13, %v10043_v17  ;;  %v6678_v31 = vsel %vm6674_vm2, %v6613_v46, %v10044_v61 }
 0x35d   :  { %v14474_v8 = vpop.permute.xlu0 %10051  ;;  %v10059_v16 = vunpack.i.h.bf16 %v14469_v20  ;;  %v10058_v35 = vunpack.i.l.bf16 %v14469_v20 }
 0x35e   :  { %10346 = vrot.lane.b32.xlu1 %v14472_v19, %s10865_s8  ;;  %v10054_v42 = vunpack.i.h.bf16 %v14474_v8  ;;  %v10053_v45 = vunpack.i.l.bf16 %v14474_v8 }
 0x35f   :  { %v6720_v33 = vsel %vm6674_vm2, %v6655_v59, %v10059_v16 }
 0x360   :  { %10341 = vrot.lane.b32.xlu0 %v10340_v29, %s10862_s30  ;;  %v14479_v2 = vpop.permute.xlu1 %10066  ;;  %v6719_v29 = vsel %vm6674_vm2, %v6654_v6, %v10058_v35  ;;  %v6743_v25 = vsel %vm6739_vm3, %v6678_v31, %v10054_v42 }
 0x361   :  { %v14486_v28 = vpop.permute.xlu0 %10061  ;;  %v10068_v27 = vunpack.i.l.bf16 %v14479_v2 }
 0x362   :  { %10356 = vrot.lane.b32.xlu1 %v14482_v4, %s10862_s30  ;;  %v10064_v47 = vunpack.i.h.bf16 %v14486_v28  ;;  %v10063_v50 = vunpack.i.l.bf16 %v14486_v28  ;;  %v10069_v28 = vunpack.i.h.bf16 %v14479_v2 }
 0x363   :  { %v14513_v26 = vpop.f32.mrb[0].mxu1 }
 0x364   :  { %10351 = vrot.lane.b32.xlu0 %v10350_v10, %s10860_s28  ;;  %v14504_v40 = vpop.permute.xlu1 %10076  ;;  %v7385_v32 = vpop.f32.mrb[1].mxu1  ;;  %v6742_v10 = vsel %vm6739_vm3, %v6677_v3, %v10053_v45  ;;  %v6808_v49 = vsel %vm6804_vm4, %v6743_v25, %v10064_v47  ;;  %v4758_v47 = vld [vmem:[#allocation3 + $0xd0] sm:$0xff] }
 0x365   :  { %v10072_v24 = vpop.permute.xlu0 %10071  ;;  %v14533_v12 = vpop.f32.mrb[2].mxu1  ;;  %v10078_v11 = vunpack.i.l.bf16 %v14504_v40  ;;  %v6807_v37 = vsel %vm6804_vm4, %v6742_v10, %v10063_v50  ;;  %v10079_v23 = vunpack.i.h.bf16 %v14504_v40  ;;  %v6785_v40 = vsel %vm6739_vm3, %v6720_v33, %v10069_v28  ;;  %v14578_v10 = vld [vmem:[#allocation3 + $0x278] sm:$0xff]  ;;  %v14583_v28 = vld [vmem:[#allocation3 + $0x268] sm:$0xff] }
 0x366   :  { %10366 = vrot.lane.b32.xlu1 %v14508_v15, %s10860_s28  ;;  %v7388_v41 = vpop.f32.mrb[3].mxu1  ;;  %v10074_v62 = vunpack.i.h.bf16 %v10072_v24  ;;  %v10073_v20 = vunpack.i.l.bf16 %v10072_v24  ;;  %v6784_v24 = vsel %vm6739_vm3, %v6719_v29, %v10068_v27  ;;  %v7069_v25 = vpack.c.bf16 %v14052_v36, %v4758_v47  ;;  %v14628_v47 = vld [vmem:[#allocation3 + $0x2e0] sm:$0xff] }
 0x367   :  { %v6849_v59 = vsel %vm6804_vm4, %v6784_v24, %v10078_v11  ;;  %v6850_v50 = vsel %vm6804_vm4, %v6785_v40, %v10079_v23  ;;  %v14585_v11 = vld [vmem:[#allocation3 + $0x270] sm:$0xff]  ;;  %v4241_v40 = vld [vmem:[#allocation3 + $0x28] sm:$0xff] }
 0x368   :  { %10361 = vrot.lane.b32.xlu0 %v10360_v57, %s10863_s6  ;;  %v10087_v9 = vpop.permute.xlu1 %10086  ;;  %v6872_v16 = vsel %vm6869_vm5, %v6807_v37, %v10073_v20  ;;  %v6873_v2 = vsel %vm6869_vm5, %v6808_v49, %v10074_v62  ;;  %v10405_v49 = vpack.i.bf16 %v14578_v10, %v14043_v56  ;;  %v7111_v30 = vpack.c.bf16 %v14578_v10, %v14585_v11 }
 0x369   :  { %v10082_v8 = vpop.permute.xlu0 %10081  ;;  %v10088_v17 = vunpack.i.l.bf16 %v10087_v9  ;;  %v10089_v35 = vunpack.i.h.bf16 %v10087_v9 }
 0x36a   :  { %10376 = vrot.lane.b32.xlu1 %v14517_v53, %s10863_s6  ;;  %v10084_v1 = vunpack.i.h.bf16 %v10082_v8  ;;  %v10083_v57 = vunpack.i.l.bf16 %v10082_v8 }
 0x36b   :  { %v14562_v45 = vpop.f32.mrb[4].mxu1  ;;  %v6914_v9 = vsel %vm6869_vm5, %v6849_v59, %v10088_v17  ;;  %v6915_v62 = vsel %vm6869_vm5, %v6850_v50, %v10089_v35 }
 0x36c   :  { %10371 = vrot.lane.b32.xlu0 %v10370_v5, %s10861_s29  ;;  %v10097_v61 = vpop.permute.xlu1 %10096  ;;  %v7393_v60 = vpop.f32.mrb[5].mxu1  ;;  %v6937_v6 = vsel %vm6934_vm6, %v6872_v16, %v10083_v57  ;;  %v6938_v3 = vsel %vm6934_vm6, %v6873_v2, %v10084_v1 }
 0x36d   :  { %v10092_v42 = vpop.permute.xlu0 %10091  ;;  %v10099_v32 = vunpack.i.h.bf16 %v10097_v61  ;;  %v10098_v5 = vunpack.i.l.bf16 %v10097_v61  ;;  %v14569_v51 = vpop.f32.mrb[6].mxu1  ;;  %v14600_v61 = vpack.i.bf16 %v14585_v11, %v14583_v28 }
 0x36e   :  { %v10094_v46 = vunpack.i.h.bf16 %v10092_v42  ;;  %v10093_v13 = vunpack.i.l.bf16 %v10092_v42  ;;  %10386 = vrot.lane.b32.xlu1 %v10385_v43, %s10866_s0  ;;  %v7396_v41 = vpop.f32.mrb[7].mxu1 }
 0x36f   :  { %v6979_v1 = vsel %vm6934_vm6, %v6914_v9, %v10098_v5  ;;  %v6980_v57 = vsel %vm6934_vm6, %v6915_v62, %v10099_v32  ;;  %v4680_v32 = vld [vmem:[#allocation3 + $0x2d0] sm:$0xff]  ;;  %v14624_v5 = vld [vmem:[#allocation3 + $0x2d8] sm:$0xff] }
 0x370   :  { %10381 = vrot.lane.b32.xlu0 %v14539_v54, %s10861_s29  ;;  %v10107_v43 = vpop.permute.xlu1 %10106  ;;  %v7002_v31 = vsel %vm6999_vm7, %v6937_v6, %v10093_v13  ;;  %v7003_v27 = vsel %vm6999_vm7, %v6938_v3, %v10094_v46 }
 0x371   :  { %v10109_v20 = vunpack.i.h.bf16 %v10107_v43  ;;  %v10108_v8 = vunpack.i.l.bf16 %v10107_v43  ;;  %v10102_v29 = vpop.permute.xlu0 %10101  ;;  %v7066_v33 = vpack.c.bf16 %v7003_v27, %v7002_v31  ;;  %v4283_v43 = vld [vmem:[#allocation3 + $0x1c8] sm:$0xff] }
 0x372   :  { %10396 = vrot.lane.b32.xlu1 %v14508_v15, %s10865_s8  ;;  %v10104_v46 = vunpack.i.h.bf16 %v10102_v29  ;;  %v10103_v13 = vunpack.i.l.bf16 %v10102_v29 }
 0x373   :  { %7342 = vmatmul.mubr.bf16.gmra.mrb[36].mxu0 %v7066_v33  ;;  %v7044_v37 = vsel %vm6999_vm7, %v6979_v1, %v10108_v8  ;;  %v7045_v15 = vsel %vm6999_vm7, %v6980_v57, %v10109_v20  ;;  %v4282_v8 = vld [vmem:[#allocation3 + $0x1c0] sm:$0xff]  ;;  %v10450_v33 = vpack.i.bf16 %v14628_v47, %v14624_v5 }
 0x374   :  { %10391 = vrot.lane.b32.xlu0 %v10390_v63, %s10864_s7  ;;  %9130 = vmatprep.mubr.msk.bf16.mxu0 %vm3939_vm1, %v7069_v25  ;;  %v10117_v36 = vpop.permute.xlu1 %10116  ;;  %v7108_v23 = vpack.c.bf16 %v7045_v15, %v7044_v37  ;;  %v10852_v63 = vld [vmem:[#allocation3 + $0x2b8] sm:$0xff] }
 0x375   :  { %v10112_v17 = vpop.permute.xlu0 %10111  ;;  %v14611_v24 = vpack.i.bf16 %v14604_v58, %v10852_v63  ;;  %v14614_v2 = vpack.i.bf16 %v10852_v63, %v14535_v18  ;;  %v10119_v60 = vunpack.i.h.bf16 %v10117_v36  ;;  %v4240_v18 = vld [vmem:[#allocation3 + $0x20] sm:$0xff]  ;;  %v10118_v59 = vunpack.i.l.bf16 %v10117_v36 }
 0x376   :  { %10406 = vrot.lane.b32.xlu1 %v10405_v49, %s10860_s28  ;;  %7510 = vmatmul.mubr.bf16.gmra.mrb[64].mxu1 %v7108_v23  ;;  %v10113_v6 = vunpack.i.l.bf16 %v10112_v17  ;;  %v10114_v50 = vunpack.i.h.bf16 %v10112_v17  ;;  %v6614_v20 = vsel %vm3939_vm1, %v4240_v18, %v10103_v13 }
 0x377   :  { %9151 = vmatprep.mubr.msk.bf16.mxu1 %vm3939_vm1, %v7111_v30  ;;  %v6657_v29 = vsel %vm3939_vm1, %v4283_v43, %v10119_v60  ;;  %v6656_v25 = vsel %vm3939_vm1, %v4282_v8, %v10118_v59  ;;  %v4761_v8 = vld [vmem:[#allocation3 + $0xe8] sm:$0xff] }
 0x378   :  { %10401 = vrot.lane.b32.xlu0 %v14600_v61, %s10862_s30  ;;  %v10127_v56 = vpop.permute.xlu1 %10126  ;;  %v6679_v1 = vsel %vm6674_vm2, %v6614_v20, %v10113_v6  ;;  %v4760_v20 = vld [vmem:[#allocation3 + $0xe0] sm:$0xff] }
 0x379   :  { %v10122_v16 = vpop.permute.xlu0 %10121  ;;  %v10129_v41 = vunpack.i.h.bf16 %v10127_v56  ;;  %v10128_v31 = vunpack.i.l.bf16 %v10127_v56 }
 0x37a   :  { %10416 = vrot.lane.b32.xlu1 %v14611_v24, %s10861_s29  ;;  %v10124_v27 = vunpack.i.h.bf16 %v10122_v16  ;;  %v10123_v62 = vunpack.i.l.bf16 %v10122_v16 }
 0x37b   :  { %v6721_v30 = vsel %vm6674_vm2, %v6656_v25, %v10128_v31 }
 0x37c   :  { %10411 = vrot.lane.b32.xlu0 %v14614_v2, %s10863_s6  ;;  %v14620_v35 = vpop.permute.xlu1 %10136  ;;  %v6744_v56 = vsel %vm6739_vm3, %v6679_v1, %v10123_v62 }
 0x37d   :  { %v10132_v42 = vpop.permute.xlu0 %10131  ;;  %v10138_v36 = vunpack.i.l.bf16 %v14620_v35  ;;  %v10139_v16 = vunpack.i.h.bf16 %v14620_v35 }
 0x37e   :  { %10426 = vrot.lane.b32.xlu1 %v14327_v52, %s10864_s7  ;;  %v10445_v52 = vpack.i.bf16 %v14624_v5, %v4680_v32  ;;  %v10134_v57 = vunpack.i.h.bf16 %v10132_v42  ;;  %v10133_v37 = vunpack.i.l.bf16 %v10132_v42 }
 0x37f   :  { %v6786_v59 = vsel %vm6739_vm3, %v6721_v30, %v10138_v36  ;;  %v4802_v30 = vld [vmem:[#allocation3 + $0x290] sm:$0xff] }
 0x380   :  { %10421 = vrot.lane.b32.xlu0 %v14120_v34, %s10866_s0  ;;  %v10147_v3 = vpop.permute.xlu1 %10146  ;;  %v6615_v34 = vsel %vm3939_vm1, %v4241_v40, %v10104_v46  ;;  %v6809_v46 = vsel %vm6804_vm4, %v6744_v56, %v10133_v37 }
 0x381   :  { %v10142_v9 = vpop.permute.xlu0 %10141  ;;  %v6680_v15 = vsel %vm6674_vm2, %v6615_v34, %v10114_v50  ;;  %v10148_v42 = vunpack.i.l.bf16 %v10147_v3  ;;  %v10149_v60 = vunpack.i.h.bf16 %v10147_v3 }
 0x382   :  { %10436 = vrot.lane.b32.xlu1 %v14266_v21, %s10862_s30  ;;  %v10144_v49 = vunpack.i.h.bf16 %v10142_v9  ;;  %v10143_v23 = vunpack.i.l.bf16 %v10142_v9  ;;  %v6745_v63 = vsel %vm6739_vm3, %v6680_v15, %v10124_v27 }
 0x383   :  { %v6810_v13 = vsel %vm6804_vm4, %v6745_v63, %v10134_v57  ;;  %v6851_v3 = vsel %vm6804_vm4, %v6786_v59, %v10148_v42  ;;  %v14677_v63 = vld [vmem:[#allocation3 + $0x2e8] sm:$0xff] }
 0x384   :  { %10431 = vrot.lane.b32.xlu0 %v14220_v55, %s10865_s8  ;;  %v10157_v21 = vpop.permute.xlu1 %10156  ;;  %v6722_v55 = vsel %vm6674_vm2, %v6657_v29, %v10129_v41  ;;  %v6874_v6 = vsel %vm6869_vm5, %v6809_v46, %v10143_v23  ;;  %v6875_v50 = vsel %vm6869_vm5, %v6810_v13, %v10144_v49  ;;  %v7071_v49 = vpack.c.bf16 %v4761_v8, %v4760_v20  ;;  %v4285_v8 = vld [vmem:[#allocation3 + $0x1e8] sm:$0xff] }
 0x385   :  { %v10152_v17 = vpop.permute.xlu0 %10151  ;;  %v10158_v18 = vunpack.i.l.bf16 %v10157_v21  ;;  %v10159_v35 = vunpack.i.h.bf16 %v10157_v21  ;;  %v6787_v27 = vsel %vm6739_vm3, %v6722_v55, %v10139_v16  ;;  %v14679_v16 = vld [vmem:[#allocation3 + $0x2f0] sm:$0xff]  ;;  %v10480_v46 = vpack.i.bf16 %v14677_v63, %v14628_v47 }
 0x386   :  { %10446 = vrot.lane.b32.xlu1 %v10445_v52, %s10863_s6  ;;  %v10154_v32 = vunpack.i.h.bf16 %v10152_v17  ;;  %v10153_v5 = vunpack.i.l.bf16 %v10152_v17  ;;  %v6852_v29 = vsel %vm6804_vm4, %v6787_v27, %v10149_v60  ;;  %v4284_v27 = vld [vmem:[#allocation3 + $0x1e0] sm:$0xff] }
 0x387   :  { %v6916_v25 = vsel %vm6869_vm5, %v6851_v3, %v10158_v18  ;;  %v6917_v37 = vsel %vm6869_vm5, %v6852_v29, %v10159_v35  ;;  %v10495_v18 = vpack.i.bf16 %v14583_v28, %v14445_v7  ;;  %v14709_v28 = vld [vmem:[#allocation3 + $0x300] sm:$0xff] }
 0x388   :  { %10441 = vrot.lane.b32.xlu0 %v14385_v38, %s10860_s28  ;;  %v10167_v40 = vpop.permute.xlu1 %10166  ;;  %v6939_v62 = vsel %vm6934_vm6, %v6874_v6, %v10153_v5  ;;  %v6940_v34 = vsel %vm6934_vm6, %v6875_v50, %v10154_v32  ;;  %v7113_v5 = vpack.c.bf16 %v14361_v14, %v4802_v30 }
 0x389   :  { %v10162_v9 = vpop.permute.xlu0 %10161  ;;  %v10169_v52 = vunpack.i.h.bf16 %v10167_v40  ;;  %v10168_v43 = vunpack.i.l.bf16 %v10167_v40 }
 0x38a   :  { %v10164_v41 = vunpack.i.h.bf16 %v10162_v9  ;;  %v10163_v31 = vunpack.i.l.bf16 %v10162_v9  ;;  %10456 = vrot.lane.b32.xlu1 %v14346_v48, %s10866_s0  ;;  %v4242_v9 = vld [vmem:[#allocation3 + $0x30] sm:$0xff] }
 0x38b   :  { %v6981_v23 = vsel %vm6934_vm6, %v6916_v25, %v10168_v43  ;;  %v6982_v17 = vsel %vm6934_vm6, %v6917_v37, %v10169_v52  ;;  %v4243_v52 = vld [vmem:[#allocation3 + $0x38] sm:$0xff] }
 0x38c   :  { %10451 = vrot.lane.b32.xlu0 %v10450_v33, %s10861_s29  ;;  %v10177_v1 = vpop.permute.xlu1 %10176  ;;  %v7004_v57 = vsel %vm6999_vm7, %v6939_v62, %v10163_v31  ;;  %v7005_v48 = vsel %vm6999_vm7, %v6940_v34, %v10164_v41 }
 0x38d   :  { %v10179_v21 = vunpack.i.h.bf16 %v10177_v1  ;;  %v10178_v15 = vunpack.i.l.bf16 %v10177_v1  ;;  %v10172_v33 = vpop.permute.xlu0 %10171  ;;  %v7068_v36 = vpack.c.bf16 %v7005_v48, %v7004_v57 }
 0x38e   :  { %10466 = vrot.lane.b32.xlu1 %v14385_v38, %s10865_s8  ;;  %v10174_v6 = vunpack.i.h.bf16 %v10172_v33  ;;  %v10173_v47 = vunpack.i.l.bf16 %v10172_v33 }
 0x38f   :  { %7350 = vmatmul.mubr.bf16.gmra.mrb[40].mxu0 %v7068_v36  ;;  %v7046_v55 = vsel %vm6999_vm7, %v6981_v23, %v10178_v15  ;;  %v7047_v56 = vsel %vm6999_vm7, %v6982_v17, %v10179_v21 }
 0x390   :  { %10461 = vrot.lane.b32.xlu0 %v14472_v19, %s10864_s7  ;;  %9131 = vmatprep.mubr.msk.bf16.mxu0 %vm3939_vm1, %v7071_v49  ;;  %v10187_v38 = vpop.permute.xlu1 %10186  ;;  %v7110_v42 = vpack.c.bf16 %v7047_v56, %v7046_v55  ;;  %v10485_v19 = vpack.i.bf16 %v14679_v16, %v14677_v63  ;;  %v6617_v48 = vsel %vm3939_vm1, %v4243_v52, %v10174_v6 }
 0x391   :  { %v10182_v32 = vpop.permute.xlu0 %10181  ;;  %v10189_v50 = vunpack.i.h.bf16 %v10187_v38  ;;  %v10188_v43 = vunpack.i.l.bf16 %v10187_v38  ;;  %v6616_v37 = vsel %vm3939_vm1, %v4242_v9, %v10173_v47 }
 0x392   :  { %10476 = vrot.lane.b32.xlu1 %v14517_v53, %s10860_s28  ;;  %7518 = vmatmul.mubr.bf16.gmra.mrb[68].mxu1 %v7110_v42  ;;  %v10183_v41 = vunpack.i.l.bf16 %v10182_v32  ;;  %v10184_v3 = vunpack.i.h.bf16 %v10182_v32 }
 0x393   :  { %9152 = vmatprep.mubr.msk.bf16.mxu1 %vm3939_vm1, %v7113_v5  ;;  %v6659_v21 = vsel %vm3939_vm1, %v4285_v8, %v10189_v50  ;;  %v6658_v33 = vsel %vm3939_vm1, %v4284_v27, %v10188_v43 }
 0x394   :  { %10471 = vrot.lane.b32.xlu0 %v14402_v22, %s10862_s30  ;;  %v10197_v13 = vpop.permute.xlu1 %10196  ;;  %v14701_v22 = vld [vmem:[#allocation3 + $0x2f8] sm:$0xff]  ;;  %v6681_v36 = vsel %vm6674_vm2, %v6616_v37, %v10183_v41 }
 0x395   :  { %v10192_v60 = vpop.permute.xlu0 %10191  ;;  %v10515_v20 = vpack.i.bf16 %v14701_v22, %v14679_v16  ;;  %v10199_v29 = vunpack.i.h.bf16 %v10197_v13  ;;  %v10198_v25 = vunpack.i.l.bf16 %v10197_v13  ;;  %v10520_v15 = vpack.i.bf16 %v14709_v28, %v14701_v22 }
 0x396   :  { %10486 = vrot.lane.b32.xlu1 %v10485_v19, %s10861_s29  ;;  %v10194_v1 = vunpack.i.h.bf16 %v10192_v60  ;;  %v10193_v57 = vunpack.i.l.bf16 %v10192_v60 }
 0x397   :  { %v6723_v38 = vsel %vm6674_vm2, %v6658_v33, %v10198_v25 }
 0x398   :  { %10481 = vrot.lane.b32.xlu0 %v10480_v46, %s10863_s6  ;;  %v14694_v14 = vpop.permute.xlu1 %10206  ;;  %v6746_v42 = vsel %vm6739_vm3, %v6681_v36, %v10193_v57  ;;  %v4762_v57 = vld [vmem:[#allocation3 + $0x100] sm:$0xff] }
 0x399   :  { %v10202_v40 = vpop.permute.xlu0 %10201  ;;  %v14698_v59 = vpop.f32.mrb[8].mxu1  ;;  %v10208_v30 = vunpack.i.l.bf16 %v14694_v14  ;;  %v10209_v19 = vunpack.i.h.bf16 %v14694_v14 }
 0x39a   :  { %10496 = vrot.lane.b32.xlu1 %v10495_v18, %s10864_s7  ;;  %v7401_v35 = vpop.f32.mrb[9].mxu1  ;;  %v10204_v49 = vunpack.i.h.bf16 %v10202_v40  ;;  %v10203_v23 = vunpack.i.l.bf16 %v10202_v40 }
 0x39b   :  { %v14705_v31 = vpop.f32.mrb[10].mxu1  ;;  %v6788_v14 = vsel %vm6739_vm3, %v6723_v38, %v10208_v30 }
 0x39c   :  { %10491 = vrot.lane.b32.xlu0 %v14482_v4, %s10866_s0  ;;  %v14707_v7 = vpop.permute.xlu1 %10216  ;;  %v7404_v34 = vpop.f32.mrb[11].mxu1  ;;  %v10530_v4 = vpack.i.bf16 %v14578_v10, %v14585_v11  ;;  %v6811_v40 = vsel %vm6804_vm4, %v6746_v42, %v10203_v23  ;;  %v4804_v11 = vld [vmem:[#allocation3 + $0x2a0] sm:$0xff] }
 0x39d   :  { %v10212_v62 = vpop.permute.xlu0 %10211  ;;  %v10218_v46 = vunpack.i.l.bf16 %v14707_v7  ;;  %v10219_v47 = vunpack.i.h.bf16 %v14707_v7 }
 0x39e   :  { %10506 = vrot.lane.b32.xlu1 %v14539_v54, %s10862_s30  ;;  %v6682_v54 = vsel %vm6674_vm2, %v6617_v48, %v10184_v3  ;;  %v10214_v55 = vunpack.i.h.bf16 %v10212_v62  ;;  %v10213_v56 = vunpack.i.l.bf16 %v10212_v62 }
 0x39f   :  { %v6747_v32 = vsel %vm6739_vm3, %v6682_v54, %v10194_v1  ;;  %v14759_v54 = vld [vmem:[#allocation3 + $0x2c8] sm:$0xff] }
 0x3a0   :  { %10501 = vrot.lane.b32.xlu0 %v14517_v53, %s10865_s8  ;;  %v10227_v17 = vpop.permute.xlu1 %10226  ;;  %v6724_v53 = vsel %vm6674_vm2, %v6659_v21, %v10199_v29  ;;  %v6812_v6 = vsel %vm6804_vm4, %v6747_v32, %v10204_v49  ;;  %v6876_v52 = vsel %vm6869_vm5, %v6811_v40, %v10213_v56  ;;  %v6853_v29 = vsel %vm6804_vm4, %v6788_v14, %v10218_v46  ;;  %v14774_v32 = vld [vmem:[#allocation3 + $0x308] sm:$0xff] }
 0x3a1   :  { %v10222_v16 = vpop.permute.xlu0 %10221  ;;  %v14732_v5 = vpop.f32.mrb[12].mxu1  ;;  %v10228_v50 = vunpack.i.l.bf16 %v10227_v17  ;;  %v6877_v43 = vsel %vm6869_vm5, %v6812_v6, %v10214_v55  ;;  %v10229_v41 = vunpack.i.h.bf16 %v10227_v17  ;;  %v6789_v7 = vsel %vm6739_vm3, %v6724_v53, %v10209_v19 }
 0x3a2   :  { %10516 = vrot.lane.b32.xlu1 %v10515_v20, %s10863_s6  ;;  %v10224_v13 = vunpack.i.h.bf16 %v10222_v16  ;;  %v10223_v60 = vunpack.i.l.bf16 %v10222_v16  ;;  %v7409_v18 = vpop.f32.mrb[13].mxu1  ;;  %v6854_v48 = vsel %vm6804_vm4, %v6789_v7, %v10219_v47  ;;  %v7073_v55 = vpack.c.bf16 %v14484_v44, %v4762_v57  ;;  %v4287_v7 = vld [vmem:[#allocation3 + $0x1f8] sm:$0xff] }
 0x3a3   :  { %v14742_v35 = vpop.f32.mrb[14].mxu1  ;;  %v6918_v37 = vsel %vm6869_vm5, %v6853_v29, %v10228_v50  ;;  %v6919_v36 = vsel %vm6869_vm5, %v6854_v48, %v10229_v41  ;;  %v10545_v46 = vpack.i.bf16 %v14759_v54, %v14604_v58  ;;  %v10550_v58 = vpack.i.bf16 %v14774_v32, %v14709_v28 }
 0x3a4   :  { %10511 = vrot.lane.b32.xlu0 %v14614_v2, %s10860_s28  ;;  %v10237_v9 = vpop.permute.xlu1 %10236  ;;  %v7412_v3 = vpop.f32.mrb[15].mxu1  ;;  %v6941_v25 = vsel %vm6934_vm6, %v6876_v52, %v10223_v60  ;;  %v6942_v1 = vsel %vm6934_vm6, %v6877_v43, %v10224_v13  ;;  %v7115_v60 = vpack.c.bf16 %v14492_v39, %v4804_v11 }
 0x3a5   :  { %v10239_v62 = vunpack.i.h.bf16 %v10237_v9  ;;  %v10238_v34 = vunpack.i.l.bf16 %v10237_v9 }
 0x3a6   :  { %v10232_v27 = vpop.permute.xlu0 %10231  ;;  %10526 = vrot.lane.b32.xlu1 %v14600_v61, %s10866_s0 }
 0x3a7   :  { %v10234_v20 = vunpack.i.h.bf16 %v10232_v27  ;;  %v10233_v8 = vunpack.i.l.bf16 %v10232_v27  ;;  %v6983_v56 = vsel %vm6934_vm6, %v6918_v37, %v10238_v34  ;;  %v6984_v16 = vsel %vm6934_vm6, %v6919_v36, %v10239_v62  ;;  %v4244_v27 = vld [vmem:[#allocation3 + $0x50] sm:$0xff] }
 0x3a8   :  { %10521 = vrot.lane.b32.xlu0 %v10520_v15, %s10861_s29  ;;  %v10247_v21 = vpop.permute.xlu1 %10246 }
 0x3a9   :  { %v7006_v33 = vsel %vm6999_vm7, %v6941_v25, %v10233_v8  ;;  %v7007_v61 = vsel %vm6999_vm7, %v6942_v1, %v10234_v20  ;;  %v10249_v49 = vunpack.i.h.bf16 %v10247_v21  ;;  %v10248_v23 = vunpack.i.l.bf16 %v10247_v21  ;;  %v14761_v30 = vpop.f32.mrb[16].mxu1  ;;  %v4245_v8 = vld [vmem:[#allocation3 + $0x58] sm:$0xff]  ;;  %v4286_v21 = vld [vmem:[#allocation3 + $0x1f0] sm:$0xff] }
 0x3aa   :  { %v10242_v17 = vpop.permute.xlu0 %10241  ;;  %v7070_v15 = vpack.c.bf16 %v7007_v61, %v7006_v33  ;;  %10536 = vrot.lane.b32.xlu1 %v14614_v2, %s10865_s8  ;;  %v7417_v38 = vpop.f32.mrb[17].mxu1  ;;  %v14776_v2 = vld [vmem:[#allocation3 + $0x310] sm:$0xff] }
 0x3ab   :  { %v7048_v53 = vsel %vm6999_vm7, %v6983_v56, %v10248_v23  ;;  %v7049_v42 = vsel %vm6999_vm7, %v6984_v16, %v10249_v49  ;;  %v14779_v44 = vpop.f32.mrb[18].mxu1  ;;  %v10555_v18 = vpack.i.bf16 %v14776_v2, %v14774_v32  ;;  %v10243_v43 = vunpack.i.l.bf16 %v10242_v17 }
 0x3ac   :  { %10531 = vrot.lane.b32.xlu0 %v10530_v4, %s10864_s7  ;;  %7358 = vmatmul.mubr.bf16.gmra.mrb[44].mxu0 %v7070_v15  ;;  %v10257_v19 = vpop.permute.xlu1 %10256  ;;  %v7112_v10 = vpack.c.bf16 %v7049_v42, %v7048_v53  ;;  %v7420_v13 = vpop.f32.mrb[19].mxu1 }
 0x3ad   :  { %9132 = vmatprep.mubr.msk.bf16.mxu0 %vm3939_vm1, %v7073_v55  ;;  %v10259_v41 = vunpack.i.h.bf16 %v10257_v19  ;;  %v10258_v3 = vunpack.i.l.bf16 %v10257_v19  ;;  %v6618_v37 = vsel %vm3939_vm1, %v4244_v27, %v10243_v43 }
 0x3ae   :  { %v10252_v4 = vpop.permute.xlu0 %10251  ;;  %10546 = vrot.lane.b32.xlu1 %v10545_v46, %s10860_s28  ;;  %7526 = vmatmul.mubr.bf16.gmra.mrb[72].mxu1 %v7112_v10 }
 0x3af   :  { %9153 = vmatprep.mubr.msk.bf16.mxu1 %vm3939_vm1, %v7115_v60  ;;  %v10253_v28 = vunpack.i.l.bf16 %v10252_v4  ;;  %v10254_v34 = vunpack.i.h.bf16 %v10252_v4  ;;  %v6661_v33 = vsel %vm3939_vm1, %v4287_v7, %v10259_v41  ;;  %v6660_v61 = vsel %vm3939_vm1, %v4286_v21, %v10258_v3 }
 0x3b0   :  { %10541 = vrot.lane.b32.xlu0 %v14611_v24, %s10862_s30  ;;  %v10267_v40 = vpop.permute.xlu1 %10266  ;;  %v10244_v24 = vunpack.i.h.bf16 %v10242_v17 }
 0x3b1   :  { %v14792_v47 = vpop.f32.mrb[20].mxu1  ;;  %v10269_v29 = vunpack.i.h.bf16 %v10267_v40  ;;  %v10268_v25 = vunpack.i.l.bf16 %v10267_v40  ;;  %v6683_v36 = vsel %vm6674_vm2, %v6618_v37, %v10253_v28 }
 0x3b2   :  { %v10262_v6 = vpop.permute.xlu0 %10261  ;;  %10556 = vrot.lane.b32.xlu1 %v10555_v18, %s10861_s29  ;;  %v7425_v39 = vpop.f32.mrb[21].mxu1  ;;  %v6619_v48 = vsel %vm3939_vm1, %v4245_v8, %v10244_v24  ;;  %v4765_v8 = vld [vmem:[#allocation3 + $0x118] sm:$0xff] }
 0x3b3   :  { %v14796_v50 = vpop.f32.mrb[22].mxu1  ;;  %v10264_v1 = vunpack.i.h.bf16 %v10262_v6  ;;  %v10263_v57 = vunpack.i.l.bf16 %v10262_v6  ;;  %v6684_v15 = vsel %vm6674_vm2, %v6619_v48, %v10254_v34  ;;  %v6725_v53 = vsel %vm6674_vm2, %v6660_v61, %v10268_v25 }
 0x3b4   :  { %10551 = vrot.lane.b32.xlu0 %v10550_v58, %s10863_s6  ;;  %v10277_v9 = vpop.permute.xlu1 %10276  ;;  %v7428_v52 = vpop.f32.mrb[23].mxu1  ;;  %v6726_v42 = vsel %vm6674_vm2, %v6661_v33, %v10269_v29 }
 0x3b5   :  { %v10278_v55 = vunpack.i.l.bf16 %v10277_v9  ;;  %v6748_v19 = vsel %vm6739_vm3, %v6683_v36, %v10263_v57  ;;  %v6749_v46 = vsel %vm6739_vm3, %v6684_v15, %v10264_v1  ;;  %v10279_v10 = vunpack.i.h.bf16 %v10277_v9 }
 0x3b6   :  { %v10272_v14 = vpop.permute.xlu0 %10271  ;;  %v7075_v36 = vpack.c.bf16 %v4765_v8, %v14488_v0  ;;  %v4247_v8 = vld [vmem:[#allocation3 + $0x68] sm:$0xff] }
 0x3b7   :  { %v10274_v49 = vunpack.i.h.bf16 %v10272_v14  ;;  %v10273_v23 = vunpack.i.l.bf16 %v10272_v14  ;;  %v6790_v39 = vsel %vm6739_vm3, %v6725_v53, %v10278_v55  ;;  %v6791_v28 = vsel %vm6739_vm3, %v6726_v42, %v10279_v10  ;;  %v15826_v10 = vld [vmem:[#allocation17_spill] sm:$0xff] }
 0x3b8   :  { %v10287_v62 = vpop.permute.xlu1 %10286 }
 0x3b9   :  { %v10288_v11 = vunpack.i.l.bf16 %v10287_v62  ;;  %v6813_v60 = vsel %vm6804_vm4, %v6748_v19, %v10273_v23  ;;  %v6814_v18 = vsel %vm6804_vm4, %v6749_v46, %v10274_v49  ;;  %v10289_v58 = vunpack.i.h.bf16 %v10287_v62 }
 0x3ba   :  { %v10282_v20 = vpop.permute.xlu0 %10281 }
 0x3bb   :  { %v10284_v56 = vunpack.i.h.bf16 %v10282_v20  ;;  %v10283_v16 = vunpack.i.l.bf16 %v10282_v20  ;;  %v6855_v34 = vsel %vm6804_vm4, %v6790_v39, %v10288_v11  ;;  %v6856_v7 = vsel %vm6804_vm4, %v6791_v28, %v10289_v58 }
 0x3bc   :  { %v10297_v17 = vpop.permute.xlu1 %10296 }
 0x3bd   :  { %v10298_v40 = vunpack.i.l.bf16 %v10297_v17  ;;  %v6878_v14 = vsel %vm6869_vm5, %v6813_v60, %v10283_v16  ;;  %v6879_v52 = vsel %vm6869_vm5, %v6814_v18, %v10284_v56  ;;  %v10299_v24 = vunpack.i.h.bf16 %v10297_v17  ;;  %v14828_v17 = vld [vmem:[%s15738_s1 + $0xa] ss:$0 sm:$0xff]  ;;  %v14847_v60 = vld [vmem:[#allocation3 + $0x2c0] sm:$0xff] }
 0x3be   :  { %v10292_v38 = vpop.permute.xlu0 %10291  ;;  %v7400_v56 = vadd.f32 %v14828_v17, %v14698_v59  ;;  %v7403_v0 = vadd.f32 %v14828_v17, %v14705_v31  ;;  %v7408_v16 = vadd.f32 %v14828_v17, %v14732_v5  ;;  %v7411_v42 = vadd.f32 %v14828_v17, %v14742_v35  ;;  %v15827_v59 = vld [vmem:[#allocation16_spill] sm:$0xff] }
 0x3bf   :  { %v10294_v4 = vunpack.i.h.bf16 %v10292_v38  ;;  %v10293_v13 = vunpack.i.l.bf16 %v10292_v38  ;;  %v6920_v29 = vsel %vm6869_vm5, %v6855_v34, %v10298_v40  ;;  %v6921_v48 = vsel %vm6869_vm5, %v6856_v7, %v10299_v24 }
 0x3c0   :  { %v10307_v6 = vpop.permute.xlu1 %10306  ;;  %v7416_v19 = vadd.f32 %v14828_v17, %v14761_v30  ;;  %v15828_v11 = vpack.c.bf16 %v15826_v10, %v15827_v59  ;;  %v7606_v31 = vmax.f32 %v7400_v56, 0.0  ;;  %v7608_v5 = vmax.f32 %v7408_v16, 0.0 }
 0x3c1   :  { %v10309_v41 = vunpack.i.h.bf16 %v10307_v6  ;;  %v10308_v9 = vunpack.i.l.bf16 %v10307_v6  ;;  %v6943_v62 = vsel %vm6934_vm6, %v6878_v14, %v10293_v13  ;;  %v6944_v20 = vsel %vm6934_vm6, %v6879_v52, %v10294_v4 }
 0x3c2   :  { %v10302_v43 = vpop.permute.xlu0 %10301  ;;  %v7607_v4 = vmax.f32 %v7403_v0, 0.0  ;;  %v7609_v18 = vmax.f32 %v7411_v42, 0.0  ;;  %v7610_v58 = vmax.f32 %v7416_v19, 0.0  ;;  %v14851_v35 = vadd.f32 %v14828_v17, %v14779_v44 }
 0x3c3   :  { %v10304_v27 = vunpack.i.h.bf16 %v10302_v43  ;;  %v10303_v3 = vunpack.i.l.bf16 %v10302_v43  ;;  %v6985_v49 = vsel %vm6934_vm6, %v6920_v29, %v10308_v9  ;;  %v6986_v23 = vsel %vm6934_vm6, %v6921_v48, %v10309_v41 }
 0x3c4   :  { %v10317_v25 = vpop.permute.xlu1 %10316  ;;  %v7119_v24 = vpack.c.bf16 %v14759_v54, %v14847_v60  ;;  %v14856_v43 = vsel %vm6674_vm2, %v7606_v31, -inf  ;;  %v14859_v41 = vsel %vm6674_vm2, %v7607_v4, -inf  ;;  %v14862_v9 = vsel %vm6674_vm2, %v7608_v5, -inf }
 0x3c5   :  { %v7008_v1 = vsel %vm6999_vm7, %v6943_v62, %v10303_v3  ;;  %v7009_v57 = vsel %vm6999_vm7, %v6944_v20, %v10304_v27  ;;  %v10319_v37 = vunpack.i.h.bf16 %v10317_v25  ;;  %v10318_v21 = vunpack.i.l.bf16 %v10317_v25  ;;  %v4246_v20 = vld [vmem:[#allocation3 + $0x60] sm:$0xff] }
 0x3c6   :  { %v10312_v33 = vpop.permute.xlu0 %10311  ;;  %v7072_v61 = vpack.c.bf16 %v7009_v57, %v7008_v1  ;;  %v14865_v3 = vsel %vm6674_vm2, %v7609_v18, -inf  ;;  %v14868_v28 = vsel %vm6674_vm2, %v7610_v58, -inf  ;;  %v7611_v34 = vmax.f32 %v14851_v35, 0.0  ;;  %v4288_v1 = vld [vmem:[#allocation3 + $0x200] sm:$0xff]  ;;  %v4289_v57 = vld [vmem:[#allocation3 + $0x208] sm:$0xff] }
 0x3c7   :  { %v7050_v15 = vsel %vm6999_vm7, %v6985_v49, %v10318_v21  ;;  %v7051_v55 = vsel %vm6999_vm7, %v6986_v23, %v10319_v37  ;;  %v10314_v40 = vunpack.i.h.bf16 %v10312_v33  ;;  %v10313_v6 = vunpack.i.l.bf16 %v10312_v33 }
 0x3c8   :  { %7366 = vmatmul.mubr.bf16.gmra.mrb[48].mxu0 %v7072_v61  ;;  %v10327_v38 = vpop.permute.xlu1 %10326  ;;  %v7114_v53 = vpack.c.bf16 %v7051_v55, %v7050_v15  ;;  %v14873_v62 = vadd.f32 %v14828_v17, %v14792_v47 }
 0x3c9   :  { %9133 = vmatprep.mubr.msk.bf16.mxu0 %vm3939_vm1, %v7075_v36  ;;  %v10329_v39 = vunpack.i.h.bf16 %v10327_v38  ;;  %v10328_v14 = vunpack.i.l.bf16 %v10327_v38  ;;  %v6621_v29 = vsel %vm3939_vm1, %v4247_v8, %v10314_v40  ;;  %v6620_v25 = vsel %vm3939_vm1, %v4246_v20, %v10313_v6 }
 0x3ca   :  { %v10322_v46 = vpop.permute.xlu0 %10321  ;;  %7534 = vmatmul.mubr.bf16.gmra.mrb[76].mxu1 %v7114_v53 }
 0x3cb   :  { %9154 = vmatprep.mubr.msk.bf16.mxu1 %vm3939_vm1, %v15828_v11  ;;  %v10323_v52 = vunpack.i.l.bf16 %v10322_v46  ;;  %v10324_v44 = vunpack.i.h.bf16 %v10322_v46  ;;  %v6663_v33 = vsel %vm3939_vm1, %v4289_v57, %v10329_v39  ;;  %v6662_v61 = vsel %vm3939_vm1, %v4288_v1, %v10328_v14 }
 0x3cc   :  { %v10337_v13 = vpop.permute.xlu1 %10336 }
 0x3cd   :  { %v10339_v48 = vunpack.i.h.bf16 %v10337_v13  ;;  %v10338_v37 = vunpack.i.l.bf16 %v10337_v13  ;;  %v6685_v36 = vsel %vm6674_vm2, %v6620_v25, %v10323_v52  ;;  %v6686_v23 = vsel %vm6674_vm2, %v6621_v29, %v10324_v44 }
 0x3ce   :  { %v10332_v30 = vpop.permute.xlu0 %10331 }
 0x3cf   :  { %v10334_v15 = vunpack.i.h.bf16 %v10332_v30  ;;  %v10333_v55 = vunpack.i.l.bf16 %v10332_v30  ;;  %v6727_v59 = vsel %vm6674_vm2, %v6662_v61, %v10338_v37  ;;  %v6728_v11 = vsel %vm6674_vm2, %v6663_v33, %v10339_v48 }
 0x3d0   :  { %v10347_v27 = vpop.permute.xlu1 %10346 }
 0x3d1   :  { %v10349_v56 = vunpack.i.h.bf16 %v10347_v27  ;;  %v10348_v38 = vunpack.i.l.bf16 %v10347_v27  ;;  %v6750_v30 = vsel %vm6739_vm3, %v6685_v36, %v10333_v55  ;;  %v6751_v40 = vsel %vm6739_vm3, %v6686_v23, %v10334_v15 }
 0x3d2   :  { %v10342_v7 = vpop.permute.xlu0 %10341  ;;  %v7431_v21 = vpop.f32.mrb[24].mxu1 }
 0x3d3   :  { %v7432_v47 = vadd.f32 %v14828_v17, %v7431_v21  ;;  %v7433_v49 = vpop.f32.mrb[25].mxu1  ;;  %v10343_v53 = vunpack.i.l.bf16 %v10342_v7  ;;  %v10344_v31 = vunpack.i.h.bf16 %v10342_v7  ;;  %v6792_v52 = vsel %vm6739_vm3, %v6727_v59, %v10348_v38 }
 0x3d4   :  { %v7434_v0 = vpop.f32.mrb[26].mxu1  ;;  %v10357_v16 = vpop.permute.xlu1 %10356  ;;  %v6793_v44 = vsel %vm6739_vm3, %v6728_v11, %v10349_v56 }
 0x3d5   :  { %v7614_v42 = vmax.f32 %v7432_v47, 0.0  ;;  %v7435_v19 = vadd.f32 %v14828_v17, %v7434_v0  ;;  %v7436_v10 = vpop.f32.mrb[27].mxu1  ;;  %v10359_v4 = vunpack.i.h.bf16 %v10357_v16  ;;  %v10358_v18 = vunpack.i.l.bf16 %v10357_v16 }
 0x3d6   :  { %v10352_v46 = vpop.permute.xlu0 %10351  ;;  %v6815_v27 = vsel %vm6804_vm4, %v6750_v30, %v10343_v53  ;;  %v6816_v7 = vsel %vm6804_vm4, %v6751_v40, %v10344_v31 }
 0x3d7   :  { %v7679_v5 = vsel %vm6674_vm2, %v7614_v42, -inf  ;;  %v7615_v13 = vmax.f32 %v7435_v19, 0.0  ;;  %v10353_v58 = vunpack.i.l.bf16 %v10352_v46  ;;  %v10354_v39 = vunpack.i.h.bf16 %v10352_v46 }
 0x3d8   :  { %v7680_v6 = vmax.f32 %v14856_v43, %v7679_v5  ;;  %v10367_v14 = vpop.permute.xlu1 %10366  ;;  %v6857_v43 = vsel %vm6804_vm4, %v6792_v52, %v10358_v18  ;;  %v6858_v48 = vsel %vm6804_vm4, %v6793_v44, %v10359_v4 }
 0x3d9   :  { %v7682_v20 = vsel %vm6674_vm2, %v7615_v13, -inf  ;;  %v6880_v37 = vsel %vm6869_vm5, %v6815_v27, %v10353_v58  ;;  %v6881_v47 = vsel %vm6869_vm5, %v6816_v7, %v10354_v39  ;;  %v10368_v49 = vunpack.i.l.bf16 %v10367_v14 }
 0x3da   :  { %v10362_v8 = vpop.permute.xlu0 %10361  ;;  %v7683_v29 = vmax.f32 %v14859_v41, %v7682_v20  ;;  %v7439_v57 = vpop.f32.mrb[28].mxu1  ;;  %v7762_v61 = vsel %vm6674_vm2, %v7680_v6, -inf  ;;  %v10369_v55 = vunpack.i.h.bf16 %v10367_v14 }
 0x3db   :  { %v10364_v25 = vunpack.i.h.bf16 %v10362_v8  ;;  %v10363_v1 = vunpack.i.l.bf16 %v10362_v8  ;;  %v7440_v21 = vadd.f32 %v14828_v17, %v7439_v57  ;;  %v7441_v33 = vpop.f32.mrb[29].mxu1  ;;  %v6922_v4 = vsel %vm6869_vm5, %v6857_v43, %v10368_v49 }
 0x3dc   :  { %v7763_v36 = vsel %vm6674_vm2, %v7683_v29, -inf  ;;  %v7442_v41 = vpop.f32.mrb[30].mxu1  ;;  %v10377_v23 = vpop.permute.xlu1 %10376  ;;  %v6923_v30 = vsel %vm6869_vm5, %v6858_v48, %v10369_v55  ;;  %v4291_v48 = vld [vmem:[#allocation3 + $0x218] sm:$0xff] }
 0x3dd   :  { %v7764_v15 = vmax.f32 %v7762_v61, %v7763_v36  ;;  %v7616_v56 = vmax.f32 %v7440_v21, 0.0  ;;  %v7443_v0 = vadd.f32 %v14828_v17, %v7442_v41  ;;  %v7444_v38 = vpop.f32.mrb[31].mxu1  ;;  %v6945_v53 = vsel %vm6934_vm6, %v6880_v37, %v10363_v1  ;;  %v4290_v61 = vld [vmem:[#allocation3 + $0x210] sm:$0xff] }
 0x3de   :  { %v10372_v16 = vpop.permute.xlu0 %10371  ;;  %v6946_v42 = vsel %vm6934_vm6, %v6881_v47, %v10364_v25  ;;  %v10379_v11 = vunpack.i.h.bf16 %v10377_v23  ;;  %v10378_v31 = vunpack.i.l.bf16 %v10377_v23 }
 0x3df   :  { %v10374_v19 = vunpack.i.h.bf16 %v10372_v16  ;;  %v10373_v46 = vunpack.i.l.bf16 %v10372_v16  ;;  %7826 = vst.msk [vmem:[#allocation4 + $0x68] sm:$0xff] %vm6674_vm2, %v7764_v15  ;;  %v7685_v10 = vsel %vm6674_vm2, %v7616_v56, -inf  ;;  %v7617_v59 = vmax.f32 %v7443_v0, 0.0 }
 0x3e0   :  { %v7686_v5 = vmax.f32 %v14862_v9, %v7685_v10  ;;  %v10387_v13 = vpop.permute.xlu1 %10386  ;;  %v7612_v9 = vmax.f32 %v14873_v62, 0.0  ;;  %v6988_v7 = vsel %vm6934_vm6, %v6923_v30, %v10379_v11  ;;  %v6987_v29 = vsel %vm6934_vm6, %v6922_v4, %v10378_v31 }
 0x3e1   :  { %v7010_v18 = vsel %vm6999_vm7, %v6945_v53, %v10373_v46  ;;  %v7011_v58 = vsel %vm6999_vm7, %v6946_v42, %v10374_v19  ;;  %v7688_v40 = vsel %vm6674_vm2, %v7617_v59, -inf  ;;  %v10389_v6 = vunpack.i.h.bf16 %v10387_v13 }
 0x3e2   :  { %v10382_v39 = vpop.permute.xlu0 %10381  ;;  %v7074_v14 = vpack.c.bf16 %v7011_v58, %v7010_v18  ;;  %v7689_v52 = vmax.f32 %v14865_v3, %v7688_v40  ;;  %v10388_v44 = vunpack.i.l.bf16 %v10387_v13  ;;  %v7447_v8 = vpop.f32.mrb[32].mxu1  ;;  %v7765_v57 = vsel %vm6674_vm2, %v7686_v5, -inf }
 0x3e3   :  { %v10384_v27 = vunpack.i.h.bf16 %v10382_v39  ;;  %v10383_v20 = vunpack.i.l.bf16 %v10382_v39  ;;  %v7448_v25 = vadd.f32 %v14828_v17, %v7447_v8  ;;  %v7449_v1 = vpop.f32.mrb[33].mxu1  ;;  %v6665_v36 = vsel %vm3939_vm1, %v4291_v48, %v10389_v6 }
 0x3e4   :  { %7374 = vmatmul.mubr.bf16.gmra.mrb[52].mxu0 %v7074_v14  ;;  %v7766_v43 = vsel %vm6674_vm2, %v7689_v52, -inf  ;;  %v7450_v3 = vpop.f32.mrb[34].mxu1  ;;  %v10397_v37 = vpop.permute.xlu1 %10396  ;;  %v6664_v15 = vsel %vm3939_vm1, %v4290_v61, %v10388_v44  ;;  %v7693_v11 = vsel %vm6674_vm2, %v7611_v34, -inf  ;;  %v7696_v31 = vsel %vm6674_vm2, %v7612_v9, -inf }
 0x3e5   :  { %v7052_v21 = vsel %vm6999_vm7, %v6987_v29, %v10383_v20  ;;  %v7053_v33 = vsel %vm6999_vm7, %v6988_v7, %v10384_v27  ;;  %v7767_v62 = vmax.f32 %v7765_v57, %v7766_v43  ;;  %v7618_v47 = vmax.f32 %v7448_v25, 0.0  ;;  %v7452_v23 = vpop.f32.mrb[35].mxu1 }
 0x3e6   :  { %v7451_v49 = vadd.f32 %v14828_v17, %v7450_v3  ;;  %v10392_v41 = vpop.permute.xlu0 %10391  ;;  %v7116_v0 = vpack.c.bf16 %v7053_v33, %v7052_v21  ;;  %v10399_v53 = vunpack.i.h.bf16 %v10397_v37  ;;  %v10398_v42 = vunpack.i.l.bf16 %v10397_v37  ;;  %v4810_v33 = vld [vmem:[#allocation3 + $0x2e0] sm:$0xff]  ;;  %v4292_v23 = vld [vmem:[#allocation3 + $0x230] sm:$0xff] }
 0x3e7   :  { %v10394_v55 = vunpack.i.h.bf16 %v10392_v41  ;;  %v10393_v56 = vunpack.i.l.bf16 %v10392_v41  ;;  %7827 = vst.msk [vmem:[#allocation4 + $0x70] sm:$0xff] %vm6674_vm2, %v7767_v62  ;;  %v7691_v16 = vsel %vm6674_vm2, %v7618_v47, -inf  ;;  %v7427_v4 = vadd.f32 %v14828_v17, %v14796_v50 }
 0x3e8   :  { %v7619_v38 = vmax.f32 %v7451_v49, 0.0  ;;  %v7692_v19 = vmax.f32 %v14868_v28, %v7691_v16  ;;  %7542 = vmatmul.mubr.bf16.gmra.mrb[80].mxu1 %v7116_v0  ;;  %v10407_v59 = vpop.permute.xlu1 %10406 }
 0x3e9   :  { %v6730_v46 = vsel %vm6674_vm2, %v6665_v36, %v10394_v55  ;;  %v6729_v10 = vsel %vm6674_vm2, %v6664_v15, %v10393_v56  ;;  %9155 = vmatprep.mubr.msk.bf16.mxu1 %vm3939_vm1, %v7119_v24  ;;  %v10409_v18 = vunpack.i.h.bf16 %v10407_v59  ;;  %v10408_v40 = vunpack.i.l.bf16 %v10407_v59 }
 0x3ea   :  { %v7694_v5 = vsel %vm6674_vm2, %v7619_v38, -inf  ;;  %v10402_v28 = vpop.permute.xlu0 %10401  ;;  %v7455_v35 = vpop.f32.mrb[36].mxu1  ;;  %v6794_v34 = vsel %vm6739_vm3, %v6729_v10, %v10398_v42  ;;  %v6795_v6 = vsel %vm6739_vm3, %v6730_v46, %v10399_v53  ;;  %v7768_v14 = vsel %vm6674_vm2, %v7692_v19, -inf  ;;  %v4293_v46 = vld [vmem:[#allocation3 + $0x238] sm:$0xff] }
 0x3eb   :  { %v7695_v13 = vmax.f32 %v7693_v11, %v7694_v5  ;;  %v10404_v58 = vunpack.i.h.bf16 %v10402_v28  ;;  %v10403_v30 = vunpack.i.l.bf16 %v10402_v28  ;;  %v7456_v50 = vadd.f32 %v14828_v17, %v7455_v35  ;;  %v7457_v39 = vpop.f32.mrb[37].mxu1 }
 0x3ec   :  { %v7458_v52 = vpop.f32.mrb[38].mxu1  ;;  %v10417_v44 = vpop.permute.xlu1 %10416  ;;  %v7613_v27 = vmax.f32 %v7427_v4, 0.0  ;;  %v7121_v38 = vpack.c.bf16 %v14677_v63, %v4810_v33 }
 0x3ed   :  { %v7769_v54 = vsel %vm6674_vm2, %v7695_v13, -inf  ;;  %v6859_v60 = vsel %vm6804_vm4, %v6794_v34, %v10403_v30  ;;  %v6860_v24 = vsel %vm6804_vm4, %v6795_v6, %v10404_v58  ;;  %v7620_v8 = vmax.f32 %v7456_v50, 0.0  ;;  %v7460_v29 = vpop.f32.mrb[39].mxu1 }
 0x3ee   :  { %v7770_v20 = vmax.f32 %v7768_v14, %v7769_v54  ;;  %v7459_v9 = vadd.f32 %v14828_v17, %v7458_v52  ;;  %v10412_v7 = vpop.permute.xlu0 %10411  ;;  %v10419_v25 = vunpack.i.h.bf16 %v10417_v44  ;;  %v10418_v1 = vunpack.i.l.bf16 %v10417_v44 }
 0x3ef   :  { %v10414_v57 = vunpack.i.h.bf16 %v10412_v7  ;;  %v10413_v43 = vunpack.i.l.bf16 %v10412_v7  ;;  %v7697_v48 = vsel %vm6674_vm2, %v7620_v8, -inf  ;;  %v6924_v37 = vsel %vm6869_vm5, %v6859_v60, %v10408_v40 }
 0x3f0   :  { %7828 = vst.msk [vmem:[#allocation4 + $0x78] sm:$0xff] %vm6674_vm2, %v7770_v20  ;;  %v7621_v3 = vmax.f32 %v7459_v9, 0.0  ;;  %v6925_v21 = vsel %vm6869_vm5, %v6860_v24, %v10409_v18  ;;  %v7698_v62 = vmax.f32 %v7696_v31, %v7697_v48  ;;  %v10427_v47 = vpop.permute.xlu1 %10426  ;;  %v7699_v49 = vsel %vm6674_vm2, %v7613_v27, -inf }
 0x3f1   :  { %v6989_v61 = vsel %vm6934_vm6, %v6924_v37, %v10413_v43  ;;  %v6990_v36 = vsel %vm6934_vm6, %v6925_v21, %v10414_v57  ;;  %v10429_v42 = vunpack.i.h.bf16 %v10427_v47  ;;  %v10428_v19 = vunpack.i.l.bf16 %v10427_v47  ;;  %v4812_v57 = vld [vmem:[#allocation3 + $0x2f0] sm:$0xff] }
 0x3f2   :  { %v7700_v41 = vsel %vm6674_vm2, %v7621_v3, -inf  ;;  %v10422_v15 = vpop.permute.xlu0 %10421  ;;  %v7054_v55 = vsel %vm6999_vm7, %v6989_v61, %v10418_v1  ;;  %v7771_v53 = vsel %vm6674_vm2, %v7698_v62, -inf  ;;  %v7055_v10 = vsel %vm6999_vm7, %v6990_v36, %v10419_v25 }
 0x3f3   :  { %v7701_v56 = vmax.f32 %v7699_v49, %v7700_v41  ;;  %v10424_v0 = vunpack.i.h.bf16 %v10422_v15  ;;  %v10423_v16 = vunpack.i.l.bf16 %v10422_v15  ;;  %v7118_v4 = vpack.c.bf16 %v7055_v10, %v7054_v55  ;;  %v4295_v15 = vld [vmem:[#allocation3 + $0x248] sm:$0xff] }
 0x3f4   :  { %v10437_v5 = vpop.permute.xlu1 %10436  ;;  %v7123_v47 = vpack.c.bf16 %v14701_v22, %v4812_v57 }
 0x3f5   :  { %v7772_v59 = vsel %vm6674_vm2, %v7701_v56, -inf  ;;  %v6667_v11 = vsel %vm3939_vm1, %v4293_v46, %v10424_v0  ;;  %v6666_v31 = vsel %vm3939_vm1, %v4292_v23, %v10423_v16  ;;  %7550 = vmatmul.mubr.bf16.gmra.mrb[84].mxu1 %v7118_v4  ;;  %v10439_v58 = vunpack.i.h.bf16 %v10437_v5  ;;  %v4294_v23 = vld [vmem:[#allocation3 + $0x240] sm:$0xff] }
 0x3f6   :  { %v7773_v28 = vmax.f32 %v7771_v53, %v7772_v59  ;;  %v10432_v13 = vpop.permute.xlu0 %10431  ;;  %v10438_v30 = vunpack.i.l.bf16 %v10437_v5  ;;  %v6731_v35 = vsel %vm6674_vm2, %v6666_v31, %v10428_v19  ;;  %v6732_v40 = vsel %vm6674_vm2, %v6667_v11, %v10429_v42  ;;  %9156 = vmatprep.mubr.msk.bf16.mxu1 %vm3939_vm1, %v7121_v38 }
 0x3f7   :  { %v10434_v18 = vunpack.i.h.bf16 %v10432_v13  ;;  %v10433_v63 = vunpack.i.l.bf16 %v10432_v13 }
 0x3f8   :  { %7829 = vst.msk [vmem:[#allocation4 + $0x80] sm:$0xff] %vm6674_vm2, %v7773_v28  ;;  %v10447_v50 = vpop.permute.xlu1 %10446 }
 0x3f9   :  { %v6796_v34 = vsel %vm6739_vm3, %v6731_v35, %v10433_v63  ;;  %v6797_v6 = vsel %vm6739_vm3, %v6732_v40, %v10434_v18  ;;  %v10449_v24 = vunpack.i.h.bf16 %v10447_v50  ;;  %v10448_v52 = vunpack.i.l.bf16 %v10447_v50 }
 0x3fa   :  { %v10442_v39 = vpop.permute.xlu0 %10441  ;;  %v14970_v60 = vpop.f32.mrb[40].mxu1  ;;  %v6861_v44 = vsel %vm6804_vm4, %v6796_v34, %v10438_v30  ;;  %v6862_v27 = vsel %vm6804_vm4, %v6797_v6, %v10439_v58 }
 0x3fb   :  { %v10444_v14 = vunpack.i.h.bf16 %v10442_v39  ;;  %v10443_v54 = vunpack.i.l.bf16 %v10442_v39  ;;  %v7465_v20 = vpop.f32.mrb[41].mxu1 }
 0x3fc   :  { %v14976_v7 = vpop.f32.mrb[42].mxu1  ;;  %v10457_v29 = vpop.permute.xlu1 %10456  ;;  %v7856_v20 = vld [vmem:[#allocation4 + $0x10] sm:$0xff] }
 0x3fd   :  { %v6926_v8 = vsel %vm6869_vm5, %v6861_v44, %v10443_v54  ;;  %v6927_v9 = vsel %vm6869_vm5, %v6862_v27, %v10444_v14  ;;  %v7468_v1 = vpop.f32.mrb[43].mxu1  ;;  %v10459_v3 = vunpack.i.h.bf16 %v10457_v29  ;;  %v10458_v37 = vunpack.i.l.bf16 %v10457_v29  ;;  %v4814_v54 = vld [vmem:[#allocation3 + $0x300] sm:$0xff]  ;;  %v7855_v27 = vld [vmem:[#allocation4 + $0x8] sm:$0xff] }
 0x3fe   :  { %v10452_v25 = vpop.permute.xlu0 %10451  ;;  %v6991_v21 = vsel %vm6934_vm6, %v6926_v8, %v10448_v52  ;;  %v6992_v33 = vsel %vm6934_vm6, %v6927_v9, %v10449_v24  ;;  %v7873_v8 = vld [vmem:[#allocation4 + $0x18] sm:$0xff]  ;;  %v10560_v57 = vpack.i.bf16 %v7856_v20, %v7855_v27 }
 0x3ff   :  { %v10454_v43 = vunpack.i.h.bf16 %v10452_v25  ;;  %v10453_v48 = vunpack.i.l.bf16 %v10452_v25  ;;  %v6669_v16 = vsel %vm3939_vm1, %v4295_v15, %v10459_v3  ;;  %v6668_v38 = vsel %vm3939_vm1, %v4294_v23, %v10458_v37  ;;  %v4296_v23 = vld [vmem:[#allocation3 + $0x250] sm:$0xff]  ;;  %v4297_v15 = vld [vmem:[#allocation3 + $0x258] sm:$0xff] }
 0x400   :  { %v10467_v62 = vpop.permute.xlu1 %10466  ;;  %v7125_v3 = vpack.c.bf16 %v14774_v32, %v4814_v54  ;;  %v10565_v37 = vpack.i.bf16 %v7873_v8, %v7856_v20  ;;  %10561 = vrot.lane.b32.xlu1 %v10560_v57, %s10864_s7  ;;  %v4817_v57 = vld [vmem:[#allocation3 + $0x318] sm:$0xff] }
 0x401   :  { %v7056_v61 = vsel %vm6999_vm7, %v6991_v21, %v10453_v48  ;;  %v7057_v36 = vsel %vm6999_vm7, %v6992_v33, %v10454_v43  ;;  %v10469_v53 = vunpack.i.h.bf16 %v10467_v62  ;;  %v10468_v42 = vunpack.i.l.bf16 %v10467_v62  ;;  %v7950_v21 = vld [vmem:[#allocation4 + $0xf0] sm:$0xff]  ;;  %v7951_v33 = vld [vmem:[#allocation4 + $0xf8] sm:$0xff] }
 0x402   :  { %v10462_v49 = vpop.permute.xlu0 %10461  ;;  %v7120_v41 = vpack.c.bf16 %v7057_v36, %v7056_v61  ;;  %v14983_v0 = vpop.f32.mrb[44].mxu1 }
 0x403   :  { %v10464_v55 = vunpack.i.h.bf16 %v10462_v49  ;;  %v10463_v56 = vunpack.i.l.bf16 %v10462_v49  ;;  %v7473_v19 = vpop.f32.mrb[45].mxu1 }
 0x404   :  { %7558 = vmatmul.mubr.bf16.gmra.mrb[88].mxu1 %v7120_v41  ;;  %v14989_v10 = vpop.f32.mrb[46].mxu1  ;;  %v10477_v59 = vpop.permute.xlu1 %10476  ;;  %10566 = vrot.lane.b32.xlu1 %v10565_v37, %s10862_s30 }
 0x405   :  { %v6734_v46 = vsel %vm6674_vm2, %v6669_v16, %v10464_v55  ;;  %v6733_v22 = vsel %vm6674_vm2, %v6668_v38, %v10463_v56  ;;  %9157 = vmatprep.mubr.msk.bf16.mxu1 %vm3939_vm1, %v7123_v47  ;;  %v7476_v31 = vpop.f32.mrb[47].mxu1  ;;  %v10479_v28 = vunpack.i.h.bf16 %v10477_v59  ;;  %v10478_v13 = vunpack.i.l.bf16 %v10477_v59  ;;  %v7858_v56 = vld [vmem:[#allocation4 + $0x20] sm:$0xff] }
 0x406   :  { %v10472_v11 = vpop.permute.xlu0 %10471  ;;  %v6798_v18 = vsel %vm6739_vm3, %v6733_v22, %v10468_v42  ;;  %v6799_v63 = vsel %vm6739_vm3, %v6734_v46, %v10469_v53  ;;  %v10580_v53 = vpack.i.bf16 %v7951_v33, %v7950_v21  ;;  %v10570_v59 = vpack.i.bf16 %v7858_v56, %v7873_v8 }
 0x407   :  { %v10474_v4 = vunpack.i.h.bf16 %v10472_v11  ;;  %v10473_v5 = vunpack.i.l.bf16 %v10472_v11 }
 0x408   :  { %v10487_v35 = vpop.permute.xlu1 %10486  ;;  %10581 = vrot.lane.b32.xlu0 %v10580_v53, %s10862_s30  ;;  %10571 = vrot.lane.b32.xlu1 %v10570_v59, %s10864_s7 }
 0x409   :  { %v6863_v58 = vsel %vm6804_vm4, %v6798_v18, %v10473_v5  ;;  %v6864_v30 = vsel %vm6804_vm4, %v6799_v63, %v10474_v4  ;;  %v10489_v34 = vunpack.i.h.bf16 %v10487_v35  ;;  %v10488_v6 = vunpack.i.l.bf16 %v10487_v35 }
 0x40a   :  { %v10482_v40 = vpop.permute.xlu0 %10481  ;;  %v14996_v14 = vpop.f32.mrb[48].mxu1  ;;  %v6928_v24 = vsel %vm6869_vm5, %v6863_v58, %v10478_v13  ;;  %v6929_v52 = vsel %vm6869_vm5, %v6864_v30, %v10479_v28  ;;  %v7875_v13 = vld [vmem:[#allocation4 + $0x28] sm:$0xff]  ;;  %v7464_v18 = vadd.f32 %v14828_v17, %v14970_v60 }
 0x40b   :  { %v10484_v50 = vunpack.i.h.bf16 %v10482_v40  ;;  %v10483_v39 = vunpack.i.l.bf16 %v10482_v40  ;;  %v7481_v44 = vpop.f32.mrb[49].mxu1 }
 0x40c   :  { %v15002_v25 = vpop.f32.mrb[50].mxu1  ;;  %v10497_v1 = vpop.permute.xlu1 %10496  ;;  %v7622_v44 = vmax.f32 %v7464_v18, 0.0 }
 0x40d   :  { %v6993_v9 = vsel %vm6934_vm6, %v6928_v24, %v10483_v39  ;;  %v6994_v29 = vsel %vm6934_vm6, %v6929_v52, %v10484_v50  ;;  %v7484_v48 = vpop.f32.mrb[51].mxu1  ;;  %v10499_v49 = vunpack.i.h.bf16 %v10497_v1  ;;  %v10498_v41 = vunpack.i.l.bf16 %v10497_v1 }
 0x40e   :  { %v10492_v43 = vpop.permute.xlu0 %10491  ;;  %v7058_v36 = vsel %vm6999_vm7, %v6993_v9, %v10488_v6  ;;  %v7059_v47 = vsel %vm6999_vm7, %v6994_v29, %v10489_v34  ;;  %v10575_v39 = vpack.i.bf16 %v7875_v13, %v7858_v56  ;;  %v7467_v9 = vadd.f32 %v14828_v17, %v14976_v7  ;;  %v4298_v56 = vld [vmem:[#allocation3 + $0x260] sm:$0xff] }
 0x40f   :  { %v10494_v62 = vunpack.i.h.bf16 %v10492_v43  ;;  %v10493_v61 = vunpack.i.l.bf16 %v10492_v43  ;;  %v7122_v55 = vpack.c.bf16 %v7059_v47, %v7058_v36  ;;  %v7702_v36 = vsel %vm6674_vm2, %v7622_v44, -inf  ;;  %v4299_v47 = vld [vmem:[#allocation3 + $0x268] sm:$0xff] }
 0x410   :  { %v10507_v38 = vpop.permute.xlu1 %10506  ;;  %10576 = vrot.lane.b32.xlu1 %v10575_v39, %s10862_s30 }
 0x411   :  { %v6671_v16 = vsel %vm3939_vm1, %v4297_v15, %v10494_v62  ;;  %v6670_v32 = vsel %vm3939_vm1, %v4296_v23, %v10493_v61  ;;  %7566 = vmatmul.mubr.bf16.gmra.mrb[92].mxu1 %v7122_v55  ;;  %v10509_v11 = vunpack.i.h.bf16 %v10507_v38  ;;  %v10508_v31 = vunpack.i.l.bf16 %v10507_v38 }
 0x412   :  { %v10502_v42 = vpop.permute.xlu0 %10501  ;;  %v15010_v22 = vpop.f32.mrb[52].mxu1  ;;  %9158 = vmatprep.mubr.msk.bf16.mxu1 %vm3939_vm1, %v7125_v3  ;;  %v6735_v4 = vsel %vm6674_vm2, %v6670_v32, %v10498_v41  ;;  %v6736_v5 = vsel %vm6674_vm2, %v6671_v16, %v10499_v49  ;;  %v7127_v15 = vpack.c.bf16 %v4817_v57, %v14776_v2  ;;  %v7623_v55 = vmax.f32 %v7467_v9, 0.0 }
 0x413   :  { %v10504_v19 = vunpack.i.h.bf16 %v10502_v42  ;;  %v10503_v46 = vunpack.i.l.bf16 %v10502_v42  ;;  %v7489_v28 = vpop.f32.mrb[53].mxu1 }
 0x414   :  { %v15021_v30 = vpop.f32.mrb[54].mxu1  ;;  %v10517_v35 = vpop.permute.xlu1 %10516 }
 0x415   :  { %v6800_v63 = vsel %vm6739_vm3, %v6735_v4, %v10503_v46  ;;  %v6801_v58 = vsel %vm6739_vm3, %v6736_v5, %v10504_v19  ;;  %v7492_v34 = vpop.f32.mrb[55].mxu1  ;;  %v10519_v54 = vunpack.i.h.bf16 %v10517_v35  ;;  %v10518_v24 = vunpack.i.l.bf16 %v10517_v35 }
 0x416   :  { %v10512_v40 = vpop.permute.xlu0 %10511  ;;  %v6865_v52 = vsel %vm6804_vm4, %v6800_v63, %v10508_v31  ;;  %v6866_v60 = vsel %vm6804_vm4, %v6801_v58, %v10509_v11  ;;  %v7705_v58 = vsel %vm6674_vm2, %v7623_v55, -inf }
 0x417   :  { %v10514_v6 = vunpack.i.h.bf16 %v10512_v40  ;;  %v10513_v50 = vunpack.i.l.bf16 %v10512_v40 }
 0x418   :  { %v10527_v8 = vpop.permute.xlu1 %10526 }
 0x419   :  { %v6930_v27 = vsel %vm6869_vm5, %v6865_v52, %v10513_v50  ;;  %v6931_v20 = vsel %vm6869_vm5, %v6866_v60, %v10514_v6  ;;  %v10529_v29 = vunpack.i.h.bf16 %v10527_v8  ;;  %v10528_v43 = vunpack.i.l.bf16 %v10527_v8 }
 0x41a   :  { %v10522_v1 = vpop.permute.xlu0 %10521  ;;  %v7495_v37 = vpop.f32.mrb[56].mxu1  ;;  %v6995_v62 = vsel %vm6934_vm6, %v6930_v27, %v10518_v24  ;;  %v6996_v61 = vsel %vm6934_vm6, %v6931_v20, %v10519_v54 }
 0x41b   :  { %v10524_v48 = vunpack.i.h.bf16 %v10522_v1  ;;  %v10523_v3 = vunpack.i.l.bf16 %v10522_v1  ;;  %v7496_v21 = vadd.f32 %v14828_v17, %v7495_v37  ;;  %v7497_v33 = vpop.f32.mrb[57].mxu1  ;;  %v6673_v16 = vsel %vm3939_vm1, %v4299_v47, %v10529_v29 }
 0x41c   :  { %v7498_v7 = vpop.f32.mrb[58].mxu1  ;;  %v10537_v49 = vpop.permute.xlu1 %10536  ;;  %v6672_v19 = vsel %vm3939_vm1, %v4298_v56, %v10528_v43 }
 0x41d   :  { %v7060_v41 = vsel %vm6999_vm7, %v6995_v62, %v10523_v3  ;;  %v7061_v23 = vsel %vm6999_vm7, %v6996_v61, %v10524_v48  ;;  %v7630_v32 = vmax.f32 %v7496_v21, 0.0  ;;  %v7499_v38 = vadd.f32 %v14828_v17, %v7498_v7  ;;  %v7500_v42 = vpop.f32.mrb[59].mxu1 }
 0x41e   :  { %v10532_v53 = vpop.permute.xlu0 %10531  ;;  %v7124_v11 = vpack.c.bf16 %v7061_v23, %v7060_v41  ;;  %v10539_v5 = vunpack.i.h.bf16 %v10537_v49  ;;  %v10538_v28 = vunpack.i.l.bf16 %v10537_v49  ;;  %v7475_v41 = vadd.f32 %v14828_v17, %v14989_v10 }
 0x41f   :  { %v10534_v46 = vunpack.i.h.bf16 %v10532_v53  ;;  %v10533_v59 = vunpack.i.l.bf16 %v10532_v53  ;;  %v7703_v31 = vsel %vm6674_vm2, %v7630_v32, -inf  ;;  %v7631_v4 = vmax.f32 %v7499_v38, 0.0 }
 0x420   :  { %v7704_v2 = vmax.f32 %v7702_v36, %v7703_v31  ;;  %7574 = vmatmul.mubr.bf16.gmra.mrb[96].mxu1 %v7124_v11  ;;  %v10547_v63 = vpop.permute.xlu1 %10546  ;;  %v7472_v36 = vadd.f32 %v14828_v17, %v14983_v0  ;;  %v7625_v53 = vmax.f32 %v7475_v41, 0.0 }
 0x421   :  { %v6738_v13 = vsel %vm6674_vm2, %v6673_v16, %v10534_v46  ;;  %v6737_v18 = vsel %vm6674_vm2, %v6672_v19, %v10533_v59  ;;  %v7706_v35 = vsel %vm6674_vm2, %v7631_v4, -inf  ;;  %9159 = vmatprep.mubr.msk.bf16.mxu1 %vm3939_vm1, %v7127_v15  ;;  %v10549_v39 = vunpack.i.h.bf16 %v10547_v63 }
 0x422   :  { %v10542_v40 = vpop.permute.xlu0 %10541  ;;  %v7707_v34 = vmax.f32 %v7705_v58, %v7706_v35  ;;  %v10548_v54 = vunpack.i.l.bf16 %v10547_v63  ;;  %v6802_v24 = vsel %vm6739_vm3, %v6737_v18, %v10538_v28  ;;  %v6803_v52 = vsel %vm6739_vm3, %v6738_v13, %v10539_v5 }
 0x423   :  { %v10544_v6 = vunpack.i.h.bf16 %v10542_v40  ;;  %v10543_v50 = vunpack.i.l.bf16 %v10542_v40  ;;  %v7774_v60 = vsel %vm6674_vm2, %v7704_v2, -inf  ;;  %v7624_v56 = vmax.f32 %v7472_v36, 0.0 }
 0x424   :  { %v7775_v44 = vsel %vm6674_vm2, %v7707_v34, -inf  ;;  %v10557_v8 = vpop.permute.xlu1 %10556  ;;  %v7711_v31 = vsel %vm6674_vm2, %v7625_v53, -inf  ;;  %v7480_v18 = vadd.f32 %v14828_v17, %v14996_v14  ;;  %v7483_v35 = vadd.f32 %v14828_v17, %v15002_v25 }
 0x425   :  { %v6867_v27 = vsel %vm6804_vm4, %v6802_v24, %v10543_v50  ;;  %v6868_v20 = vsel %vm6804_vm4, %v6803_v52, %v10544_v6  ;;  %v7776_v9 = vmax.f32 %v7774_v60, %v7775_v44  ;;  %v10559_v1 = vunpack.i.h.bf16 %v10557_v8 }
 0x426   :  { %v10552_v29 = vpop.permute.xlu0 %10551  ;;  %v10558_v48 = vunpack.i.l.bf16 %v10557_v8  ;;  %v6932_v3 = vsel %vm6869_vm5, %v6867_v27, %v10548_v54  ;;  %v6933_v37 = vsel %vm6869_vm5, %v6868_v20, %v10549_v39  ;;  %v7708_v46 = vsel %vm6674_vm2, %v7624_v56, -inf }
 0x427   :  { %v10554_v57 = vunpack.i.h.bf16 %v10552_v29  ;;  %v10553_v43 = vunpack.i.l.bf16 %v10552_v29  ;;  %7830 = vst.msk [vmem:[#allocation4 + $0x98] sm:$0xff] %vm6674_vm2, %v7776_v9  ;;  %v7626_v50 = vmax.f32 %v7480_v18, 0.0  ;;  %v7627_v52 = vmax.f32 %v7483_v35, 0.0 }
 0x429   :  { %v6997_v21 = vsel %vm6934_vm6, %v6932_v3, %v10553_v43  ;;  %v6998_v33 = vsel %vm6934_vm6, %v6933_v37, %v10554_v57  ;;  %v7714_v27 = vsel %vm6674_vm2, %v7626_v50, -inf  ;;  %v7717_v9 = vsel %vm6674_vm2, %v7627_v52, -inf }
 0x42a   :  { %v7062_v62 = vsel %vm6999_vm7, %v6997_v21, %v10558_v48  ;;  %v7063_v61 = vsel %vm6999_vm7, %v6998_v33, %v10559_v1  ;;  %v15062_v47 = vpop.f32.mrb[32].mxu0  ;;  %v7384_v3 = vadd.f32 %v14828_v17, %v14513_v26  ;;  %v7387_v37 = vadd.f32 %v14828_v17, %v14533_v12 }
 0x42b   :  { %v7126_v7 = vpack.c.bf16 %v7063_v61, %v7062_v62  ;;  %v7337_v49 = vpop.f32.mrb[33].mxu0  ;;  %v7488_v21 = vadd.f32 %v14828_v17, %v15010_v22 }
 0x42c   :  { %v15066_v23 = vpop.f32.mrb[34].mxu0  ;;  %v7602_v62 = vmax.f32 %v7384_v3, 0.0  ;;  %v7603_v41 = vmax.f32 %v7387_v37, 0.0 }
 0x42d   :  { %7582 = vmatmul.mubr.bf16.gmra.mrb[100].mxu1 %v7126_v7  ;;  %v7340_v15 = vpop.f32.mrb[35].mxu0  ;;  %v7503_v55 = vpop.f32.mrb[60].mxu1  ;;  %v7491_v7 = vadd.f32 %v14828_v17, %v15021_v30 }
 0x42e   :  { %v7504_v16 = vadd.f32 %v14828_v17, %v7503_v55  ;;  %v7505_v32 = vpop.f32.mrb[61].mxu1  ;;  %v7667_v22 = vsel %vm6674_vm2, %v7602_v62, -inf }
 0x42f   :  { %v7506_v38 = vpop.f32.mrb[62].mxu1 }
 0x430   :  { %v7632_v42 = vmax.f32 %v7504_v16, 0.0  ;;  %v7507_v0 = vadd.f32 %v14828_v17, %v7506_v38  ;;  %v7508_v19 = vpop.f32.mrb[63].mxu1  ;;  %v7628_v16 = vmax.f32 %v7488_v21, 0.0 }
 0x432   :  { %v7709_v59 = vsel %vm6674_vm2, %v7632_v42, -inf  ;;  %v7633_v10 = vmax.f32 %v7507_v0, 0.0  ;;  %v7629_v0 = vmax.f32 %v7491_v7, 0.0 }
 0x433   :  { %v7710_v11 = vmax.f32 %v7708_v46, %v7709_v59  ;;  %v15110_v46 = vld [vmem:[%s15738_s1 + $0xa] ss:$0 sm:$0xff] }
 0x434   :  { %v7712_v4 = vsel %vm6674_vm2, %v7633_v10, -inf  ;;  %v7395_v52 = vadd.f32 %v15110_v46, %v14569_v51 }
 0x435   :  { %v7713_v5 = vmax.f32 %v7711_v31, %v7712_v4  ;;  %v7777_v28 = vsel %vm6674_vm2, %v7710_v11, -inf  ;;  %v7720_v31 = vsel %vm6674_vm2, %v7628_v16, -inf  ;;  %v7339_v16 = vadd.f32 %v15110_v46, %v15066_v23 }
 0x437   :  { %v7778_v2 = vsel %vm6674_vm2, %v7713_v5, -inf }
 0x438   :  { %v7779_v13 = vmax.f32 %v7777_v28, %v7778_v2 }
 0x43a   :  { %7831 = vst.msk [vmem:[#allocation4 + $0xa0] sm:$0xff] %vm6674_vm2, %v7779_v13  ;;  %v7723_v13 = vsel %vm6674_vm2, %v7629_v0, -inf }
 0x446   :  { %v15079_v63 = vpop.f32.mrb[36].mxu0 }
 0x447   :  { %v7345_v58 = vpop.f32.mrb[37].mxu0 }
 0x448   :  { %v15083_v40 = vpop.f32.mrb[38].mxu0 }
 0x449   :  { %v7348_v34 = vpop.f32.mrb[39].mxu0  ;;  %v7511_v6 = vpop.f32.mrb[64].mxu1 }
 0x44a   :  { %v7512_v39 = vadd.f32 %v14828_v17, %v7511_v6  ;;  %v7513_v54 = vpop.f32.mrb[65].mxu1 }
 0x44b   :  { %v7514_v24 = vpop.f32.mrb[66].mxu1 }
 0x44c   :  { %v7634_v60 = vmax.f32 %v7512_v39, 0.0  ;;  %v7515_v44 = vadd.f32 %v14828_v17, %v7514_v24  ;;  %v7516_v14 = vpop.f32.mrb[67].mxu1  ;;  %v7392_v24 = vadd.f32 %v15110_v46, %v14562_v45 }
 0x44e   :  { %v7715_v20 = vsel %vm6674_vm2, %v7634_v60, -inf  ;;  %v7635_v8 = vmax.f32 %v7515_v44, 0.0  ;;  %v7604_v44 = vmax.f32 %v7392_v24, 0.0 }
 0x44f   :  { %v7716_v25 = vmax.f32 %v7714_v27, %v7715_v20 }
 0x450   :  { %v7718_v29 = vsel %vm6674_vm2, %v7635_v8, -inf  ;;  %v7605_v8 = vmax.f32 %v7395_v52, 0.0 }
 0x451   :  { %v7719_v1 = vmax.f32 %v7717_v9, %v7718_v29  ;;  %v7780_v57 = vsel %vm6674_vm2, %v7716_v25, -inf }
 0x452   :  { %v7676_v21 = vsel %vm6674_vm2, %v7605_v8, -inf  ;;  %v7347_v8 = vadd.f32 %v15110_v46, %v15083_v40 }
 0x453   :  { %v7781_v43 = vsel %vm6674_vm2, %v7719_v1, -inf }
 0x454   :  { %v7782_v48 = vmax.f32 %v7780_v57, %v7781_v43  ;;  %v7673_v43 = vsel %vm6674_vm2, %v7604_v44, -inf  ;;  %v10815_v44 = vld [vmem:[%s15741_s3 + $0x58] sm:$0xff]  }
 0x456   :  { %7832 = vst.msk [vmem:[#allocation4 + $0xa8] sm:$0xff] %vm6674_vm2, %v7782_v48 }
 0x462   :  { %v7351_v33 = vpop.f32.mrb[40].mxu0 }
 0x463   :  { %v7352_v61 = vadd.f32 %v14828_v17, %v7351_v33  ;;  %v7353_v36 = vpop.f32.mrb[41].mxu0 }
 0x464   :  { %v7354_v49 = vpop.f32.mrb[42].mxu0 }
 0x465   :  { %v7594_v15 = vmax.f32 %v7352_v61, 0.0  ;;  %v7355_v55 = vadd.f32 %v14828_v17, %v7354_v49  ;;  %v7356_v26 = vpop.f32.mrb[43].mxu0  ;;  %v7519_v56 = vpop.f32.mrb[68].mxu1  ;;  %v7924_v49 = vld [vmem:[#allocation4 + $0x58] sm:$0xff] }
 0x466   :  { %v7520_v12 = vadd.f32 %v14828_v17, %v7519_v56  ;;  %v7521_v32 = vpop.f32.mrb[69].mxu1  ;;  %v7670_v17 = vsel %vm6674_vm2, %v7603_v41, -inf  ;;  %v7336_v56 = vadd.f32 %v15110_v46, %v15062_v47 }
 0x467   :  { %v7666_v38 = vsel %vm6674_vm2, %v7594_v15, -inf  ;;  %v7595_v53 = vmax.f32 %v7355_v55, 0.0  ;;  %v7522_v42 = vpop.f32.mrb[70].mxu1 }
 0x468   :  { %v7668_v19 = vmax.f32 %v7666_v38, %v7667_v22  ;;  %v7636_v30 = vmax.f32 %v7520_v12, 0.0  ;;  %v7523_v59 = vadd.f32 %v15110_v46, %v7522_v42  ;;  %v7524_v10 = vpop.f32.mrb[71].mxu1  ;;  %v7590_v32 = vmax.f32 %v7336_v56, 0.0 }
 0x469   :  { %v7669_v11 = vsel %vm6674_vm2, %v7595_v53, -inf  ;;  %v7591_v42 = vmax.f32 %v7339_v16, 0.0 }
 0x46a   :  { %v7671_v4 = vmax.f32 %v7669_v11, %v7670_v17  ;;  %v7721_v5 = vsel %vm6674_vm2, %v7636_v30, -inf  ;;  %v7637_v28 = vmax.f32 %v7523_v59, 0.0  ;;  %v7756_v18 = vsel %vm6674_vm2, %v7668_v19, -inf }
 0x46b   :  { %v7722_v2 = vmax.f32 %v7720_v31, %v7721_v5  ;;  %v7654_v47 = vsel %vm6674_vm2, %v7590_v32, -inf  ;;  %v7657_v5 = vsel %vm6674_vm2, %v7591_v42, -inf  ;;  %v10822_v42 = vld [vmem:[%s15741_s3 + $0x30] sm:$0xff]  }
 0x46c   :  { %v7757_v58 = vsel %vm6674_vm2, %v7671_v4, -inf  ;;  %v7724_v35 = vsel %vm6674_vm2, %v7637_v28, -inf }
 0x46d   :  { %v7758_v34 = vmax.f32 %v7756_v18, %v7757_v58  ;;  %v7725_v6 = vmax.f32 %v7723_v13, %v7724_v35  ;;  %v7783_v50 = vsel %vm6674_vm2, %v7722_v2, -inf  ;;  %v10809_v35 = vld [vmem:[%s15741_s3 + $0x40] sm:$0xff]  }
 0x46e   :  { %9232 = vmatprep.subr.bf16.mxu0 %v10809_v35  ;;  %v15267_v35 = vld [vmem:[#allocation4 + $0x78] sm:$0xff] }
 0x46f   :  { %7824 = vst.msk [vmem:[#allocation4 + $0x48] sm:$0xff] %vm6674_vm2, %v7758_v34  ;;  %v7784_v39 = vsel %vm6674_vm2, %v7725_v6, -inf  ;;  %v10810_v34 = vld [vmem:[%s15741_s3] sm:$0xff]  }
 0x470   :  { %v7785_v54 = vmax.f32 %v7783_v50, %v7784_v39  ;;  %v15175_v6 = vld [vmem:[#allocation4 + $0x30] sm:$0xff]  ;;  %v10811_v50 = vld [vmem:[%s15741_s3 + $0x48] sm:$0xff]   ;;  %9233 = vmatpush3.bf16.msra.mxu0 %v10810_v34 }
 0x471   :  { %v10812_v39 = vld [vmem:[%s15741_s3 + $0x8] sm:$0xff]   ;;  %9234 = vmatprep.subr.bf16.mxu0 %v10811_v50 }
 0x472   :  { %7833 = vst.msk [vmem:[#allocation4 + $0xb0] sm:$0xff] %vm6674_vm2, %v7785_v54  ;;  %v10813_v54 = vld [vmem:[%s15741_s3 + $0x50] sm:$0xff]  }
 0x474   :  { %9235 = vmatpush3.bf16.msra.mxu0 %v10812_v39 }
 0x475   :  { %9236 = vmatprep.subr.bf16.mxu0 %v10813_v54 }
 0x476   :  { %v15144_v15 = vld [vmem:[#allocation4 + $0x48] sm:$0xff] }
 0x47f   :  { %v7359_v60 = vpop.f32.mrb[44].mxu0 }
 0x480   :  { %v7360_v14 = vadd.f32 %v15110_v46, %v7359_v60  ;;  %v7361_v27 = vpop.f32.mrb[45].mxu0  ;;  %v10814_v60 = vld [vmem:[%s15741_s3 + $0x10] sm:$0xff]  }
 0x481   :  { %v7362_v20 = vpop.f32.mrb[46].mxu0  ;;  %v15131_v1 = vpop.f32.mrb[72].mxu1  ;;  %v7344_v27 = vadd.f32 %v15110_v46, %v15079_v63  ;;  %9237 = vmatpush3.bf16.msra.mxu0 %v10814_v60 }
 0x482   :  { %v7596_v25 = vmax.f32 %v7360_v14, 0.0  ;;  %v7363_v9 = vadd.f32 %v15110_v46, %v7362_v20  ;;  %v7364_v29 = vpop.f32.mrb[47].mxu0  ;;  %v7529_v57 = vpop.f32.mrb[73].mxu1  ;;  %v10816_v14 = vld [vmem:[%s15741_s3 + $0x18] sm:$0xff]   ;;  %v10817_v20 = vld [vmem:[%s15741_s3 + $0x60] sm:$0xff]   ;;  %9238 = vmatprep.subr.bf16.mxu0 %v10815_v44 }
 0x483   :  { %v15135_v51 = vpop.f32.mrb[74].mxu1 }
 0x484   :  { %v7672_v45 = vsel %vm6674_vm2, %v7596_v25, -inf  ;;  %v7597_v48 = vmax.f32 %v7363_v9, 0.0  ;;  %v7532_v37 = vpop.f32.mrb[75].mxu1  ;;  %v7592_v25 = vmax.f32 %v7344_v27, 0.0  ;;  %v7531_v34 = vadd.f32 %v15110_v46, %v15135_v51 }
 0x485   :  { %v7674_v3 = vmax.f32 %v7672_v45, %v7673_v43  ;;  %9239 = vmatpush3.bf16.msra.mxu0 %v10816_v14  ;;  %v10818_v43 = vld [vmem:[%s15741_s3 + $0x20] sm:$0xff]   ;;  %v7593_v45 = vmax.f32 %v7347_v8, 0.0 }
 0x486   :  { %v7675_v33 = vsel %vm6674_vm2, %v7597_v48, -inf  ;;  %9240 = vmatprep.subr.bf16.mxu0 %v10817_v20  ;;  %v7639_v44 = vmax.f32 %v7531_v34, 0.0 }
 0x487   :  { %v7677_v62 = vmax.f32 %v7675_v33, %v7676_v21  ;;  %v7759_v61 = vsel %vm6674_vm2, %v7674_v3, -inf  ;;  %v7660_v21 = vsel %vm6674_vm2, %v7592_v25, -inf }
 0x489   :  { %v7760_v36 = vsel %vm6674_vm2, %v7677_v62, -inf  ;;  %9241 = vmatpush3.bf16.msra.mxu0 %v10818_v43 }
 0x48a   :  { %v7761_v7 = vmax.f32 %v7759_v61, %v7760_v36 }
 0x48c   :  { %7825 = vst.msk [vmem:[#allocation4 + $0x50] sm:$0xff] %vm6674_vm2, %v7761_v7  ;;  %v7663_v7 = vsel %vm6674_vm2, %v7593_v45, -inf }
 0x493   :  { %v15142_v41 = vld [vmem:[#allocation4 + $0x50] sm:$0xff] }
 0x494   :  { %v10585_v55 = vpack.i.bf16 %v7924_v49, %v15142_v41  ;;  %v10590_v26 = vpack.i.bf16 %v15142_v41, %v15144_v15 }
 0x496   :  { %10586 = vrot.lane.b32.xlu0 %v10585_v55, %s10864_s7  ;;  %10591 = vrot.lane.b32.xlu1 %v10590_v26, %s10864_s7 }
 0x49a   :  { %10596 = vrot.lane.b32.xlu1 %v10585_v55, %s10862_s30 }
 0x49b   :  { %v7367_v12 = vpop.f32.mrb[48].mxu0 }
 0x49c   :  { %v7368_v22 = vadd.f32 %v15110_v46, %v7367_v12  ;;  %v7369_v38 = vpop.f32.mrb[49].mxu0 }
 0x49d   :  { %v7370_v53 = vpop.f32.mrb[50].mxu0  ;;  %v15158_v59 = vpop.f32.mrb[76].mxu1  ;;  %v10820_v38 = vld [vmem:[%s15741_s3 + $0x28] sm:$0xff]  }
 0x49e   :  { %v7598_v0 = vmax.f32 %v7368_v22, 0.0  ;;  %v7371_v19 = vadd.f32 %v15110_v46, %v7370_v53  ;;  %v7372_v30 = vpop.f32.mrb[51].mxu0  ;;  %v7537_v10 = vpop.f32.mrb[77].mxu1  ;;  %v10819_v22 = vld [vmem:[%s15741_s3 + $0x68] sm:$0xff]   ;;  %v10821_v53 = vld [vmem:[%s15741_s3 + $0x70] sm:$0xff]  }
 0x49f   :  { %v15162_v11 = vpop.f32.mrb[78].mxu1  ;;  %9242 = vmatprep.subr.bf16.mxu0 %v10819_v22  ;;  %v10823_v10 = vld [vmem:[%s15741_s3 + $0x78] sm:$0xff]  }
 0x4a0   :  { %v7655_v23 = vsel %vm6674_vm2, %v7598_v0, -inf  ;;  %v7599_v17 = vmax.f32 %v7371_v19, 0.0  ;;  %v7540_v4 = vpop.f32.mrb[79].mxu1  ;;  %9243 = vmatpush3.bf16.msra.mxu0 %v10820_v38 }
 0x4a1   :  { %v7656_v31 = vmax.f32 %v7654_v47, %v7655_v23  ;;  %9244 = vmatprep.subr.bf16.mxu0 %v10821_v53  ;;  %v10824_v47 = vld [vmem:[%s15741_s3 + $0x38] sm:$0xff]   ;;  %v15249_v4 = vld [vmem:[#allocation4 + $0x60] sm:$0xff] }
 0x4a2   :  { %v7658_v28 = vsel %vm6674_vm2, %v7599_v17, -inf }
 0x4a3   :  { %v7659_v2 = vmax.f32 %v7657_v5, %v7658_v28  ;;  %v7750_v13 = vsel %vm6674_vm2, %v7656_v31, -inf  ;;  %v15251_v5 = vld [vmem:[#allocation4 + $0x68] sm:$0xff] }
 0x4a4   :  { %9245 = vmatpush3.bf16.msra.mxu0 %v10822_v42  ;;  %v10625_v28 = vpack.i.bf16 %v15251_v5, %v15249_v4  ;;  %v15314_v42 = vld [vmem:[#allocation4 + $0xa0] sm:$0xff] }
 0x4a5   :  { %v7751_v18 = vsel %vm6674_vm2, %v7659_v2, -inf  ;;  %9246 = vmatprep.subr.bf16.mxu0 %v10823_v10 }
 0x4a6   :  { %v7752_v58 = vmax.f32 %v7750_v13, %v7751_v18  ;;  %v15259_v13 = vld [vmem:[#allocation4 + $0x70] sm:$0xff]  ;;  %v7528_v18 = vadd.f32 %v15110_v46, %v15131_v1 }
 0x4a7   :  { %v10645_v1 = vpack.i.bf16 %v15267_v35, %v15259_v13 }
 0x4a8   :  { %7822 = vst.msk [vmem:[#allocation4 + $0x38] sm:$0xff] %vm6674_vm2, %v7752_v58  ;;  %9247 = vmatpush3.bf16.msra.mxu0 %v10824_v47  ;;  %v10635_v58 = vpack.i.bf16 %v15259_v13, %v15251_v5  ;;  %v7638_v39 = vmax.f32 %v7528_v18, 0.0 }
 0x4aa   :  { %v7726_v51 = vsel %vm6674_vm2, %v7638_v39, -inf }
 0x4af   :  { %v15186_v24 = vld [vmem:[#allocation4 + $0x38] sm:$0xff] }
 0x4b0   :  { %v10600_v52 = vpack.i.bf16 %v15186_v24, %v15175_v6 }
 0x4b2   :  { %10601 = vrot.lane.b32.xlu1 %v10600_v52, %s10863_s6 }
 0x4b7   :  { %v7375_v9 = vpop.f32.mrb[52].mxu0 }
 0x4b8   :  { %v7376_v29 = vadd.f32 %v15110_v46, %v7375_v9  ;;  %v7377_v57 = vpop.f32.mrb[53].mxu0 }
 0x4b9   :  { %v7378_v63 = vpop.f32.mrb[54].mxu0  ;;  %v7729_v57 = vsel %vm6674_vm2, %v7639_v44, -inf }
 0x4ba   :  { %v7600_v48 = vmax.f32 %v7376_v29, 0.0  ;;  %v7379_v3 = vadd.f32 %v15110_v46, %v7378_v63  ;;  %v7380_v37 = vpop.f32.mrb[55].mxu0  ;;  %v15281_v29 = vld [vmem:[#allocation4 + $0x80] sm:$0xff] }
 0x4bb   :  { %v15214_v62 = vpop.f32.mrb[80].mxu1  ;;  %v10665_v45 = vpack.i.bf16 %v15281_v29, %v15267_v35  ;;  %v7928_v37 = vld [vmem:[#allocation4 + $0x88] sm:$0xff] }
 0x4bc   :  { %v7661_v40 = vsel %vm6674_vm2, %v7600_v48, -inf  ;;  %v7601_v33 = vmax.f32 %v7379_v3, 0.0  ;;  %v7545_v36 = vpop.f32.mrb[81].mxu1 }
 0x4bd   :  { %v7662_v61 = vmax.f32 %v7660_v21, %v7661_v40  ;;  %v15218_v55 = vpop.f32.mrb[82].mxu1  ;;  %v7536_v21 = vadd.f32 %v15110_v46, %v15158_v59 }
 0x4be   :  { %v7664_v49 = vsel %vm6674_vm2, %v7601_v33, -inf  ;;  %v7548_v56 = vpop.f32.mrb[83].mxu1  ;;  %v7539_v33 = vadd.f32 %v15110_v46, %v15162_v11  ;;  %v15309_v11 = vld [vmem:[%s15741_s3 + $0x80] sm:$0xff]  }
 0x4bf   :  { %v7665_v26 = vmax.f32 %v7663_v7, %v7664_v49  ;;  %v7753_v16 = vsel %vm6674_vm2, %v7662_v61, -inf  ;;  %v10670_v61 = vpack.i.bf16 %v7928_v37, %v15281_v29  ;;  %v15299_v7 = vld [vmem:[#allocation4 + $0x90] sm:$0xff]  ;;  %v15301_v49 = vld [vmem:[#allocation4 + $0x98] sm:$0xff]  ;;  %9366 = vmatprep.subr.bf16.mxu0 %v15309_v11 }
 0x4c0   :  { %v10685_v53 = vpack.i.bf16 %v15301_v49, %v15299_v7 }
 0x4c1   :  { %v7754_v12 = vsel %vm6674_vm2, %v7665_v26, -inf  ;;  %v7640_v26 = vmax.f32 %v7536_v21, 0.0 }
 0x4c2   :  { %v7755_v32 = vmax.f32 %v7753_v16, %v7754_v12  ;;  %v7641_v12 = vmax.f32 %v7539_v33, 0.0 }
 0x4c4   :  { %7823 = vst.msk [vmem:[#allocation4 + $0x40] sm:$0xff] %vm6674_vm2, %v7755_v32 }
 0x4c8   :  { %v15235_v0 = vpop.f32.mrb[84].mxu1 }
 0x4c9   :  { %v7553_v19 = vpop.f32.mrb[85].mxu1  ;;  %v7552_v33 = vadd.f32 %v15110_v46, %v15235_v0 }
 0x4ca   :  { %v15245_v23 = vpop.f32.mrb[86].mxu1  ;;  %v7732_v19 = vsel %vm6674_vm2, %v7640_v26, -inf }
 0x4cb   :  { %v15237_v30 = vld [vmem:[#allocation4 + $0x40] sm:$0xff]  ;;  %v7556_v31 = vpop.f32.mrb[87].mxu1 }
 0x4cc   :  { %v10605_v17 = vpack.i.bf16 %v15144_v15, %v15237_v30  ;;  %v10615_v2 = vpack.i.bf16 %v15237_v30, %v15186_v24  ;;  %v7735_v31 = vsel %vm6674_vm2, %v7641_v12, -inf }
 0x4ce   :  { %10606 = vrot.lane.b32.xlu0 %v10605_v17, %s10864_s7  ;;  %10611 = vrot.lane.b32.xlu1 %v10605_v17, %s10863_s6 }
 0x4d2   :  { %10626 = vrot.lane.b32.xlu0 %v10625_v28, %s10862_s30  ;;  %10616 = vrot.lane.b32.xlu1 %v10615_v2, %s10864_s7  ;;  %v10695_v2 = vpack.i.bf16 %v15314_v42, %v15301_v49 }
 0x4d6   :  { %10636 = vrot.lane.b32.xlu0 %v10635_v58, %s10863_s6  ;;  %10621 = vrot.lane.b32.xlu1 %v10605_v17, %s10862_s30 }
 0x4d7   :  { %v7559_v50 = vpop.f32.mrb[88].mxu1 }
 0x4d8   :  { %v7560_v54 = vadd.f32 %v15110_v46, %v7559_v50  ;;  %v7561_v52 = vpop.f32.mrb[89].mxu1 }
 0x4d9   :  { %v7562_v60 = vpop.f32.mrb[90].mxu1  ;;  %v7544_v52 = vadd.f32 %v15110_v46, %v15214_v62 }
 0x4da   :  { %v7646_v14 = vmax.f32 %v7560_v54, 0.0  ;;  %v7563_v27 = vadd.f32 %v15110_v46, %v7562_v60  ;;  %v7564_v20 = vpop.f32.mrb[91].mxu1  ;;  %10646 = vrot.lane.b32.xlu0 %v10645_v1, %s10862_s30  ;;  %10631 = vrot.lane.b32.xlu1 %v10625_v28, %s10863_s6 }
 0x4db   :  { %v7642_v44 = vmax.f32 %v7544_v52, 0.0  ;;  %v15341_v20 = vld [vmem:[#allocation4 + $0xb0] sm:$0xff] }
 0x4dc   :  { %v7727_v8 = vsel %vm6674_vm2, %v7646_v14, -inf  ;;  %v7647_v25 = vmax.f32 %v7563_v27, 0.0 }
 0x4dd   :  { %v7728_v9 = vmax.f32 %v7726_v51, %v7727_v8 }
 0x4de   :  { %v7730_v43 = vsel %vm6674_vm2, %v7647_v25, -inf  ;;  %10651 = vrot.lane.b32.xlu0 %v10645_v1, %s10864_s7  ;;  %10641 = vrot.lane.b32.xlu1 %v10635_v58, %s10864_s7  ;;  %v15325_v58 = vld [vmem:[#allocation4 + $0xa8] sm:$0xff] }
 0x4df   :  { %v7731_v63 = vmax.f32 %v7729_v57, %v7730_v43  ;;  %v7786_v48 = vsel %vm6674_vm2, %v7728_v9, -inf  ;;  %v10705_v54 = vpack.i.bf16 %v15325_v58, %v15314_v42  ;;  %v7738_v57 = vsel %vm6674_vm2, %v7642_v44, -inf }
 0x4e1   :  { %v7787_v3 = vsel %vm6674_vm2, %v7731_v63, -inf }
 0x4e2   :  { %v7788_v40 = vmax.f32 %v7786_v48, %v7787_v3  ;;  %10666 = vrot.lane.b32.xlu0 %v10665_v45, %s10863_s6  ;;  %10656 = vrot.lane.b32.xlu1 %v10645_v1, %s10863_s6 }
 0x4e4   :  { %7834 = vst.msk [vmem:[#allocation4 + $0xc8] sm:$0xff] %vm6674_vm2, %v7788_v40  ;;  %v7567_v36 = vpop.f32.mrb[92].mxu1 }
 0x4e5   :  { %v7568_v59 = vadd.f32 %v15110_v46, %v7567_v36  ;;  %v7569_v56 = vpop.f32.mrb[93].mxu1 }
 0x4e6   :  { %10671 = vrot.lane.b32.xlu0 %v10670_v61, %s10864_s7  ;;  %10661 = vrot.lane.b32.xlu1 %v10645_v1, %s10862_s30  ;;  %v7570_v16 = vpop.f32.mrb[94].mxu1  ;;  %v7547_v1 = vadd.f32 %v15110_v46, %v15218_v55  ;;  %v10725_v55 = vpack.i.bf16 %v15341_v20, %v15325_v58  ;;  %v7555_v56 = vadd.f32 %v15110_v46, %v15245_v23 }
 0x4e7   :  { %v7648_v32 = vmax.f32 %v7568_v59, 0.0  ;;  %v7571_v22 = vadd.f32 %v15110_v46, %v7570_v16  ;;  %v7572_v38 = vpop.f32.mrb[95].mxu1 }
 0x4e8   :  { %v7643_v62 = vmax.f32 %v7547_v1, 0.0 }
 0x4e9   :  { %v7733_v10 = vsel %vm6674_vm2, %v7648_v32, -inf  ;;  %v7649_v47 = vmax.f32 %v7571_v22, 0.0  ;;  %v7644_v22 = vmax.f32 %v7552_v33, 0.0  ;;  %v15423_v33 = vpop.permute.xlu0 %10581 }
 0x4ea   :  { %10686 = vrot.lane.b32.xlu0 %v10685_v53, %s10862_s30  ;;  %10676 = vrot.lane.b32.xlu1 %v10665_v45, %s10864_s7  ;;  %v7734_v17 = vmax.f32 %v7732_v19, %v7733_v10  ;;  %v15350_v45 = vld [vmem:[#allocation4 + $0xb8] sm:$0xff]  ;;  %v7741_v3 = vsel %vm6674_vm2, %v7643_v62, -inf  ;;  %v7645_v10 = vmax.f32 %v7555_v56, 0.0 }
 0x4eb   :  { %v7736_v28 = vsel %vm6674_vm2, %v7649_v47, -inf  ;;  %v10730_v40 = vpack.i.bf16 %v15350_v45, %v15341_v20  ;;  %v15360_v36 = vld [vmem:[#allocation4 + $0xc8] sm:$0xff]  ;;  %v10854_v62 = vld [vmem:[#allocation4 + $0xf8] sm:$0xff] }
 0x4ec   :  { %v7737_v18 = vmax.f32 %v7735_v31, %v7736_v28  ;;  %v7789_v34 = vsel %vm6674_vm2, %v7734_v17, -inf  ;;  %v7744_v28 = vsel %vm6674_vm2, %v7644_v22, -inf  ;;  %v7838_v22 = vld [vmem:[#allocation4] sm:$0xff] }
 0x4ee   :  { %10696 = vrot.lane.b32.xlu0 %v10695_v2, %s10863_s6  ;;  %10681 = vrot.lane.b32.xlu1 %v10670_v61, %s10862_s30  ;;  %v7790_v50 = vsel %vm6674_vm2, %v7737_v18, -inf  ;;  %v7946_v61 = vld [vmem:[#allocation4 + $0xc0] sm:$0xff] }
 0x4ef   :  { %v7791_v39 = vmax.f32 %v7789_v34, %v7790_v50  ;;  %v10735_v32 = vpack.i.bf16 %v15360_v36, %v7946_v61  ;;  %v7747_v50 = vsel %vm6674_vm2, %v7645_v10, -inf }
 0x4f1   :  { %7835 = vst.msk [vmem:[#allocation4 + $0xd0] sm:$0xff] %vm6674_vm2, %v7791_v39 }
 0x4f2   :  { %10706 = vrot.lane.b32.xlu0 %v10705_v54, %s10862_s30  ;;  %10691 = vrot.lane.b32.xlu1 %v10685_v53, %s10863_s6 }
 0x4f3   :  { %v7575_v60 = vpop.f32.mrb[96].mxu1 }
 0x4f4   :  { %v7576_v14 = vadd.f32 %v15110_v46, %v7575_v60  ;;  %v7577_v27 = vpop.f32.mrb[97].mxu1 }
 0x4f5   :  { %v7578_v51 = vpop.f32.mrb[98].mxu1  ;;  %v15397_v27 = vld [vmem:[#allocation4 + $0x100] sm:$0xff] }
 0x4f6   :  { %10711 = vrot.lane.b32.xlu0 %v10705_v54, %s10864_s7  ;;  %10701 = vrot.lane.b32.xlu1 %v10695_v2, %s10864_s7  ;;  %v7650_v8 = vmax.f32 %v7576_v14, 0.0  ;;  %v7579_v25 = vadd.f32 %v15110_v46, %v7578_v51  ;;  %v7580_v9 = vpop.f32.mrb[99].mxu1 }
 0x4f7   :  { %v10562_v9 = vpop.permute.xlu1 %10561 }
 0x4f8   :  { %v7739_v43 = vsel %vm6674_vm2, %v7650_v8, -inf  ;;  %v7651_v63 = vmax.f32 %v7579_v25, 0.0  ;;  %v15371_v53 = vld [vmem:[#allocation4 + $0xd0] sm:$0xff]  ;;  %v10760_v8 = vpack.i.bf16 %v15397_v27, %v10854_v62  ;;  %v15403_v25 = vld [vmem:[#allocation4 + $0x108] sm:$0xff]  ;;  %v10564_v56 = vunpack.i.h.bf16 %v10562_v9 }
 0x4f9   :  { %v7740_v48 = vmax.f32 %v7738_v57, %v7739_v43  ;;  %v10740_v31 = vpack.i.bf16 %v15371_v53, %v15360_v36  ;;  %v15408_v57 = vld [vmem:[#allocation4 + $0xe8] sm:$0xff] }
 0x4fa   :  { %10726 = vrot.lane.b32.xlu0 %v10725_v55, %s10863_s6  ;;  %10716 = vrot.lane.b32.xlu1 %v10705_v54, %s10863_s6  ;;  %v7742_v37 = vsel %vm6674_vm2, %v7651_v63, -inf  ;;  %v15411_v63 = vld [vmem:[#allocation4 + $0x110] sm:$0xff] }
 0x4fb   :  { %v7743_v21 = vmax.f32 %v7741_v3, %v7742_v37  ;;  %v7792_v26 = vsel %vm6674_vm2, %v7740_v48, -inf  ;;  %v10567_v43 = vpop.permute.xlu1 %10566  ;;  %v10790_v3 = vpack.i.bf16 %v15411_v63, %v15403_v25 }
 0x4fd   :  { %v7793_v59 = vsel %vm6674_vm2, %v7743_v21, -inf }
 0x4fe   :  { %10731 = vrot.lane.b32.xlu0 %v10730_v40, %s10864_s7  ;;  %10721 = vrot.lane.b32.xlu1 %v10705_v54, %s10862_s30  ;;  %v7794_v16 = vmax.f32 %v7792_v26, %v7793_v59 }
 0x4ff   :  { %v10572_v37 = vpop.permute.xlu1 %10571 }
 0x500   :  { %v7583_v12 = vpop.f32.mrb[100].mxu1  ;;  %7836 = vst.msk [vmem:[#allocation4 + $0xd8] sm:$0xff] %vm6674_vm2, %v7794_v16  ;;  %v10563_v16 = vunpack.i.l.bf16 %v10562_v9 }
 0x501   :  { %v7584_v0 = vadd.f32 %v15110_v46, %v7583_v12  ;;  %v7585_v38 = vpop.f32.mrb[101].mxu1 }
 0x502   :  { %v7586_v19 = vpop.f32.mrb[102].mxu1  ;;  %10736 = vrot.lane.b32.xlu0 %v10735_v32, %s10862_s30  ;;  %10766 = vrot.lane.b32.xlu1 %v10735_v32, %s10863_s6  ;;  %v10568_v38 = vunpack.i.l.bf16 %v10567_v43 }
 0x503   :  { %v7652_v47 = vmax.f32 %v7584_v0, 0.0  ;;  %v7587_v23 = vadd.f32 %v15110_v46, %v7586_v19  ;;  %v7588_v17 = vpop.f32.mrb[103].mxu1  ;;  %v15419_v21 = vpop.permute.xlu1 %10576  ;;  %v10569_v0 = vunpack.i.h.bf16 %v10567_v43  ;;  %v10855_v19 = vld [vmem:[#allocation4 + $0x8] sm:$0xff] }
 0x504   :  { %v8373_v10 = vsel %vm6674_vm2, %v10855_v19, %v10564_v56  ;;  %v10573_v56 = vunpack.i.l.bf16 %v10572_v37  ;;  %v10579_v19 = vunpack.i.h.bf16 %v15419_v21 }
 0x505   :  { %v7745_v2 = vsel %vm6674_vm2, %v7652_v47, -inf  ;;  %v7653_v18 = vmax.f32 %v7587_v23, 0.0  ;;  %v8372_v47 = vsel %vm6674_vm2, %v7838_v22, %v10563_v16 }
 0x506   :  { %v7746_v34 = vmax.f32 %v7744_v28, %v7745_v2  ;;  %10741 = vrot.lane.b32.xlu0 %v10740_v31, %s10863_s6  ;;  %10771 = vrot.lane.b32.xlu1 %v10725_v55, %s10864_s7  ;;  %v10775_v55 = vpack.i.bf16 %v15403_v25, %v15397_v27 }
 0x507   :  { %v7748_v39 = vsel %vm6674_vm2, %v7653_v18, -inf  ;;  %v15384_v46 = vld [vmem:[#allocation4 + $0xd8] sm:$0xff] }
 0x508   :  { %v7749_v54 = vmax.f32 %v7747_v50, %v7748_v39  ;;  %v7795_v52 = vsel %vm6674_vm2, %v7746_v34, -inf  ;;  %v10745_v60 = vpack.i.bf16 %v15384_v46, %v15371_v53  ;;  %v15427_v26 = vpop.permute.xlu0 %10586  ;;  %v8388_v39 = vsel %vm6804_vm4, %v8372_v47, %v10568_v38  ;;  %v10826_v38 = vld [vmem:[%s15741_s3 + $0x88] sm:$0xff]  }
 0x509   :  { %v10856_v47 = vld [vmem:[#allocation4 + $0x18] sm:$0xff] }
 0x50a   :  { %v7796_v1 = vsel %vm6674_vm2, %v7749_v54, -inf  ;;  %10781 = vrot.lane.b32.xlu1 %v10730_v40, %s10862_s30  ;;  %10746 = vrot.lane.b32.xlu0 %v10745_v60, %s10862_s30  ;;  %v15421_v40 = vpop.permute.xlu1 %10591  ;;  %v8389_v54 = vsel %vm6804_vm4, %v8373_v10, %v10569_v0  ;;  %v10578_v10 = vunpack.i.l.bf16 %v15419_v21 }
 0x50b   :  { %v7797_v44 = vmax.f32 %v7795_v52, %v7796_v1 }
 0x50d   :  { %7837 = vst.msk [vmem:[#allocation4 + $0xe0] sm:$0xff] %vm6674_vm2, %v7797_v44 }
 0x50e   :  { %10796 = vrot.lane.b32.xlu1 %v10745_v60, %s10863_s6  ;;  %10751 = vrot.lane.b32.xlu0 %v10745_v60, %s10864_s7  ;;  %v15425_v61 = vpop.permute.xlu1 %10596 }
 0x514   :  { %v15395_v14 = vld [vmem:[#allocation4 + $0xe0] sm:$0xff] }
 0x515   :  { %v10755_v51 = vpack.i.bf16 %v15395_v14, %v15384_v46  ;;  %v10785_v48 = vpack.i.bf16 %v15408_v57, %v15395_v14 }
 0x517   :  { %10756 = vrot.lane.b32.xlu0 %v10755_v51, %s10863_s6 }
 0x51b   :  { %10761 = vrot.lane.b32.xlu0 %v10760_v8, %s10863_s6 }
 0x51f   :  { %10776 = vrot.lane.b32.xlu0 %v10775_v55, %s10862_s30 }
 0x523   :  { %10786 = vrot.lane.b32.xlu0 %v10785_v48, %s10864_s7 }
 0x524   :  { %v10602_v59 = vpop.permute.xlu1 %10601 }
 0x525   :  { %v10604_v2 = vunpack.i.h.bf16 %v10602_v59  ;;  %v10603_v18 = vunpack.i.l.bf16 %v10602_v59  ;;  %v10574_v59 = vunpack.i.h.bf16 %v10572_v37 }
 0x527   :  { %10791 = vrot.lane.b32.xlu0 %v10790_v3, %s10863_s6  ;;  %v8405_v8 = vsel %vm6934_vm6, %v8389_v54, %v10604_v2  ;;  %v8404_v9 = vsel %vm6934_vm6, %v8388_v39, %v10603_v18  ;;  %v10589_v18 = vunpack.i.h.bf16 %v15427_v26 }
 0x528   :  { %v8468_v0 = vpack.c.bf16 %v8405_v8, %v8404_v9  ;;  %v15473_v9 = vld [vmem:[#allocation2] sm:$0xff] }
 0x540   :  { %v10607_v12 = vpop.permute.xlu0 %10606  ;;  %v15429_v32 = vpop.permute.xlu1 %10611 }
 0x541   :  { %v10609_v31 = vunpack.i.h.bf16 %v10607_v12  ;;  %v10608_v28 = vunpack.i.l.bf16 %v10607_v12  ;;  %v10613_v21 = vunpack.i.l.bf16 %v15429_v32 }
 0x543   :  { %v8421_v60 = vsel %vm6674_vm2, %v15237_v30, %v10609_v31  ;;  %v8420_v44 = vsel %vm6674_vm2, %v15186_v24, %v10608_v28  ;;  %v10857_v31 = vld [vmem:[#allocation4 + $0x10] sm:$0xff] }
 0x544   :  { %v10627_v23 = vpop.permute.xlu0 %10626  ;;  %v15433_v17 = vpop.permute.xlu1 %10616  ;;  %v8374_v37 = vsel %vm6674_vm2, %v10857_v31, %v10573_v56 }
 0x545   :  { %v10629_v34 = vunpack.i.h.bf16 %v10627_v23  ;;  %v10628_v50 = vunpack.i.l.bf16 %v10627_v23  ;;  %v8375_v23 = vsel %vm6674_vm2, %v10856_v47, %v10574_v59 }
 0x547   :  { %v8436_v55 = vsel %vm6804_vm4, %v8420_v44, %v10628_v50  ;;  %v8437_v43 = vsel %vm6804_vm4, %v8421_v60, %v10629_v34  ;;  %v10588_v34 = vunpack.i.l.bf16 %v15427_v26  ;;  %v10614_v50 = vunpack.i.h.bf16 %v15429_v32 }
 0x548   :  { %v10637_v52 = vpop.permute.xlu0 %10636  ;;  %v15437_v1 = vpop.permute.xlu1 %10621  ;;  %v8391_v60 = vsel %vm6804_vm4, %v8375_v23, %v10579_v19  ;;  %v8423_v26 = vsel %vm6674_vm2, %v15142_v41, %v10589_v18 }
 0x549   :  { %v10639_v51 = vunpack.i.h.bf16 %v10637_v52  ;;  %v10638_v62 = vunpack.i.l.bf16 %v10637_v52  ;;  %v8390_v52 = vsel %vm6804_vm4, %v8374_v37, %v10578_v10  ;;  %v10624_v19 = vunpack.i.h.bf16 %v15437_v1 }
 0x54a   :  { %v10623_v10 = vunpack.i.l.bf16 %v15437_v1 }
 0x54b   :  { %v8452_v48 = vsel %vm6934_vm6, %v8436_v55, %v10638_v62  ;;  %v8453_v3 = vsel %vm6934_vm6, %v8437_v43, %v10639_v51  ;;  %v8406_v43 = vsel %vm6934_vm6, %v8390_v52, %v10613_v21 }
 0x54c   :  { %v10647_v16 = vpop.permute.xlu0 %10646  ;;  %v15449_v12 = vpop.permute.xlu1 %10631  ;;  %v8469_v22 = vpack.c.bf16 %v8453_v3, %v8452_v48  ;;  %v8407_v48 = vsel %vm6934_vm6, %v8391_v60, %v10614_v50 }
 0x54d   :  { %v10649_v39 = vunpack.i.h.bf16 %v10647_v16  ;;  %v10648_v54 = vunpack.i.l.bf16 %v10647_v16  ;;  %v10634_v37 = vunpack.i.h.bf16 %v15449_v12  ;;  %v10633_v18 = vunpack.i.l.bf16 %v15449_v12 }
 0x54e   :  { %8697 = vmatprep.mubr.bf16.mxu0 %v8469_v22  ;;  %v8471_v22 = vpack.c.bf16 %v8407_v48, %v8406_v43 }
 0x54f   :  { %8698 = vmatmul.mubr.bf16.vlgmr.msra.gmra.mrb[56].mxu0 %v8468_v0  ;;  %v8439_v32 = vsel %vm6804_vm4, %v8423_v26, %v10649_v39  ;;  %v10619_v0 = vunpack.i.h.bf16 %v15433_v17 }
 0x550   :  { %v10652_v28 = vpop.permute.xlu0 %10651  ;;  %v15458_v2 = vpop.permute.xlu1 %10641  ;;  %9367 = vmatpush3.bf16.msra.mxu0 %v15309_v11  ;;  %v8422_v11 = vsel %vm6674_vm2, %v15144_v15, %v10588_v34 }
 0x551   :  { %9368 = vmatprep.subr.bf16.mxu0 %v10826_v38  ;;  %v8438_v55 = vsel %vm6804_vm4, %v8422_v11, %v10648_v54  ;;  %v10654_v23 = vunpack.i.h.bf16 %v10652_v28  ;;  %v10653_v31 = vunpack.i.l.bf16 %v10652_v28  ;;  %v8377_v39 = vsel %vm6674_vm2, %v15186_v24, %v10619_v0 }
 0x552   :  { %v8393_v1 = vsel %vm6804_vm4, %v8377_v39, %v10624_v19 }
 0x553   :  { %v8425_v28 = vsel %vm6674_vm2, %v15259_v13, %v10654_v23  ;;  %v8424_v12 = vsel %vm6674_vm2, %v15251_v5, %v10653_v31 }
 0x554   :  { %v10667_v44 = vpop.permute.xlu0 %10666  ;;  %v15467_v51 = vpop.permute.xlu1 %10656  ;;  %9369 = vmatpush3.bf16.msra.mxu0 %v10826_v38  ;;  %v10618_v38 = vunpack.i.l.bf16 %v15433_v17 }
 0x555   :  { %v10669_v62 = vunpack.i.h.bf16 %v10667_v44  ;;  %v10668_v8 = vunpack.i.l.bf16 %v10667_v44  ;;  %9386 = vmatprep.subr.bf16.mxu0 %v15473_v9 }
 0x556   :  { %v8376_v17 = vsel %vm6674_vm2, %v15175_v6, %v10618_v38  ;;  %v8409_v6 = vsel %vm6934_vm6, %v8393_v1, %v10634_v37 }
 0x557   :  { %v8454_v3 = vsel %vm6934_vm6, %v8438_v55, %v10668_v8  ;;  %v8455_v59 = vsel %vm6934_vm6, %v8439_v32, %v10669_v62  ;;  %v8392_v54 = vsel %vm6804_vm4, %v8376_v17, %v10623_v10  ;;  %v10659_v10 = vunpack.i.h.bf16 %v15467_v51 }
 0x558   :  { %v10672_v56 = vpop.permute.xlu0 %10671  ;;  %v15482_v41 = vpop.permute.xlu1 %10661  ;;  %v8472_v16 = vpack.c.bf16 %v8455_v59, %v8454_v3  ;;  %v8408_v26 = vsel %vm6934_vm6, %v8392_v54, %v10633_v18  ;;  %v10594_v3 = vunpack.i.h.bf16 %v15421_v40  ;;  %v10593_v59 = vunpack.i.l.bf16 %v15421_v40 }
 0x559   :  { %v8474_v48 = vpack.c.bf16 %v8409_v6, %v8408_v26  ;;  %v10674_v38 = vunpack.i.h.bf16 %v10672_v56  ;;  %v10673_v19 = vunpack.i.l.bf16 %v10672_v56  ;;  %v10664_v26 = vunpack.i.h.bf16 %v15482_v41 }
 0x55a   :  { %8705 = vmatprep.mubr.bf16.mxu0 %v8472_v16  ;;  %v10599_v16 = vunpack.i.h.bf16 %v15425_v61  ;;  %v8378_v18 = vsel %vm6674_vm2, %v15237_v30, %v10593_v59  ;;  %v8379_v40 = vsel %vm6674_vm2, %v15144_v15, %v10594_v3  ;;  %v10663_v6 = vunpack.i.l.bf16 %v15482_v41 }
 0x55b   :  { %8706 = vmatmul.mubr.bf16.gmra.mrb[60].mxu0 %v8471_v22  ;;  %v10598_v22 = vunpack.i.l.bf16 %v15425_v61  ;;  %v8427_v56 = vsel %vm6674_vm2, %v15281_v29, %v10674_v38 }
 0x55c   :  { %v10687_v47 = vpop.permute.xlu0 %10686  ;;  %v15490_v21 = vpop.permute.xlu1 %10676  ;;  %v8395_v61 = vsel %vm6804_vm4, %v8379_v40, %v10599_v16 }
 0x55d   :  { %v10689_v34 = vunpack.i.h.bf16 %v10687_v47  ;;  %v10688_v50 = vunpack.i.l.bf16 %v10687_v47  ;;  %v10658_v47 = vunpack.i.l.bf16 %v15467_v51  ;;  %v8426_v51 = vsel %vm6674_vm2, %v15267_v35, %v10673_v19 }
 0x55e   :  { %v8411_v15 = vsel %vm6934_vm6, %v8395_v61, %v10659_v10 }
 0x55f   :  { %v8440_v11 = vsel %vm6804_vm4, %v8424_v12, %v10688_v50  ;;  %v8441_v24 = vsel %vm6804_vm4, %v8425_v28, %v10689_v34  ;;  %v8394_v34 = vsel %vm6804_vm4, %v8378_v18, %v10598_v22 }
 0x560   :  { %v10697_v52 = vpop.permute.xlu0 %10696  ;;  %v15508_v32 = vpop.permute.xlu1 %10681  ;;  %v8410_v1 = vsel %vm6934_vm6, %v8394_v34, %v10658_v47 }
 0x561   :  { %v10699_v60 = vunpack.i.h.bf16 %v10697_v52  ;;  %v10698_v44 = vunpack.i.l.bf16 %v10697_v52 }
 0x563   :  { %v8456_v62 = vsel %vm6934_vm6, %v8440_v11, %v10698_v44  ;;  %v8457_v8 = vsel %vm6934_vm6, %v8441_v24, %v10699_v60  ;;  %v8477_v44 = vpack.c.bf16 %v8411_v15, %v8410_v1  ;;  %v10644_v11 = vunpack.i.h.bf16 %v15458_v2 }
 0x564   :  { %v10707_v55 = vpop.permute.xlu0 %10706  ;;  %v8475_v43 = vpack.c.bf16 %v8457_v8, %v8456_v62  ;;  %v10692_v37 = vpop.permute.xlu1 %10691  ;;  %v10643_v24 = vunpack.i.l.bf16 %v15458_v2 }
 0x565   :  { %v10709_v23 = vunpack.i.h.bf16 %v10707_v55  ;;  %v10708_v31 = vunpack.i.l.bf16 %v10707_v55  ;;  %v8381_v22 = vsel %vm6674_vm2, %v15251_v5, %v10644_v11 }
 0x566   :  { %8713 = vmatprep.mubr.bf16.mxu0 %v8475_v43  ;;  %v10694_v43 = vunpack.i.h.bf16 %v10692_v37  ;;  %v8380_v38 = vsel %vm6674_vm2, %v15249_v4, %v10643_v24  ;;  %v8397_v19 = vsel %vm6804_vm4, %v8381_v22, %v10664_v26 }
 0x567   :  { %8714 = vmatmul.mubr.bf16.gmra.mrb[64].mxu0 %v8474_v48  ;;  %v8442_v54 = vsel %vm6804_vm4, %v8426_v51, %v10708_v31  ;;  %v8443_v30 = vsel %vm6804_vm4, %v8427_v56, %v10709_v23  ;;  %v10693_v48 = vunpack.i.l.bf16 %v10692_v37  ;;  %v8396_v2 = vsel %vm6804_vm4, %v8380_v38, %v10663_v6 }
 0x568   :  { %v10712_v0 = vpop.permute.xlu0 %10711  ;;  %v15532_v12 = vpop.permute.xlu1 %10701  ;;  %v8413_v4 = vsel %vm6934_vm6, %v8397_v19, %v10694_v43  ;;  %v10583_v43 = vunpack.i.l.bf16 %v15423_v33 }
 0x569   :  { %v10714_v8 = vunpack.i.h.bf16 %v10712_v0  ;;  %v10713_v55 = vunpack.i.l.bf16 %v10712_v0  ;;  %v8412_v37 = vsel %vm6934_vm6, %v8396_v2, %v10693_v48  ;;  %v10704_v22 = vunpack.i.h.bf16 %v15532_v12 }
 0x56a   :  { %v10703_v38 = vunpack.i.l.bf16 %v15532_v12 }
 0x56b   :  { %v8429_v41 = vsel %vm6674_vm2, %v15314_v42, %v10714_v8  ;;  %v8428_v0 = vsel %vm6674_vm2, %v15301_v49, %v10713_v55  ;;  %v10584_v55 = vunpack.i.h.bf16 %v15423_v33 }
 0x56c   :  { %v10727_v50 = vpop.permute.xlu0 %10726  ;;  %v10717_v3 = vpop.permute.xlu1 %10716 }
 0x56d   :  { %v10729_v39 = vunpack.i.h.bf16 %v10727_v50  ;;  %v10728_v17 = vunpack.i.l.bf16 %v10727_v50  ;;  %v8480_v50 = vpack.c.bf16 %v8413_v4, %v8412_v37  ;;  %v10719_v1 = vunpack.i.h.bf16 %v10717_v3 }
 0x56e   :  { %v10718_v15 = vunpack.i.l.bf16 %v10717_v3 }
 0x56f   :  { %v8458_v52 = vsel %vm6934_vm6, %v8442_v54, %v10728_v17  ;;  %v8459_v28 = vsel %vm6934_vm6, %v8443_v30, %v10729_v39  ;;  %v10679_v39 = vunpack.i.h.bf16 %v15490_v21  ;;  %v10678_v17 = vunpack.i.l.bf16 %v15490_v21 }
 0x570   :  { %v15534_v29 = vpop.permute.xlu0 %10731  ;;  %v8478_v60 = vpack.c.bf16 %v8459_v28, %v8458_v52  ;;  %v15556_v34 = vpop.permute.xlu1 %10721  ;;  %v10684_v54 = vunpack.i.h.bf16 %v15508_v32  ;;  %v10683_v30 = vunpack.i.l.bf16 %v15508_v32 }
 0x571   :  { %v10734_v28 = vunpack.i.h.bf16 %v15534_v29  ;;  %v8382_v11 = vsel %vm6674_vm2, %v15259_v13, %v10678_v17 }
 0x572   :  { %8721 = vmatprep.mubr.bf16.mxu0 %v8478_v60  ;;  %v10733_v60 = vunpack.i.l.bf16 %v15534_v29  ;;  %v8398_v21 = vsel %vm6804_vm4, %v8382_v11, %v10683_v30 }
 0x573   :  { %8722 = vmatmul.mubr.bf16.gmra.mrb[68].mxu0 %v8477_v44  ;;  %v8383_v44 = vsel %vm6674_vm2, %v15267_v35, %v10679_v39  ;;  %v8414_v48 = vsel %vm6934_vm6, %v8398_v21, %v10718_v15  ;;  %v8431_v13 = vsel %vm6674_vm2, %v15341_v20, %v10734_v28  ;;  %v8384_v39 = vsel %vm6674_vm2, %v15299_v7, %v10703_v38 }
 0x574   :  { %v10737_v62 = vpop.permute.xlu0 %10736  ;;  %v10767_v51 = vpop.permute.xlu1 %10766  ;;  %v8399_v6 = vsel %vm6804_vm4, %v8383_v44, %v10684_v54  ;;  %v8430_v3 = vsel %vm6674_vm2, %v15325_v58, %v10733_v60 }
 0x575   :  { %v10739_v59 = vunpack.i.h.bf16 %v10737_v62  ;;  %v10738_v16 = vunpack.i.l.bf16 %v10737_v62  ;;  %v8415_v35 = vsel %vm6934_vm6, %v8399_v6, %v10719_v1  ;;  %v10769_v37 = vunpack.i.h.bf16 %v10767_v51 }
 0x576   :  { %v10768_v4 = vunpack.i.l.bf16 %v10767_v51 }
 0x577   :  { %v8444_v31 = vsel %vm6804_vm4, %v8428_v0, %v10738_v16  ;;  %v8445_v5 = vsel %vm6804_vm4, %v8429_v41, %v10739_v59 }
 0x578   :  { %v10742_v10 = vpop.permute.xlu0 %10741  ;;  %v10772_v32 = vpop.permute.xlu1 %10771 }
 0x579   :  { %v10744_v47 = vunpack.i.h.bf16 %v10742_v10  ;;  %v10743_v23 = vunpack.i.l.bf16 %v10742_v10  ;;  %v10774_v28 = vunpack.i.h.bf16 %v10772_v32  ;;  %v10773_v60 = vunpack.i.l.bf16 %v10772_v32 }
 0x57b   :  { %v8460_v18 = vsel %vm6934_vm6, %v8444_v31, %v10743_v23  ;;  %v8461_v40 = vsel %vm6934_vm6, %v8445_v5, %v10744_v47  ;;  %v10724_v47 = vunpack.i.h.bf16 %v15556_v34  ;;  %v10723_v23 = vunpack.i.l.bf16 %v15556_v34 }
 0x57c   :  { %v8481_v61 = vpack.c.bf16 %v8461_v40, %v8460_v18  ;;  %v10747_v56 = vpop.permute.xlu0 %10746  ;;  %v8483_v5 = vpack.c.bf16 %v8415_v35, %v8414_v48  ;;  %v10782_v18 = vpop.permute.xlu1 %10781  ;;  %v8386_v32 = vsel %vm6674_vm2, %v15314_v42, %v10773_v60 }
 0x57d   :  { %v10749_v24 = vunpack.i.h.bf16 %v10747_v56  ;;  %v10748_v26 = vunpack.i.l.bf16 %v10747_v56  ;;  %v8385_v56 = vsel %vm6674_vm2, %v15301_v49, %v10704_v22  ;;  %v8400_v51 = vsel %vm6804_vm4, %v8384_v39, %v10723_v23  ;;  %v7972_v23 = vld [vmem:[#allocation4 + $0x70] sm:$0xff] }
 0x57e   :  { %8729 = vmatprep.mubr.bf16.mxu0 %v8481_v61  ;;  %v8401_v54 = vsel %vm6804_vm4, %v8385_v56, %v10724_v47  ;;  %v8416_v15 = vsel %vm6934_vm6, %v8400_v51, %v10768_v4  ;;  %v10784_v11 = vunpack.i.h.bf16 %v10782_v18  ;;  %v8476_v4 = vpack.c.bf16 %v15325_v58, %v15314_v42 }
 0x57f   :  { %8730 = vmatmul.mubr.bf16.gmra.mrb[72].mxu0 %v8480_v50  ;;  %v8446_v2 = vsel %vm6804_vm4, %v8430_v3, %v10748_v26  ;;  %v8447_v33 = vsel %vm6804_vm4, %v8431_v13, %v10749_v24  ;;  %v10783_v24 = vunpack.i.l.bf16 %v10782_v18  ;;  %v8479_v18 = vpack.c.bf16 %v15350_v45, %v15341_v20  ;;  %v10827_v45 = vld [vmem:[%s15742_s4] sm:$0xff]  }
 0x580   :  { %v10752_v52 = vpop.permute.xlu0 %10751  ;;  %v10797_v49 = vpop.permute.xlu1 %10796  ;;  %v8485_v42 = vpack.c.bf16 %v15408_v57, %v15395_v14  ;;  %v10829_v57 = vld [vmem:[%s15742_s4 + $0x10] sm:$0xff]  }
 0x581   :  { %v10754_v62 = vunpack.i.h.bf16 %v10752_v52  ;;  %v10753_v8 = vunpack.i.l.bf16 %v10752_v52  ;;  %v8417_v52 = vsel %vm6934_vm6, %v8401_v54, %v10769_v37  ;;  %v10799_v6 = vunpack.i.h.bf16 %v10797_v49 }
 0x582   :  { %v8486_v44 = vpack.c.bf16 %v8417_v52, %v8416_v15  ;;  %v8402_v13 = vsel %vm6804_vm4, %v8386_v32, %v10783_v24 }
 0x583   :  { %v8433_v19 = vsel %vm6674_vm2, %v15371_v53, %v10754_v62  ;;  %v8432_v10 = vsel %vm6674_vm2, %v15360_v36, %v10753_v8  ;;  %v10798_v62 = vunpack.i.l.bf16 %v10797_v49 }
 0x584   :  { %v8448_v50 = vsel %vm6804_vm4, %v8432_v10, %v10583_v43  ;;  %v8449_v36 = vsel %vm6804_vm4, %v8433_v19, %v10584_v55  ;;  %v8387_v43 = vsel %vm6674_vm2, %v15325_v58, %v10774_v28  ;;  %v7987_v58 = vld [vmem:[#allocation4 + $0x118] sm:$0xff] }
 0x585   :  { %v8403_v3 = vsel %vm6804_vm4, %v8387_v43, %v10784_v11  ;;  %v8491_v20 = vpack.c.bf16 %v7987_v58, %v15411_v63 }
 0x589   :  { %v10757_v29 = vpop.permute.xlu0 %10756 }
 0x58a   :  { %v10759_v59 = vunpack.i.h.bf16 %v10757_v29  ;;  %v10758_v16 = vunpack.i.l.bf16 %v10757_v29 }
 0x58c   :  { %v8462_v41 = vsel %vm6934_vm6, %v8446_v2, %v10758_v16  ;;  %v8463_v0 = vsel %vm6934_vm6, %v8447_v33, %v10759_v59  ;;  %v8418_v2 = vsel %vm6934_vm6, %v8402_v13, %v10798_v62  ;;  %v8419_v33 = vsel %vm6934_vm6, %v8403_v3, %v10799_v6 }
 0x58d   :  { %v10762_v31 = vpop.permute.xlu0 %10761  ;;  %v8484_v12 = vpack.c.bf16 %v8463_v0, %v8462_v41  ;;  %v7973_v41 = vld [vmem:[#allocation4 + $0x78] sm:$0xff]  ;;  %v8489_v47 = vpack.c.bf16 %v8419_v33, %v8418_v2 }
 0x58e   :  { %v10764_v40 = vunpack.i.h.bf16 %v10762_v31  ;;  %v10763_v61 = vunpack.i.l.bf16 %v10762_v31  ;;  %v8470_v31 = vpack.c.bf16 %v7973_v41, %v7972_v23 }
 0x58f   :  { %8737 = vmatprep.mubr.bf16.mxu0 %v8484_v12  ;;  %v7974_v12 = vld [vmem:[#allocation4 + $0x80] sm:$0xff] }
 0x590   :  { %8738 = vmatmul.mubr.bf16.gmra.mrb[76].mxu0 %v8483_v5  ;;  %v8464_v34 = vsel %vm6934_vm6, %v8448_v50, %v10763_v61  ;;  %v8465_v17 = vsel %vm6934_vm6, %v8449_v36, %v10764_v40  ;;  %v7975_v5 = vld [vmem:[#allocation4 + $0x88] sm:$0xff]  ;;  %v8482_v40 = vpack.c.bf16 %v15384_v46, %v15371_v53  ;;  %v8488_v61 = vpack.c.bf16 %v15403_v25, %v15397_v27  ;;  %v10828_v53 = vld [vmem:[%s15742_s4 + $0x8] sm:$0xff]  }
 0x591   :  { %v10777_v30 = vpop.permute.xlu0 %10776  ;;  %v8487_v1 = vpack.c.bf16 %v8465_v17, %v8464_v34  ;;  %v8473_v37 = vpack.c.bf16 %v7975_v5, %v7974_v12  ;;  %v10830_v36 = vld [vmem:[%s15742_s4 + $0x18] sm:$0xff]  }
 0x592   :  { %v10779_v29 = vunpack.i.h.bf16 %v10777_v30  ;;  %v10778_v48 = vunpack.i.l.bf16 %v10777_v30 }
 0x593   :  { %8745 = vmatprep.mubr.bf16.mxu0 %v8487_v1 }
 0x595   :  { %v10787_v7 = vpop.permute.xlu0 %10786 }
 0x596   :  { %v10789_v26 = vunpack.i.h.bf16 %v10787_v7  ;;  %v10788_v21 = vunpack.i.l.bf16 %v10787_v7 }
 0x598   :  { %v8435_v8 = vsel %vm6674_vm2, %v15395_v14, %v10789_v26  ;;  %v8434_v55 = vsel %vm6674_vm2, %v15384_v46, %v10788_v21  ;;  %8746 = vmatmul.mubr.bf16.gmra.mrb[80].mxu0 %v8486_v44 }
 0x599   :  { %v10792_v35 = vpop.permute.xlu0 %10791  ;;  %v8450_v22 = vsel %vm6804_vm4, %v8434_v55, %v10778_v48  ;;  %v8451_v38 = vsel %vm6804_vm4, %v8435_v8, %v10779_v29 }
 0x59a   :  { %v10794_v59 = vunpack.i.h.bf16 %v10792_v35  ;;  %v10793_v16 = vunpack.i.l.bf16 %v10792_v35 }
 0x59c   :  { %v8466_v19 = vsel %vm6934_vm6, %v8450_v22, %v10793_v16  ;;  %v8467_v10 = vsel %vm6934_vm6, %v8451_v38, %v10794_v59 }
 0x59d   :  { %v8490_v0 = vpack.c.bf16 %v8467_v10, %v8466_v19 }
 0x59f   :  { %8753 = vmatprep.mubr.bf16.mxu0 %v8490_v0 }
 0x5a0   :  { %8754 = vmatmul.mubr.bf16.gmra.mrb[84].mxu0 %v8489_v47 }
 0x5a1   :  { %9370 = vmatprep.mubr.msk.bf16.mxu0 %vm6674_vm2, %v8470_v31  ;;  %v15670_v31 = vld [vmem:[%s15738_s1 + $0xb] ss:$0 sm:$0xff] }
 0x5a8   :  { %9371 = vmatmul.mubr.msk.bf16.vlgmr.msra.gmra.mrb[88].mxu0 %vm6674_vm2, %v8473_v37 }
 0x5a9   :  { %9374 = vmatprep.mubr.msk.bf16.mxu0 %vm6674_vm2, %v8476_v4  ;;  %9387 = vmatpush3.bf16.msra.mxu0 %v10827_v45 }
 0x5aa   :  { %9388 = vmatprep.subr.bf16.mxu0 %v15473_v9 }
 0x5ad   :  { %9389 = vmatpush3.bf16.msra.mxu0 %v10828_v53 }
 0x5ae   :  { %9390 = vmatprep.subr.bf16.mxu0 %v15473_v9 }
 0x5b0   :  { %9375 = vmatmul.mubr.msk.bf16.gmra.mrb[92].mxu0 %vm6674_vm2, %v8479_v18 }
 0x5b1   :  { %9378 = vmatprep.mubr.msk.bf16.mxu0 %vm6674_vm2, %v8482_v40  ;;  %9391 = vmatpush3.bf16.msra.mxu0 %v10829_v57 }
 0x5b2   :  { %9392 = vmatprep.subr.bf16.mxu0 %v15473_v9 }
 0x5b5   :  { %9393 = vmatpush3.bf16.msra.mxu0 %v10830_v36 }
 0x5b6   :  { %9398 = vmatprep.subr.bf16.mxu0 %v15473_v9 }
 0x5b8   :  { %9379 = vmatmul.mubr.msk.bf16.gmra.mrb[96].mxu0 %vm6674_vm2, %v8485_v42 }
 0x5b9   :  { %9382 = vmatprep.mubr.msk.bf16.mxu0 %vm6674_vm2, %v8488_v61 }
 0x5c0   :  { %9383 = vmatmul.mubr.msk.bf16.gmra.mrb[100].mxu0 %vm6674_vm2, %v8491_v20 }
 0x5c1   :  { %9394 = vmatprep.mubr.msk.bf16.mxu0 %vm10870_vm8, %v15473_v9 }
 0x622   :  { %v9248_v46 = vpop.f32.mrb[56].mxu0 }
 0x623   :  { %v9249_v14 = vpop.f32.mrb[57].mxu0 }
 0x624   :  { %v9250_v27 = vadd.f32 %v9249_v14, %v9248_v46  ;;  %v9251_v25 = vpop.f32.mrb[58].mxu0 }
 0x625   :  { %v9252_v63 = vpop.f32.mrb[59].mxu0 }
 0x626   :  { %v9253_v50 = vadd.f32 %v9252_v63, %v9251_v25  ;;  %v8700_v37 = vadd.f32 %v9250_v27, %v15670_v31 }
 0x628   :  { %v8703_v58 = vadd.f32 %v9253_v50, %v15670_v31 }
 0x62e   :  { %v9254_v56 = vpop.f32.mrb[60].mxu0 }
 0x62f   :  { %v9255_v39 = vpop.f32.mrb[61].mxu0 }
 0x630   :  { %v9256_v34 = vadd.f32 %v9255_v39, %v9254_v56  ;;  %v9257_v17 = vpop.f32.mrb[62].mxu0 }
 0x631   :  { %v9258_v51 = vpop.f32.mrb[63].mxu0 }
 0x632   :  { %v9259_v54 = vadd.f32 %v9258_v51, %v9257_v17  ;;  %v8708_v12 = vadd.f32 %v9256_v34, %v15670_v31 }
 0x634   :  { %v8711_v40 = vadd.f32 %v9259_v54, %v15670_v31 }
 0x63a   :  { %v9260_v30 = vpop.f32.mrb[64].mxu0 }
 0x63b   :  { %v9261_v1 = vpop.f32.mrb[65].mxu0 }
 0x63c   :  { %v9262_v15 = vadd.f32 %v9261_v1, %v9260_v30  ;;  %v9263_v52 = vpop.f32.mrb[66].mxu0 }
 0x63d   :  { %v9264_v49 = vpop.f32.mrb[67].mxu0 }
 0x63e   :  { %v9265_v28 = vadd.f32 %v9264_v49, %v9263_v52  ;;  %v8716_v39 = vadd.f32 %v9262_v15, %v15670_v31 }
 0x640   :  { %v8719_v52 = vadd.f32 %v9265_v28, %v15670_v31 }
 0x646   :  { %v9266_v60 = vpop.f32.mrb[68].mxu0 }
 0x647   :  { %v9267_v7 = vpop.f32.mrb[69].mxu0 }
 0x648   :  { %v9268_v44 = vadd.f32 %v9267_v7, %v9266_v60  ;;  %v9269_v11 = vpop.f32.mrb[70].mxu0 }
 0x649   :  { %v9270_v24 = vpop.f32.mrb[71].mxu0 }
 0x64a   :  { %v9271_v26 = vadd.f32 %v9270_v24, %v9269_v11  ;;  %v8724_v57 = vadd.f32 %v9268_v44, %v15670_v31 }
 0x64c   :  { %v8727_v50 = vadd.f32 %v9271_v26, %v15670_v31 }
 0x652   :  { %v9272_v21 = vpop.f32.mrb[72].mxu0 }
 0x653   :  { %v9273_v6 = vpop.f32.mrb[73].mxu0 }
 0x654   :  { %v15655_v62 = vadd.f32 %v9273_v6, %v9272_v21  ;;  %v9275_v8 = vpop.f32.mrb[74].mxu0 }
 0x655   :  { %v9276_v55 = vpop.f32.mrb[75].mxu0 }
 0x656   :  { %v15657_v43 = vadd.f32 %v9276_v55, %v9275_v8  ;;  %v8732_v28 = vadd.f32 %v15655_v62, %v15670_v31 }
 0x663   :  { %v9278_v32 = vpop.f32.mrb[76].mxu0 }
 0x664   :  { %v9279_v29 = vpop.f32.mrb[77].mxu0 }
 0x665   :  { %v9280_v48 = vadd.f32 %v9279_v29, %v9278_v32  ;;  %v9281_v35 = vpop.f32.mrb[78].mxu0 }
 0x666   :  { %v9282_v13 = vpop.f32.mrb[79].mxu0 }
 0x667   :  { %v9283_v3 = vadd.f32 %v9282_v13, %v9281_v35  ;;  %v8740_v26 = vadd.f32 %v9280_v48, %v15670_v31 }
 0x66b   :  { %v9284_v59 = vpop.f32.mrb[80].mxu0 }
 0x66c   :  { %v9285_v16 = vpop.f32.mrb[81].mxu0 }
 0x66d   :  { %v15659_v22 = vadd.f32 %v9285_v16, %v9284_v59  ;;  %v9287_v38 = vpop.f32.mrb[82].mxu0 }
 0x66e   :  { %v9288_v2 = vpop.f32.mrb[83].mxu0 }
 0x66f   :  { %v15661_v33 = vadd.f32 %v9288_v2, %v9287_v38  ;;  %v8743_v38 = vadd.f32 %v9283_v3, %v15670_v31 }
 0x673   :  { %v9290_v19 = vpop.f32.mrb[84].mxu0 }
 0x674   :  { %v9291_v10 = vpop.f32.mrb[85].mxu0 }
 0x675   :  { %v15663_v41 = vadd.f32 %v9291_v10, %v9290_v19  ;;  %v9293_v0 = vpop.f32.mrb[86].mxu0 }
 0x676   :  { %v9294_v47 = vpop.f32.mrb[87].mxu0 }
 0x677   :  { %v15665_v23 = vadd.f32 %v9294_v47, %v9293_v0  ;;  %v8735_v0 = vadd.f32 %v15657_v43, %v15670_v31 }
 0x67b   :  { %v9372_v5 = vpop.f32.mrb[88].mxu0 }
 0x67c   :  { %v8805_v4 = vadd.f32 %v9372_v5, %v8708_v12  ;;  %v8796_v18 = vpop.f32.mrb[89].mxu0 }
 0x67d   :  { %v8797_v61 = vadd.f32 %v8796_v18, %v8700_v37  ;;  %v9373_v42 = vpop.f32.mrb[90].mxu0 }
 0x67e   :  { %v8808_v20 = vadd.f32 %v9373_v42, %v8711_v40  ;;  %v8799_v45 = vpop.f32.mrb[91].mxu0  ;;  %v8861_v14 = vmax.f32 %v8805_v4, 0.0  ;;  %v8756_v42 = vadd.f32 %v15663_v41, %v15670_v31  ;;  %v8751_v41 = vadd.f32 %v15661_v33, %v15670_v31 }
 0x67f   :  { %v8859_v53 = vmax.f32 %v8797_v61, 0.0  ;;  %v8800_v46 = vadd.f32 %v8799_v45, %v8703_v58  ;;  %v8748_v45 = vadd.f32 %v15659_v22, %v15670_v31 }
 0x680   :  { %v8862_v36 = vmax.f32 %v8808_v20, 0.0  ;;  %v8878_v54 = vsel %vm6804_vm4, %v8861_v14, 0.0 }
 0x681   :  { %v8860_v25 = vmax.f32 %v8800_v46, 0.0  ;;  %v8875_v63 = vsel %vm6804_vm4, %v8859_v53, 0.0 }
 0x682   :  { %v8880_v44 = vsel %vm6804_vm4, %v8862_v36, 0.0 }
 0x683   :  { %v8876_v27 = vsel %vm6804_vm4, %v8860_v25, 0.0  ;;  %v9376_v56 = vpop.f32.mrb[92].mxu0  ;;  %v8759_v25 = vadd.f32 %v15665_v23, %v15670_v31 }
 0x684   :  { %v8877_v34 = vadd.f32 %v8876_v27, %v8875_v63  ;;  %v8821_v17 = vadd.f32 %v9376_v56, %v8724_v57  ;;  %v8812_v51 = vpop.f32.mrb[93].mxu0 }
 0x685   :  { %v8813_v30 = vadd.f32 %v8812_v51, %v8716_v39  ;;  %v9377_v1 = vpop.f32.mrb[94].mxu0 }
 0x686   :  { %v8879_v49 = vadd.f32 %v8878_v54, %v8877_v34  ;;  %v8824_v60 = vadd.f32 %v9377_v1, %v8727_v50  ;;  %v8815_v7 = vpop.f32.mrb[95].mxu0  ;;  %v8865_v15 = vmax.f32 %v8821_v17, 0.0 }
 0x687   :  { %v8863_v11 = vmax.f32 %v8813_v30, 0.0  ;;  %v8816_v24 = vadd.f32 %v8815_v7, %v8719_v52 }
 0x688   :  { %v8881_v21 = vadd.f32 %v8880_v44, %v8879_v49  ;;  %v8866_v32 = vmax.f32 %v8824_v60, 0.0  ;;  %v8886_v2 = vsel %vm6804_vm4, %v8865_v15, 0.0  ;;  %v10833_v15 = vld [vmem:[%s15742_s4 + $0x30] sm:$0xff]  }
 0x689   :  { %v8882_v6 = vsel %vm6804_vm4, %v8863_v11, 0.0  ;;  %v8864_v8 = vmax.f32 %v8816_v24, 0.0  ;;  %v10831_v11 = vld [vmem:[%s15742_s4 + $0x20] sm:$0xff]  }
 0x68a   :  { %v8883_v55 = vadd.f32 %v8882_v6, %v8881_v21  ;;  %v8888_v5 = vsel %vm6804_vm4, %v8866_v32, 0.0  ;;  %v10832_v21 = vld [vmem:[%s15742_s4 + $0x28] sm:$0xff]   ;;  %v10834_v6 = vld [vmem:[%s15742_s4 + $0x38] sm:$0xff]  }
 0x68b   :  { %v8884_v29 = vsel %vm6804_vm4, %v8864_v8, 0.0  ;;  %v9380_v35 = vpop.f32.mrb[96].mxu0  ;;  %v9187_v8 = vld [vmem:[%s15738_s1 + $0xc] ss:$0 sm:$0xff] }
 0x68c   :  { %v8885_v13 = vadd.f32 %v8884_v29, %v8883_v55  ;;  %v8837_v59 = vadd.f32 %v9380_v35, %v8740_v26  ;;  %v8828_v16 = vpop.f32.mrb[97].mxu0 }
 0x68d   :  { %v8829_v19 = vadd.f32 %v8828_v16, %v8732_v28  ;;  %v9381_v10 = vpop.f32.mrb[98].mxu0 }
 0x68e   :  { %v8887_v48 = vadd.f32 %v8886_v2, %v8885_v13  ;;  %v8840_v47 = vadd.f32 %v9381_v10, %v8743_v38  ;;  %v8831_v12 = vpop.f32.mrb[99].mxu0  ;;  %v8869_v18 = vmax.f32 %v8837_v59, 0.0  ;;  %v9193_v59 = vld [vmem:[%s15738_s1 + $0xd] ss:$0 sm:$0xff] }
 0x68f   :  { %v8867_v37 = vmax.f32 %v8829_v19, 0.0  ;;  %v8832_v4 = vadd.f32 %v8831_v12, %v8735_v0 }
 0x690   :  { %v8889_v62 = vadd.f32 %v8888_v5, %v8887_v48  ;;  %v8870_v58 = vmax.f32 %v8840_v47, 0.0  ;;  %v8894_v57 = vsel %vm6804_vm4, %v8869_v18, 0.0 }
 0x691   :  { %v8890_v40 = vsel %vm6804_vm4, %v8867_v37, 0.0  ;;  %v8868_v61 = vmax.f32 %v8832_v4, 0.0 }
 0x692   :  { %v8891_v3 = vadd.f32 %v8890_v40, %v8889_v62  ;;  %v8896_v34 = vsel %vm6804_vm4, %v8870_v58, 0.0 }
 0x693   :  { %v8892_v20 = vsel %vm6804_vm4, %v8868_v61, 0.0  ;;  %v9384_v43 = vpop.f32.mrb[100].mxu0 }
 0x694   :  { %v8893_v53 = vadd.f32 %v8892_v20, %v8891_v3  ;;  %v8853_v46 = vadd.f32 %v9384_v43, %v8756_v42  ;;  %v8844_v14 = vpop.f32.mrb[101].mxu0 }
 0x695   :  { %v8845_v63 = vadd.f32 %v8844_v14, %v8748_v45  ;;  %v9385_v36 = vpop.f32.mrb[102].mxu0 }
 0x696   :  { %v8895_v27 = vadd.f32 %v8894_v57, %v8893_v53  ;;  %v8856_v56 = vadd.f32 %v9385_v36, %v8759_v25  ;;  %v8847_v39 = vpop.f32.mrb[103].mxu0  ;;  %v8873_v50 = vmax.f32 %v8853_v46, 0.0 }
 0x697   :  { %v8871_v17 = vmax.f32 %v8845_v63, 0.0  ;;  %v8848_v22 = vadd.f32 %v8847_v39, %v8751_v41 }
 0x698   :  { %v8897_v51 = vadd.f32 %v8896_v34, %v8895_v27  ;;  %v8874_v1 = vmax.f32 %v8856_v56, 0.0  ;;  %v8902_v60 = vsel %vm6804_vm4, %v8873_v50, 0.0 }
 0x699   :  { %v8898_v54 = vsel %vm6804_vm4, %v8871_v17, 0.0  ;;  %v8872_v30 = vmax.f32 %v8848_v22, 0.0 }
 0x69a   :  { %v8899_v23 = vadd.f32 %v8898_v54, %v8897_v51  ;;  %v8904_v31 = vsel %vm6804_vm4, %v8874_v1, 0.0 }
 0x69b   :  { %v8900_v52 = vsel %vm6804_vm4, %v8872_v30, 0.0 }
 0x69c   :  { %v8901_v49 = vadd.f32 %v8900_v52, %v8899_v23 }
 0x69e   :  { %v8903_v33 = vadd.f32 %v8902_v60, %v8901_v49 }
 0x6a0   :  { %v8905_v7 = vadd.f32 %v8904_v31, %v8903_v33 }
 0x6a2   :  { %v8907_v44 = vmul.f32 0.0625, %v8905_v7 }
 0x6a4   :  { %v8908_v24 = vpack.c.bf16 %v8907_v44, %v8907_v44 }
 0x6a6   :  { %9395 = vmatmul.mubr.msk.bf16.vlgmr.msra.gmra.mrb[104].mxu0 %vm6804_vm4, %v8908_v24 }
 0x6a7   :  { %9399 = vmatpush3.bf16.msra.mxu0 %v10831_v11  ;;  %9406 = vmatprep.mubr.msk.bf16.mxu0 %vm10870_vm8, %v15473_v9 }
 0x6a8   :  { %9400 = vmatprep.subr.bf16.mxu0 %v15473_v9 }
 0x6ab   :  { %9401 = vmatpush3.bf16.msra.mxu0 %v10832_v21 }
 0x6ac   :  { %9402 = vmatprep.subr.bf16.mxu0 %v15473_v9 }
 0x6af   :  { %9403 = vmatpush3.bf16.msra.mxu0 %v10833_v15 }
 0x6b0   :  { %9404 = vmatprep.subr.bf16.mxu0 %v15473_v9 }
 0x6b3   :  { %9405 = vmatpush3.bf16.msra.mxu0 %v10834_v6 }
 0x779   :  { %v8983_v55 = vpop.f32.mrb[104].mxu0 }
 0x77a   :  { %v8984_v26 = vadd.f32 %v9187_v8, %v8983_v55  ;;  %v9396_v32 = vpop.f32.mrb[105].mxu0 }
 0x77b   :  { %v8986_v29 = vpop.f32.mrb[106].mxu0 }
 0x77c   :  { %v8989_v35 = vmax.f32 %v8984_v26, 0.0  ;;  %v9397_v28 = vpop.f32.mrb[107].mxu0 }
 0x77e   :  { %v8990_v13 = vpack.c.bf16 %v8989_v35, %v8989_v35 }
 0x780   :  { %9407 = vmatmul.mubr.msk.bf16.vlgmr.msra.gmra.mrb[108].mxu0 %vm6804_vm4, %v8990_v13 }
 0x853   :  { %v9065_v16 = vpop.f32.mrb[108].mxu0 }
 0x854   :  { %v9066_v9 = vadd.f32 %v9193_v59, %v9065_v16  ;;  %v9408_v38 = vpop.f32.mrb[109].mxu0 }
 0x855   :  { %v9068_v2 = vpop.f32.mrb[110].mxu0 }
 0x856   :  { %9071 = vst [vmem:[%s15743_s5] sm:$0xff] %v9066_v9  ;;  %v9409_v19 = vpop.f32.mrb[111].mxu0 }

</bundles_post_ra>
